<compile_context>
chip_gen: v7x
topology: tpu7x:2x2x1
jax: 0.10.0
libtpu: 0.0.40
codegen_flags: <defaults>
</compile_context>

<pallas_src>
import jax
import jax.numpy as jnp
from jax.experimental import pallas as pl
from jax.experimental.pallas import tpu as pltpu

H1, H2, H3 = 512, 128, 32      # hidden widths from the PyTorch module
LANE = 128                     # TPU lane width
H3P = 128                      # 32 padded to lane-dense width
MAX_TB = 1024                  # batch tile cap (multiple of 128)
VMEM_LIMIT = 32 * 1024 * 1024  # safe on v5e/v6e/v7x
VMEM_BUDGET = 24 * 1024 * 1024 # leave headroom under VMEM_LIMIT


def _round_up(n, m):
    return ((n + m - 1) // m) * m


def _pad2(a, rows, cols):
    return jnp.pad(a, ((0, rows - a.shape[0]), (0, cols - a.shape[1])))


def prepare_params(params):
    """One-time weight prep: lane-dense padding of the narrow layers (zero
    padding is inert through matmul + ReLU) and bf16 cast for the MXU.
    Hoisted out of the per-call forward path."""
    out_size = params["w4"].shape[1]
    o_pad = _round_up(out_size, LANE)
    return {
        "w1": params["w1"].astype(jnp.bfloat16),
        "b1": params["b1"].astype(jnp.float32),
        "w2": params["w2"].astype(jnp.bfloat16),
        "b2": params["b2"].astype(jnp.float32),
        "w3": _pad2(params["w3"], H2, H3P).astype(jnp.bfloat16),
        "b3": _pad2(params["b3"], 1, H3P).astype(jnp.float32),
        "w4": _pad2(params["w4"], H3P, o_pad).astype(jnp.bfloat16),
        "b4": _pad2(params["b4"], 1, o_pad).astype(jnp.float32),
        "out_size": out_size,
        "o_pad": o_pad,
    }


def _mlp_kernel(x_ref,
                w1_ref, b1_ref,
                w2_ref, b2_ref,
                w3_ref, b3_ref,
                w4_ref, b4_ref,
                o_ref):
    # Four linear layers + ReLUs fused; one batch tile per grid step.
    # bf16 MXU operands, f32 accumulation, f32 bias-add / ReLU.
    x = x_ref[...].astype(jnp.bfloat16)
    h = jnp.dot(x, w1_ref[...], preferred_element_type=jnp.float32) + b1_ref[...]
    h = jnp.maximum(h, 0.0)
    h = jnp.dot(h.astype(jnp.bfloat16), w2_ref[...],
                preferred_element_type=jnp.float32) + b2_ref[...]
    h = jnp.maximum(h, 0.0)
    h = jnp.dot(h.astype(jnp.bfloat16), w3_ref[...],
                preferred_element_type=jnp.float32) + b3_ref[...]
    h = jnp.maximum(h, 0.0)
    out = jnp.dot(h.astype(jnp.bfloat16), w4_ref[...],
                  preferred_element_type=jnp.float32) + b4_ref[...]
    o_ref[...] = out.astype(o_ref.dtype)


def _vmem_estimate(TB, F, o_pad):
    x_tile = TB * F * 4 * 2                                       # f32, 2 bufs
    weights = (F * H1 + H1 * H2 + H2 * H3P + H3P * o_pad) * 2     # bf16, 1 buf
    biases = (H1 + H2 + H3P + o_pad) * 4
    out_tile = TB * o_pad * 4 * 2                                 # f32, 2 bufs
    interm = TB * H1 * 4 + TB * H1 * 2                            # layer-1 acts
    return x_tile + weights + biases + out_tile + interm


def _choose_tb(B, F, o_pad):
    TB = min(MAX_TB, _round_up(B, LANE))
    # Ensure >= 2 batch tiles when B > 128: lets v7x's two TensorCores split
    # the batch (weights stay resident) and re-enables x-tile pipelining.
    if B > LANE and TB > LANE and pl.cdiv(B, TB) == 1:
        TB = max(LANE, _round_up(pl.cdiv(B, 2), LANE))
    # VMEM guard: shrink TB until the estimated footprint fits the budget.
    while TB > LANE and _vmem_estimate(TB, F, o_pad) > VMEM_BUDGET:
        TB = max(LANE, _round_up(TB // 2, LANE))
    # TODO(synk): for very large input_size the w1 block + x tile may not fit
    # VMEM even at TB=128; that case needs a K-split grid axis over F with an
    # f32 accumulator scratch (marked "arbitrary").
    return TB


def logistic_regression_forward(x, prep):
    """x: (B, ...) float array; prep: output of prepare_params()."""
    if x.ndim > 2:
        x = x.reshape(x.shape[0], -1)          # torch.flatten(x, start_dim=1)
    x = x.astype(jnp.float32)
    B, F = x.shape
    out_size = prep["out_size"]
    o_pad = prep["o_pad"]
    if B == 0:
        return jnp.zeros((0, out_size), jnp.float32)

    TB = _choose_tb(B, F, o_pad)
    grid = (pl.cdiv(B, TB),)                   # ragged last block handled by Pallas

    flops = 2 * B * (F * H1 + H1 * H2 + H2 * H3P + H3P * o_pad)
    bytes_accessed = (4 * x.size + 4 * B * o_pad
                      + 2 * (prep["w1"].size + prep["w2"].size
                             + prep["w3"].size + prep["w4"].size)
                      + 4 * (prep["b1"].size + prep["b2"].size
                             + prep["b3"].size + prep["b4"].size))

    def call(single_buffer_weights):
        if single_buffer_weights:
            # Constant index_map + single buffer: loaded once, resident in VMEM.
            def resident(shape):
                return pl.BlockSpec(shape, lambda i: (0, 0),
                                    pipeline_mode=pl.Buffered(1))
        else:
            def resident(shape):
                return pl.BlockSpec(shape, lambda i: (0, 0))

        return pl.pallas_call(
            _mlp_kernel,
            out_shape=jax.ShapeDtypeStruct((B, o_pad), jnp.float32),
            grid=grid,
            in_specs=[
                pl.BlockSpec((TB, F), lambda i: (i, 0)),   # streamed batch tile
                resident((F, H1)),   resident((1, H1)),
                resident((H1, H2)),  resident((1, H2)),
                resident((H2, H3P)), resident((1, H3P)),
                resident((H3P, o_pad)), resident((1, o_pad)),
            ],
            out_specs=pl.BlockSpec((TB, o_pad), lambda i: (i, 0)),
            compiler_params=pltpu.CompilerParams(
                dimension_semantics=("parallel",),
                vmem_limit_bytes=VMEM_LIMIT,
            ),
            cost_estimate=pl.CostEstimate(
                flops=flops, transcendentals=0, bytes_accessed=bytes_accessed),
        )(x, prep["w1"], prep["b1"], prep["w2"], prep["b2"],
          prep["w3"], prep["b3"], prep["w4"], prep["b4"])

    try:
        out = call(True)         # single-buffered resident weights (saves VMEM)
    except Exception:            # fallback if this JAX build rejects Buffered(1)
        out = call(False)
    return out[:, :out_size]


def init_params(key, input_size, output_size):
    """Deterministic synthetic parameters (shapes match the PyTorch module)."""
    sizes = [(input_size, H1), (H1, H2), (H2, H3), (H3, output_size)]
    params = {}
    for i, (fin, fout) in enumerate(sizes, start=1):
        key, kw, kb = jax.random.split(key, 3)
        bound = 1.0 / (fin ** 0.5)   # same scale as nn.Linear default init
        params[f"w{i}"] = jax.random.uniform(
            kw, (fin, fout), jnp.float32, minval=-bound, maxval=bound)
        params[f"b{i}"] = jax.random.uniform(
            kb, (1, fout), jnp.float32, minval=-bound, maxval=bound)
    return params


def _reference_forward_f32(x, params):
    if x.ndim > 2:
        x = x.reshape(x.shape[0], -1)
    h = jnp.maximum(x @ params["w1"] + params["b1"], 0.0)
    h = jnp.maximum(h @ params["w2"] + params["b2"], 0.0)
    h = jnp.maximum(h @ params["w3"] + params["b3"], 0.0)
    return h @ params["w4"] + params["b4"]


def _reference_forward_bf16(x, params):
    # Same bf16-operand / f32-accumulate math as the kernel, in plain JAX.
    if x.ndim > 2:
        x = x.reshape(x.shape[0], -1)
    h = x.astype(jnp.float32)
    for i in range(1, 5):
        w = params[f"w{i}"].astype(jnp.bfloat16)
        h = jnp.dot(h.astype(jnp.bfloat16), w,
                    preferred_element_type=jnp.float32) + params[f"b{i}"]
        if i < 4:
            h = jnp.maximum(h, 0.0)
    return h


if __name__ == "__main__":
    key = jax.random.PRNGKey(0)
    kx, kp = jax.random.split(key)

    # Example input consistent with the module: batch=2, channels=4, 16x16
    # spatial -> flattened input_size = 1024; binary-classification output = 2.
    B, C, Himg, Wimg = 2, 4, 16, 16
    input_size = C * Himg * Wimg
    output_size = 2

    x = jax.random.normal(kx, (B, C, Himg, Wimg), jnp.float32)
    params = init_params(kp, input_size, output_size)
    prep = prepare_params(params)          # done once, outside the forward path

    out = logistic_regression_forward(x, prep)
    out = jax.block_until_ready(out)

    assert out.shape == (B, output_size)
    ref_bf16 = _reference_forward_bf16(x, params)
    ref_f32 = _reference_forward_f32(x, params)
    assert jnp.allclose(out, ref_bf16, atol=2e-3, rtol=2e-3)
    assert jnp.allclose(out, ref_f32, atol=5e-2, rtol=5e-2)

    print("KERNEL_OK")
</pallas_src>

<mosaic_0001>
module attributes {stable_mosaic.version = 11 : i64} {
  func.func @_mlp_kernel(%arg0: i32, %arg1: memref<128x1024xf32, #tpu.memory_space<vmem>>, %arg2: memref<1024x512xbf16, #tpu.memory_space<vmem>>, %arg3: memref<1x512xf32, #tpu.memory_space<vmem>>, %arg4: memref<512x128xbf16, #tpu.memory_space<vmem>>, %arg5: memref<1x128xf32, #tpu.memory_space<vmem>>, %arg6: memref<128x128xbf16, #tpu.memory_space<vmem>>, %arg7: memref<1x128xf32, #tpu.memory_space<vmem>>, %arg8: memref<128x128xbf16, #tpu.memory_space<vmem>>, %arg9: memref<1x128xf32, #tpu.memory_space<vmem>>, %arg10: memref<128x128xf32, #tpu.memory_space<vmem>>) attributes {dimension_semantics = [#tpu.dimension_semantics<parallel>], iteration_bounds = array<i64: 1>, scalar_prefetch = 0 : i64, scratch_operands = 0 : i64, tpu.core_type = #tpu.core_type<tc>, window_params = [{transform_indices = @transform_0, window_bounds = array<i64: 128, 1024>}, {pipeline_mode = #tpu.pipeline_mode<synchronous>, transform_indices = @transform_1, window_bounds = array<i64: 1024, 512>}, {pipeline_mode = #tpu.pipeline_mode<synchronous>, transform_indices = @transform_2, window_bounds = array<i64: 1, 512>}, {pipeline_mode = #tpu.pipeline_mode<synchronous>, transform_indices = @transform_3, window_bounds = array<i64: 512, 128>}, {pipeline_mode = #tpu.pipeline_mode<synchronous>, transform_indices = @transform_4, window_bounds = array<i64: 1, 128>}, {pipeline_mode = #tpu.pipeline_mode<synchronous>, transform_indices = @transform_5, window_bounds = array<i64: 128, 128>}, {pipeline_mode = #tpu.pipeline_mode<synchronous>, transform_indices = @transform_6, window_bounds = array<i64: 1, 128>}, {pipeline_mode = #tpu.pipeline_mode<synchronous>, transform_indices = @transform_7, window_bounds = array<i64: 128, 128>}, {pipeline_mode = #tpu.pipeline_mode<synchronous>, transform_indices = @transform_8, window_bounds = array<i64: 1, 128>}, {transform_indices = @transform_9, window_bounds = array<i64: 128, 128>}]} {
    %c0 = arith.constant 0 : index
    %c0_0 = arith.constant 0 : index
    %0 = vector.load %arg1[%c0, %c0_0] : memref<128x1024xf32, #tpu.memory_space<vmem>>, vector<128x1024xf32>
    %1 = arith.truncf %0 : vector<128x1024xf32> to vector<128x1024xbf16>
    %c0_1 = arith.constant 0 : index
    %c0_2 = arith.constant 0 : index
    %2 = vector.load %arg2[%c0_1, %c0_2] : memref<1024x512xbf16, #tpu.memory_space<vmem>>, vector<1024x512xbf16>
    %cst = arith.constant dense<0.000000e+00> : vector<128x512xf32>
    %3 = tpu.matmul %1, %2, %cst {dimension_numbers = #tpu.dot_dimension_numbers<[1], [0], [0], [1], [0, 0, 1, 1], [], []>} : vector<128x1024xbf16>, vector<1024x512xbf16>, vector<128x512xf32> -> vector<128x512xf32>
    %c0_3 = arith.constant 0 : index
    %c0_4 = arith.constant 0 : index
    %4 = vector.load %arg3[%c0_3, %c0_4] : memref<1x512xf32, #tpu.memory_space<vmem>>, vector<1x512xf32>
    %5 = vector.broadcast %4 : vector<1x512xf32> to vector<128x512xf32>
    %6 = arith.addf %3, %5 : vector<128x512xf32>
    %cst_5 = arith.constant 0.000000e+00 : f32
    %7 = vector.broadcast %cst_5 : f32 to vector<128x512xf32>
    %8 = arith.maximumf %6, %7 : vector<128x512xf32>
    %9 = arith.truncf %8 : vector<128x512xf32> to vector<128x512xbf16>
    %c0_6 = arith.constant 0 : index
    %c0_7 = arith.constant 0 : index
    %10 = vector.load %arg4[%c0_6, %c0_7] : memref<512x128xbf16, #tpu.memory_space<vmem>>, vector<512x128xbf16>
    %cst_8 = arith.constant dense<0.000000e+00> : vector<128x128xf32>
    %11 = tpu.matmul %9, %10, %cst_8 {dimension_numbers = #tpu.dot_dimension_numbers<[1], [0], [0], [1], [0, 0, 1, 1], [], []>} : vector<128x512xbf16>, vector<512x128xbf16>, vector<128x128xf32> -> vector<128x128xf32>
    %c0_9 = arith.constant 0 : index
    %c0_10 = arith.constant 0 : index
    %12 = vector.load %arg5[%c0_9, %c0_10] : memref<1x128xf32, #tpu.memory_space<vmem>>, vector<1x128xf32>
    %13 = vector.broadcast %12 : vector<1x128xf32> to vector<128x128xf32>
    %14 = arith.addf %11, %13 : vector<128x128xf32>
    %cst_11 = arith.constant 0.000000e+00 : f32
    %15 = vector.broadcast %cst_11 : f32 to vector<128x128xf32>
    %16 = arith.maximumf %14, %15 : vector<128x128xf32>
    %17 = arith.truncf %16 : vector<128x128xf32> to vector<128x128xbf16>
    %c0_12 = arith.constant 0 : index
    %c0_13 = arith.constant 0 : index
    %18 = vector.load %arg6[%c0_12, %c0_13] : memref<128x128xbf16, #tpu.memory_space<vmem>>, vector<128x128xbf16>
    %cst_14 = arith.constant dense<0.000000e+00> : vector<128x128xf32>
    %19 = tpu.matmul %17, %18, %cst_14 {dimension_numbers = #tpu.dot_dimension_numbers<[1], [0], [0], [1], [0, 0, 1, 1], [], []>} : vector<128x128xbf16>, vector<128x128xbf16>, vector<128x128xf32> -> vector<128x128xf32>
    %c0_15 = arith.constant 0 : index
    %c0_16 = arith.constant 0 : index
    %20 = vector.load %arg7[%c0_15, %c0_16] : memref<1x128xf32, #tpu.memory_space<vmem>>, vector<1x128xf32>
    %21 = vector.broadcast %20 : vector<1x128xf32> to vector<128x128xf32>
    %22 = arith.addf %19, %21 : vector<128x128xf32>
    %cst_17 = arith.constant 0.000000e+00 : f32
    %23 = vector.broadcast %cst_17 : f32 to vector<128x128xf32>
    %24 = arith.maximumf %22, %23 : vector<128x128xf32>
    %25 = arith.truncf %24 : vector<128x128xf32> to vector<128x128xbf16>
    %c0_18 = arith.constant 0 : index
    %c0_19 = arith.constant 0 : index
    %26 = vector.load %arg8[%c0_18, %c0_19] : memref<128x128xbf16, #tpu.memory_space<vmem>>, vector<128x128xbf16>
    %cst_20 = arith.constant dense<0.000000e+00> : vector<128x128xf32>
    %27 = tpu.matmul %25, %26, %cst_20 {dimension_numbers = #tpu.dot_dimension_numbers<[1], [0], [0], [1], [0, 0, 1, 1], [], []>} : vector<128x128xbf16>, vector<128x128xbf16>, vector<128x128xf32> -> vector<128x128xf32>
    %c0_21 = arith.constant 0 : index
    %c0_22 = arith.constant 0 : index
    %28 = vector.load %arg9[%c0_21, %c0_22] : memref<1x128xf32, #tpu.memory_space<vmem>>, vector<1x128xf32>
    %29 = vector.broadcast %28 : vector<1x128xf32> to vector<128x128xf32>
    %30 = arith.addf %27, %29 : vector<128x128xf32>
    %c0_23 = arith.constant 0 : index
    %c0_24 = arith.constant 0 : index
    %31 = vector.load %arg10[%c0_23, %c0_24] : memref<128x128xf32, #tpu.memory_space<vmem>>, vector<128x128xf32>
    tpu.vector_store %arg10[%c0_23, %c0_24], %30 {strides = array<i32>} : memref<128x128xf32, #tpu.memory_space<vmem>>, vector<128x128xf32>,
    return
  }
  func.func @transform_0(%arg0: i32) -> (i32, i32) {
    %c0_i32 = arith.constant 0 : i32
    %c0_i32_0 = arith.constant 0 : i32
    return %arg0, %c0_i32 : i32, i32
  }
  func.func @transform_1(%arg0: i32) -> (i32, i32) {
    %c0_i32 = arith.constant 0 : i32
    %c0_i32_0 = arith.constant 0 : i32
    %c0_i32_1 = arith.constant 0 : i32
    return %c0_i32, %c0_i32_0 : i32, i32
  }
  func.func @transform_2(%arg0: i32) -> (i32, i32) {
    %c0_i32 = arith.constant 0 : i32
    %c0_i32_0 = arith.constant 0 : i32
    %c0_i32_1 = arith.constant 0 : i32
    return %c0_i32, %c0_i32_0 : i32, i32
  }
  func.func @transform_3(%arg0: i32) -> (i32, i32) {
    %c0_i32 = arith.constant 0 : i32
    %c0_i32_0 = arith.constant 0 : i32
    %c0_i32_1 = arith.constant 0 : i32
    return %c0_i32, %c0_i32_0 : i32, i32
  }
  func.func @transform_4(%arg0: i32) -> (i32, i32) {
    %c0_i32 = arith.constant 0 : i32
    %c0_i32_0 = arith.constant 0 : i32
    %c0_i32_1 = arith.constant 0 : i32
    return %c0_i32, %c0_i32_0 : i32, i32
  }
  func.func @transform_5(%arg0: i32) -> (i32, i32) {
    %c0_i32 = arith.constant 0 : i32
    %c0_i32_0 = arith.constant 0 : i32
    %c0_i32_1 = arith.constant 0 : i32
    return %c0_i32, %c0_i32_0 : i32, i32
  }
  func.func @transform_6(%arg0: i32) -> (i32, i32) {
    %c0_i32 = arith.constant 0 : i32
    %c0_i32_0 = arith.constant 0 : i32
    %c0_i32_1 = arith.constant 0 : i32
    return %c0_i32, %c0_i32_0 : i32, i32
  }
  func.func @transform_7(%arg0: i32) -> (i32, i32) {
    %c0_i32 = arith.constant 0 : i32
    %c0_i32_0 = arith.constant 0 : i32
    %c0_i32_1 = arith.constant 0 : i32
    return %c0_i32, %c0_i32_0 : i32, i32
  }
  func.func @transform_8(%arg0: i32) -> (i32, i32) {
    %c0_i32 = arith.constant 0 : i32
    %c0_i32_0 = arith.constant 0 : i32
    %c0_i32_1 = arith.constant 0 : i32
    return %c0_i32, %c0_i32_0 : i32, i32
  }
  func.func @transform_9(%arg0: i32) -> (i32, i32) {
    %c0_i32 = arith.constant 0 : i32
    %c0_i32_0 = arith.constant 0 : i32
    return %arg0, %c0_i32 : i32, i32
  }
}

module attributes {stable_mosaic.version = 11 : i64} {
  func.func @_mlp_kernel(%arg0: i32, %arg1: memref<128x1024xf32, #tpu.memory_space<vmem>>, %arg2: memref<1024x512xbf16, #tpu.memory_space<vmem>>, %arg3: memref<1x512xf32, #tpu.memory_space<vmem>>, %arg4: memref<512x128xbf16, #tpu.memory_space<vmem>>, %arg5: memref<1x128xf32, #tpu.memory_space<vmem>>, %arg6: memref<128x128xbf16, #tpu.memory_space<vmem>>, %arg7: memref<1x128xf32, #tpu.memory_space<vmem>>, %arg8: memref<128x128xbf16, #tpu.memory_space<vmem>>, %arg9: memref<1x128xf32, #tpu.memory_space<vmem>>, %arg10: memref<128x128xf32, #tpu.memory_space<vmem>>) attributes {dimension_semantics = [#tpu.dimension_semantics<parallel>], iteration_bounds = array<i64: 1>, scalar_prefetch = 0 : i64, scratch_operands = 0 : i64, tpu.core_type = #tpu.core_type<tc>, window_params = [{transform_indices = @transform_0, window_bounds = array<i64: 128, 1024>}, {pipeline_mode = #tpu.pipeline_mode<synchronous>, transform_indices = @transform_1, window_bounds = array<i64: 1024, 512>}, {pipeline_mode = #tpu.pipeline_mode<synchronous>, transform_indices = @transform_2, window_bounds = array<i64: 1, 512>}, {pipeline_mode = #tpu.pipeline_mode<synchronous>, transform_indices = @transform_3, window_bounds = array<i64: 512, 128>}, {pipeline_mode = #tpu.pipeline_mode<synchronous>, transform_indices = @transform_4, window_bounds = array<i64: 1, 128>}, {pipeline_mode = #tpu.pipeline_mode<synchronous>, transform_indices = @transform_5, window_bounds = array<i64: 128, 128>}, {pipeline_mode = #tpu.pipeline_mode<synchronous>, transform_indices = @transform_6, window_bounds = array<i64: 1, 128>}, {pipeline_mode = #tpu.pipeline_mode<synchronous>, transform_indices = @transform_7, window_bounds = array<i64: 128, 128>}, {pipeline_mode = #tpu.pipeline_mode<synchronous>, transform_indices = @transform_8, window_bounds = array<i64: 1, 128>}, {transform_indices = @transform_9, window_bounds = array<i64: 128, 128>}]} {
    %c0 = arith.constant 0 : index
    %c0_0 = arith.constant 0 : index
    %0 = vector.load %arg1[%c0, %c0_0] : memref<128x1024xf32, #tpu.memory_space<vmem>>, vector<128x1024xf32>
    %1 = arith.truncf %0 : vector<128x1024xf32> to vector<128x1024xbf16>
    %c0_1 = arith.constant 0 : index
    %c0_2 = arith.constant 0 : index
    %2 = vector.load %arg2[%c0_1, %c0_2] : memref<1024x512xbf16, #tpu.memory_space<vmem>>, vector<1024x512xbf16>
    %cst = arith.constant dense<0.000000e+00> : vector<128x512xf32>
    %3 = tpu.matmul %1, %2, %cst {dimension_numbers = #tpu.dot_dimension_numbers<[1], [0], [0], [1], [0, 0, 1, 1], [], []>} : vector<128x1024xbf16>, vector<1024x512xbf16>, vector<128x512xf32> -> vector<128x512xf32>
    %c0_3 = arith.constant 0 : index
    %c0_4 = arith.constant 0 : index
    %4 = vector.load %arg3[%c0_3, %c0_4] : memref<1x512xf32, #tpu.memory_space<vmem>>, vector<1x512xf32>
    %5 = vector.broadcast %4 : vector<1x512xf32> to vector<128x512xf32>
    %6 = arith.addf %3, %5 : vector<128x512xf32>
    %cst_5 = arith.constant 0.000000e+00 : f32
    %7 = vector.broadcast %cst_5 : f32 to vector<128x512xf32>
    %8 = arith.maximumf %6, %7 : vector<128x512xf32>
    %9 = arith.truncf %8 : vector<128x512xf32> to vector<128x512xbf16>
    %c0_6 = arith.constant 0 : index
    %c0_7 = arith.constant 0 : index
    %10 = vector.load %arg4[%c0_6, %c0_7] : memref<512x128xbf16, #tpu.memory_space<vmem>>, vector<512x128xbf16>
    %cst_8 = arith.constant dense<0.000000e+00> : vector<128x128xf32>
    %11 = tpu.matmul %9, %10, %cst_8 {dimension_numbers = #tpu.dot_dimension_numbers<[1], [0], [0], [1], [0, 0, 1, 1], [], []>} : vector<128x512xbf16>, vector<512x128xbf16>, vector<128x128xf32> -> vector<128x128xf32>
    %c0_9 = arith.constant 0 : index
    %c0_10 = arith.constant 0 : index
    %12 = vector.load %arg5[%c0_9, %c0_10] : memref<1x128xf32, #tpu.memory_space<vmem>>, vector<1x128xf32>
    %13 = vector.broadcast %12 : vector<1x128xf32> to vector<128x128xf32>
    %14 = arith.addf %11, %13 : vector<128x128xf32>
    %cst_11 = arith.constant 0.000000e+00 : f32
    %15 = vector.broadcast %cst_11 : f32 to vector<128x128xf32>
    %16 = arith.maximumf %14, %15 : vector<128x128xf32>
    %17 = arith.truncf %16 : vector<128x128xf32> to vector<128x128xbf16>
    %c0_12 = arith.constant 0 : index
    %c0_13 = arith.constant 0 : index
    %18 = vector.load %arg6[%c0_12, %c0_13] : memref<128x128xbf16, #tpu.memory_space<vmem>>, vector<128x128xbf16>
    %cst_14 = arith.constant dense<0.000000e+00> : vector<128x128xf32>
    %19 = tpu.matmul %17, %18, %cst_14 {dimension_numbers = #tpu.dot_dimension_numbers<[1], [0], [0], [1], [0, 0, 1, 1], [], []>} : vector<128x128xbf16>, vector<128x128xbf16>, vector<128x128xf32> -> vector<128x128xf32>
    %c0_15 = arith.constant 0 : index
    %c0_16 = arith.constant 0 : index
    %20 = vector.load %arg7[%c0_15, %c0_16] : memref<1x128xf32, #tpu.memory_space<vmem>>, vector<1x128xf32>
    %21 = vector.broadcast %20 : vector<1x128xf32> to vector<128x128xf32>
    %22 = arith.addf %19, %21 : vector<128x128xf32>
    %cst_17 = arith.constant 0.000000e+00 : f32
    %23 = vector.broadcast %cst_17 : f32 to vector<128x128xf32>
    %24 = arith.maximumf %22, %23 : vector<128x128xf32>
    %25 = arith.truncf %24 : vector<128x128xf32> to vector<128x128xbf16>
    %c0_18 = arith.constant 0 : index
    %c0_19 = arith.constant 0 : index
    %26 = vector.load %arg8[%c0_18, %c0_19] : memref<128x128xbf16, #tpu.memory_space<vmem>>, vector<128x128xbf16>
    %cst_20 = arith.constant dense<0.000000e+00> : vector<128x128xf32>
    %27 = tpu.matmul %25, %26, %cst_20 {dimension_numbers = #tpu.dot_dimension_numbers<[1], [0], [0], [1], [0, 0, 1, 1], [], []>} : vector<128x128xbf16>, vector<128x128xbf16>, vector<128x128xf32> -> vector<128x128xf32>
    %c0_21 = arith.constant 0 : index
    %c0_22 = arith.constant 0 : index
    %28 = vector.load %arg9[%c0_21, %c0_22] : memref<1x128xf32, #tpu.memory_space<vmem>>, vector<1x128xf32>
    %29 = vector.broadcast %28 : vector<1x128xf32> to vector<128x128xf32>
    %30 = arith.addf %27, %29 : vector<128x128xf32>
    %c0_23 = arith.constant 0 : index
    %c0_24 = arith.constant 0 : index
    %31 = vector.load %arg10[%c0_23, %c0_24] : memref<128x128xf32, #tpu.memory_space<vmem>>, vector<128x128xf32>
    tpu.vector_store %arg10[%c0_23, %c0_24], %30 {strides = array<i32>} : memref<128x128xf32, #tpu.memory_space<vmem>>, vector<128x128xf32>,
    return
  }
  func.func @transform_0(%arg0: i32) -> (i32, i32) {
    %c0_i32 = arith.constant 0 : i32
    %c0_i32_0 = arith.constant 0 : i32
    return %arg0, %c0_i32 : i32, i32
  }
  func.func @transform_1(%arg0: i32) -> (i32, i32) {
    %c0_i32 = arith.constant 0 : i32
    %c0_i32_0 = arith.constant 0 : i32
    %c0_i32_1 = arith.constant 0 : i32
    return %c0_i32, %c0_i32_0 : i32, i32
  }
  func.func @transform_2(%arg0: i32) -> (i32, i32) {
    %c0_i32 = arith.constant 0 : i32
    %c0_i32_0 = arith.constant 0 : i32
    %c0_i32_1 = arith.constant 0 : i32
    return %c0_i32, %c0_i32_0 : i32, i32
  }
  func.func @transform_3(%arg0: i32) -> (i32, i32) {
    %c0_i32 = arith.constant 0 : i32
    %c0_i32_0 = arith.constant 0 : i32
    %c0_i32_1 = arith.constant 0 : i32
    return %c0_i32, %c0_i32_0 : i32, i32
  }
  func.func @transform_4(%arg0: i32) -> (i32, i32) {
    %c0_i32 = arith.constant 0 : i32
    %c0_i32_0 = arith.constant 0 : i32
    %c0_i32_1 = arith.constant 0 : i32
    return %c0_i32, %c0_i32_0 : i32, i32
  }
  func.func @transform_5(%arg0: i32) -> (i32, i32) {
    %c0_i32 = arith.constant 0 : i32
    %c0_i32_0 = arith.constant 0 : i32
    %c0_i32_1 = arith.constant 0 : i32
    return %c0_i32, %c0_i32_0 : i32, i32
  }
  func.func @transform_6(%arg0: i32) -> (i32, i32) {
    %c0_i32 = arith.constant 0 : i32
    %c0_i32_0 = arith.constant 0 : i32
    %c0_i32_1 = arith.constant 0 : i32
    return %c0_i32, %c0_i32_0 : i32, i32
  }
  func.func @transform_7(%arg0: i32) -> (i32, i32) {
    %c0_i32 = arith.constant 0 : i32
    %c0_i32_0 = arith.constant 0 : i32
    %c0_i32_1 = arith.constant 0 : i32
    return %c0_i32, %c0_i32_0 : i32, i32
  }
  func.func @transform_8(%arg0: i32) -> (i32, i32) {
    %c0_i32 = arith.constant 0 : i32
    %c0_i32_0 = arith.constant 0 : i32
    %c0_i32_1 = arith.constant 0 : i32
    return %c0_i32, %c0_i32_0 : i32, i32
  }
  func.func @transform_9(%arg0: i32) -> (i32, i32) {
    %c0_i32 = arith.constant 0 : i32
    %c0_i32_0 = arith.constant 0 : i32
    return %arg0, %c0_i32 : i32, i32
  }
}

</mosaic_0001>

<bundles_post_ra>
// kernel: tpu_custom_call.1
= control target key start
LH: loop header
LB: loop body
LE: loop exit
PB: predicated region body
PF: predicated region fallthrough
CT: control target
= control target key end

     0   :  { %14 = vsyncpa [#allocation3], 0  ;;  %s7105_s0 = inlined_call_operand.hbm [shape: f32[2,1024], index: 0, kind: input, shape index: {}]   ;;  %s7106_s1 = inlined_call_operand.hbm [shape: bf16[1024,512], index: 1, kind: input, shape index: {}]   ;;  %s7107_s2 = inlined_call_operand.vmem [shape: f32[1,512], index: 2, kind: input, shape index: {}]   ;;  %s7108_s3 = inlined_call_operand.hbm [shape: bf16[512,128], index: 3, kind: input, shape index: {}]   ;;  %s7109_s4 = inlined_call_operand.vmem [shape: f32[1,128], index: 4, kind: input, shape index: {}]   ;;  %s7110_s5 = inlined_call_operand.hbm [shape: bf16[128,128], index: 5, kind: input, shape index: {}]   ;;  %s7111_s6 = inlined_call_operand.vmem [shape: f32[1,128], index: 6, kind: input, shape index: {}]   ;;  %s7112_s7 = inlined_call_operand.hbm [shape: bf16[128,128], index: 7, kind: input, shape index: {}]   ;;  %s7113_s8 = inlined_call_operand.vmem [shape: f32[1,128], index: 8, kind: input, shape index: {}]   ;;  %s7114_s9 = inlined_call_operand.hbm [shape: f32[2,128], index: 9, kind: output, shape index: {}]  }
   0x1   :  { %15 = vsyncpa [#allocation6], 0 }
   0x2   :  { %16 = vsyncpa [#allocation9], 0 }
   0x3   :  { %17 = vsyncpa [#allocation4], 0 }
   0x4   :  { %22 = vsyncadd [#allocation3], 16128  ;;  %s6700_s30 = smov [#allocation5]   ;;  %s6560_s13 = scalar_lea.hbm %s7106_s1, 32768 }
   0x5   :  { %s35_s10 = sshll.u32 %s6700_s30, 4  ;;  %p6561_p0 = scmp.ne.s32.totalorder %s7106_s1, %s6560_s13  ;;  %s36_s10 = int_to_ptr.vmem [resolvable:$true] %s35_s10 }
   0x6   :  { %p6564_p1 = scmp.lt.u32.totalorder %s6560_s13, %s7106_s1 }
   0x8   :  { %p6566_p2 = pnand %p6564_p1, %p6561_p0 }
   0xa   :  { %6569 = shalt.err (!%p6566_p2)
}
   0xb   :  { %s6570_s18 = scalar_lea.vmem %s36_s10, 32768  ;;  %p6575_p4 = scmp.lt.s32.totalorder %s36_s10, %s36_s10 }
   0xc   :  { %p6571_p3 = scmp.ne.s32.totalorder %s36_s10, %s6570_s18  ;;  %p6576_p5 = scmp.lt.s32.totalorder %s6570_s18, %s6570_s18 }
   0xe   :  { %p6577_p6 = por %p6576_p5, %p6575_p4 }
  0x10   :  { %p6578_p7 = pnand %p6577_p6, %p6571_p3 }
  0x12   :  { %6581 = shalt.err (!%p6578_p7)
}
  0x13   :  { %s6701_s19 = smov 256   ;;  %s6702_s20 = smov 16  }
  0x14   :  { %41 = dma.hbm_to_vmem [thread:$0]  %s7106_s1, 32768, %s36_s10, [#allocation6], %s6701_s19, %s6701_s19, %s6702_s20  }
  0x15   :  { %s6703_s23 = smov [#allocation8]   ;;  %s6704_s25 = smov [#allocation2]  }
  0x16   :  { %s63_s24 = sshll.u32 %s6703_s23, 4  ;;  %s23_s26 = sshll.u32 %s6704_s25, 4  ;;  %s64_s24 = int_to_ptr.vmem [resolvable:$true] %s63_s24  ;;  %s24_s26 = int_to_ptr.vmem [resolvable:$true] %s23_s26 }
  0x17   :  { %s6582_s29 = scalar_lea.hbm %s7110_s5, 1024 }
  0x18   :  { %p6583_p8 = scmp.ne.s32.totalorder %s7110_s5, %s6582_s29  ;;  %p6586_p9 = scmp.lt.u32.totalorder %s6582_s29, %s7110_s5 }
  0x1a   :  { %p6588_p10 = pnand %p6586_p9, %p6583_p8 }
  0x1c   :  { %6591 = shalt.err (!%p6588_p10)
}
  0x1d   :  { %s6592_s1 = scalar_lea.vmem %s64_s24, 1024  ;;  %p6597_p12 = scmp.lt.s32.totalorder %s64_s24, %s64_s24 }
  0x1e   :  { %p6593_p11 = scmp.ne.s32.totalorder %s64_s24, %s6592_s1  ;;  %p6598_p13 = scmp.lt.s32.totalorder %s6592_s1, %s6592_s1 }
  0x20   :  { %p6599_p0 = por %p6598_p13, %p6597_p12 }
  0x22   :  { %p6600_p1 = pnand %p6599_p0, %p6593_p11 }
  0x24   :  { %6603 = shalt.err (!%p6600_p1)
}
  0x25   :  { %s6705_s10 = smov 64   ;;  %s6706_s14 = smov 4  }
  0x26   :  { %69 = dma.hbm_to_vmem [thread:$0]  %s7110_s5, 1024, %s64_s24, [#allocation9], %s6705_s10, %s6705_s10, %s6706_s14  }
  0x27   :  { %s6604_s21 = scalar_lea.hbm %s7105_s0, 256 }
  0x28   :  { %p6605_p2 = scmp.ne.s32.totalorder %s7105_s0, %s6604_s21  ;;  %p6608_p3 = scmp.lt.u32.totalorder %s6604_s21, %s7105_s0 }
  0x2a   :  { %p6610_p4 = pnand %p6608_p3, %p6605_p2 }
  0x2c   :  { %6613 = shalt.err (!%p6610_p4)
}
  0x2d   :  { %s6614_s28 = scalar_lea.vmem %s24_s26, 256  ;;  %s6618_s29 = scalar_lea.vmem %s24_s26, 16384 }
  0x2e   :  { %p6615_p5 = scmp.ne.s32.totalorder %s24_s26, %s6614_s28  ;;  %p6619_p6 = scmp.lt.s32.totalorder %s24_s26, %s24_s26 }
  0x2f   :  { %p6620_p7 = scmp.lt.s32.totalorder %s6618_s29, %s6614_s28 }
  0x31   :  { %p6621_p8 = por %p6620_p7, %p6619_p6 }
  0x33   :  { %p6622_p9 = pnand %p6621_p8, %p6615_p5 }
  0x35   :  { %6625 = shalt.err (!%p6622_p9)
}
  0x36   :  { %29 = dma.hbm_to_vmem [thread:$0]  %s7105_s0, 256, %s24_s26, [#allocation3], %s6701_s19, %s6701_s19, %s6702_s20  }
  0x37   :  { %s6707_s30 = smov [#allocation7]   ;;  %s6708_s12 = smov [#allocation10]  }
  0x38   :  { %s49_s11 = sshll.u32 %s6707_s30, 4  ;;  %s77_s13 = sshll.u32 %s6708_s12, 4  ;;  %s50_s11 = int_to_ptr.vmem [resolvable:$true] %s49_s11  ;;  %s78_s13 = int_to_ptr.vmem [resolvable:$true] %s77_s13 }
  0x39   :  { %s6626_s16 = scalar_lea.hbm %s7108_s3, 4096 }
  0x3a   :  { %p6627_p10 = scmp.ne.s32.totalorder %s7108_s3, %s6626_s16  ;;  %p6630_p11 = scmp.lt.u32.totalorder %s6626_s16, %s7108_s3 }
  0x3c   :  { %p6632_p12 = pnand %p6630_p11, %p6627_p10 }
  0x3e   :  { %6635 = shalt.err (!%p6632_p12)
}
  0x3f   :  { %s6636_s0 = scalar_lea.vmem %s50_s11, 4096  ;;  %p6641_p0 = scmp.lt.s32.totalorder %s50_s11, %s50_s11 }
  0x40   :  { %p6637_p13 = scmp.ne.s32.totalorder %s50_s11, %s6636_s0  ;;  %p6642_p1 = scmp.lt.s32.totalorder %s6636_s0, %s6636_s0 }
  0x42   :  { %p6643_p2 = por %p6642_p1, %p6641_p0 }
  0x44   :  { %p6644_p3 = pnand %p6643_p2, %p6637_p13 }
  0x46   :  { %6647 = shalt.err (!%p6644_p3)
}
  0x47   :  { %55 = dma.hbm_to_vmem [thread:$0]  %s7108_s3, 4096, %s50_s11, [#allocation6], %s6705_s10, %s6705_s10, %s6706_s14  }
  0x48   :  { %s6648_s25 = scalar_lea.hbm %s7112_s7, 1024 }
  0x49   :  { %p6649_p4 = scmp.ne.s32.totalorder %s7112_s7, %s6648_s25  ;;  %p6652_p5 = scmp.lt.u32.totalorder %s6648_s25, %s7112_s7 }
  0x4b   :  { %p6654_p6 = pnand %p6652_p5, %p6649_p4 }
  0x4d   :  { %6657 = shalt.err (!%p6654_p6)
}
  0x4e   :  { %s6658_s24 = scalar_lea.vmem %s78_s13, 1024  ;;  %p6663_p8 = scmp.lt.s32.totalorder %s78_s13, %s78_s13 }
  0x4f   :  { %p6659_p7 = scmp.ne.s32.totalorder %s78_s13, %s6658_s24  ;;  %p6664_p9 = scmp.lt.s32.totalorder %s6658_s24, %s6658_s24 }
  0x51   :  { %p6665_p10 = por %p6664_p9, %p6663_p8 }
  0x53   :  { %p6666_p11 = pnand %p6665_p10, %p6659_p7 }
  0x55   :  { %6669 = shalt.err (!%p6666_p11)
}
  0x56   :  { %83 = dma.hbm_to_vmem [thread:$0]  %s7112_s7, 1024, %s78_s13, [#allocation9], %s6705_s10, %s6705_s10, %s6706_s14  }
  0x57   :  { %6692 = dma.done.wait [#allocation3], 16384  }
  0x58   :  { %6693 = vsyncadd [#allocation3], 4294950912 }
  0x59   :  { %6694 = dma.done.wait [#allocation6], 36864  }
  0x5a   :  { %6695 = vsyncadd [#allocation6], 4294930432 }
  0x5b   :  { %6696 = dma.done.wait [#allocation9], 2048  }
  0x5c   :  { %6697 = vsyncadd [#allocation9], 4294965248  ;;  %v5936_v0 = vld [vmem:[#allocation5 + $0x4] ss:$16 sps:$4 sm:$0xff]   ;;  %v5938_v1 = vld [vmem:[#allocation5 + $0xc] ss:$16 sps:$4 sm:$0xff]   ;;  %v365_v41 = vlaneseq }
  0x5d   :  { %3260 = vmatprep.subr.bf16.mxu0 %v5936_v0  ;;  %v5940_v2 = vld [vmem:[#allocation5] ss:$16 sps:$4 sm:$0xff]   ;;  %v5941_v3 = vld [vmem:[#allocation5 + $0x8] ss:$16 sps:$4 sm:$0xff]   ;;  %3712 = vmatprep.subr.bf16.mxu1 %v5938_v1  ;;  %v5942_v4 = vld [vmem:[#allocation5 + $0x24] ss:$16 sps:$4 sm:$0xff]  }
  0x5e   :  { %3261 = vmatpush1.bf16.msra.mxu0 %v5940_v2  ;;  %3713 = vmatpush1.bf16.msra.mxu1 %v5941_v3  ;;  %v5944_v5 = vld [vmem:[#allocation5 + $0x2c] ss:$16 sps:$4 sm:$0xff]   ;;  %v5946_v6 = vld [vmem:[#allocation5 + $0x20] ss:$16 sps:$4 sm:$0xff]   ;;  %v5947_v7 = vld [vmem:[#allocation5 + $0x28] ss:$16 sps:$4 sm:$0xff]  }
  0x5f   :  { %3262 = vmatprep.subr.bf16.mxu0 %v5942_v4  ;;  %3714 = vmatprep.subr.bf16.mxu1 %v5944_v5  ;;  %v5948_v8 = vld [vmem:[#allocation5 + $0x44] ss:$16 sps:$4 sm:$0xff]   ;;  %v5950_v9 = vld [vmem:[#allocation5 + $0x4c] ss:$16 sps:$4 sm:$0xff]   ;;  %v5952_v10 = vld [vmem:[#allocation5 + $0x40] ss:$16 sps:$4 sm:$0xff]  }
  0x60   :  { %v5953_v11 = vld [vmem:[#allocation5 + $0x48] ss:$16 sps:$4 sm:$0xff]   ;;  %v5954_v12 = vld [vmem:[#allocation5 + $0x64] ss:$16 sps:$4 sm:$0xff]   ;;  %v5956_v13 = vld [vmem:[#allocation5 + $0x6c] ss:$16 sps:$4 sm:$0xff]  }
  0x61   :  { %v5958_v14 = vld [vmem:[#allocation5 + $0x60] ss:$16 sps:$4 sm:$0xff]   ;;  %v5959_v15 = vld [vmem:[#allocation5 + $0x68] ss:$16 sps:$4 sm:$0xff]   ;;  %v5960_v16 = vld [vmem:[#allocation5 + $0x84] ss:$16 sps:$4 sm:$0xff]  }
  0x62   :  { %3263 = vmatpush1.bf16.msra.mxu0 %v5946_v6  ;;  %3715 = vmatpush1.bf16.msra.mxu1 %v5947_v7  ;;  %v5962_v17 = vld [vmem:[#allocation5 + $0x8c] ss:$16 sps:$4 sm:$0xff]   ;;  %v5964_v18 = vld [vmem:[#allocation5 + $0x80] ss:$16 sps:$4 sm:$0xff]   ;;  %v5965_v19 = vld [vmem:[#allocation5 + $0x88] ss:$16 sps:$4 sm:$0xff]  }
  0x63   :  { %3264 = vmatprep.subr.bf16.mxu0 %v5948_v8  ;;  %3716 = vmatprep.subr.bf16.mxu1 %v5950_v9  ;;  %v5966_v20 = vld [vmem:[#allocation5 + $0xa4] ss:$16 sps:$4 sm:$0xff]   ;;  %v5968_v21 = vld [vmem:[#allocation5 + $0xac] ss:$16 sps:$4 sm:$0xff]   ;;  %v5970_v22 = vld [vmem:[#allocation5 + $0xa0] ss:$16 sps:$4 sm:$0xff]  }
  0x64   :  { %v5971_v23 = vld [vmem:[#allocation5 + $0xa8] ss:$16 sps:$4 sm:$0xff]   ;;  %v5972_v24 = vld [vmem:[#allocation5 + $0xc4] ss:$16 sps:$4 sm:$0xff]   ;;  %v5974_v25 = vld [vmem:[#allocation5 + $0xcc] ss:$16 sps:$4 sm:$0xff]  }
  0x65   :  { %v5976_v26 = vld [vmem:[#allocation5 + $0xc0] ss:$16 sps:$4 sm:$0xff]   ;;  %v5977_v27 = vld [vmem:[#allocation5 + $0xc8] ss:$16 sps:$4 sm:$0xff]   ;;  %v5978_v28 = vld [vmem:[#allocation5 + $0xe4] ss:$16 sps:$4 sm:$0xff]  }
  0x66   :  { %3265 = vmatpush1.bf16.msra.mxu0 %v5952_v10  ;;  %3717 = vmatpush1.bf16.msra.mxu1 %v5953_v11  ;;  %v5980_v29 = vld [vmem:[#allocation5 + $0xec] ss:$16 sps:$4 sm:$0xff]   ;;  %v5982_v30 = vld [vmem:[#allocation5 + $0xe0] ss:$16 sps:$4 sm:$0xff]   ;;  %v5983_v31 = vld [vmem:[#allocation5 + $0xe8] ss:$16 sps:$4 sm:$0xff]  }
  0x67   :  { %3266 = vmatprep.subr.bf16.mxu0 %v5954_v12  ;;  %3718 = vmatprep.subr.bf16.mxu1 %v5956_v13  ;;  %v5984_v32 = vld [vmem:[#allocation5 + $0x104] ss:$16 sps:$4 sm:$0xff]   ;;  %v5986_v33 = vld [vmem:[#allocation5 + $0x10c] ss:$16 sps:$4 sm:$0xff]   ;;  %v5988_v34 = vld [vmem:[#allocation5 + $0x100] ss:$16 sps:$4 sm:$0xff]  }
  0x68   :  { %v5989_v35 = vld [vmem:[#allocation5 + $0x108] ss:$16 sps:$4 sm:$0xff]   ;;  %v5990_v36 = vld [vmem:[#allocation5 + $0x124] ss:$16 sps:$4 sm:$0xff]   ;;  %v5992_v37 = vld [vmem:[#allocation5 + $0x12c] ss:$16 sps:$4 sm:$0xff]  }
  0x69   :  { %v5994_v38 = vld [vmem:[#allocation5 + $0x120] ss:$16 sps:$4 sm:$0xff]   ;;  %v6709_v39 = vmov 1983009808   ;;  %v5995_v42 = vld [vmem:[#allocation5 + $0x128] ss:$16 sps:$4 sm:$0xff]  }
  0x6a   :  { %3267 = vmatpush1.bf16.msra.mxu0 %v5958_v14  ;;  %3719 = vmatpush1.bf16.msra.mxu1 %v5959_v15  ;;  %v363_v40 = vunpack.c.l.s4 %v6709_v39  ;;  %v5996_v43 = vld [vmem:[#allocation5 + $0x144] ss:$16 sps:$4 sm:$0xff]   ;;  %v5998_v44 = vld [vmem:[#allocation5 + $0x14c] ss:$16 sps:$4 sm:$0xff]   ;;  %v6000_v45 = vld [vmem:[#allocation5 + $0x140] ss:$16 sps:$4 sm:$0xff]  }
  0x6b   :  { %3268 = vmatprep.subr.bf16.mxu0 %v5960_v16  ;;  %3720 = vmatprep.subr.bf16.mxu1 %v5962_v17  ;;  %v6001_v46 = vld [vmem:[#allocation5 + $0x148] ss:$16 sps:$4 sm:$0xff]   ;;  %v6838_v48 = vshrl.u32 %v365_v41, 7  ;;  %v6002_v49 = vld [vmem:[#allocation5 + $0x164] ss:$16 sps:$4 sm:$0xff]  }
  0x6c   :  { %v364_v47 = vunpack.c.0.s8 %v363_v40  ;;  %v6004_v50 = vld [vmem:[#allocation5 + $0x16c] ss:$16 sps:$4 sm:$0xff]   ;;  %v6006_v51 = vld [vmem:[#allocation5 + $0x160] ss:$16 sps:$4 sm:$0xff]   ;;  %v6007_v52 = vld [vmem:[#allocation5 + $0x168] ss:$16 sps:$4 sm:$0xff]  }
  0x6d   :  { %v6008_v53 = vld [vmem:[#allocation5 + $0x184] ss:$16 sps:$4 sm:$0xff]   ;;  %v6010_v55 = vld [vmem:[#allocation5 + $0x18c] ss:$16 sps:$4 sm:$0xff]   ;;  %v6032_v56 = vld [vmem:[#allocation2] ss:$16 sps:$4 sm:$0xff]  }
  0x6e   :  { %3269 = vmatpush1.bf16.msra.mxu0 %v5964_v18  ;;  %3721 = vmatpush1.bf16.msra.mxu1 %v5965_v19  ;;  %v6841_v54 = vsub.s32 %v364_v47, %v6838_v48  ;;  %v6035_v57 = vld [vmem:[#allocation2 + $0x20] ss:$16 sps:$4 sm:$0xff]   ;;  %v6013_v60 = vld [vmem:[#allocation5 + $0x188] ss:$16 sps:$4 sm:$0xff]   ;;  %v6014_v63 = vld [vmem:[#allocation5 + $0x1a4] ss:$16 sps:$4 sm:$0xff]  }
  0x6f   :  { %3270 = vmatprep.subr.bf16.mxu0 %v5966_v20  ;;  %3722 = vmatprep.subr.bf16.mxu1 %v5968_v21  ;;  %v6038_v58 = vld [vmem:[#allocation2 + $0x40] ss:$16 sps:$4 sm:$0xff]   ;;  %v6016_v2 = vld [vmem:[#allocation5 + $0x1ac] ss:$16 sps:$4 sm:$0xff]   ;;  %v6019_v6 = vld [vmem:[#allocation5 + $0x1a8] ss:$16 sps:$4 sm:$0xff]  }
  0x70   :  { %v6012_v59 = vld [vmem:[#allocation5 + $0x180] ss:$16 sps:$4 sm:$0xff]   ;;  %v368_v61 = vrot.slane %v6032_v56, %v6841_v54  ;;  %v382_v0 = vrot.slane %v6035_v57, %v6841_v54  ;;  %v440_v1 = vrot.slane %v6038_v58, %v6841_v54  ;;  %v6020_v8 = vld [vmem:[#allocation5 + $0x1c4] ss:$16 sps:$4 sm:$0xff]   ;;  %v6022_v9 = vld [vmem:[#allocation5 + $0x1cc] ss:$16 sps:$4 sm:$0xff]  }
  0x71   :  { %v6041_v62 = vld [vmem:[#allocation2 + $0x60] ss:$16 sps:$4 sm:$0xff]   ;;  %v6025_v12 = vld [vmem:[#allocation5 + $0x1c8] ss:$16 sps:$4 sm:$0xff]   ;;  %v6026_v13 = vld [vmem:[#allocation5 + $0x1e4] ss:$16 sps:$4 sm:$0xff]  }
  0x72   :  { %3271 = vmatpush1.bf16.msra.mxu0 %v5970_v22  ;;  %3723 = vmatpush1.bf16.msra.mxu1 %v5971_v23  ;;  %v454_v3 = vrot.slane %v6041_v62, %v6841_v54  ;;  %v391_v4 = vcombine.high %v368_v61, %v382_v0  ;;  %v6018_v5 = vld [vmem:[#allocation5 + $0x1a0] ss:$16 sps:$4 sm:$0xff]   ;;  %v6028_v14 = vld [vmem:[#allocation5 + $0x1ec] ss:$16 sps:$4 sm:$0xff]   ;;  %v6031_v23 = vld [vmem:[#allocation5 + $0x1e8] ss:$16 sps:$4 sm:$0xff]  }
  0x73   :  { %3272 = vmatprep.subr.bf16.mxu0 %v5972_v24  ;;  %3724 = vmatprep.subr.bf16.mxu1 %v5974_v25  ;;  %v6024_v11 = vld [vmem:[#allocation5 + $0x1c0] ss:$16 sps:$4 sm:$0xff]   ;;  %v390_v24 = vcombine.low %v368_v61, %v382_v0  ;;  %v6066_v47 = vld [vmem:[#allocation5 + $0x244] ss:$16 sps:$4 sm:$0xff]   ;;  %v6073_v61 = vld [vmem:[#allocation5 + $0x268] ss:$16 sps:$4 sm:$0xff]  }
  0x74   :  { %v463_v7 = vcombine.high %v440_v1, %v454_v3  ;;  %v6056_v15 = vld [vmem:[#allocation2 + $0x80] ss:$16 sps:$4 sm:$0xff]   ;;  %v462_v25 = vcombine.low %v440_v1, %v454_v3  ;;  %v6072_v58 = vld [vmem:[#allocation5 + $0x264] ss:$16 sps:$4 sm:$0xff]  }
  0x75   :  { %v6058_v16 = vld [vmem:[#allocation2 + $0xa0] ss:$16 sps:$4 sm:$0xff]   ;;  %v512_v19 = vrot.slane %v6056_v15, %v6841_v54 }
  0x76   :  { %3273 = vmatpush1.bf16.msra.mxu0 %v5976_v26  ;;  %3725 = vmatpush1.bf16.msra.mxu1 %v5977_v27  ;;  %v1639_v10 = vpack.c.bf16 %v463_v7, %v391_v4  ;;  %v6060_v17 = vld [vmem:[#allocation2 + $0xc0] ss:$16 sps:$4 sm:$0xff]   ;;  %v526_v20 = vrot.slane %v6058_v16, %v6841_v54  ;;  %v6046_v27 = vld [vmem:[#allocation5 + $0x204] ss:$16 sps:$4 sm:$0xff]   ;;  %v6089_v7 = vld [vmem:[#allocation5 + $0x28c] ss:$16 sps:$4 sm:$0xff]  }
  0x77   :  { %3274 = vmatprep.subr.bf16.mxu0 %v5978_v28  ;;  %3726 = vmatprep.subr.bf16.mxu1 %v5980_v29  ;;  %v6062_v18 = vld [vmem:[#allocation2 + $0xe0] ss:$16 sps:$4 sm:$0xff]   ;;  %v584_v21 = vrot.slane %v6060_v17, %v6841_v54  ;;  %v6049_v28 = vld [vmem:[#allocation5 + $0x20c] ss:$16 sps:$4 sm:$0xff]   ;;  %v6092_v16 = vld [vmem:[#allocation5 + $0x2a4] ss:$16 sps:$4 sm:$0xff]  }
  0x78   :  { %3292 = vmatprep.mubr.bf16.mxu0 %v1639_v10  ;;  %3744 = vmatprep.mubr.bf16.mxu1 %v1639_v10  ;;  %v6030_v22 = vld [vmem:[#allocation5 + $0x1e0] ss:$16 sps:$4 sm:$0xff]   ;;  %v598_v26 = vrot.slane %v6062_v18, %v6841_v54  ;;  %v534_v39 = vcombine.low %v512_v19, %v526_v20  ;;  %v6095_v17 = vld [vmem:[#allocation5 + $0x2ac] ss:$16 sps:$4 sm:$0xff]  }
  0x79   :  { %v6044_v29 = vld [vmem:[#allocation5 + $0x200] ss:$16 sps:$4 sm:$0xff]  }
  0x7a   :  { %3275 = vmatpush1.bf16.msra.mxu0 %v5982_v30  ;;  %3727 = vmatpush1.bf16.msra.mxu1 %v5983_v31  ;;  %v6047_v30 = vld [vmem:[#allocation5 + $0x208] ss:$16 sps:$4 sm:$0xff]   ;;  %v535_v31 = vcombine.high %v512_v19, %v526_v20  ;;  %v6080_v40 = vld [vmem:[#allocation2 + $0x140] ss:$16 sps:$4 sm:$0xff]  }
  0x7b   :  { %3276 = vmatprep.subr.bf16.mxu0 %v5984_v32  ;;  %3728 = vmatprep.subr.bf16.mxu1 %v5986_v33  ;;  %v607_v32 = vcombine.high %v584_v21, %v598_v26  ;;  %v1638_v33 = vpack.c.bf16 %v462_v25, %v390_v24  ;;  %v6082_v41 = vld [vmem:[#allocation2 + $0x160] ss:$16 sps:$4 sm:$0xff]   ;;  %v6093_v19 = vld [vmem:[#allocation5 + $0x2a8] ss:$16 sps:$4 sm:$0xff]   ;;  %v6109_v24 = vld [vmem:[#allocation5 + $0x2cc] ss:$16 sps:$4 sm:$0xff]  }
  0x7c   :  { %v6100_v3 = vld [vmem:[#allocation2 + $0x1c0] ss:$16 sps:$4 sm:$0xff]  }
  0x7d   :  { %v6102_v4 = vld [vmem:[#allocation2 + $0x1e0] ss:$16 sps:$4 sm:$0xff]  }
  0x7e   :  { %3277 = vmatpush1.bf16.msra.mxu0 %v5988_v34  ;;  %3729 = vmatpush1.bf16.msra.mxu1 %v5989_v35  ;;  %v6052_v34 = vld [vmem:[#allocation5 + $0x224] ss:$16 sps:$4 sm:$0xff]   ;;  %v6055_v35 = vld [vmem:[#allocation5 + $0x22c] ss:$16 sps:$4 sm:$0xff]   ;;  %v886_v10 = vrot.slane %v6102_v4, %v6841_v54  ;;  %v6090_v18 = vld [vmem:[#allocation5 + $0x2a0] ss:$16 sps:$4 sm:$0xff]  }
  0x7f   :  { %3278 = vmatprep.subr.bf16.mxu0 %v5990_v36  ;;  %3730 = vmatprep.subr.bf16.mxu1 %v5992_v37  ;;  %v6076_v36 = vld [vmem:[#allocation2 + $0x100] ss:$16 sps:$4 sm:$0xff]   ;;  %v6146_v4 = vld [vmem:[#allocation5 + $0x344] ss:$16 sps:$4 sm:$0xff]  }
  0x80   :  { %v6078_v37 = vld [vmem:[#allocation2 + $0x120] ss:$16 sps:$4 sm:$0xff]  }
  0x81   :  { %v6116_v25 = vld [vmem:[#allocation2 + $0x200] ss:$16 sps:$4 sm:$0xff]  }
  0x82   :  { %3279 = vmatpush1.bf16.msra.mxu0 %v5994_v38  ;;  %3731 = vmatpush1.bf16.msra.mxu1 %v5995_v42  ;;  %v1647_v38 = vpack.c.bf16 %v607_v32, %v535_v31  ;;  %v6050_v42 = vld [vmem:[#allocation5 + $0x220] ss:$16 sps:$4 sm:$0xff]  }
  0x83   :  { %3280 = vmatprep.subr.bf16.mxu0 %v5996_v43  ;;  %3732 = vmatprep.subr.bf16.mxu1 %v5998_v44  ;;  %v6053_v43 = vld [vmem:[#allocation5 + $0x228] ss:$16 sps:$4 sm:$0xff]   ;;  %v606_v44 = vcombine.low %v584_v21, %v598_v26  ;;  %v6118_v26 = vld [vmem:[#allocation2 + $0x220] ss:$16 sps:$4 sm:$0xff]  }
  0x85   :  { %v1646_v57 = vpack.c.bf16 %v606_v44, %v534_v39 }
  0x86   :  { %3281 = vmatpush1.bf16.msra.mxu0 %v6000_v45  ;;  %3733 = vmatpush1.bf16.msra.mxu1 %v6001_v46  ;;  %v656_v45 = vrot.slane %v6076_v36, %v6841_v54  ;;  %v670_v46 = vrot.slane %v6078_v37, %v6841_v54  ;;  %v6112_v36 = vld [vmem:[#allocation5 + $0x2e4] ss:$16 sps:$4 sm:$0xff]  }
  0x87   :  { %3282 = vmatprep.subr.bf16.mxu0 %v6002_v49  ;;  %3734 = vmatprep.subr.bf16.mxu1 %v6004_v50  ;;  %v728_v49 = vrot.slane %v6080_v40, %v6841_v54  ;;  %v742_v50 = vrot.slane %v6082_v41, %v6841_v54  ;;  %v6110_v40 = vld [vmem:[#allocation5 + $0x2e0] ss:$16 sps:$4 sm:$0xff]   ;;  %v6113_v41 = vld [vmem:[#allocation5 + $0x2e8] ss:$16 sps:$4 sm:$0xff]  }
  0x88   :  { %v678_v0 = vcombine.low %v656_v45, %v670_v46 }
  0x89   :  { %v751_v56 = vcombine.high %v728_v49, %v742_v50  ;;  %v750_v1 = vcombine.low %v728_v49, %v742_v50  ;;  %v6138_v49 = vld [vmem:[#allocation2 + $0x2a0] ss:$16 sps:$4 sm:$0xff]  }
  0x8a   :  { %3283 = vmatpush1.bf16.msra.mxu0 %v6006_v51  ;;  %3735 = vmatpush1.bf16.msra.mxu1 %v6007_v52  ;;  %v6069_v51 = vld [vmem:[#allocation5 + $0x24c] ss:$16 sps:$4 sm:$0xff]   ;;  %v6064_v52 = vld [vmem:[#allocation5 + $0x240] ss:$16 sps:$4 sm:$0xff]  }
  0x8b   :  { %3284 = vmatprep.subr.bf16.mxu0 %v6008_v53  ;;  %3736 = vmatprep.subr.bf16.mxu1 %v6010_v55  ;;  %v6067_v53 = vld [vmem:[#allocation5 + $0x248] ss:$16 sps:$4 sm:$0xff]   ;;  %v679_v55 = vcombine.high %v656_v45, %v670_v46  ;;  %v6126_v45 = vld [vmem:[#allocation5 + $0x304] ss:$16 sps:$4 sm:$0xff]   ;;  %v6129_v46 = vld [vmem:[#allocation5 + $0x30c] ss:$16 sps:$4 sm:$0xff]  }
  0x8c   :  { %v6140_v50 = vld [vmem:[#allocation2 + $0x2c0] ss:$16 sps:$4 sm:$0xff]  }
  0x8d   :  { %v1655_v62 = vpack.c.bf16 %v751_v56, %v679_v55  ;;  %v6127_v55 = vld [vmem:[#allocation5 + $0x308] ss:$16 sps:$4 sm:$0xff]  }
  0x8e   :  { %3285 = vmatpush1.bf16.msra.mxu0 %v6012_v59  ;;  %3737 = vmatpush1.bf16.msra.mxu1 %v6013_v60  ;;  %v6075_v59 = vld [vmem:[#allocation5 + $0x26c] ss:$16 sps:$4 sm:$0xff]   ;;  %v6070_v60 = vld [vmem:[#allocation5 + $0x260] ss:$16 sps:$4 sm:$0xff]  }
  0x8f   :  { %3286 = vmatprep.subr.bf16.mxu0 %v6014_v63  ;;  %3738 = vmatprep.subr.bf16.mxu1 %v6016_v2  ;;  %v6096_v63 = vld [vmem:[#allocation2 + $0x180] ss:$16 sps:$4 sm:$0xff]  }
  0x90   :  { %v6098_v2 = vld [vmem:[#allocation2 + $0x1a0] ss:$16 sps:$4 sm:$0xff]  }
  0x92   :  { %3287 = vmatpush1.bf16.msra.mxu0 %v6018_v5  ;;  %3739 = vmatpush1.bf16.msra.mxu1 %v6019_v6  ;;  %v6086_v5 = vld [vmem:[#allocation5 + $0x284] ss:$16 sps:$4 sm:$0xff]   ;;  %v800_v6 = vrot.slane %v6096_v63, %v6841_v54  ;;  %v6130_v63 = vld [vmem:[#allocation5 + $0x320] ss:$16 sps:$4 sm:$0xff]  }
  0x93   :  { %3288 = vmatprep.subr.bf16.mxu0 %v6020_v8  ;;  %3740 = vmatprep.subr.bf16.mxu1 %v6022_v9  ;;  %v814_v8 = vrot.slane %v6098_v2, %v6841_v54  ;;  %v872_v9 = vrot.slane %v6100_v3, %v6841_v54 }
  0x95   :  { %v895_v15 = vcombine.high %v872_v9, %v886_v10  ;;  %v822_v21 = vcombine.low %v800_v6, %v814_v8 }
  0x96   :  { %3289 = vmatpush1.bf16.msra.mxu0 %v6024_v11  ;;  %3741 = vmatpush1.bf16.msra.mxu1 %v6025_v12  ;;  %v1654_v11 = vpack.c.bf16 %v750_v1, %v678_v0  ;;  %v6084_v12 = vld [vmem:[#allocation5 + $0x280] ss:$16 sps:$4 sm:$0xff]   ;;  %v6133_v0 = vld [vmem:[#allocation5 + $0x328] ss:$16 sps:$4 sm:$0xff]  }
  0x97   :  { %3290 = vmatprep.subr.bf16.mxu0 %v6026_v13  ;;  %3742 = vmatprep.subr.bf16.mxu1 %v6028_v14  ;;  %v6087_v13 = vld [vmem:[#allocation5 + $0x288] ss:$16 sps:$4 sm:$0xff]   ;;  %v823_v14 = vcombine.high %v800_v6, %v814_v8 }
  0x98   :  { %v6147_v8 = vld [vmem:[#allocation5 + $0x348] ss:$16 sps:$4 sm:$0xff]  }
  0x99   :  { %v1663_v20 = vpack.c.bf16 %v895_v15, %v823_v14  ;;  %v6152_v14 = vld [vmem:[#allocation5 + $0x364] ss:$16 sps:$4 sm:$0xff]  }
  0x9a   :  { %3291 = vmatpush1.bf16.msra.mxu0 %v6030_v22  ;;  %3743 = vmatpush1.bf16.msra.mxu1 %v6031_v23  ;;  %v894_v22 = vcombine.low %v872_v9, %v886_v10  ;;  %v6106_v23 = vld [vmem:[#allocation5 + $0x2c4] ss:$16 sps:$4 sm:$0xff]   ;;  %v6156_v9 = vld [vmem:[#allocation2 + $0x300] ss:$16 sps:$4 sm:$0xff]  }
  0x9b   :  { %3373 = vmatprep.subr.bf16.mxu0 %v6046_v27  ;;  %3825 = vmatprep.subr.bf16.mxu1 %v6049_v28  ;;  %v6120_v27 = vld [vmem:[#allocation2 + $0x240] ss:$16 sps:$4 sm:$0xff]   ;;  %v1232_v15 = vrot.slane %v6156_v9, %v6841_v54  ;;  %v6198_v9 = vld [vmem:[#allocation5 + $0x404] ss:$16 sps:$4 sm:$0xff]  }
  0x9c   :  { %v6122_v28 = vld [vmem:[#allocation2 + $0x260] ss:$16 sps:$4 sm:$0xff]   ;;  %v1016_v31 = vrot.slane %v6120_v27, %v6841_v54  ;;  %v1662_v32 = vpack.c.bf16 %v894_v22, %v822_v21  ;;  %v6037_v21 = vld [vmem:[#allocation2 + $0x24] ss:$16 sps:$4 sm:$0xff]  }
  0x9d   :  { %3293 = vmatmul.mubr.bf16.vlgmr.msra.gmra.mrb[0].mxu0 %v1638_v33  ;;  %3745 = vmatmul.mubr.bf16.vlgmr.msra.gmra.mrb[0].mxu1 %v1638_v33  ;;  %v6104_v33 = vld [vmem:[#allocation5 + $0x2c0] ss:$16 sps:$4 sm:$0xff]   ;;  %v6040_v22 = vld [vmem:[#allocation2 + $0x44] ss:$16 sps:$4 sm:$0xff]  }
  0x9e   :  { %3374 = vmatpush1.bf16.msra.mxu0 %v6044_v29  ;;  %3826 = vmatpush1.bf16.msra.mxu1 %v6047_v30  ;;  %v944_v29 = vrot.slane %v6116_v25, %v6841_v54  ;;  %v958_v30 = vrot.slane %v6118_v26, %v6841_v54 }
  0x9f   :  { %3375 = vmatprep.subr.bf16.mxu0 %v6052_v34  ;;  %3827 = vmatprep.subr.bf16.mxu1 %v6055_v35  ;;  %v6107_v34 = vld [vmem:[#allocation5 + $0x2c8] ss:$16 sps:$4 sm:$0xff]   ;;  %v1030_v35 = vrot.slane %v6122_v28, %v6841_v54  ;;  %v6043_v28 = vld [vmem:[#allocation2 + $0x64] ss:$16 sps:$4 sm:$0xff]  }
  0xa0   :  { %3302 = vmatprep.mubr.bf16.mxu0 %v1647_v38  ;;  %3754 = vmatprep.mubr.bf16.mxu1 %v1647_v38  ;;  %v967_v37 = vcombine.high %v944_v29, %v958_v30  ;;  %v6115_v38 = vld [vmem:[#allocation5 + $0x2ec] ss:$16 sps:$4 sm:$0xff]  }
  0xa1   :  { %v1039_v39 = vcombine.high %v1016_v31, %v1030_v35  ;;  %v1038_v44 = vcombine.low %v1016_v31, %v1030_v35 }
  0xa2   :  { %3376 = vmatpush1.bf16.msra.mxu0 %v6050_v42  ;;  %3828 = vmatpush1.bf16.msra.mxu1 %v6053_v43  ;;  %v966_v43 = vcombine.low %v944_v29, %v958_v30  ;;  %v6166_v30 = vld [vmem:[#allocation5 + $0x384] ss:$16 sps:$4 sm:$0xff]  }
  0xa3   :  { %3377 = vmatprep.subr.bf16.mxu0 %v6066_v47  ;;  %3829 = vmatprep.subr.bf16.mxu1 %v6069_v51  ;;  %v1671_v42 = vpack.c.bf16 %v1039_v39, %v967_v37  ;;  %v6136_v47 = vld [vmem:[#allocation2 + $0x280] ss:$16 sps:$4 sm:$0xff]   ;;  %v6175_v37 = vld [vmem:[#allocation5 + $0x3ac] ss:$16 sps:$4 sm:$0xff]  }
  0xa4   :  { %v6142_v51 = vld [vmem:[#allocation2 + $0x2e0] ss:$16 sps:$4 sm:$0xff]   ;;  %v1088_v56 = vrot.slane %v6136_v47, %v6841_v54 }
  0xa5   :  { %3303 = vmatmul.mubr.bf16.gmra.mrb[4].mxu0 %v1646_v57  ;;  %3755 = vmatmul.mubr.bf16.gmra.mrb[4].mxu1 %v1646_v57  ;;  %v1102_v57 = vrot.slane %v6138_v49, %v6841_v54  ;;  %v6178_v39 = vld [vmem:[#allocation2 + $0x3a0] ss:$16 sps:$4 sm:$0xff]   ;;  %v461_v49 = vrot.slane %v6043_v28, %v6841_v54  ;;  %v6224_v28 = vld [vmem:[#allocation2 + $0x104] ss:$16 sps:$4 sm:$0xff]  }
  0xa6   :  { %3378 = vmatpush1.bf16.msra.mxu0 %v6064_v52  ;;  %3830 = vmatpush1.bf16.msra.mxu1 %v6067_v53  ;;  %v1670_v52 = vpack.c.bf16 %v1038_v44, %v966_v43  ;;  %v6124_v53 = vld [vmem:[#allocation5 + $0x300] ss:$16 sps:$4 sm:$0xff]   ;;  %v389_v43 = vrot.slane %v6037_v21, %v6841_v54  ;;  %v447_v44 = vrot.slane %v6040_v22, %v6841_v54  ;;  %v6204_v22 = vld [vmem:[#allocation5 + $0x424] ss:$16 sps:$4 sm:$0xff]  }
  0xa7   :  { %3379 = vmatprep.subr.bf16.mxu0 %v6072_v58  ;;  %3831 = vmatprep.subr.bf16.mxu1 %v6075_v59  ;;  %v6132_v58 = vld [vmem:[#allocation5 + $0x324] ss:$16 sps:$4 sm:$0xff]   ;;  %v1160_v59 = vrot.slane %v6140_v50, %v6841_v54  ;;  %v1110_v2 = vcombine.low %v1088_v56, %v1102_v57  ;;  %v6170_v50 = vld [vmem:[#allocation5 + $0x3a0] ss:$16 sps:$4 sm:$0xff]  }
  0xa8   :  { %3312 = vmatprep.mubr.bf16.mxu0 %v1655_v62  ;;  %3764 = vmatprep.mubr.bf16.mxu1 %v1655_v62  ;;  %v1111_v62 = vcombine.high %v1088_v56, %v1102_v57 }
  0xaa   :  { %3380 = vmatpush1.bf16.msra.mxu0 %v6070_v60  ;;  %3832 = vmatpush1.bf16.msra.mxu1 %v6073_v61  ;;  %v1174_v60 = vrot.slane %v6142_v51, %v6841_v54  ;;  %v6135_v61 = vld [vmem:[#allocation5 + $0x32c] ss:$16 sps:$4 sm:$0xff]  }
  0xab   :  { %3381 = vmatprep.subr.bf16.mxu0 %v6086_v5  ;;  %3833 = vmatprep.subr.bf16.mxu1 %v6089_v7  ;;  %v6149_v5 = vld [vmem:[#allocation5 + $0x34c] ss:$16 sps:$4 sm:$0xff]   ;;  %v6144_v7 = vld [vmem:[#allocation5 + $0x340] ss:$16 sps:$4 sm:$0xff]  }
  0xac   :  { %v1183_v1 = vcombine.high %v1160_v59, %v1174_v60  ;;  %v1182_v3 = vcombine.low %v1160_v59, %v1174_v60  ;;  %v6189_v59 = vld [vmem:[#allocation5 + $0x3cc] ss:$16 sps:$4 sm:$0xff]  }
  0xad   :  { %3313 = vmatmul.mubr.bf16.gmra.mrb[8].mxu0 %v1654_v11  ;;  %3765 = vmatmul.mubr.bf16.gmra.mrb[8].mxu1 %v1654_v11  ;;  %v6158_v11 = vld [vmem:[#allocation2 + $0x320] ss:$16 sps:$4 sm:$0xff]  }
  0xae   :  { %3382 = vmatpush1.bf16.msra.mxu0 %v6084_v12  ;;  %3834 = vmatpush1.bf16.msra.mxu1 %v6087_v13  ;;  %v1679_v6 = vpack.c.bf16 %v1183_v1, %v1111_v62  ;;  %v1678_v10 = vpack.c.bf16 %v1182_v3, %v1110_v2  ;;  %v6160_v12 = vld [vmem:[#allocation2 + $0x340] ss:$16 sps:$4 sm:$0xff]   ;;  %v6187_v1 = vld [vmem:[#allocation5 + $0x3c8] ss:$16 sps:$4 sm:$0xff]   ;;  %v6192_v2 = vld [vmem:[#allocation5 + $0x3e4] ss:$16 sps:$4 sm:$0xff]  }
  0xaf   :  { %3383 = vmatprep.subr.bf16.mxu0 %v6092_v16  ;;  %3835 = vmatprep.subr.bf16.mxu1 %v6095_v17  ;;  %v6162_v13 = vld [vmem:[#allocation2 + $0x360] ss:$16 sps:$4 sm:$0xff]   ;;  %v6155_v16 = vld [vmem:[#allocation5 + $0x36c] ss:$16 sps:$4 sm:$0xff]   ;;  %v1246_v17 = vrot.slane %v6158_v11, %v6841_v54  ;;  %v6208_v11 = vld [vmem:[#allocation2 + $0x84] ss:$16 sps:$4 sm:$0xff]  }
  0xb0   :  { %3322 = vmatprep.mubr.bf16.mxu0 %v1663_v20  ;;  %3774 = vmatprep.mubr.bf16.mxu1 %v1663_v20  ;;  %v6034_v20 = vld [vmem:[#allocation2 + $0x4] ss:$16 sps:$4 sm:$0xff]   ;;  %v6195_v3 = vld [vmem:[#allocation5 + $0x3ec] ss:$16 sps:$4 sm:$0xff]  }
  0xb1   :  { %v1255_v25 = vcombine.high %v1232_v15, %v1246_v17  ;;  %v1254_v27 = vcombine.low %v1232_v15, %v1246_v17  ;;  %v519_v15 = vrot.slane %v6208_v11, %v6841_v54  ;;  %v6259_v11 = vld [vmem:[#allocation2 + $0x264] ss:$16 sps:$4 sm:$0xff]  }
  0xb2   :  { %3384 = vmatpush1.bf16.msra.mxu0 %v6090_v18  ;;  %3836 = vmatpush1.bf16.msra.mxu1 %v6093_v19  ;;  %v1304_v18 = vrot.slane %v6160_v12, %v6841_v54  ;;  %v1318_v19 = vrot.slane %v6162_v13, %v6841_v54  ;;  %v6209_v12 = vld [vmem:[#allocation2 + $0xa4] ss:$16 sps:$4 sm:$0xff]  }
  0xb3   :  { %3385 = vmatprep.subr.bf16.mxu0 %v6106_v23  ;;  %3837 = vmatprep.subr.bf16.mxu1 %v6109_v24  ;;  %v6150_v23 = vld [vmem:[#allocation5 + $0x360] ss:$16 sps:$4 sm:$0xff]   ;;  %v6153_v24 = vld [vmem:[#allocation5 + $0x368] ss:$16 sps:$4 sm:$0xff]   ;;  %v6210_v13 = vld [vmem:[#allocation2 + $0xc4] ss:$16 sps:$4 sm:$0xff]  }
  0xb4   :  { %v1327_v26 = vcombine.high %v1304_v18, %v1318_v19  ;;  %v1326_v29 = vcombine.low %v1304_v18, %v1318_v19  ;;  %v591_v17 = vrot.slane %v6210_v13, %v6841_v54  ;;  %v6196_v19 = vld [vmem:[#allocation5 + $0x400] ss:$16 sps:$4 sm:$0xff]  }
  0xb5   :  { %3323 = vmatmul.mubr.bf16.gmra.mrb[12].mxu0 %v1662_v32  ;;  %3775 = vmatmul.mubr.bf16.gmra.mrb[12].mxu1 %v1662_v32  ;;  %v6169_v32 = vld [vmem:[#allocation5 + $0x38c] ss:$16 sps:$4 sm:$0xff]  }
  0xb6   :  { %3386 = vmatpush1.bf16.msra.mxu0 %v6104_v33  ;;  %3838 = vmatpush1.bf16.msra.mxu1 %v6107_v34  ;;  %v1687_v31 = vpack.c.bf16 %v1327_v26, %v1255_v25  ;;  %v6164_v33 = vld [vmem:[#allocation5 + $0x380] ss:$16 sps:$4 sm:$0xff]   ;;  %v6167_v34 = vld [vmem:[#allocation5 + $0x388] ss:$16 sps:$4 sm:$0xff]   ;;  %v1686_v35 = vpack.c.bf16 %v1326_v29, %v1254_v27 }
  0xb7   :  { %3387 = vmatprep.subr.bf16.mxu0 %v6112_v36  ;;  %3839 = vmatprep.subr.bf16.mxu1 %v6115_v38  ;;  %v6172_v36 = vld [vmem:[#allocation5 + $0x3a4] ss:$16 sps:$4 sm:$0xff]   ;;  %v6176_v38 = vld [vmem:[#allocation2 + $0x380] ss:$16 sps:$4 sm:$0xff]   ;;  %v6205_v27 = vld [vmem:[#allocation5 + $0x428] ss:$16 sps:$4 sm:$0xff]  }
  0xb8   :  { %3332 = vmatprep.mubr.bf16.mxu0 %v1671_v42  ;;  %3784 = vmatprep.mubr.bf16.mxu1 %v1671_v42  ;;  %v375_v42 = vrot.slane %v6034_v20, %v6841_v54  ;;  %v6199_v20 = vld [vmem:[#allocation5 + $0x408] ss:$16 sps:$4 sm:$0xff]   ;;  %v6202_v26 = vld [vmem:[#allocation5 + $0x420] ss:$16 sps:$4 sm:$0xff]  }
  0xba   :  { %3388 = vmatpush1.bf16.msra.mxu0 %v6110_v40  ;;  %3840 = vmatpush1.bf16.msra.mxu1 %v6113_v41  ;;  %v6180_v40 = vld [vmem:[#allocation2 + $0x3c0] ss:$16 sps:$4 sm:$0xff]   ;;  %v393_v60 = vcombine.high %v375_v42, %v389_v43 }
  0xbb   :  { %3389 = vmatprep.subr.bf16.mxu0 %v6126_v45  ;;  %3841 = vmatprep.subr.bf16.mxu1 %v6129_v46  ;;  %v6182_v41 = vld [vmem:[#allocation2 + $0x3e0] ss:$16 sps:$4 sm:$0xff]   ;;  %v1376_v45 = vrot.slane %v6176_v38, %v6841_v54  ;;  %v1390_v46 = vrot.slane %v6178_v39, %v6841_v54  ;;  %v1448_v47 = vrot.slane %v6180_v40, %v6841_v54 }
  0xbc   :  { %v1462_v51 = vrot.slane %v6182_v41, %v6841_v54 }
  0xbd   :  { %3333 = vmatmul.mubr.bf16.gmra.mrb[16].mxu0 %v1670_v52  ;;  %3785 = vmatmul.mubr.bf16.gmra.mrb[16].mxu1 %v1670_v52  ;;  %v6173_v52 = vld [vmem:[#allocation5 + $0x3a8] ss:$16 sps:$4 sm:$0xff]  }
  0xbe   :  { %3390 = vmatpush1.bf16.msra.mxu0 %v6124_v53  ;;  %3842 = vmatpush1.bf16.msra.mxu1 %v6127_v55  ;;  %v1399_v53 = vcombine.high %v1376_v45, %v1390_v46  ;;  %v1398_v55 = vcombine.low %v1376_v45, %v1390_v46  ;;  %v1471_v56 = vcombine.high %v1448_v47, %v1462_v51  ;;  %v6220_v46 = vld [vmem:[#allocation5 + $0x464] ss:$16 sps:$4 sm:$0xff]  }
  0xbf   :  { %3391 = vmatprep.subr.bf16.mxu0 %v6132_v58  ;;  %3843 = vmatprep.subr.bf16.mxu1 %v6135_v61  ;;  %v1470_v57 = vcombine.low %v1448_v47, %v1462_v51  ;;  %v6186_v58 = vld [vmem:[#allocation5 + $0x3c4] ss:$16 sps:$4 sm:$0xff]   ;;  %v465_v61 = vcombine.high %v447_v44, %v461_v49  ;;  %v6223_v47 = vld [vmem:[#allocation5 + $0x46c] ss:$16 sps:$4 sm:$0xff]  }
  0xc0   :  { %3342 = vmatprep.mubr.bf16.mxu0 %v1679_v6  ;;  %3794 = vmatprep.mubr.bf16.mxu1 %v1679_v6  ;;  %v1695_v62 = vpack.c.bf16 %v1471_v56, %v1399_v53  ;;  %v6242_v53 = vld [vmem:[#allocation2 + $0x1c4] ss:$16 sps:$4 sm:$0xff]   ;;  %v6218_v56 = vld [vmem:[#allocation5 + $0x460] ss:$16 sps:$4 sm:$0xff]  }
  0xc1   :  { %v1641_v6 = vpack.c.bf16 %v465_v61, %v393_v60  ;;  %v6230_v61 = vld [vmem:[#allocation5 + $0x484] ss:$16 sps:$4 sm:$0xff]  }
  0xc2   :  { %3392 = vmatpush1.bf16.msra.mxu0 %v6130_v63  ;;  %3844 = vmatpush1.bf16.msra.mxu1 %v6133_v0  ;;  %v1694_v63 = vpack.c.bf16 %v1470_v57, %v1398_v55  ;;  %v6184_v0 = vld [vmem:[#allocation5 + $0x3c0] ss:$16 sps:$4 sm:$0xff]   ;;  %v6243_v55 = vld [vmem:[#allocation2 + $0x1e4] ss:$16 sps:$4 sm:$0xff]   ;;  %v6221_v57 = vld [vmem:[#allocation5 + $0x468] ss:$16 sps:$4 sm:$0xff]  }
  0xc3   :  { %3393 = vmatprep.subr.bf16.mxu0 %v6146_v4  ;;  %3845 = vmatprep.subr.bf16.mxu1 %v6149_v5  ;;  %v6190_v4 = vld [vmem:[#allocation5 + $0x3e0] ss:$16 sps:$4 sm:$0xff]   ;;  %v6193_v5 = vld [vmem:[#allocation5 + $0x3e8] ss:$16 sps:$4 sm:$0xff]  }
  0xc5   :  { %3343 = vmatmul.mubr.bf16.gmra.mrb[20].mxu0 %v1678_v10  ;;  %3795 = vmatmul.mubr.bf16.gmra.mrb[20].mxu1 %v1678_v10  ;;  %v6201_v10 = vld [vmem:[#allocation5 + $0x40c] ss:$16 sps:$4 sm:$0xff]  }
  0xc6   :  { %3394 = vmatpush1.bf16.msra.mxu0 %v6144_v7  ;;  %3846 = vmatpush1.bf16.msra.mxu1 %v6147_v8  ;;  %v392_v7 = vcombine.low %v375_v42, %v389_v43  ;;  %v464_v8 = vcombine.low %v447_v44, %v461_v49  ;;  %v6212_v42 = vld [vmem:[#allocation5 + $0x440] ss:$16 sps:$4 sm:$0xff]   ;;  %v6215_v43 = vld [vmem:[#allocation5 + $0x448] ss:$16 sps:$4 sm:$0xff]   ;;  %v6240_v49 = vld [vmem:[#allocation2 + $0x184] ss:$16 sps:$4 sm:$0xff]  }
  0xc7   :  { %3395 = vmatprep.subr.bf16.mxu0 %v6152_v14  ;;  %3847 = vmatprep.subr.bf16.mxu1 %v6155_v16  ;;  %v6211_v14 = vld [vmem:[#allocation2 + $0xe4] ss:$16 sps:$4 sm:$0xff]   ;;  %v533_v16 = vrot.slane %v6209_v12, %v6841_v54 }
  0xc8   :  { %3352 = vmatprep.mubr.bf16.mxu0 %v1687_v31  ;;  %3804 = vmatprep.mubr.bf16.mxu1 %v1687_v31  ;;  %v1640_v18 = vpack.c.bf16 %v464_v8, %v392_v7  ;;  %v605_v21 = vrot.slane %v6211_v14, %v6841_v54  ;;  %v6239_v7 = vld [vmem:[#allocation5 + $0x4ac] ss:$16 sps:$4 sm:$0xff]   ;;  %v6256_v8 = vld [vmem:[#allocation2 + $0x204] ss:$16 sps:$4 sm:$0xff]  }
  0xc9   :  { %v951_v13 = vrot.slane %v6256_v8, %v6841_v54  ;;  %v6305_v8 = vld [vmem:[#allocation2 + $0x3a4] ss:$16 sps:$4 sm:$0xff]  }
  0xca   :  { %3396 = vmatpush1.bf16.msra.mxu0 %v6150_v23  ;;  %3848 = vmatpush1.bf16.msra.mxu1 %v6153_v24  ;;  %v537_v23 = vcombine.high %v519_v15, %v533_v16  ;;  %v6207_v24 = vld [vmem:[#allocation5 + $0x42c] ss:$16 sps:$4 sm:$0xff]   ;;  %v609_v25 = vcombine.high %v591_v17, %v605_v21  ;;  %v608_v31 = vcombine.low %v591_v17, %v605_v21  ;;  %v6237_v17 = vld [vmem:[#allocation5 + $0x4a8] ss:$16 sps:$4 sm:$0xff]   ;;  %v6246_v21 = vld [vmem:[#allocation5 + $0x4c4] ss:$16 sps:$4 sm:$0xff]  }
  0xcb   :  { %3397 = vmatprep.subr.bf16.mxu0 %v6166_v30  ;;  %3849 = vmatprep.subr.bf16.mxu1 %v6169_v32  ;;  %v536_v30 = vcombine.low %v519_v15, %v533_v16  ;;  %v6225_v32 = vld [vmem:[#allocation2 + $0x124] ss:$16 sps:$4 sm:$0xff]   ;;  %v6234_v16 = vld [vmem:[#allocation5 + $0x4a0] ss:$16 sps:$4 sm:$0xff]  }
  0xcc   :  { %v1649_v29 = vpack.c.bf16 %v609_v25, %v537_v23  ;;  %v677_v38 = vrot.slane %v6225_v32, %v6841_v54  ;;  %v6244_v25 = vld [vmem:[#allocation5 + $0x4c0] ss:$16 sps:$4 sm:$0xff]   ;;  %v6252_v32 = vld [vmem:[#allocation5 + $0x4e4] ss:$16 sps:$4 sm:$0xff]  }
  0xcd   :  { %3353 = vmatmul.mubr.bf16.gmra.mrb[24].mxu0 %v1686_v35  ;;  %3805 = vmatmul.mubr.bf16.gmra.mrb[24].mxu1 %v1686_v35  ;;  %v6214_v35 = vld [vmem:[#allocation5 + $0x444] ss:$16 sps:$4 sm:$0xff]   ;;  %v1648_v41 = vpack.c.bf16 %v608_v31, %v536_v30 }
  0xce   :  { %3398 = vmatpush1.bf16.msra.mxu0 %v6164_v33  ;;  %3850 = vmatpush1.bf16.msra.mxu1 %v6167_v34  ;;  %v6226_v33 = vld [vmem:[#allocation2 + $0x144] ss:$16 sps:$4 sm:$0xff]  }
  0xcf   :  { %3399 = vmatprep.subr.bf16.mxu0 %v6172_v36  ;;  %3851 = vmatprep.subr.bf16.mxu1 %v6175_v37  ;;  %v6227_v34 = vld [vmem:[#allocation2 + $0x164] ss:$16 sps:$4 sm:$0xff]   ;;  %v663_v36 = vrot.slane %v6224_v28, %v6841_v54  ;;  %v6217_v37 = vld [vmem:[#allocation5 + $0x44c] ss:$16 sps:$4 sm:$0xff]   ;;  %v735_v39 = vrot.slane %v6226_v33, %v6841_v54 }
  0xd0   :  { %3362 = vmatprep.mubr.bf16.mxu0 %v1695_v62  ;;  %3814 = vmatprep.mubr.bf16.mxu1 %v1695_v62  ;;  %v749_v40 = vrot.slane %v6227_v34, %v6841_v54  ;;  %v879_v62 = vrot.slane %v6242_v53, %v6841_v54  ;;  %v6274_v30 = vld [vmem:[#allocation2 + $0x2c4] ss:$16 sps:$4 sm:$0xff]   ;;  %v6255_v33 = vld [vmem:[#allocation5 + $0x4ec] ss:$16 sps:$4 sm:$0xff]   ;;  %v6260_v53 = vld [vmem:[#allocation5 + $0x500] ss:$16 sps:$4 sm:$0xff]  }
  0xd1   :  { %v681_v44 = vcombine.high %v663_v36, %v677_v38  ;;  %v6275_v31 = vld [vmem:[#allocation2 + $0x2e4] ss:$16 sps:$4 sm:$0xff]  }
  0xd2   :  { %3400 = vmatpush1.bf16.msra.mxu0 %v6170_v50  ;;  %3852 = vmatpush1.bf16.msra.mxu1 %v6173_v52  ;;  %v753_v45 = vcombine.high %v735_v39, %v749_v40  ;;  %v6241_v50 = vld [vmem:[#allocation2 + $0x1a4] ss:$16 sps:$4 sm:$0xff]   ;;  %v680_v52 = vcombine.low %v663_v36, %v677_v38  ;;  %v1181_v38 = vrot.slane %v6275_v31, %v6841_v54  ;;  %v6324_v31 = vld [vmem:[#allocation2 + $0x48] ss:$16 sps:$4 sm:$0xff]  }
  0xd3   :  { %3401 = vmatprep.subr.bf16.mxu0 %v6186_v58  ;;  %3853 = vmatprep.subr.bf16.mxu1 %v6189_v59  ;;  %v752_v58 = vcombine.low %v735_v39, %v749_v40  ;;  %v807_v59 = vrot.slane %v6240_v49, %v6841_v54  ;;  %v821_v60 = vrot.slane %v6241_v50, %v6841_v54  ;;  %v6250_v39 = vld [vmem:[#allocation5 + $0x4e0] ss:$16 sps:$4 sm:$0xff]   ;;  %v6253_v40 = vld [vmem:[#allocation5 + $0x4e8] ss:$16 sps:$4 sm:$0xff]   ;;  %v6290_v50 = vld [vmem:[#allocation2 + $0x344] ss:$16 sps:$4 sm:$0xff]  }
  0xd4   :  { %v1657_v51 = vpack.c.bf16 %v753_v45, %v681_v44  ;;  %v6265_v44 = vld [vmem:[#allocation5 + $0x50c] ss:$16 sps:$4 sm:$0xff]   ;;  %v6288_v45 = vld [vmem:[#allocation2 + $0x304] ss:$16 sps:$4 sm:$0xff]  }
  0xd5   :  { %3363 = vmatmul.mubr.bf16.gmra.mrb[28].mxu0 %v1694_v63  ;;  %3815 = vmatmul.mubr.bf16.gmra.mrb[28].mxu1 %v1694_v63  ;;  %v893_v63 = vrot.slane %v6243_v55, %v6841_v54  ;;  %v6263_v55 = vld [vmem:[#allocation5 + $0x508] ss:$16 sps:$4 sm:$0xff]  }
  0xd6   :  { %3402 = vmatpush1.bf16.msra.mxu0 %v6184_v0  ;;  %3854 = vmatpush1.bf16.msra.mxu1 %v6187_v1  ;;  %v6233_v0 = vld [vmem:[#allocation5 + $0x48c] ss:$16 sps:$4 sm:$0xff]   ;;  %v6228_v1 = vld [vmem:[#allocation5 + $0x480] ss:$16 sps:$4 sm:$0xff]  }
  0xd7   :  { %3403 = vmatprep.subr.bf16.mxu0 %v6192_v2  ;;  %3855 = vmatprep.subr.bf16.mxu1 %v6195_v3  ;;  %v6231_v2 = vld [vmem:[#allocation5 + $0x488] ss:$16 sps:$4 sm:$0xff]   ;;  %v825_v3 = vcombine.high %v807_v59, %v821_v60 }
  0xd8   :  { %3405 = vmatprep.mubr.bf16.mxu0 %v1641_v6  ;;  %3857 = vmatprep.mubr.bf16.mxu1 %v1641_v6  ;;  %v6236_v6 = vld [vmem:[#allocation5 + $0x4a4] ss:$16 sps:$4 sm:$0xff]  }
  0xda   :  { %3404 = vmatpush1.bf16.msra.mxu0 %v6190_v4  ;;  %3856 = vmatpush1.bf16.msra.mxu1 %v6193_v5  ;;  %v897_v4 = vcombine.high %v879_v62, %v893_v63  ;;  %v1656_v5 = vpack.c.bf16 %v752_v58, %v680_v52  ;;  %v6271_v58 = vld [vmem:[#allocation5 + $0x52c] ss:$16 sps:$4 sm:$0xff]  }
  0xdb   :  { %3486 = vmatprep.subr.bf16.mxu0 %v6198_v9  ;;  %3938 = vmatprep.subr.bf16.mxu1 %v6201_v10  ;;  %v6257_v9 = vld [vmem:[#allocation2 + $0x224] ss:$16 sps:$4 sm:$0xff]  }
  0xdc   :  { %v6258_v10 = vld [vmem:[#allocation2 + $0x244] ss:$16 sps:$4 sm:$0xff]   ;;  %v1665_v12 = vpack.c.bf16 %v897_v4, %v825_v3  ;;  %v965_v14 = vrot.slane %v6257_v9, %v6841_v54  ;;  %v6281_v4 = vld [vmem:[#allocation5 + $0x54c] ss:$16 sps:$4 sm:$0xff]  }
  0xdd   :  { %3406 = vmatmul.mubr.bf16.vlgmr.msra.gmra.mrb[0].mxu0 %v1640_v18  ;;  %3858 = vmatmul.mubr.bf16.vlgmr.msra.gmra.mrb[0].mxu1 %v1640_v18  ;;  %v1023_v15 = vrot.slane %v6258_v10, %v6841_v54  ;;  %v824_v18 = vcombine.low %v807_v59, %v821_v60  ;;  %v1311_v60 = vrot.slane %v6290_v50, %v6841_v54  ;;  %v6278_v3 = vld [vmem:[#allocation5 + $0x544] ss:$16 sps:$4 sm:$0xff]  }
  0xde   :  { %3487 = vmatpush1.bf16.msra.mxu0 %v6196_v19  ;;  %3939 = vmatpush1.bf16.msra.mxu1 %v6199_v20  ;;  %v896_v19 = vcombine.low %v879_v62, %v893_v63  ;;  %v1037_v20 = vrot.slane %v6259_v11, %v6841_v54  ;;  %v969_v23 = vcombine.high %v951_v13, %v965_v14  ;;  %v6266_v63 = vld [vmem:[#allocation5 + $0x520] ss:$16 sps:$4 sm:$0xff]   ;;  %v6306_v9 = vld [vmem:[#allocation2 + $0x3c4] ss:$16 sps:$4 sm:$0xff]  }
  0xdf   :  { %3488 = vmatprep.subr.bf16.mxu0 %v6204_v22  ;;  %3940 = vmatprep.subr.bf16.mxu1 %v6207_v24  ;;  %v6249_v22 = vld [vmem:[#allocation5 + $0x4cc] ss:$16 sps:$4 sm:$0xff]   ;;  %v6307_v10 = vld [vmem:[#allocation2 + $0x3e4] ss:$16 sps:$4 sm:$0xff]  }
  0xe0   :  { %3415 = vmatprep.mubr.bf16.mxu0 %v1649_v29  ;;  %3867 = vmatprep.mubr.bf16.mxu1 %v1649_v29  ;;  %v1041_v24 = vcombine.high %v1023_v15, %v1037_v20  ;;  %v1664_v28 = vpack.c.bf16 %v896_v19, %v824_v18  ;;  %v6273_v29 = vld [vmem:[#allocation2 + $0x2a4] ss:$16 sps:$4 sm:$0xff]   ;;  %v6285_v18 = vld [vmem:[#allocation5 + $0x568] ss:$16 sps:$4 sm:$0xff]  }
  0xe1   :  { %v1109_v36 = vrot.slane %v6273_v29, %v6841_v54 }
  0xe2   :  { %3489 = vmatpush1.bf16.msra.mxu0 %v6202_v26  ;;  %3941 = vmatpush1.bf16.msra.mxu1 %v6205_v27  ;;  %v6247_v26 = vld [vmem:[#allocation5 + $0x4c8] ss:$16 sps:$4 sm:$0xff]   ;;  %v6272_v27 = vld [vmem:[#allocation2 + $0x284] ss:$16 sps:$4 sm:$0xff]   ;;  %v1673_v34 = vpack.c.bf16 %v1041_v24, %v969_v23 }
  0xe3   :  { %3490 = vmatprep.subr.bf16.mxu0 %v6214_v35  ;;  %3942 = vmatprep.subr.bf16.mxu1 %v6217_v37  ;;  %v1095_v35 = vrot.slane %v6272_v27, %v6841_v54  ;;  %v1167_v37 = vrot.slane %v6274_v30, %v6841_v54  ;;  %v6320_v27 = vld [vmem:[#allocation2 + $0x8] ss:$16 sps:$4 sm:$0xff]  }
  0xe5   :  { %3416 = vmatmul.mubr.bf16.gmra.mrb[4].mxu0 %v1648_v41  ;;  %3868 = vmatmul.mubr.bf16.gmra.mrb[4].mxu1 %v1648_v41  ;;  %v968_v41 = vcombine.low %v951_v13, %v965_v14  ;;  %v1185_v49 = vcombine.high %v1167_v37, %v1181_v38  ;;  %v6279_v13 = vld [vmem:[#allocation5 + $0x548] ss:$16 sps:$4 sm:$0xff]   ;;  %v6284_v14 = vld [vmem:[#allocation5 + $0x564] ss:$16 sps:$4 sm:$0xff]  }
  0xe6   :  { %3491 = vmatpush1.bf16.msra.mxu0 %v6212_v42  ;;  %3943 = vmatpush1.bf16.msra.mxu1 %v6215_v43  ;;  %v1040_v42 = vcombine.low %v1023_v15, %v1037_v20  ;;  %v6262_v43 = vld [vmem:[#allocation5 + $0x504] ss:$16 sps:$4 sm:$0xff]   ;;  %v6287_v15 = vld [vmem:[#allocation5 + $0x56c] ss:$16 sps:$4 sm:$0xff]   ;;  %v1397_v20 = vrot.slane %v6305_v8, %v6841_v54 }
  0xe7   :  { %3492 = vmatprep.subr.bf16.mxu0 %v6220_v46  ;;  %3944 = vmatprep.subr.bf16.mxu1 %v6223_v47  ;;  %v6289_v46 = vld [vmem:[#allocation2 + $0x324] ss:$16 sps:$4 sm:$0xff]   ;;  %v1113_v47 = vcombine.high %v1095_v35, %v1109_v36  ;;  %v6333_v8 = vld [vmem:[#allocation5 + $0x60c] ss:$16 sps:$4 sm:$0xff]  }
  0xe8   :  { %3425 = vmatprep.mubr.bf16.mxu0 %v1657_v51  ;;  %3877 = vmatprep.mubr.bf16.mxu1 %v1657_v51  ;;  %v6291_v51 = vld [vmem:[#allocation2 + $0x364] ss:$16 sps:$4 sm:$0xff]   ;;  %v1672_v52 = vpack.c.bf16 %v1040_v42, %v968_v41  ;;  %v1253_v59 = vrot.slane %v6289_v46, %v6841_v54  ;;  %v6298_v42 = vld [vmem:[#allocation5 + $0x5a0] ss:$16 sps:$4 sm:$0xff]  }
  0xe9   :  { %v1681_v62 = vpack.c.bf16 %v1185_v49, %v1113_v47  ;;  %v6310_v47 = vld [vmem:[#allocation5 + $0x5c4] ss:$16 sps:$4 sm:$0xff]   ;;  %v6313_v49 = vld [vmem:[#allocation5 + $0x5cc] ss:$16 sps:$4 sm:$0xff]  }
  0xea   :  { %3493 = vmatpush1.bf16.msra.mxu0 %v6218_v56  ;;  %3945 = vmatpush1.bf16.msra.mxu1 %v6221_v57  ;;  %v6268_v56 = vld [vmem:[#allocation5 + $0x524] ss:$16 sps:$4 sm:$0xff]   ;;  %v6900_v57 = vrot.slane %v6288_v45, %v6841_v54 }
  0xeb   :  { %3494 = vmatprep.subr.bf16.mxu0 %v6230_v61  ;;  %3946 = vmatprep.subr.bf16.mxu1 %v6233_v0  ;;  %v1325_v61 = vrot.slane %v6291_v51, %v6841_v54  ;;  %v6269_v0 = vld [vmem:[#allocation5 + $0x528] ss:$16 sps:$4 sm:$0xff]  }
  0xec   :  { %v1256_v23 = vcombine.low %v6900_v57, %v1253_v59 }
  0xed   :  { %3426 = vmatmul.mubr.bf16.gmra.mrb[8].mxu0 %v1656_v5  ;;  %3878 = vmatmul.mubr.bf16.gmra.mrb[8].mxu1 %v1656_v5  ;;  %v6304_v5 = vld [vmem:[#allocation2 + $0x384] ss:$16 sps:$4 sm:$0xff]   ;;  %v1328_v24 = vcombine.low %v1311_v60, %v1325_v61 }
  0xee   :  { %3495 = vmatpush1.bf16.msra.mxu0 %v6228_v1  ;;  %3947 = vmatpush1.bf16.msra.mxu1 %v6231_v2  ;;  %v1112_v1 = vcombine.low %v1095_v35, %v1109_v36  ;;  %v1184_v2 = vcombine.low %v1167_v37, %v1181_v38  ;;  %v1383_v19 = vrot.slane %v6304_v5, %v6841_v54  ;;  %v6295_v35 = vld [vmem:[#allocation5 + $0x588] ss:$16 sps:$4 sm:$0xff]   ;;  %v6300_v36 = vld [vmem:[#allocation5 + $0x5a4] ss:$16 sps:$4 sm:$0xff]   ;;  %v6303_v38 = vld [vmem:[#allocation5 + $0x5ac] ss:$16 sps:$4 sm:$0xff]  }
  0xef   :  { %3496 = vmatprep.subr.bf16.mxu0 %v6236_v6  ;;  %3948 = vmatprep.subr.bf16.mxu1 %v6239_v7  ;;  %v1257_v6 = vcombine.high %v6900_v57, %v1253_v59  ;;  %v1329_v7 = vcombine.high %v1311_v60, %v1325_v61  ;;  %v404_v37 = vrot.slane %v6320_v27, %v6841_v54  ;;  %v6342_v57 = vld [vmem:[#allocation2 + $0xa8] ss:$16 sps:$4 sm:$0xff]   ;;  %v6316_v60 = vld [vmem:[#allocation5 + $0x5e4] ss:$16 sps:$4 sm:$0xff]   ;;  %v6319_v61 = vld [vmem:[#allocation5 + $0x5ec] ss:$16 sps:$4 sm:$0xff]  }
  0xf0   :  { %3435 = vmatprep.mubr.bf16.mxu0 %v1665_v12  ;;  %3887 = vmatprep.mubr.bf16.mxu1 %v1665_v12  ;;  %v1680_v11 = vpack.c.bf16 %v1184_v2, %v1112_v1  ;;  %v6276_v12 = vld [vmem:[#allocation5 + $0x540] ss:$16 sps:$4 sm:$0xff]   ;;  %v1401_v29 = vcombine.high %v1383_v19, %v1397_v20  ;;  %v1400_v45 = vcombine.low %v1383_v19, %v1397_v20  ;;  %v6346_v59 = vld [vmem:[#allocation2 + $0xe8] ss:$16 sps:$4 sm:$0xff]  }
  0xf1   :  { %v634_v2 = vrot.slane %v6346_v59, %v6841_v54  ;;  %v6366_v19 = vld [vmem:[#allocation2 + $0x168] ss:$16 sps:$4 sm:$0xff]  }
  0xf2   :  { %3497 = vmatpush1.bf16.msra.mxu0 %v6234_v16  ;;  %3949 = vmatpush1.bf16.msra.mxu1 %v6237_v17  ;;  %v1689_v16 = vpack.c.bf16 %v1329_v7, %v1257_v6  ;;  %v6282_v17 = vld [vmem:[#allocation5 + $0x560] ss:$16 sps:$4 sm:$0xff]   ;;  %v6330_v7 = vld [vmem:[#allocation5 + $0x604] ss:$16 sps:$4 sm:$0xff]  }
  0xf3   :  { %3498 = vmatprep.subr.bf16.mxu0 %v6246_v21  ;;  %3950 = vmatprep.subr.bf16.mxu1 %v6249_v22  ;;  %v1455_v21 = vrot.slane %v6306_v9, %v6841_v54  ;;  %v1469_v22 = vrot.slane %v6307_v10, %v6841_v54  ;;  %v6328_v9 = vld [vmem:[#allocation5 + $0x600] ss:$16 sps:$4 sm:$0xff]   ;;  %v6331_v10 = vld [vmem:[#allocation5 + $0x608] ss:$16 sps:$4 sm:$0xff]  }
  0xf5   :  { %3436 = vmatmul.mubr.bf16.gmra.mrb[12].mxu0 %v1664_v28  ;;  %3888 = vmatmul.mubr.bf16.gmra.mrb[12].mxu1 %v1664_v28  ;;  %v6322_v28 = vld [vmem:[#allocation2 + $0x28] ss:$16 sps:$4 sm:$0xff]   ;;  %v1473_v30 = vcombine.high %v1455_v21, %v1469_v22  ;;  %v1472_v46 = vcombine.low %v1455_v21, %v1469_v22 }
  0xf6   :  { %3499 = vmatpush1.bf16.msra.mxu0 %v6244_v25  ;;  %3951 = vmatpush1.bf16.msra.mxu1 %v6247_v26  ;;  %v6294_v25 = vld [vmem:[#allocation5 + $0x584] ss:$16 sps:$4 sm:$0xff]   ;;  %v6297_v26 = vld [vmem:[#allocation5 + $0x58c] ss:$16 sps:$4 sm:$0xff]  }
  0xf7   :  { %3500 = vmatprep.subr.bf16.mxu0 %v6252_v32  ;;  %3952 = vmatprep.subr.bf16.mxu1 %v6255_v33  ;;  %v6326_v32 = vld [vmem:[#allocation2 + $0x68] ss:$16 sps:$4 sm:$0xff]   ;;  %v1688_v33 = vpack.c.bf16 %v1328_v24, %v1256_v23  ;;  %v6334_v24 = vld [vmem:[#allocation5 + $0x620] ss:$16 sps:$4 sm:$0xff]  }
  0xf8   :  { %3445 = vmatprep.mubr.bf16.mxu0 %v1673_v34  ;;  %3897 = vmatprep.mubr.bf16.mxu1 %v1673_v34  ;;  %v6292_v34 = vld [vmem:[#allocation5 + $0x580] ss:$16 sps:$4 sm:$0xff]   ;;  %v490_v41 = vrot.slane %v6326_v32, %v6841_v54  ;;  %v6351_v32 = vld [vmem:[#allocation5 + $0x648] ss:$16 sps:$4 sm:$0xff]  }
  0xfa   :  { %3501 = vmatpush1.bf16.msra.mxu0 %v6250_v39  ;;  %3953 = vmatpush1.bf16.msra.mxu1 %v6253_v40  ;;  %v418_v39 = vrot.slane %v6322_v28, %v6841_v54  ;;  %v476_v40 = vrot.slane %v6324_v31, %v6841_v54  ;;  %v778_v28 = vrot.slane %v6366_v19, %v6841_v54  ;;  %v6348_v31 = vld [vmem:[#allocation5 + $0x640] ss:$16 sps:$4 sm:$0xff]   ;;  %v6399_v19 = vld [vmem:[#allocation5 + $0x6ec] ss:$16 sps:$4 sm:$0xff]  }
  0xfb   :  { %3502 = vmatprep.subr.bf16.mxu0 %v6262_v43  ;;  %3954 = vmatprep.subr.bf16.mxu1 %v6265_v44  ;;  %v6301_v43 = vld [vmem:[#allocation5 + $0x5a8] ss:$16 sps:$4 sm:$0xff]   ;;  %v1697_v44 = vpack.c.bf16 %v1473_v30, %v1401_v29  ;;  %v6350_v29 = vld [vmem:[#allocation5 + $0x644] ss:$16 sps:$4 sm:$0xff]   ;;  %v6353_v30 = vld [vmem:[#allocation5 + $0x64c] ss:$16 sps:$4 sm:$0xff]  }
  0xfc   :  { %v427_v50 = vcombine.high %v404_v37, %v418_v39  ;;  %v499_v51 = vcombine.high %v476_v40, %v490_v41  ;;  %v426_v5 = vcombine.low %v404_v37, %v418_v39  ;;  %v498_v6 = vcombine.low %v476_v40, %v490_v41  ;;  %v6359_v37 = vld [vmem:[#allocation5 + $0x66c] ss:$16 sps:$4 sm:$0xff]   ;;  %v6382_v39 = vld [vmem:[#allocation2 + $0x1a8] ss:$16 sps:$4 sm:$0xff]  }
  0xfd   :  { %3446 = vmatmul.mubr.bf16.gmra.mrb[16].mxu0 %v1672_v52  ;;  %3898 = vmatmul.mubr.bf16.gmra.mrb[16].mxu1 %v1672_v52  ;;  %v6308_v52 = vld [vmem:[#allocation5 + $0x5c0] ss:$16 sps:$4 sm:$0xff]  }
  0xfe   :  { %3503 = vmatpush1.bf16.msra.mxu0 %v6260_v53  ;;  %3955 = vmatpush1.bf16.msra.mxu1 %v6263_v55  ;;  %v6311_v53 = vld [vmem:[#allocation5 + $0x5c8] ss:$16 sps:$4 sm:$0xff]  }
  0xff   :  { %3504 = vmatprep.subr.bf16.mxu0 %v6268_v56  ;;  %3956 = vmatprep.subr.bf16.mxu1 %v6271_v58  ;;  %v6340_v55 = vld [vmem:[#allocation2 + $0x88] ss:$16 sps:$4 sm:$0xff]   ;;  %v1696_v56 = vpack.c.bf16 %v1472_v46, %v1400_v45 }
 0x100   :  { %3455 = vmatprep.mubr.bf16.mxu0 %v1681_v62  ;;  %3907 = vmatprep.mubr.bf16.mxu1 %v1681_v62  ;;  %v6344_v58 = vld [vmem:[#allocation2 + $0xc8] ss:$16 sps:$4 sm:$0xff]   ;;  %v1643_v62 = vpack.c.bf16 %v499_v51, %v427_v50  ;;  %v6370_v50 = vld [vmem:[#allocation5 + $0x684] ss:$16 sps:$4 sm:$0xff]  }
 0x101   :  { %v620_v1 = vrot.slane %v6344_v58, %v6841_v54  ;;  %v6357_v45 = vld [vmem:[#allocation5 + $0x668] ss:$16 sps:$4 sm:$0xff]  }
 0x102   :  { %3505 = vmatpush1.bf16.msra.mxu0 %v6266_v63  ;;  %3957 = vmatpush1.bf16.msra.mxu1 %v6269_v0  ;;  %v548_v63 = vrot.slane %v6340_v55, %v6841_v54  ;;  %v562_v0 = vrot.slane %v6342_v57, %v6841_v54  ;;  %v6368_v55 = vld [vmem:[#allocation5 + $0x680] ss:$16 sps:$4 sm:$0xff]  }
 0x103   :  { %3506 = vmatprep.subr.bf16.mxu0 %v6278_v3  ;;  %3958 = vmatprep.subr.bf16.mxu1 %v6281_v4  ;;  %v6314_v3 = vld [vmem:[#allocation5 + $0x5e0] ss:$16 sps:$4 sm:$0xff]   ;;  %v6317_v4 = vld [vmem:[#allocation5 + $0x5e8] ss:$16 sps:$4 sm:$0xff]   ;;  %v642_v27 = vcombine.low %v620_v1, %v634_v2 }
 0x105   :  { %3456 = vmatmul.mubr.bf16.gmra.mrb[20].mxu0 %v1680_v11  ;;  %3908 = vmatmul.mubr.bf16.gmra.mrb[20].mxu1 %v1680_v11  ;;  %v571_v11 = vcombine.high %v548_v63, %v562_v0 }
 0x106   :  { %3507 = vmatpush1.bf16.msra.mxu0 %v6276_v12  ;;  %3959 = vmatpush1.bf16.msra.mxu1 %v6279_v13  ;;  %v643_v12 = vcombine.high %v620_v1, %v634_v2  ;;  %v1642_v13 = vpack.c.bf16 %v498_v6, %v426_v5  ;;  %v6400_v1 = vld [vmem:[#allocation2 + $0x208] ss:$16 sps:$4 sm:$0xff]  }
 0x107   :  { %3508 = vmatprep.subr.bf16.mxu0 %v6284_v14  ;;  %3960 = vmatprep.subr.bf16.mxu1 %v6287_v15  ;;  %v6336_v14 = vld [vmem:[#allocation5 + $0x624] ss:$16 sps:$4 sm:$0xff]   ;;  %v6339_v15 = vld [vmem:[#allocation5 + $0x62c] ss:$16 sps:$4 sm:$0xff]   ;;  %v6404_v5 = vld [vmem:[#allocation2 + $0x248] ss:$16 sps:$4 sm:$0xff]  }
 0x108   :  { %3465 = vmatprep.mubr.bf16.mxu0 %v1689_v16  ;;  %3917 = vmatprep.mubr.bf16.mxu1 %v1689_v16  ;;  %v6360_v16 = vld [vmem:[#allocation2 + $0x108] ss:$16 sps:$4 sm:$0xff]   ;;  %v1651_v20 = vpack.c.bf16 %v643_v12, %v571_v11  ;;  %v1052_v11 = vrot.slane %v6404_v5, %v6841_v54 }
 0x109   :  { %v692_v21 = vrot.slane %v6360_v16, %v6841_v54  ;;  %v6406_v6 = vld [vmem:[#allocation2 + $0x268] ss:$16 sps:$4 sm:$0xff]  }
 0x10a   :  { %3509 = vmatpush1.bf16.msra.mxu0 %v6282_v17  ;;  %3961 = vmatpush1.bf16.msra.mxu1 %v6285_v18  ;;  %v6362_v17 = vld [vmem:[#allocation2 + $0x128] ss:$16 sps:$4 sm:$0xff]   ;;  %v1066_v12 = vrot.slane %v6406_v6, %v6841_v54  ;;  %v6450_v6 = vld [vmem:[#allocation5 + $0x784] ss:$16 sps:$4 sm:$0xff]  }
 0x10b   :  { %3510 = vmatprep.subr.bf16.mxu0 %v6294_v25  ;;  %3962 = vmatprep.subr.bf16.mxu1 %v6297_v26  ;;  %v6364_v18 = vld [vmem:[#allocation2 + $0x148] ss:$16 sps:$4 sm:$0xff]   ;;  %v706_v22 = vrot.slane %v6362_v17, %v6841_v54  ;;  %v570_v26 = vcombine.low %v548_v63, %v562_v0 }
 0x10c   :  { %v764_v23 = vrot.slane %v6364_v18, %v6841_v54  ;;  %v6337_v25 = vld [vmem:[#allocation5 + $0x628] ss:$16 sps:$4 sm:$0xff]   ;;  %v1075_v17 = vcombine.high %v1052_v11, %v1066_v12  ;;  %v6396_v18 = vld [vmem:[#allocation5 + $0x6e4] ss:$16 sps:$4 sm:$0xff]  }
 0x10d   :  { %3466 = vmatmul.mubr.bf16.gmra.mrb[24].mxu0 %v1688_v33  ;;  %3918 = vmatmul.mubr.bf16.gmra.mrb[24].mxu1 %v1688_v33  ;;  %v715_v33 = vcombine.high %v692_v21, %v706_v22  ;;  %v714_v41 = vcombine.low %v692_v21, %v706_v22  ;;  %v6377_v63 = vld [vmem:[#allocation5 + $0x6a8] ss:$16 sps:$4 sm:$0xff]  }
 0x10e   :  { %3511 = vmatpush1.bf16.msra.mxu0 %v6292_v34  ;;  %3963 = vmatpush1.bf16.msra.mxu1 %v6295_v35  ;;  %v787_v34 = vcombine.high %v764_v23, %v778_v28  ;;  %v1650_v35 = vpack.c.bf16 %v642_v27, %v570_v26  ;;  %v786_v46 = vcombine.low %v764_v23, %v778_v28  ;;  %v6397_v21 = vld [vmem:[#allocation5 + $0x6e8] ss:$16 sps:$4 sm:$0xff]   ;;  %v6413_v26 = vld [vmem:[#allocation5 + $0x70c] ss:$16 sps:$4 sm:$0xff]  }
 0x10f   :  { %3512 = vmatprep.subr.bf16.mxu0 %v6300_v36  ;;  %3964 = vmatprep.subr.bf16.mxu1 %v6303_v38  ;;  %v6356_v36 = vld [vmem:[#allocation5 + $0x664] ss:$16 sps:$4 sm:$0xff]   ;;  %v6380_v38 = vld [vmem:[#allocation2 + $0x188] ss:$16 sps:$4 sm:$0xff]  }
 0x110   :  { %3475 = vmatprep.mubr.bf16.mxu0 %v1697_v44  ;;  %3927 = vmatprep.mubr.bf16.mxu1 %v1697_v44  ;;  %v1659_v40 = vpack.c.bf16 %v787_v34, %v715_v33  ;;  %v6354_v44 = vld [vmem:[#allocation5 + $0x660] ss:$16 sps:$4 sm:$0xff]   ;;  %v1658_v59 = vpack.c.bf16 %v786_v46, %v714_v41  ;;  %v6420_v27 = vld [vmem:[#allocation2 + $0x288] ss:$16 sps:$4 sm:$0xff]  }
 0x111   :  { %v6422_v28 = vld [vmem:[#allocation2 + $0x2a8] ss:$16 sps:$4 sm:$0xff]  }
 0x112   :  { %3513 = vmatpush1.bf16.msra.mxu0 %v6298_v42  ;;  %3965 = vmatpush1.bf16.msra.mxu1 %v6301_v43  ;;  %v6384_v42 = vld [vmem:[#allocation2 + $0x1c8] ss:$16 sps:$4 sm:$0xff]  }
 0x113   :  { %3514 = vmatprep.subr.bf16.mxu0 %v6310_v47  ;;  %3966 = vmatprep.subr.bf16.mxu1 %v6313_v49  ;;  %v6386_v43 = vld [vmem:[#allocation2 + $0x1e8] ss:$16 sps:$4 sm:$0xff]   ;;  %v836_v47 = vrot.slane %v6380_v38, %v6841_v54  ;;  %v850_v49 = vrot.slane %v6382_v39, %v6841_v54  ;;  %v908_v51 = vrot.slane %v6384_v42, %v6841_v54  ;;  %v6416_v38 = vld [vmem:[#allocation5 + $0x724] ss:$16 sps:$4 sm:$0xff]   ;;  %v6414_v42 = vld [vmem:[#allocation5 + $0x720] ss:$16 sps:$4 sm:$0xff]  }
 0x115   :  { %3476 = vmatmul.mubr.bf16.gmra.mrb[28].mxu0 %v1696_v56  ;;  %3928 = vmatmul.mubr.bf16.gmra.mrb[28].mxu1 %v1696_v56  ;;  %v6371_v56 = vld [vmem:[#allocation5 + $0x688] ss:$16 sps:$4 sm:$0xff]   ;;  %v859_v57 = vcombine.high %v836_v47, %v850_v49  ;;  %v858_v2 = vcombine.low %v836_v47, %v850_v49  ;;  %v6430_v47 = vld [vmem:[#allocation5 + $0x744] ss:$16 sps:$4 sm:$0xff]   ;;  %v6433_v49 = vld [vmem:[#allocation5 + $0x74c] ss:$16 sps:$4 sm:$0xff]  }
 0x116   :  { %3515 = vmatpush1.bf16.msra.mxu0 %v6308_v52  ;;  %3967 = vmatpush1.bf16.msra.mxu1 %v6311_v53  ;;  %v922_v52 = vrot.slane %v6386_v43, %v6841_v54  ;;  %v6373_v53 = vld [vmem:[#allocation5 + $0x68c] ss:$16 sps:$4 sm:$0xff]   ;;  %v6417_v43 = vld [vmem:[#allocation5 + $0x728] ss:$16 sps:$4 sm:$0xff]  }
 0x117   :  { %3516 = vmatprep.subr.bf16.mxu0 %v6316_v60  ;;  %3968 = vmatprep.subr.bf16.mxu1 %v6319_v61  ;;  %v6376_v60 = vld [vmem:[#allocation5 + $0x6a4] ss:$16 sps:$4 sm:$0xff]   ;;  %v6379_v61 = vld [vmem:[#allocation5 + $0x6ac] ss:$16 sps:$4 sm:$0xff]  }
 0x118   :  { %3518 = vmatprep.mubr.bf16.mxu0 %v1643_v62  ;;  %3970 = vmatprep.mubr.bf16.mxu1 %v1643_v62  ;;  %v931_v58 = vcombine.high %v908_v51, %v922_v52  ;;  %v6374_v62 = vld [vmem:[#allocation5 + $0x6a0] ss:$16 sps:$4 sm:$0xff]  }
 0x11a   :  { %3517 = vmatpush1.bf16.msra.mxu0 %v6314_v3  ;;  %3969 = vmatpush1.bf16.msra.mxu1 %v6317_v4  ;;  %v1667_v0 = vpack.c.bf16 %v931_v58, %v859_v57  ;;  %v930_v3 = vcombine.low %v908_v51, %v922_v52  ;;  %v6402_v4 = vld [vmem:[#allocation2 + $0x228] ss:$16 sps:$4 sm:$0xff]  }
 0x11b   :  { %3599 = vmatprep.subr.bf16.mxu0 %v6330_v7  ;;  %4051 = vmatprep.subr.bf16.mxu1 %v6333_v8  ;;  %v6390_v7 = vld [vmem:[#allocation5 + $0x6c4] ss:$16 sps:$4 sm:$0xff]   ;;  %v980_v8 = vrot.slane %v6400_v1, %v6841_v54  ;;  %v6442_v51 = vld [vmem:[#allocation2 + $0x328] ss:$16 sps:$4 sm:$0xff]   ;;  %v6434_v1 = vld [vmem:[#allocation5 + $0x760] ss:$16 sps:$4 sm:$0xff]  }
 0x11c   :  { %v6444_v52 = vld [vmem:[#allocation2 + $0x348] ss:$16 sps:$4 sm:$0xff]  }
 0x11d   :  { %3519 = vmatmul.mubr.bf16.vlgmr.msra.gmra.mrb[0].mxu0 %v1642_v13  ;;  %3971 = vmatmul.mubr.bf16.vlgmr.msra.gmra.mrb[0].mxu1 %v1642_v13  ;;  %v1666_v13 = vpack.c.bf16 %v930_v3, %v858_v2  ;;  %v6431_v57 = vld [vmem:[#allocation5 + $0x748] ss:$16 sps:$4 sm:$0xff]  }
 0x11e   :  { %3600 = vmatpush1.bf16.msra.mxu0 %v6328_v9  ;;  %4052 = vmatpush1.bf16.msra.mxu1 %v6331_v10  ;;  %v6393_v9 = vld [vmem:[#allocation5 + $0x6cc] ss:$16 sps:$4 sm:$0xff]   ;;  %v994_v10 = vrot.slane %v6402_v4, %v6841_v54  ;;  %v6437_v2 = vld [vmem:[#allocation5 + $0x768] ss:$16 sps:$4 sm:$0xff]  }
 0x11f   :  { %3601 = vmatprep.subr.bf16.mxu0 %v6336_v14  ;;  %4053 = vmatprep.subr.bf16.mxu1 %v6339_v15  ;;  %v6388_v14 = vld [vmem:[#allocation5 + $0x6c0] ss:$16 sps:$4 sm:$0xff]   ;;  %v6391_v15 = vld [vmem:[#allocation5 + $0x6c8] ss:$16 sps:$4 sm:$0xff]  }
 0x120   :  { %3528 = vmatprep.mubr.bf16.mxu0 %v1651_v20  ;;  %3980 = vmatprep.mubr.bf16.mxu1 %v1651_v20  ;;  %v1003_v16 = vcombine.high %v980_v8, %v994_v10  ;;  %v6394_v20 = vld [vmem:[#allocation5 + $0x6e0] ss:$16 sps:$4 sm:$0xff]   ;;  %v1002_v23 = vcombine.low %v980_v8, %v994_v10  ;;  %v6451_v10 = vld [vmem:[#allocation5 + $0x788] ss:$16 sps:$4 sm:$0xff]  }
 0x122   :  { %3602 = vmatpush1.bf16.msra.mxu0 %v6334_v24  ;;  %4054 = vmatpush1.bf16.msra.mxu1 %v6337_v25  ;;  %v1675_v22 = vpack.c.bf16 %v1075_v17, %v1003_v16  ;;  %v1074_v24 = vcombine.low %v1052_v11, %v1066_v12  ;;  %v6410_v25 = vld [vmem:[#allocation5 + $0x704] ss:$16 sps:$4 sm:$0xff]   ;;  %v6460_v11 = vld [vmem:[#allocation2 + $0x388] ss:$16 sps:$4 sm:$0xff]  }
 0x123   :  { %3603 = vmatprep.subr.bf16.mxu0 %v6350_v29  ;;  %4055 = vmatprep.subr.bf16.mxu1 %v6353_v30  ;;  %v6424_v29 = vld [vmem:[#allocation2 + $0x2c8] ss:$16 sps:$4 sm:$0xff]   ;;  %v6456_v16 = vld [vmem:[#allocation5 + $0x7a4] ss:$16 sps:$4 sm:$0xff]   ;;  %v1412_v17 = vrot.slane %v6460_v11, %v6841_v54 }
 0x124   :  { %v6426_v30 = vld [vmem:[#allocation2 + $0x2e8] ss:$16 sps:$4 sm:$0xff]   ;;  %v1196_v33 = vrot.slane %v6424_v29, %v6841_v54  ;;  %v1674_v34 = vpack.c.bf16 %v1074_v24, %v1002_v23  ;;  %v6513_v11 = vld [vmem:[#allocation7] sm:$0xff]  }
 0x125   :  { %3529 = vmatmul.mubr.bf16.gmra.mrb[4].mxu0 %v1650_v35  ;;  %3981 = vmatmul.mubr.bf16.gmra.mrb[4].mxu1 %v1650_v35  ;;  %v6408_v35 = vld [vmem:[#allocation5 + $0x700] ss:$16 sps:$4 sm:$0xff]   ;;  %v6457_v23 = vld [vmem:[#allocation5 + $0x7a8] ss:$16 sps:$4 sm:$0xff]  }
 0x126   :  { %3604 = vmatpush1.bf16.msra.mxu0 %v6348_v31  ;;  %4056 = vmatpush1.bf16.msra.mxu1 %v6351_v32  ;;  %v1124_v31 = vrot.slane %v6420_v27, %v6841_v54  ;;  %v1138_v32 = vrot.slane %v6422_v28, %v6841_v54  ;;  %v6470_v28 = vld [vmem:[#allocation5 + $0x7c4] ss:$16 sps:$4 sm:$0xff]  }
 0x127   :  { %3605 = vmatprep.subr.bf16.mxu0 %v6356_v36  ;;  %4057 = vmatprep.subr.bf16.mxu1 %v6359_v37  ;;  %v6411_v36 = vld [vmem:[#allocation5 + $0x708] ss:$16 sps:$4 sm:$0xff]   ;;  %v1210_v37 = vrot.slane %v6426_v30, %v6841_v54  ;;  %v6473_v30 = vld [vmem:[#allocation5 + $0x7cc] ss:$16 sps:$4 sm:$0xff]  }
 0x128   :  { %3538 = vmatprep.mubr.bf16.mxu0 %v1659_v40  ;;  %3990 = vmatprep.mubr.bf16.mxu1 %v1659_v40  ;;  %v1147_v39 = vcombine.high %v1124_v31, %v1138_v32  ;;  %v6419_v40 = vld [vmem:[#allocation5 + $0x72c] ss:$16 sps:$4 sm:$0xff]  }
 0x129   :  { %v1219_v41 = vcombine.high %v1196_v33, %v1210_v37  ;;  %v1218_v46 = vcombine.low %v1196_v33, %v1210_v37  ;;  %v6482_v33 = vld [vmem:[#allocation2 + $0x4c] ss:$16 sps:$4 sm:$0xff]  }
 0x12a   :  { %3606 = vmatpush1.bf16.msra.mxu0 %v6354_v44  ;;  %4058 = vmatpush1.bf16.msra.mxu1 %v6357_v45  ;;  %v1146_v45 = vcombine.low %v1124_v31, %v1138_v32  ;;  %v6480_v31 = vld [vmem:[#allocation2 + $0xc] ss:$16 sps:$4 sm:$0xff]  }
 0x12b   :  { %3607 = vmatprep.subr.bf16.mxu0 %v6370_v50  ;;  %4059 = vmatprep.subr.bf16.mxu1 %v6373_v53  ;;  %v1683_v44 = vpack.c.bf16 %v1219_v41, %v1147_v39  ;;  %v6440_v50 = vld [vmem:[#allocation2 + $0x308] ss:$16 sps:$4 sm:$0xff]   ;;  %v6481_v32 = vld [vmem:[#allocation2 + $0x2c] ss:$16 sps:$4 sm:$0xff]   ;;  %v411_v37 = vrot.slane %v6480_v31, %v6841_v54 }
 0x12c   :  { %v6446_v53 = vld [vmem:[#allocation2 + $0x368] ss:$16 sps:$4 sm:$0xff]   ;;  %v1268_v58 = vrot.slane %v6440_v50, %v6841_v54  ;;  %v6485_v39 = vld [vmem:[#allocation2 + $0xac] ss:$16 sps:$4 sm:$0xff]  }
 0x12d   :  { %3539 = vmatmul.mubr.bf16.gmra.mrb[8].mxu0 %v1658_v59  ;;  %3991 = vmatmul.mubr.bf16.gmra.mrb[8].mxu1 %v1658_v59  ;;  %v1282_v59 = vrot.slane %v6442_v51, %v6841_v54  ;;  %v6487_v41 = vld [vmem:[#allocation2 + $0xec] ss:$16 sps:$4 sm:$0xff]   ;;  %v569_v51 = vrot.slane %v6485_v39, %v6841_v54  ;;  %v6521_v39 = vld [vmem:[#allocation7 + $0x10] sm:$0xff]  }
 0x12e   :  { %3608 = vmatpush1.bf16.msra.mxu0 %v6368_v55  ;;  %4060 = vmatpush1.bf16.msra.mxu1 %v6371_v56  ;;  %v1682_v55 = vpack.c.bf16 %v1218_v46, %v1146_v45  ;;  %v6428_v56 = vld [vmem:[#allocation5 + $0x740] ss:$16 sps:$4 sm:$0xff]   ;;  %v6496_v31 = vld [vmem:[#allocation2 + $0x20c] ss:$16 sps:$4 sm:$0xff]  }
 0x12f   :  { %3609 = vmatprep.subr.bf16.mxu0 %v6376_v60  ;;  %4061 = vmatprep.subr.bf16.mxu1 %v6379_v61  ;;  %v6436_v60 = vld [vmem:[#allocation5 + $0x764] ss:$16 sps:$4 sm:$0xff]   ;;  %v1340_v61 = vrot.slane %v6444_v52, %v6841_v54  ;;  %v1290_v4 = vcombine.low %v1268_v58, %v1282_v59 }
 0x130   :  { %3548 = vmatprep.mubr.bf16.mxu0 %v1667_v0  ;;  %4000 = vmatprep.mubr.bf16.mxu1 %v1667_v0  ;;  %v1291_v0 = vcombine.high %v1268_v58, %v1282_v59  ;;  %v6488_v59 = vld [vmem:[#allocation2 + $0x10c] ss:$16 sps:$4 sm:$0xff]  }
 0x132   :  { %3610 = vmatpush1.bf16.msra.mxu0 %v6374_v62  ;;  %4062 = vmatpush1.bf16.msra.mxu1 %v6377_v63  ;;  %v1354_v62 = vrot.slane %v6446_v53, %v6841_v54  ;;  %v6439_v63 = vld [vmem:[#allocation5 + $0x76c] ss:$16 sps:$4 sm:$0xff]  }
 0x133   :  { %3611 = vmatprep.subr.bf16.mxu0 %v6390_v7  ;;  %4063 = vmatprep.subr.bf16.mxu1 %v6393_v9  ;;  %v6453_v7 = vld [vmem:[#allocation5 + $0x78c] ss:$16 sps:$4 sm:$0xff]   ;;  %v6448_v9 = vld [vmem:[#allocation5 + $0x780] ss:$16 sps:$4 sm:$0xff]  }
 0x134   :  { %v1363_v3 = vcombine.high %v1340_v61, %v1354_v62  ;;  %v1362_v5 = vcombine.low %v1340_v61, %v1354_v62  ;;  %v6477_v61 = vld [vmem:[#allocation5 + $0x7e8] ss:$16 sps:$4 sm:$0xff]  }
 0x135   :  { %3549 = vmatmul.mubr.bf16.gmra.mrb[12].mxu0 %v1666_v13  ;;  %4001 = vmatmul.mubr.bf16.gmra.mrb[12].mxu1 %v1666_v13  ;;  %v6462_v13 = vld [vmem:[#allocation2 + $0x3a8] ss:$16 sps:$4 sm:$0xff]  }
 0x136   :  { %3612 = vmatpush1.bf16.msra.mxu0 %v6388_v14  ;;  %4064 = vmatpush1.bf16.msra.mxu1 %v6391_v15  ;;  %v1691_v8 = vpack.c.bf16 %v1363_v3, %v1291_v0  ;;  %v1690_v12 = vpack.c.bf16 %v1362_v5, %v1290_v4  ;;  %v6464_v14 = vld [vmem:[#allocation2 + $0x3c8] ss:$16 sps:$4 sm:$0xff]   ;;  %v699_v4 = vrot.slane %v6488_v59, %v6841_v54  ;;  %v6503_v59 = vld [vmem:[#allocation2 + $0x2ec] ss:$16 sps:$4 sm:$0xff]  }
 0x137   :  { %3613 = vmatprep.subr.bf16.mxu0 %v6396_v18  ;;  %4065 = vmatprep.subr.bf16.mxu1 %v6399_v19  ;;  %v6466_v15 = vld [vmem:[#allocation2 + $0x3e8] ss:$16 sps:$4 sm:$0xff]   ;;  %v6459_v18 = vld [vmem:[#allocation5 + $0x7ac] ss:$16 sps:$4 sm:$0xff]   ;;  %v1426_v19 = vrot.slane %v6462_v13, %v6841_v54 }
 0x138   :  { %3558 = vmatprep.mubr.bf16.mxu0 %v1675_v22  ;;  %4010 = vmatprep.mubr.bf16.mxu1 %v1675_v22  ;;  %v6454_v22 = vld [vmem:[#allocation5 + $0x7a0] ss:$16 sps:$4 sm:$0xff]   ;;  %v6494_v13 = vld [vmem:[#allocation2 + $0x1cc] ss:$16 sps:$4 sm:$0xff]  }
 0x139   :  { %v1435_v24 = vcombine.high %v1412_v17, %v1426_v19 }
 0x13a   :  { %3614 = vmatpush1.bf16.msra.mxu0 %v6394_v20  ;;  %4066 = vmatpush1.bf16.msra.mxu1 %v6397_v21  ;;  %v1484_v20 = vrot.slane %v6464_v14, %v6841_v54  ;;  %v1498_v21 = vrot.slane %v6466_v15, %v6841_v54  ;;  %v6495_v14 = vld [vmem:[#allocation2 + $0x1ec] ss:$16 sps:$4 sm:$0xff]   ;;  %v6514_v15 = vld [vmem:[#allocation7 + $0xc0] sm:$0xff]  }
 0x13b   :  { %3615 = vmatprep.subr.bf16.mxu0 %v6410_v25  ;;  %4067 = vmatprep.subr.bf16.mxu1 %v6413_v26  ;;  %v1434_v26 = vcombine.low %v1412_v17, %v1426_v19 }
 0x13c   :  { %v1507_v25 = vcombine.high %v1484_v20, %v1498_v21  ;;  %v1506_v27 = vcombine.low %v1484_v20, %v1498_v21  ;;  %v6516_v21 = vld [vmem:[#allocation7 + $0x48] sm:$0xff]  }
 0x13d   :  { %3559 = vmatmul.mubr.bf16.gmra.mrb[16].mxu0 %v1674_v34  ;;  %4011 = vmatmul.mubr.bf16.gmra.mrb[16].mxu1 %v1674_v34  ;;  %v6483_v34 = vld [vmem:[#allocation2 + $0x6c] ss:$16 sps:$4 sm:$0xff]  }
 0x13e   :  { %3616 = vmatpush1.bf16.msra.mxu0 %v6408_v35  ;;  %4068 = vmatpush1.bf16.msra.mxu1 %v6411_v36  ;;  %v1699_v29 = vpack.c.bf16 %v1507_v25, %v1435_v24  ;;  %v6484_v35 = vld [vmem:[#allocation2 + $0x8c] ss:$16 sps:$4 sm:$0xff]   ;;  %v1698_v36 = vpack.c.bf16 %v1506_v27, %v1434_v26  ;;  %v497_v45 = vrot.slane %v6483_v34, %v6841_v54 }
 0x13f   :  { %3617 = vmatprep.subr.bf16.mxu0 %v6416_v38  ;;  %4069 = vmatprep.subr.bf16.mxu1 %v6419_v40  ;;  %v425_v38 = vrot.slane %v6481_v32, %v6841_v54  ;;  %v6486_v40 = vld [vmem:[#allocation2 + $0xcc] ss:$16 sps:$4 sm:$0xff]   ;;  %v555_v46 = vrot.slane %v6484_v35, %v6841_v54  ;;  %v6520_v32 = vld [vmem:[#allocation7 + $0x50] sm:$0xff]  }
 0x140   :  { %3568 = vmatprep.mubr.bf16.mxu0 %v1683_v44  ;;  %4020 = vmatprep.mubr.bf16.mxu1 %v1683_v44  ;;  %v483_v44 = vrot.slane %v6482_v33, %v6841_v54  ;;  %v627_v53 = vrot.slane %v6486_v40, %v6841_v54  ;;  %v6497_v33 = vld [vmem:[#allocation2 + $0x22c] ss:$16 sps:$4 sm:$0xff]  }
 0x141   :  { %v429_v50 = vcombine.high %v411_v37, %v425_v38  ;;  %v6498_v34 = vld [vmem:[#allocation2 + $0x24c] ss:$16 sps:$4 sm:$0xff]  }
 0x142   :  { %3618 = vmatpush1.bf16.msra.mxu0 %v6414_v42  ;;  %4070 = vmatpush1.bf16.msra.mxu1 %v6417_v43  ;;  %v6468_v42 = vld [vmem:[#allocation5 + $0x7c0] ss:$16 sps:$4 sm:$0xff]   ;;  %v6471_v43 = vld [vmem:[#allocation5 + $0x7c8] ss:$16 sps:$4 sm:$0xff]   ;;  %v501_v52 = vcombine.high %v483_v44, %v497_v45  ;;  %v500_v58 = vcombine.low %v483_v44, %v497_v45  ;;  %v6499_v35 = vld [vmem:[#allocation2 + $0x26c] ss:$16 sps:$4 sm:$0xff]  }
 0x143   :  { %3619 = vmatprep.subr.bf16.mxu0 %v6430_v47  ;;  %4071 = vmatprep.subr.bf16.mxu1 %v6433_v49  ;;  %v6476_v47 = vld [vmem:[#allocation5 + $0x7e4] ss:$16 sps:$4 sm:$0xff]   ;;  %v6479_v49 = vld [vmem:[#allocation5 + $0x7ec] ss:$16 sps:$4 sm:$0xff]  }
 0x144   :  { %v1645_v62 = vpack.c.bf16 %v501_v52, %v429_v50  ;;  %v6526_v44 = vld [vmem:[#allocation7 + $0xd8] sm:$0xff]   ;;  %v1001_v50 = vrot.slane %v6497_v33, %v6841_v54  ;;  %v1073_v52 = vrot.slane %v6499_v35, %v6841_v54 }
 0x145   :  { %3569 = vmatmul.mubr.bf16.gmra.mrb[20].mxu0 %v1682_v55  ;;  %4021 = vmatmul.mubr.bf16.gmra.mrb[20].mxu1 %v1682_v55  ;;  %v641_v55 = vrot.slane %v6487_v41, %v6841_v54  ;;  %v6510_v33 = vld [vmem:[#allocation2 + $0x3cc] ss:$16 sps:$4 sm:$0xff]  }
 0x146   :  { %3620 = vmatpush1.bf16.msra.mxu0 %v6428_v56  ;;  %4072 = vmatpush1.bf16.msra.mxu1 %v6431_v57  ;;  %v6474_v56 = vld [vmem:[#allocation5 + $0x7e0] ss:$16 sps:$4 sm:$0xff]   ;;  %v428_v57 = vcombine.low %v411_v37, %v425_v38 }
 0x147   :  { %3621 = vmatprep.subr.bf16.mxu0 %v6436_v60  ;;  %4073 = vmatprep.subr.bf16.mxu1 %v6439_v63  ;;  %v6489_v60 = vld [vmem:[#allocation2 + $0x12c] ss:$16 sps:$4 sm:$0xff]   ;;  %v573_v63 = vcombine.high %v555_v46, %v569_v51  ;;  %v645_v0 = vcombine.high %v627_v53, %v641_v55  ;;  %v644_v17 = vcombine.low %v627_v53, %v641_v55 }
 0x148   :  { %3578 = vmatprep.mubr.bf16.mxu0 %v1691_v8  ;;  %4030 = vmatprep.mubr.bf16.mxu1 %v1691_v8  ;;  %v1644_v3 = vpack.c.bf16 %v500_v58, %v428_v57  ;;  %v713_v5 = vrot.slane %v6489_v60, %v6841_v54  ;;  %v6527_v53 = vld [vmem:[#allocation7 + $0x98] sm:$0xff]   ;;  %v6530_v60 = vld [vmem:[#allocation7 + $0xe0] sm:$0xff]  }
 0x149   :  { %v6500_v55 = vld [vmem:[#allocation2 + $0x28c] ss:$16 sps:$4 sm:$0xff]  }
 0x14a   :  { %3622 = vmatpush1.bf16.msra.mxu0 %v6434_v1  ;;  %4074 = vmatpush1.bf16.msra.mxu1 %v6437_v2  ;;  %v6490_v1 = vld [vmem:[#allocation2 + $0x14c] ss:$16 sps:$4 sm:$0xff]   ;;  %v717_v19 = vcombine.high %v699_v4, %v713_v5  ;;  %v716_v37 = vcombine.low %v699_v4, %v713_v5 }
 0x14b   :  { %3623 = vmatprep.subr.bf16.mxu0 %v6450_v6  ;;  %4075 = vmatprep.subr.bf16.mxu1 %v6453_v7  ;;  %v6491_v2 = vld [vmem:[#allocation2 + $0x16c] ss:$16 sps:$4 sm:$0xff]   ;;  %v1653_v6 = vpack.c.bf16 %v645_v0, %v573_v63  ;;  %v771_v7 = vrot.slane %v6490_v1, %v6841_v54  ;;  %v6529_v63 = vld [vmem:[#allocation7 + $0x20] sm:$0xff]  }
 0x14c   :  { %v785_v8 = vrot.slane %v6491_v2, %v6841_v54  ;;  %v6501_v57 = vld [vmem:[#allocation2 + $0x2ac] ss:$16 sps:$4 sm:$0xff]   ;;  %v6531_v2 = vld [vmem:[#allocation7 + $0xa0] sm:$0xff]  }
 0x14d   :  { %3579 = vmatmul.mubr.bf16.gmra.mrb[24].mxu0 %v1690_v12  ;;  %4031 = vmatmul.mubr.bf16.gmra.mrb[24].mxu1 %v1690_v12  ;;  %v6493_v12 = vld [vmem:[#allocation2 + $0x1ac] ss:$16 sps:$4 sm:$0xff]  }
 0x14e   :  { %3624 = vmatpush1.bf16.msra.mxu0 %v6448_v9  ;;  %4076 = vmatpush1.bf16.msra.mxu1 %v6451_v10  ;;  %v6512_v9 = vld [vmem:[#allocation7 + $0x40] sm:$0xff]   ;;  %v6492_v10 = vld [vmem:[#allocation2 + $0x18c] ss:$16 sps:$4 sm:$0xff]   ;;  %v789_v20 = vcombine.high %v771_v7, %v785_v8  ;;  %v6959_v27 = vrot.slane %v6493_v12, %v6841_v54  ;;  %v788_v38 = vcombine.low %v771_v7, %v785_v8 }
 0x14f   :  { %3625 = vmatprep.subr.bf16.mxu0 %v6456_v16  ;;  %4077 = vmatprep.subr.bf16.mxu1 %v6459_v18  ;;  %v572_v16 = vcombine.low %v555_v46, %v569_v51  ;;  %v6515_v18 = vld [vmem:[#allocation7 + $0x80] sm:$0xff]   ;;  %v6956_v25 = vrot.slane %v6492_v10, %v6841_v54  ;;  %v6966_v46 = vrot.slane %v6496_v31, %v6841_v54  ;;  %v6502_v58 = vld [vmem:[#allocation2 + $0x2cc] ss:$16 sps:$4 sm:$0xff]  }
 0x150   :  { %3588 = vmatprep.mubr.bf16.mxu0 %v1699_v29  ;;  %4040 = vmatprep.mubr.bf16.mxu1 %v1699_v29  ;;  %v1661_v26 = vpack.c.bf16 %v789_v20, %v717_v19  ;;  %v929_v29 = vrot.slane %v6495_v14, %v6841_v54  ;;  %v1660_v45 = vpack.c.bf16 %v788_v38, %v716_v37  ;;  %v6534_v4 = vld [vmem:[#allocation7 + $0xe8] sm:$0xff]   ;;  %v6536_v14 = vld [vmem:[#allocation7 + $0x70] sm:$0xff]  }
 0x151   :  { %v1652_v24 = vpack.c.bf16 %v644_v17, %v572_v16  ;;  %v861_v40 = vcombine.high %v6956_v25, %v6959_v27  ;;  %v1059_v51 = vrot.slane %v6498_v34, %v6841_v54  ;;  %v1005_v0 = vcombine.high %v6966_v46, %v1001_v50  ;;  %v6533_v7 = vld [vmem:[#allocation7 + $0x28] sm:$0xff]  }
 0x152   :  { %3626 = vmatpush1.bf16.msra.mxu0 %v6454_v22  ;;  %4078 = vmatpush1.bf16.msra.mxu1 %v6457_v23  ;;  %v6517_v22 = vld [vmem:[#allocation7 + $0x8] sm:$0xff]   ;;  %v1203_v10 = vrot.slane %v6502_v58, %v6841_v54  ;;  %v1004_v19 = vcombine.low %v6966_v46, %v1001_v50  ;;  %v6543_v58 = vld [vmem:[#allocation7 + $0xb8] sm:$0xff]  }
 0x153   :  { %3627 = vmatprep.subr.bf16.mxu0 %v6470_v28  ;;  %4079 = vmatprep.subr.bf16.mxu1 %v6473_v30  ;;  %v6518_v23 = vld [vmem:[#allocation7 + $0xc8] sm:$0xff]   ;;  %v915_v28 = vrot.slane %v6494_v13, %v6841_v54  ;;  %v1077_v1 = vcombine.high %v1059_v51, %v1073_v52  ;;  %v1076_v20 = vcombine.low %v1059_v51, %v1073_v52 }
 0x154   :  { %v6519_v30 = vld [vmem:[#allocation7 + $0x88] sm:$0xff]  }
 0x155   :  { %3589 = vmatmul.mubr.bf16.gmra.mrb[28].mxu0 %v1698_v36  ;;  %4041 = vmatmul.mubr.bf16.gmra.mrb[28].mxu1 %v1698_v36  ;;  %v6522_v36 = vld [vmem:[#allocation7 + $0xd0] sm:$0xff]   ;;  %v933_v41 = vcombine.high %v915_v28, %v929_v29  ;;  %v1677_v8 = vpack.c.bf16 %v1077_v1, %v1005_v0  ;;  %v6535_v12 = vld [vmem:[#allocation7 + $0xa8] sm:$0xff]   ;;  %v1974_v0 = vsub.s32 3, %v6838_v48 }
 0x156   :  { %3628 = vmatpush1.bf16.msra.mxu0 %v6468_v42  ;;  %4080 = vmatpush1.bf16.msra.mxu1 %v6471_v43  ;;  %v6524_v42 = vld [vmem:[#allocation7 + $0x58] sm:$0xff]   ;;  %v6523_v43 = vld [vmem:[#allocation7 + $0x90] sm:$0xff]  }
 0x157   :  { %3629 = vmatprep.subr.bf16.mxu0 %v6476_v47  ;;  %4081 = vmatprep.subr.bf16.mxu1 %v6479_v49  ;;  %v6525_v47 = vld [vmem:[#allocation7 + $0x18] sm:$0xff]   ;;  %v1669_v49 = vpack.c.bf16 %v933_v41, %v861_v40 }
 0x158   :  { %3631 = vmatprep.mubr.bf16.mxu0 %v1645_v62  ;;  %4083 = vmatprep.mubr.bf16.mxu1 %v1645_v62  ;;  %v932_v62 = vcombine.low %v915_v28, %v929_v29  ;;  %v6504_v13 = vld [vmem:[#allocation2 + $0x30c] ss:$16 sps:$4 sm:$0xff]  }
 0x159   :  { %v6506_v16 = vld [vmem:[#allocation2 + $0x34c] ss:$16 sps:$4 sm:$0xff]  }
 0x15a   :  { %3630 = vmatpush1.bf16.msra.mxu0 %v6474_v56  ;;  %4082 = vmatpush1.bf16.msra.mxu1 %v6477_v61  ;;  %v6528_v56 = vld [vmem:[#allocation7 + $0x60] sm:$0xff]   ;;  %v860_v61 = vcombine.low %v6956_v25, %v6959_v27  ;;  %v6507_v17 = vld [vmem:[#allocation2 + $0x36c] ss:$16 sps:$4 sm:$0xff]   ;;  %v1676_v25 = vpack.c.bf16 %v1076_v20, %v1004_v19  ;;  %v1347_v29 = vrot.slane %v6506_v16, %v6841_v54 }
 0x15b   :  { %5443 = vmatprep.subr.bf16.mxu0 %v6512_v9  ;;  %5507 = vmatprep.subr.bf16.mxu1 %v6514_v15  ;;  %v1145_v9 = vrot.slane %v6501_v57, %v6841_v54  ;;  %v6505_v15 = vld [vmem:[#allocation2 + $0x32c] ss:$16 sps:$4 sm:$0xff]  }
 0x15c   :  { %v1668_v5 = vpack.c.bf16 %v932_v62, %v860_v61  ;;  %v1289_v28 = vrot.slane %v6505_v15, %v6841_v54  ;;  %v6508_v31 = vld [vmem:[#allocation2 + $0x38c] ss:$16 sps:$4 sm:$0xff]   ;;  %v1970_v61 = vsub.s32 2, %v6838_v48  ;;  %v1958_v62 = vld [vmem:[%s7107_s2] sm:$0xf] }
 0x15d   :  { %3632 = vmatmul.mubr.bf16.vlgmr.msra.gmra.mrb[0].mxu0 %v1644_v3  ;;  %4084 = vmatmul.mubr.bf16.vlgmr.msra.gmra.mrb[0].mxu1 %v1644_v3  ;;  %v6532_v3 = vld [vmem:[#allocation7 + $0x68] sm:$0xff]   ;;  %v1419_v40 = vrot.slane %v6508_v31, %v6841_v54  ;;  %v6541_v57 = vld [vmem:[#allocation7 + $0x38] sm:$0xff]  }
 0x15e   :  { %3641 = vmatprep.mubr.bf16.mxu0 %v1653_v6  ;;  %4093 = vmatprep.mubr.bf16.mxu1 %v1653_v6  ;;  %v1131_v6 = vrot.slane %v6500_v55, %v6841_v54  ;;  %v6511_v34 = vld [vmem:[#allocation2 + $0x3ec] ss:$16 sps:$4 sm:$0xff]  }
 0x15f   :  { %5444 = vmatpush3.bf16.msra.mxu0 %v6513_v11  ;;  %5508 = vmatpush3.bf16.msra.mxu1 %v6515_v18  ;;  %v1217_v11 = vrot.slane %v6503_v59, %v6841_v54  ;;  %v6538_v18 = vld [vmem:[#allocation7 + $0xf0] sm:$0xff]   ;;  %v6544_v59 = vld [vmem:[#allocation8] sm:$0xff]  }
 0x160   :  { %5445 = vmatprep.subr.bf16.mxu0 %v6516_v21  ;;  %5509 = vmatprep.subr.bf16.mxu1 %v6518_v23  ;;  %v6537_v21 = vld [vmem:[#allocation7 + $0x30] sm:$0xff]   ;;  %v1148_v35 = vcombine.low %v1131_v6, %v1145_v9 }
 0x161   :  { %v1221_v23 = vcombine.high %v1203_v10, %v1217_v11 }
 0x163   :  { %5446 = vmatpush3.bf16.msra.mxu0 %v6517_v22  ;;  %5510 = vmatpush3.bf16.msra.mxu1 %v6519_v30  ;;  %v1149_v22 = vcombine.high %v1131_v6, %v1145_v9  ;;  %v1361_v30 = vrot.slane %v6507_v17, %v6841_v54 }
 0x164   :  { %5447 = vmatprep.subr.bf16.mxu0 %v6520_v32  ;;  %5511 = vmatprep.subr.bf16.mxu1 %v6522_v36  ;;  %v6509_v32 = vld [vmem:[#allocation2 + $0x3ac] ss:$16 sps:$4 sm:$0xff]   ;;  %v1220_v36 = vcombine.low %v1203_v10, %v1217_v11 }
 0x165   :  { %3642 = vmatmul.mubr.bf16.gmra.mrb[4].mxu0 %v1652_v24  ;;  %4094 = vmatmul.mubr.bf16.gmra.mrb[4].mxu1 %v1652_v24  ;;  %v6539_v24 = vld [vmem:[#allocation7 + $0xb0] sm:$0xff]   ;;  %v1685_v27 = vpack.c.bf16 %v1221_v23, %v1149_v22  ;;  %v1365_v38 = vcombine.high %v1347_v29, %v1361_v30  ;;  %v1364_v46 = vcombine.low %v1347_v29, %v1361_v30 }
 0x166   :  { %3651 = vmatprep.mubr.bf16.mxu0 %v1661_v26  ;;  %4103 = vmatprep.mubr.bf16.mxu1 %v1661_v26  ;;  %v1275_v26 = vrot.slane %v6504_v13, %v6841_v54 }
 0x167   :  { %5448 = vmatpush3.bf16.msra.mxu0 %v6521_v39  ;;  %5512 = vmatpush3.bf16.msra.mxu1 %v6523_v43  ;;  %v1684_v39 = vpack.c.bf16 %v1220_v36, %v1148_v35  ;;  %v1491_v43 = vrot.slane %v6510_v33, %v6841_v54 }
 0x168   :  { %5449 = vmatprep.subr.bf16.mxu0 %v6524_v42  ;;  %5513 = vmatprep.subr.bf16.mxu1 %v6526_v44  ;;  %v1293_v37 = vcombine.high %v1275_v26, %v1289_v28  ;;  %v1433_v42 = vrot.slane %v6509_v32, %v6841_v54  ;;  %v1505_v44 = vrot.slane %v6511_v34, %v6841_v54  ;;  %v6540_v54 = vld [vmem:[#allocation7 + $0x78] sm:$0xff]  }
 0x16a   :  { %v1693_v41 = vpack.c.bf16 %v1365_v38, %v1293_v37  ;;  %v1436_v52 = vcombine.low %v1419_v40, %v1433_v42  ;;  %v6545_v38 = vld [vmem:[#allocation8 + $0x8] sm:$0xff]  }
 0x16b   :  { %5450 = vmatpush3.bf16.msra.mxu0 %v6525_v47  ;;  %5514 = vmatpush3.bf16.msra.mxu1 %v6527_v53  ;;  %v1437_v47 = vcombine.high %v1419_v40, %v1433_v42  ;;  %v1508_v53 = vcombine.low %v1491_v43, %v1505_v44 }
 0x16c   :  { %5451 = vmatprep.subr.bf16.mxu0 %v6528_v56  ;;  %5515 = vmatprep.subr.bf16.mxu1 %v6530_v60  ;;  %v6542_v56 = vld [vmem:[#allocation7 + $0xf8] sm:$0xff]   ;;  %v1962_v60 = vsub.s32 0, %v6838_v48 }
 0x16d   :  { %3652 = vmatmul.mubr.bf16.gmra.mrb[8].mxu0 %v1660_v45  ;;  %4104 = vmatmul.mubr.bf16.gmra.mrb[8].mxu1 %v1660_v45  ;;  %v1292_v45 = vcombine.low %v1275_v26, %v1289_v28  ;;  %v1700_v55 = vpack.c.bf16 %v1508_v53, %v1436_v52 }
 0x16e   :  { %3661 = vmatprep.mubr.bf16.mxu0 %v1669_v49  ;;  %4113 = vmatprep.mubr.bf16.mxu1 %v1669_v49  ;;  %v1509_v49 = vcombine.high %v1491_v43, %v1505_v44  ;;  %v6994_v1 = vrot.slane %v1958_v62, %v1962_v60 }
 0x16f   :  { %5452 = vmatpush3.bf16.msra.mxu0 %v6529_v63  ;;  %5516 = vmatpush3.bf16.msra.mxu1 %v6531_v2  ;;  %v1692_v50 = vpack.c.bf16 %v1364_v46, %v1292_v45  ;;  %v1966_v63 = vsub.s32 1, %v6838_v48  ;;  %v6996_v2 = vrot.slane %v1958_v62, %v1970_v61 }
 0x170   :  { %5453 = vmatprep.subr.bf16.mxu0 %v6532_v3  ;;  %5517 = vmatprep.subr.bf16.mxu1 %v6534_v4  ;;  %v1701_v51 = vpack.c.bf16 %v1509_v49, %v1437_v47  ;;  %v7000_v4 = vrot.slane %v1958_v62, %v1974_v0 }
 0x171   :  { %v6998_v3 = vrot.slane %v1958_v62, %v1966_v63 }
 0x173   :  { %5454 = vmatpush3.bf16.msra.mxu0 %v6533_v7  ;;  %5518 = vmatpush3.bf16.msra.mxu1 %v6535_v12 }
 0x174   :  { %5455 = vmatprep.subr.bf16.mxu0 %v6536_v14  ;;  %5519 = vmatprep.subr.bf16.mxu1 %v6538_v18 }
 0x175   :  { %3662 = vmatmul.mubr.bf16.gmra.mrb[12].mxu0 %v1668_v5  ;;  %4114 = vmatmul.mubr.bf16.gmra.mrb[12].mxu1 %v1668_v5 }
 0x176   :  { %3671 = vmatprep.mubr.bf16.mxu0 %v1677_v8  ;;  %4123 = vmatprep.mubr.bf16.mxu1 %v1677_v8 }
 0x177   :  { %5456 = vmatpush3.bf16.msra.mxu0 %v6537_v21  ;;  %5520 = vmatpush3.bf16.msra.mxu1 %v6539_v24 }
 0x178   :  { %5457 = vmatprep.subr.bf16.mxu0 %v6540_v54  ;;  %5521 = vmatprep.subr.bf16.mxu1 %v6542_v56 }
 0x17b   :  { %5458 = vmatpush3.bf16.msra.mxu0 %v6541_v57  ;;  %5522 = vmatpush3.bf16.msra.mxu1 %v6543_v58 }
 0x17c   :  { %5603 = vmatprep.subr.bf16.mxu0 %v6544_v59 }
 0x17d   :  { %3672 = vmatmul.mubr.bf16.gmra.mrb[16].mxu0 %v1676_v25  ;;  %4124 = vmatmul.mubr.bf16.gmra.mrb[16].mxu1 %v1676_v25 }
 0x17e   :  { %3681 = vmatprep.mubr.bf16.mxu0 %v1685_v27  ;;  %4133 = vmatprep.mubr.bf16.mxu1 %v1685_v27 }
 0x185   :  { %3682 = vmatmul.mubr.bf16.gmra.mrb[20].mxu0 %v1684_v39  ;;  %4134 = vmatmul.mubr.bf16.gmra.mrb[20].mxu1 %v1684_v39 }
 0x186   :  { %3691 = vmatprep.mubr.bf16.mxu0 %v1693_v41  ;;  %4143 = vmatprep.mubr.bf16.mxu1 %v1693_v41 }
 0x18d   :  { %3692 = vmatmul.mubr.bf16.gmra.mrb[24].mxu0 %v1692_v50  ;;  %4144 = vmatmul.mubr.bf16.gmra.mrb[24].mxu1 %v1692_v50 }
 0x18e   :  { %3701 = vmatprep.mubr.bf16.mxu0 %v1701_v51  ;;  %4153 = vmatprep.mubr.bf16.mxu1 %v1701_v51 }
 0x195   :  { %3702 = vmatmul.mubr.bf16.gmra.mrb[28].mxu0 %v1700_v55  ;;  %4154 = vmatmul.mubr.bf16.gmra.mrb[28].mxu1 %v1700_v55  ;;  %v6546_v55 = vld [vmem:[#allocation8 + $0x10] sm:$0xff]  }
 0x230   :  { %v3633_v5 = vpop.f32.mrb[0].mxu0  ;;  %v4085_v6 = vpop.f32.mrb[0].mxu1 }
 0x231   :  { %v5667_v7 = vadd.f32 %v3633_v5, %v6994_v1  ;;  %v5699_v8 = vadd.f32 %v4085_v6, %v6996_v2  ;;  %v3635_v9 = vpop.f32.mrb[1].mxu0  ;;  %v4087_v10 = vpop.f32.mrb[1].mxu1 }
 0x232   :  { %v5668_v11 = vadd.f32 %v3635_v9, %v6998_v3  ;;  %v5700_v48 = vadd.f32 %v4087_v10, %v7000_v4  ;;  %v3637_v12 = vpop.f32.mrb[2].mxu0  ;;  %v4089_v13 = vpop.f32.mrb[2].mxu1 }
 0x233   :  { %v5669_v14 = vadd.f32 %v3637_v12, %v6994_v1  ;;  %v5701_v15 = vadd.f32 %v4089_v13, %v6996_v2  ;;  %v3639_v16 = vpop.f32.mrb[3].mxu0  ;;  %v4091_v17 = vpop.f32.mrb[3].mxu1  ;;  %v4164_v20 = vmax.f32 %v5667_v7, 0.0  ;;  %v4166_v21 = vmax.f32 %v5699_v8, 0.0 }
 0x234   :  { %v5670_v18 = vadd.f32 %v3639_v16, %v6998_v3  ;;  %v5702_v19 = vadd.f32 %v4091_v17, %v7000_v4  ;;  %v4165_v24 = vmax.f32 %v5668_v11, 0.0  ;;  %v4167_v25 = vmax.f32 %v5700_v48, 0.0 }
 0x235   :  { %v4168_v22 = vmax.f32 %v5669_v14, 0.0  ;;  %v4170_v23 = vmax.f32 %v5701_v15, 0.0 }
 0x236   :  { %v4169_v26 = vmax.f32 %v5670_v18, 0.0  ;;  %v4171_v27 = vmax.f32 %v5702_v19, 0.0 }
 0x237   :  { %v4228_v28 = vpack.c.bf16 %v4168_v22, %v4164_v20  ;;  %v4230_v29 = vpack.c.bf16 %v4170_v23, %v4166_v21 }
 0x238   :  { %v4229_v30 = vpack.c.bf16 %v4169_v26, %v4165_v24  ;;  %v4231_v31 = vpack.c.bf16 %v4171_v27, %v4167_v25  ;;  %v3643_v32 = vpop.f32.mrb[4].mxu0  ;;  %v4095_v33 = vpop.f32.mrb[4].mxu1 }
 0x239   :  { %v5671_v34 = vadd.f32 %v3643_v32, %v6994_v1  ;;  %v5703_v35 = vadd.f32 %v4095_v33, %v6996_v2  ;;  %v3645_v36 = vpop.f32.mrb[5].mxu0  ;;  %v4097_v37 = vpop.f32.mrb[5].mxu1 }
 0x23a   :  { %v5672_v39 = vadd.f32 %v3645_v36, %v6998_v3  ;;  %v5704_v40 = vadd.f32 %v4097_v37, %v7000_v4  ;;  %v3647_v41 = vpop.f32.mrb[6].mxu0  ;;  %v4099_v42 = vpop.f32.mrb[6].mxu1  ;;  %4555 = vmatprep.mubr.bf16.mxu0 %v4229_v30  ;;  %4652 = vmatprep.mubr.bf16.mxu1 %v4231_v31 }
 0x23b   :  { %v5673_v43 = vadd.f32 %v3647_v41, %v6994_v1  ;;  %v5705_v44 = vadd.f32 %v4099_v42, %v6996_v2  ;;  %v3649_v45 = vpop.f32.mrb[7].mxu0  ;;  %v4101_v46 = vpop.f32.mrb[7].mxu1  ;;  %4556 = vmatmul.mubr.bf16.vlgmr.msra.gmra.mrb[32].mxu0 %v4228_v28  ;;  %4653 = vmatmul.mubr.bf16.vlgmr.msra.gmra.mrb[32].mxu1 %v4230_v29  ;;  %v4172_v50 = vmax.f32 %v5671_v34, 0.0  ;;  %v4174_v51 = vmax.f32 %v5703_v35, 0.0 }
 0x23c   :  { %v5674_v47 = vadd.f32 %v3649_v45, %v6998_v3  ;;  %v5706_v49 = vadd.f32 %v4101_v46, %v7000_v4  ;;  %5604 = vmatpush3.bf16.msra.mxu0 %v6544_v59  ;;  %v4173_v54 = vmax.f32 %v5672_v39, 0.0  ;;  %v4175_v56 = vmax.f32 %v5704_v40, 0.0 }
 0x23d   :  { %v4176_v52 = vmax.f32 %v5673_v43, 0.0  ;;  %v4178_v53 = vmax.f32 %v5705_v44, 0.0  ;;  %5605 = vmatprep.subr.bf16.mxu0 %v6545_v38 }
 0x23e   :  { %v4177_v57 = vmax.f32 %v5674_v47, 0.0  ;;  %v4179_v58 = vmax.f32 %v5706_v49, 0.0 }
 0x23f   :  { %v4232_v60 = vpack.c.bf16 %v4176_v52, %v4172_v50  ;;  %v4234_v61 = vpack.c.bf16 %v4178_v53, %v4174_v51 }
 0x240   :  { %v4233_v62 = vpack.c.bf16 %v4177_v57, %v4173_v54  ;;  %v4235_v63 = vpack.c.bf16 %v4179_v58, %v4175_v56  ;;  %v3653_v0 = vpop.f32.mrb[8].mxu0  ;;  %v4105_v5 = vpop.f32.mrb[8].mxu1  ;;  %5606 = vmatpush3.bf16.msra.mxu0 %v6545_v38 }
 0x241   :  { %v5675_v6 = vadd.f32 %v3653_v0, %v6994_v1  ;;  %v5707_v59 = vadd.f32 %v4105_v5, %v6996_v2  ;;  %v3655_v7 = vpop.f32.mrb[9].mxu0  ;;  %v4107_v8 = vpop.f32.mrb[9].mxu1  ;;  %5607 = vmatprep.subr.bf16.mxu0 %v6546_v55 }
 0x242   :  { %v5676_v9 = vadd.f32 %v3655_v7, %v6998_v3  ;;  %v5708_v10 = vadd.f32 %v4107_v8, %v7000_v4  ;;  %v3657_v11 = vpop.f32.mrb[10].mxu0  ;;  %v4109_v48 = vpop.f32.mrb[10].mxu1  ;;  %4563 = vmatprep.mubr.bf16.mxu0 %v4233_v62  ;;  %4660 = vmatprep.mubr.bf16.mxu1 %v4235_v63 }
 0x243   :  { %v5677_v12 = vadd.f32 %v3657_v11, %v6994_v1  ;;  %v5709_v13 = vadd.f32 %v4109_v48, %v6996_v2  ;;  %v3659_v14 = vpop.f32.mrb[11].mxu0  ;;  %v4111_v15 = vpop.f32.mrb[11].mxu1  ;;  %4564 = vmatmul.mubr.bf16.gmra.mrb[36].mxu0 %v4232_v60  ;;  %4661 = vmatmul.mubr.bf16.gmra.mrb[36].mxu1 %v4234_v61  ;;  %v4180_v18 = vmax.f32 %v5675_v6, 0.0  ;;  %v4182_v19 = vmax.f32 %v5707_v59, 0.0 }
 0x244   :  { %v5678_v16 = vadd.f32 %v3659_v14, %v6998_v3  ;;  %v5710_v17 = vadd.f32 %v4111_v15, %v7000_v4  ;;  %5608 = vmatpush3.bf16.msra.mxu0 %v6546_v55  ;;  %v4181_v22 = vmax.f32 %v5676_v9, 0.0  ;;  %v4183_v23 = vmax.f32 %v5708_v10, 0.0 }
 0x245   :  { %v4184_v20 = vmax.f32 %v5677_v12, 0.0  ;;  %v4186_v21 = vmax.f32 %v5709_v13, 0.0 }
 0x246   :  { %v4185_v24 = vmax.f32 %v5678_v16, 0.0  ;;  %v4187_v25 = vmax.f32 %v5710_v17, 0.0 }
 0x247   :  { %v4236_v26 = vpack.c.bf16 %v4184_v20, %v4180_v18  ;;  %v4238_v27 = vpack.c.bf16 %v4186_v21, %v4182_v19 }
 0x248   :  { %v4237_v28 = vpack.c.bf16 %v4185_v24, %v4181_v22  ;;  %v4239_v29 = vpack.c.bf16 %v4187_v25, %v4183_v23  ;;  %v3663_v30 = vpop.f32.mrb[12].mxu0  ;;  %v4115_v31 = vpop.f32.mrb[12].mxu1 }
 0x249   :  { %v5679_v32 = vadd.f32 %v3663_v30, %v6994_v1  ;;  %v5711_v33 = vadd.f32 %v4115_v31, %v6996_v2  ;;  %v3665_v34 = vpop.f32.mrb[13].mxu0  ;;  %v4117_v35 = vpop.f32.mrb[13].mxu1 }
 0x24a   :  { %v5680_v36 = vadd.f32 %v3665_v34, %v6998_v3  ;;  %v5712_v37 = vadd.f32 %v4117_v35, %v7000_v4  ;;  %v3667_v38 = vpop.f32.mrb[14].mxu0  ;;  %v4119_v39 = vpop.f32.mrb[14].mxu1  ;;  %4571 = vmatprep.mubr.bf16.mxu0 %v4237_v28  ;;  %4668 = vmatprep.mubr.bf16.mxu1 %v4239_v29 }
 0x24b   :  { %v5681_v40 = vadd.f32 %v3667_v38, %v6994_v1  ;;  %v5713_v41 = vadd.f32 %v4119_v39, %v6996_v2  ;;  %v3669_v42 = vpop.f32.mrb[15].mxu0  ;;  %v4121_v43 = vpop.f32.mrb[15].mxu1  ;;  %4572 = vmatmul.mubr.bf16.gmra.mrb[40].mxu0 %v4236_v26  ;;  %4669 = vmatmul.mubr.bf16.gmra.mrb[40].mxu1 %v4238_v27  ;;  %v4188_v46 = vmax.f32 %v5679_v32, 0.0  ;;  %v4190_v47 = vmax.f32 %v5711_v33, 0.0 }
 0x24c   :  { %v5682_v44 = vadd.f32 %v3669_v42, %v6998_v3  ;;  %v5714_v45 = vadd.f32 %v4121_v43, %v7000_v4  ;;  %v4189_v51 = vmax.f32 %v5680_v36, 0.0  ;;  %v4191_v52 = vmax.f32 %v5712_v37, 0.0 }
 0x24d   :  { %v4192_v49 = vmax.f32 %v5681_v40, 0.0  ;;  %v4194_v50 = vmax.f32 %v5713_v41, 0.0 }
 0x24e   :  { %v4193_v53 = vmax.f32 %v5682_v44, 0.0  ;;  %v4195_v55 = vmax.f32 %v5714_v45, 0.0 }
 0x24f   :  { %v4240_v54 = vpack.c.bf16 %v4192_v49, %v4188_v46  ;;  %v4242_v56 = vpack.c.bf16 %v4194_v50, %v4190_v47 }
 0x250   :  { %v4241_v57 = vpack.c.bf16 %v4193_v53, %v4189_v51  ;;  %v4243_v58 = vpack.c.bf16 %v4195_v55, %v4191_v52  ;;  %v3673_v60 = vpop.f32.mrb[16].mxu0  ;;  %v4125_v61 = vpop.f32.mrb[16].mxu1 }
 0x251   :  { %v5683_v62 = vadd.f32 %v3673_v60, %v6994_v1  ;;  %v5715_v63 = vadd.f32 %v4125_v61, %v6996_v2  ;;  %v3675_v0 = vpop.f32.mrb[17].mxu0  ;;  %v4127_v5 = vpop.f32.mrb[17].mxu1 }
 0x252   :  { %v5684_v6 = vadd.f32 %v3675_v0, %v6998_v3  ;;  %v5716_v59 = vadd.f32 %v4127_v5, %v7000_v4  ;;  %v3677_v7 = vpop.f32.mrb[18].mxu0  ;;  %v4129_v8 = vpop.f32.mrb[18].mxu1  ;;  %4579 = vmatprep.mubr.bf16.mxu0 %v4241_v57  ;;  %4676 = vmatprep.mubr.bf16.mxu1 %v4243_v58 }
 0x253   :  { %v5685_v9 = vadd.f32 %v3677_v7, %v6994_v1  ;;  %v5717_v10 = vadd.f32 %v4129_v8, %v6996_v2  ;;  %v3679_v11 = vpop.f32.mrb[19].mxu0  ;;  %v4131_v48 = vpop.f32.mrb[19].mxu1  ;;  %4580 = vmatmul.mubr.bf16.gmra.mrb[44].mxu0 %v4240_v54  ;;  %4677 = vmatmul.mubr.bf16.gmra.mrb[44].mxu1 %v4242_v56  ;;  %v4196_v14 = vmax.f32 %v5683_v62, 0.0  ;;  %v4198_v15 = vmax.f32 %v5715_v63, 0.0 }
 0x254   :  { %v5686_v12 = vadd.f32 %v3679_v11, %v6998_v3  ;;  %v5718_v13 = vadd.f32 %v4131_v48, %v7000_v4  ;;  %v4197_v18 = vmax.f32 %v5684_v6, 0.0  ;;  %v4199_v19 = vmax.f32 %v5716_v59, 0.0 }
 0x255   :  { %v4200_v16 = vmax.f32 %v5685_v9, 0.0  ;;  %v4202_v17 = vmax.f32 %v5717_v10, 0.0 }
 0x256   :  { %v4201_v20 = vmax.f32 %v5686_v12, 0.0  ;;  %v4203_v21 = vmax.f32 %v5718_v13, 0.0 }
 0x257   :  { %v4244_v22 = vpack.c.bf16 %v4200_v16, %v4196_v14  ;;  %v4246_v23 = vpack.c.bf16 %v4202_v17, %v4198_v15 }
 0x258   :  { %v4245_v24 = vpack.c.bf16 %v4201_v20, %v4197_v18  ;;  %v4247_v25 = vpack.c.bf16 %v4203_v21, %v4199_v19  ;;  %v3683_v26 = vpop.f32.mrb[20].mxu0  ;;  %v4135_v27 = vpop.f32.mrb[20].mxu1 }
 0x259   :  { %v5687_v28 = vadd.f32 %v3683_v26, %v6994_v1  ;;  %v5719_v29 = vadd.f32 %v4135_v27, %v6996_v2  ;;  %v3685_v30 = vpop.f32.mrb[21].mxu0  ;;  %v4137_v31 = vpop.f32.mrb[21].mxu1 }
 0x25a   :  { %v5688_v32 = vadd.f32 %v3685_v30, %v6998_v3  ;;  %v5720_v33 = vadd.f32 %v4137_v31, %v7000_v4  ;;  %v3687_v34 = vpop.f32.mrb[22].mxu0  ;;  %v4139_v35 = vpop.f32.mrb[22].mxu1  ;;  %4587 = vmatprep.mubr.bf16.mxu0 %v4245_v24  ;;  %4684 = vmatprep.mubr.bf16.mxu1 %v4247_v25 }
 0x25b   :  { %v5689_v36 = vadd.f32 %v3687_v34, %v6994_v1  ;;  %v5721_v37 = vadd.f32 %v4139_v35, %v6996_v2  ;;  %v3689_v38 = vpop.f32.mrb[23].mxu0  ;;  %v4141_v39 = vpop.f32.mrb[23].mxu1  ;;  %4588 = vmatmul.mubr.bf16.gmra.mrb[48].mxu0 %v4244_v22  ;;  %4685 = vmatmul.mubr.bf16.gmra.mrb[48].mxu1 %v4246_v23  ;;  %v4204_v42 = vmax.f32 %v5687_v28, 0.0  ;;  %v4206_v43 = vmax.f32 %v5719_v29, 0.0 }
 0x25c   :  { %v5690_v40 = vadd.f32 %v3689_v38, %v6998_v3  ;;  %v5722_v41 = vadd.f32 %v4141_v39, %v7000_v4  ;;  %v4205_v46 = vmax.f32 %v5688_v32, 0.0  ;;  %v4207_v47 = vmax.f32 %v5720_v33, 0.0 }
 0x25d   :  { %v4208_v44 = vmax.f32 %v5689_v36, 0.0  ;;  %v4210_v45 = vmax.f32 %v5721_v37, 0.0 }
 0x25e   :  { %v4209_v49 = vmax.f32 %v5690_v40, 0.0  ;;  %v4211_v50 = vmax.f32 %v5722_v41, 0.0 }
 0x25f   :  { %v4248_v51 = vpack.c.bf16 %v4208_v44, %v4204_v42  ;;  %v4250_v52 = vpack.c.bf16 %v4210_v45, %v4206_v43 }
 0x260   :  { %v4249_v53 = vpack.c.bf16 %v4209_v49, %v4205_v46  ;;  %v4251_v55 = vpack.c.bf16 %v4211_v50, %v4207_v47  ;;  %v3693_v54 = vpop.f32.mrb[24].mxu0  ;;  %v4145_v56 = vpop.f32.mrb[24].mxu1  ;;  %v6547_v49 = vld [vmem:[#allocation8 + $0x18] sm:$0xff]   ;;  %v6550_v50 = vld [vmem:[#allocation8 + $0x30] sm:$0xff]  }
 0x261   :  { %v5691_v57 = vadd.f32 %v3693_v54, %v6994_v1  ;;  %v5723_v58 = vadd.f32 %v4145_v56, %v6996_v2  ;;  %v3695_v60 = vpop.f32.mrb[25].mxu0  ;;  %v4147_v61 = vpop.f32.mrb[25].mxu1  ;;  %5609 = vmatprep.subr.bf16.mxu0 %v6547_v49  ;;  %v6555_v54 = vld [vmem:[#allocation10 + $0x18] sm:$0xff]   ;;  %v6556_v56 = vld [vmem:[#allocation10 + $0x20] sm:$0xff]  }
 0x262   :  { %v5692_v62 = vadd.f32 %v3695_v60, %v6998_v3  ;;  %v5724_v63 = vadd.f32 %v4147_v61, %v7000_v4  ;;  %v3697_v0 = vpop.f32.mrb[26].mxu0  ;;  %v4149_v5 = vpop.f32.mrb[26].mxu1  ;;  %4595 = vmatprep.mubr.bf16.mxu0 %v4249_v53  ;;  %4692 = vmatprep.mubr.bf16.mxu1 %v4251_v55  ;;  %v6553_v53 = vld [vmem:[#allocation10 + $0x8] sm:$0xff]   ;;  %v6554_v55 = vld [vmem:[#allocation10 + $0x10] sm:$0xff]   ;;  %v7069_v61 = vld [vmem:[%s7109_s4] ss:$0 sm:$0xff] }
 0x263   :  { %v5693_v6 = vadd.f32 %v3697_v0, %v6994_v1  ;;  %v5725_v59 = vadd.f32 %v4149_v5, %v6996_v2  ;;  %v3699_v7 = vpop.f32.mrb[27].mxu0  ;;  %v4151_v8 = vpop.f32.mrb[27].mxu1  ;;  %4596 = vmatmul.mubr.bf16.gmra.mrb[52].mxu0 %v4248_v51  ;;  %4693 = vmatmul.mubr.bf16.gmra.mrb[52].mxu1 %v4250_v52  ;;  %v4212_v11 = vmax.f32 %v5691_v57, 0.0  ;;  %v4214_v48 = vmax.f32 %v5723_v58, 0.0  ;;  %v6551_v51 = vld [vmem:[#allocation8 + $0x38] sm:$0xff]   ;;  %v6552_v52 = vld [vmem:[#allocation10] sm:$0xff]  }
 0x264   :  { %v5694_v9 = vadd.f32 %v3699_v7, %v6998_v3  ;;  %v5726_v10 = vadd.f32 %v4151_v8, %v7000_v4  ;;  %v4213_v14 = vmax.f32 %v5692_v62, 0.0  ;;  %v4215_v15 = vmax.f32 %v5724_v63, 0.0  ;;  %5610 = vmatpush3.bf16.msra.mxu0 %v6547_v49  ;;  %5635 = vmatprep.subr.bf16.mxu1 %v6552_v52  ;;  %v6557_v57 = vld [vmem:[#allocation10 + $0x28] sm:$0xff]  }
 0x265   :  { %v4216_v12 = vmax.f32 %v5693_v6, 0.0  ;;  %v4218_v13 = vmax.f32 %v5725_v59, 0.0  ;;  %5636 = vmatpush3.bf16.msra.mxu1 %v6552_v52 }
 0x266   :  { %v4217_v16 = vmax.f32 %v5694_v9, 0.0  ;;  %v4219_v17 = vmax.f32 %v5726_v10, 0.0  ;;  %5637 = vmatprep.subr.bf16.mxu1 %v6553_v53 }
 0x267   :  { %v4252_v18 = vpack.c.bf16 %v4216_v12, %v4212_v11  ;;  %v4254_v19 = vpack.c.bf16 %v4218_v13, %v4214_v48 }
 0x268   :  { %v4253_v20 = vpack.c.bf16 %v4217_v16, %v4213_v14  ;;  %v4255_v21 = vpack.c.bf16 %v4219_v17, %v4215_v15  ;;  %v3703_v22 = vpop.f32.mrb[28].mxu0  ;;  %v4155_v23 = vpop.f32.mrb[28].mxu1 }
 0x269   :  { %v5695_v24 = vadd.f32 %v3703_v22, %v6994_v1  ;;  %v5727_v25 = vadd.f32 %v4155_v23, %v6996_v2  ;;  %v3705_v26 = vpop.f32.mrb[29].mxu0  ;;  %v4157_v27 = vpop.f32.mrb[29].mxu1  ;;  %5638 = vmatpush3.bf16.msra.mxu1 %v6553_v53 }
 0x26a   :  { %v5696_v28 = vadd.f32 %v3705_v26, %v6998_v3  ;;  %v5728_v29 = vadd.f32 %v4157_v27, %v7000_v4  ;;  %v3707_v30 = vpop.f32.mrb[30].mxu0  ;;  %v4159_v31 = vpop.f32.mrb[30].mxu1  ;;  %4603 = vmatprep.mubr.bf16.mxu0 %v4253_v20  ;;  %4700 = vmatprep.mubr.bf16.mxu1 %v4255_v21 }
 0x26b   :  { %v5697_v32 = vadd.f32 %v3707_v30, %v6994_v1  ;;  %v5729_v33 = vadd.f32 %v4159_v31, %v6996_v2  ;;  %v3709_v34 = vpop.f32.mrb[31].mxu0  ;;  %v4161_v35 = vpop.f32.mrb[31].mxu1  ;;  %4604 = vmatmul.mubr.bf16.gmra.mrb[56].mxu0 %v4252_v18  ;;  %4701 = vmatmul.mubr.bf16.gmra.mrb[56].mxu1 %v4254_v19  ;;  %v4220_v38 = vmax.f32 %v5695_v24, 0.0  ;;  %v4222_v39 = vmax.f32 %v5727_v25, 0.0 }
 0x26c   :  { %v5698_v36 = vadd.f32 %v3709_v34, %v6998_v3  ;;  %v5730_v37 = vadd.f32 %v4161_v35, %v7000_v4  ;;  %v4221_v42 = vmax.f32 %v5696_v28, 0.0  ;;  %v4223_v43 = vmax.f32 %v5728_v29, 0.0  ;;  %v6548_v3 = vld [vmem:[#allocation8 + $0x20] sm:$0xff]   ;;  %v6549_v4 = vld [vmem:[#allocation8 + $0x28] sm:$0xff]   ;;  %5639 = vmatprep.subr.bf16.mxu1 %v6554_v55 }
 0x26d   :  { %v4224_v40 = vmax.f32 %v5697_v32, 0.0  ;;  %v4226_v41 = vmax.f32 %v5729_v33, 0.0  ;;  %5611 = vmatprep.subr.bf16.mxu0 %v6548_v3  ;;  %5640 = vmatpush3.bf16.msra.mxu1 %v6554_v55 }
 0x26e   :  { %v4225_v44 = vmax.f32 %v5698_v36, 0.0  ;;  %v4227_v45 = vmax.f32 %v5730_v37, 0.0  ;;  %5612 = vmatpush3.bf16.msra.mxu0 %v6548_v3  ;;  %5641 = vmatprep.subr.bf16.mxu1 %v6555_v54 }
 0x26f   :  { %v4256_v46 = vpack.c.bf16 %v4224_v40, %v4220_v38  ;;  %v4258_v1 = vpack.c.bf16 %v4226_v41, %v4222_v39  ;;  %5613 = vmatprep.subr.bf16.mxu0 %v6549_v4 }
 0x270   :  { %v4257_v47 = vpack.c.bf16 %v4225_v44, %v4221_v42  ;;  %v4259_v2 = vpack.c.bf16 %v4227_v45, %v4223_v43 }
 0x271   :  { %5642 = vmatpush3.bf16.msra.mxu1 %v6555_v54 }
 0x272   :  { %4611 = vmatprep.mubr.bf16.mxu0 %v4257_v47  ;;  %4708 = vmatprep.mubr.bf16.mxu1 %v4259_v2 }
 0x273   :  { %4612 = vmatmul.mubr.bf16.gmra.mrb[60].mxu0 %v4256_v46  ;;  %4709 = vmatmul.mubr.bf16.gmra.mrb[60].mxu1 %v4258_v1 }
 0x274   :  { %5614 = vmatpush3.bf16.msra.mxu0 %v6549_v4  ;;  %5643 = vmatprep.subr.bf16.mxu1 %v6556_v56 }
 0x275   :  { %5615 = vmatprep.subr.bf16.mxu0 %v6550_v50  ;;  %5644 = vmatpush3.bf16.msra.mxu1 %v6556_v56 }
 0x276   :  { %5645 = vmatprep.subr.bf16.mxu1 %v6557_v57 }
 0x278   :  { %5616 = vmatpush3.bf16.msra.mxu0 %v6550_v50 }
 0x279   :  { %5617 = vmatprep.subr.bf16.mxu0 %v6551_v51  ;;  %5646 = vmatpush3.bf16.msra.mxu1 %v6557_v57 }
 0x27c   :  { %5618 = vmatpush3.bf16.msra.mxu0 %v6551_v51 }
 0x30e   :  { %v5459_v58 = vpop.f32.mrb[32].mxu0  ;;  %v5523_v60 = vpop.f32.mrb[32].mxu1 }
 0x30f   :  { %v5460_v62 = vpop.f32.mrb[33].mxu0  ;;  %v5524_v63 = vpop.f32.mrb[33].mxu1 }
 0x310   :  { %v5461_v0 = vadd.f32 %v5460_v62, %v5459_v58  ;;  %v5525_v5 = vadd.f32 %v5524_v63, %v5523_v60  ;;  %v5462_v6 = vpop.f32.mrb[34].mxu0  ;;  %v5526_v59 = vpop.f32.mrb[34].mxu1 }
 0x311   :  { %v5463_v7 = vpop.f32.mrb[35].mxu0  ;;  %v5527_v8 = vpop.f32.mrb[35].mxu1 }
 0x312   :  { %v4558_v9 = vadd.f32 %v5461_v0, %v7069_v61  ;;  %v5464_v10 = vadd.f32 %v5463_v7, %v5462_v6  ;;  %v5528_v11 = vadd.f32 %v5527_v8, %v5526_v59 }
 0x314   :  { %v4655_v48 = vadd.f32 %v5525_v5, %v4558_v9  ;;  %v4561_v12 = vadd.f32 %v5464_v10, %v7069_v61 }
 0x316   :  { %v4658_v13 = vadd.f32 %v5528_v11, %v4561_v12  ;;  %v5465_v14 = vpop.f32.mrb[36].mxu0  ;;  %v5529_v15 = vpop.f32.mrb[36].mxu1  ;;  %v4717_v18 = vmax.f32 %v4655_v48, 0.0 }
 0x317   :  { %v5466_v16 = vpop.f32.mrb[37].mxu0  ;;  %v5530_v17 = vpop.f32.mrb[37].mxu1 }
 0x318   :  { %v4718_v19 = vmax.f32 %v4658_v13, 0.0  ;;  %v5467_v20 = vadd.f32 %v5466_v16, %v5465_v14  ;;  %v5531_v21 = vadd.f32 %v5530_v17, %v5529_v15  ;;  %v5468_v22 = vpop.f32.mrb[38].mxu0  ;;  %v5532_v23 = vpop.f32.mrb[38].mxu1 }
 0x319   :  { %v5469_v24 = vpop.f32.mrb[39].mxu0  ;;  %v5533_v25 = vpop.f32.mrb[39].mxu1 }
 0x31a   :  { %v4566_v26 = vadd.f32 %v5467_v20, %v7069_v61  ;;  %v5470_v27 = vadd.f32 %v5469_v24, %v5468_v22  ;;  %v5534_v28 = vadd.f32 %v5533_v25, %v5532_v23  ;;  %v4733_v29 = vpack.c.bf16 %v4718_v19, %v4717_v18 }
 0x31c   :  { %v4663_v30 = vadd.f32 %v5531_v21, %v4566_v26  ;;  %v4569_v31 = vadd.f32 %v5470_v27, %v7069_v61  ;;  %5619 = vmatprep.mubr.bf16.mxu0 %v4733_v29 }
 0x31e   :  { %v4666_v32 = vadd.f32 %v5534_v28, %v4569_v31  ;;  %v5471_v33 = vpop.f32.mrb[40].mxu0  ;;  %v5535_v34 = vpop.f32.mrb[40].mxu1  ;;  %v4719_v37 = vmax.f32 %v4663_v30, 0.0 }
 0x31f   :  { %v5472_v35 = vpop.f32.mrb[41].mxu0  ;;  %v5536_v36 = vpop.f32.mrb[41].mxu1 }
 0x320   :  { %v4720_v38 = vmax.f32 %v4666_v32, 0.0  ;;  %v5473_v39 = vadd.f32 %v5472_v35, %v5471_v33  ;;  %v5537_v40 = vadd.f32 %v5536_v36, %v5535_v34  ;;  %v5474_v41 = vpop.f32.mrb[42].mxu0  ;;  %v5538_v42 = vpop.f32.mrb[42].mxu1 }
 0x321   :  { %v5475_v43 = vpop.f32.mrb[43].mxu0  ;;  %v5539_v44 = vpop.f32.mrb[43].mxu1 }
 0x322   :  { %v4734_v45 = vpack.c.bf16 %v4720_v38, %v4719_v37  ;;  %v4574_v46 = vadd.f32 %v5473_v39, %v7069_v61  ;;  %v5476_v1 = vadd.f32 %v5475_v43, %v5474_v41  ;;  %v5540_v47 = vadd.f32 %v5539_v44, %v5538_v42 }
 0x324   :  { %v4671_v2 = vadd.f32 %v5537_v40, %v4574_v46  ;;  %v4577_v49 = vadd.f32 %v5476_v1, %v7069_v61  ;;  %5620 = vmatmul.mubr.bf16.vlgmr.msra.gmra.mrb[64].mxu0 %v4734_v45 }
 0x326   :  { %v4674_v3 = vadd.f32 %v5540_v47, %v4577_v49  ;;  %v5477_v4 = vpop.f32.mrb[44].mxu0  ;;  %v5541_v50 = vpop.f32.mrb[44].mxu1  ;;  %v4721_v53 = vmax.f32 %v4671_v2, 0.0 }
 0x327   :  { %v5478_v51 = vpop.f32.mrb[45].mxu0  ;;  %v5542_v52 = vpop.f32.mrb[45].mxu1 }
 0x328   :  { %v4722_v55 = vmax.f32 %v4674_v3, 0.0  ;;  %v5479_v54 = vadd.f32 %v5478_v51, %v5477_v4  ;;  %v5543_v56 = vadd.f32 %v5542_v52, %v5541_v50  ;;  %v5480_v57 = vpop.f32.mrb[46].mxu0  ;;  %v5544_v58 = vpop.f32.mrb[46].mxu1 }
 0x329   :  { %v5481_v60 = vpop.f32.mrb[47].mxu0  ;;  %v5545_v62 = vpop.f32.mrb[47].mxu1 }
 0x32a   :  { %v4582_v63 = vadd.f32 %v5479_v54, %v7069_v61  ;;  %v5482_v0 = vadd.f32 %v5481_v60, %v5480_v57  ;;  %v5546_v5 = vadd.f32 %v5545_v62, %v5544_v58  ;;  %v4735_v6 = vpack.c.bf16 %v4722_v55, %v4721_v53 }
 0x32c   :  { %v4679_v59 = vadd.f32 %v5543_v56, %v4582_v63  ;;  %v4585_v7 = vadd.f32 %v5482_v0, %v7069_v61  ;;  %5623 = vmatprep.mubr.bf16.mxu0 %v4735_v6 }
 0x32e   :  { %v4682_v8 = vadd.f32 %v5546_v5, %v4585_v7  ;;  %v5483_v9 = vpop.f32.mrb[48].mxu0  ;;  %v5547_v10 = vpop.f32.mrb[48].mxu1  ;;  %v4723_v12 = vmax.f32 %v4679_v59, 0.0 }
 0x32f   :  { %v5484_v11 = vpop.f32.mrb[49].mxu0  ;;  %v5548_v48 = vpop.f32.mrb[49].mxu1 }
 0x330   :  { %v4724_v13 = vmax.f32 %v4682_v8, 0.0  ;;  %v5485_v14 = vadd.f32 %v5484_v11, %v5483_v9  ;;  %v5549_v15 = vadd.f32 %v5548_v48, %v5547_v10  ;;  %v5486_v16 = vpop.f32.mrb[50].mxu0  ;;  %v5550_v17 = vpop.f32.mrb[50].mxu1 }
 0x331   :  { %v5487_v18 = vpop.f32.mrb[51].mxu0  ;;  %v5551_v19 = vpop.f32.mrb[51].mxu1 }
 0x332   :  { %v4590_v20 = vadd.f32 %v5485_v14, %v7069_v61  ;;  %v5488_v21 = vadd.f32 %v5487_v18, %v5486_v16  ;;  %v5552_v22 = vadd.f32 %v5551_v19, %v5550_v17  ;;  %v4736_v23 = vpack.c.bf16 %v4724_v13, %v4723_v12 }
 0x334   :  { %v4687_v24 = vadd.f32 %v5549_v15, %v4590_v20  ;;  %v4593_v25 = vadd.f32 %v5488_v21, %v7069_v61  ;;  %5624 = vmatmul.mubr.bf16.gmra.mrb[68].mxu0 %v4736_v23 }
 0x336   :  { %v4690_v26 = vadd.f32 %v5552_v22, %v4593_v25  ;;  %v5489_v27 = vpop.f32.mrb[52].mxu0  ;;  %v5553_v28 = vpop.f32.mrb[52].mxu1  ;;  %v4725_v31 = vmax.f32 %v4687_v24, 0.0  ;;  %v6558_v24 = vld [vmem:[#allocation10 + $0x30] sm:$0xff]   ;;  %v6559_v25 = vld [vmem:[#allocation10 + $0x38] sm:$0xff]  }
 0x337   :  { %v5490_v29 = vpop.f32.mrb[53].mxu0  ;;  %v5554_v30 = vpop.f32.mrb[53].mxu1  ;;  %5647 = vmatprep.subr.bf16.mxu1 %v6558_v24 }
 0x338   :  { %v4726_v32 = vmax.f32 %v4690_v26, 0.0  ;;  %v5491_v33 = vadd.f32 %v5490_v29, %v5489_v27  ;;  %v5555_v34 = vadd.f32 %v5554_v30, %v5553_v28  ;;  %v5492_v35 = vpop.f32.mrb[54].mxu0  ;;  %v5556_v36 = vpop.f32.mrb[54].mxu1  ;;  %5648 = vmatpush3.bf16.msra.mxu1 %v6558_v24  ;;  %v5425_v26 = vld [vmem:[%s7111_s6] ss:$0 sm:$0xff] }
 0x339   :  { %v5493_v37 = vpop.f32.mrb[55].mxu0  ;;  %v5557_v38 = vpop.f32.mrb[55].mxu1  ;;  %5649 = vmatprep.subr.bf16.mxu1 %v6559_v25 }
 0x33a   :  { %v4598_v39 = vadd.f32 %v5491_v33, %v7069_v61  ;;  %v5494_v40 = vadd.f32 %v5493_v37, %v5492_v35  ;;  %v5558_v41 = vadd.f32 %v5557_v38, %v5556_v36  ;;  %v4737_v42 = vpack.c.bf16 %v4726_v32, %v4725_v31 }
 0x33c   :  { %v4695_v43 = vadd.f32 %v5555_v34, %v4598_v39  ;;  %v4601_v44 = vadd.f32 %v5494_v40, %v7069_v61  ;;  %5627 = vmatprep.mubr.bf16.mxu0 %v4737_v42  ;;  %5650 = vmatpush3.bf16.msra.mxu1 %v6559_v25 }
 0x33e   :  { %v4698_v45 = vadd.f32 %v5558_v41, %v4601_v44  ;;  %v5495_v46 = vpop.f32.mrb[56].mxu0  ;;  %v5559_v1 = vpop.f32.mrb[56].mxu1  ;;  %v4727_v49 = vmax.f32 %v4695_v43, 0.0 }
 0x33f   :  { %v5496_v47 = vpop.f32.mrb[57].mxu0  ;;  %v5560_v2 = vpop.f32.mrb[57].mxu1 }
 0x340   :  { %v4728_v3 = vmax.f32 %v4698_v45, 0.0  ;;  %v5497_v4 = vadd.f32 %v5496_v47, %v5495_v46  ;;  %v5561_v50 = vadd.f32 %v5560_v2, %v5559_v1  ;;  %v5498_v51 = vpop.f32.mrb[58].mxu0  ;;  %v5562_v52 = vpop.f32.mrb[58].mxu1 }
 0x341   :  { %v5499_v53 = vpop.f32.mrb[59].mxu0  ;;  %v5563_v55 = vpop.f32.mrb[59].mxu1 }
 0x342   :  { %v4606_v54 = vadd.f32 %v5497_v4, %v7069_v61  ;;  %v5500_v56 = vadd.f32 %v5499_v53, %v5498_v51  ;;  %v5564_v57 = vadd.f32 %v5563_v55, %v5562_v52  ;;  %v4738_v58 = vpack.c.bf16 %v4728_v3, %v4727_v49 }
 0x344   :  { %v4703_v60 = vadd.f32 %v5561_v50, %v4606_v54  ;;  %v4609_v62 = vadd.f32 %v5500_v56, %v7069_v61  ;;  %5628 = vmatmul.mubr.bf16.gmra.mrb[72].mxu0 %v4738_v58 }
 0x346   :  { %v4706_v63 = vadd.f32 %v5564_v57, %v4609_v62  ;;  %v5501_v0 = vpop.f32.mrb[60].mxu0  ;;  %v5565_v5 = vpop.f32.mrb[60].mxu1  ;;  %v4729_v7 = vmax.f32 %v4703_v60, 0.0 }
 0x347   :  { %v5502_v6 = vpop.f32.mrb[61].mxu0  ;;  %v5566_v59 = vpop.f32.mrb[61].mxu1 }
 0x348   :  { %v4730_v8 = vmax.f32 %v4706_v63, 0.0  ;;  %v5503_v9 = vadd.f32 %v5502_v6, %v5501_v0  ;;  %v5567_v10 = vadd.f32 %v5566_v59, %v5565_v5  ;;  %v5504_v11 = vpop.f32.mrb[62].mxu0  ;;  %v5568_v48 = vpop.f32.mrb[62].mxu1 }
 0x349   :  { %v5505_v12 = vpop.f32.mrb[63].mxu0  ;;  %v5569_v13 = vpop.f32.mrb[63].mxu1 }
 0x34a   :  { %v4614_v14 = vadd.f32 %v5503_v9, %v7069_v61  ;;  %v5506_v15 = vadd.f32 %v5505_v12, %v5504_v11  ;;  %v5570_v16 = vadd.f32 %v5569_v13, %v5568_v48  ;;  %v4739_v17 = vpack.c.bf16 %v4730_v8, %v4729_v7 }
 0x34c   :  { %v4711_v18 = vadd.f32 %v5567_v10, %v4614_v14  ;;  %v4617_v19 = vadd.f32 %v5506_v15, %v7069_v61  ;;  %5631 = vmatprep.mubr.bf16.mxu0 %v4739_v17 }
 0x34e   :  { %v4714_v20 = vadd.f32 %v5570_v16, %v4617_v19  ;;  %v4731_v21 = vmax.f32 %v4711_v18, 0.0  ;;  %v5434_v19 = vld [vmem:[%s7113_s8] ss:$0 sm:$0xff] }
 0x350   :  { %v4732_v22 = vmax.f32 %v4714_v20, 0.0 }
 0x352   :  { %v4740_v23 = vpack.c.bf16 %v4732_v22, %v4731_v21 }
 0x354   :  { %5632 = vmatmul.mubr.bf16.gmra.mrb[76].mxu0 %v4740_v23 }
 0x3f7   :  { %v5621_v27 = vpop.f32.mrb[64].mxu0 }
 0x3f8   :  { %v4855_v28 = vadd.f32 %v5621_v27, %v5425_v26  ;;  %v4846_v29 = vpop.f32.mrb[65].mxu0 }
 0x3f9   :  { %v4847_v61 = vadd.f32 %v5425_v26, %v4846_v29  ;;  %v5622_v30 = vpop.f32.mrb[66].mxu0 }
 0x3fa   :  { %v4858_v31 = vadd.f32 %v5622_v30, %v5425_v26  ;;  %v4849_v32 = vpop.f32.mrb[67].mxu0  ;;  %v4911_v34 = vmax.f32 %v4855_v28, 0.0 }
 0x3fb   :  { %v4850_v33 = vadd.f32 %v5425_v26, %v4849_v32  ;;  %v4909_v36 = vmax.f32 %v4847_v61, 0.0 }
 0x3fc   :  { %v4912_v35 = vmax.f32 %v4858_v31, 0.0 }
 0x3fd   :  { %v4910_v37 = vmax.f32 %v4850_v33, 0.0 }
 0x3fe   :  { %v4926_v38 = vpack.c.bf16 %v4912_v35, %v4911_v34 }
 0x3ff   :  { %v4925_v39 = vpack.c.bf16 %v4910_v37, %v4909_v36 }
 0x401   :  { %5651 = vmatprep.mubr.bf16.mxu1 %v4925_v39 }
 0x402   :  { %5652 = vmatmul.mubr.bf16.vlgmr.msra.gmra.mrb[64].mxu1 %v4926_v38 }
 0x407   :  { %v5625_v40 = vpop.f32.mrb[68].mxu0 }
 0x408   :  { %v4871_v41 = vadd.f32 %v5625_v40, %v5425_v26  ;;  %v4862_v42 = vpop.f32.mrb[69].mxu0 }
 0x409   :  { %v4863_v43 = vadd.f32 %v5425_v26, %v4862_v42  ;;  %v5626_v44 = vpop.f32.mrb[70].mxu0 }
 0x40a   :  { %v4874_v45 = vadd.f32 %v5626_v44, %v5425_v26  ;;  %v4865_v46 = vpop.f32.mrb[71].mxu0  ;;  %v4915_v47 = vmax.f32 %v4871_v41, 0.0 }
 0x40b   :  { %v4866_v1 = vadd.f32 %v5425_v26, %v4865_v46  ;;  %v4913_v49 = vmax.f32 %v4863_v43, 0.0 }
 0x40c   :  { %v4916_v2 = vmax.f32 %v4874_v45, 0.0 }
 0x40d   :  { %v4914_v3 = vmax.f32 %v4866_v1, 0.0 }
 0x40e   :  { %v4928_v4 = vpack.c.bf16 %v4916_v2, %v4915_v47 }
 0x40f   :  { %v4927_v50 = vpack.c.bf16 %v4914_v3, %v4913_v49 }
 0x411   :  { %5655 = vmatprep.mubr.bf16.mxu1 %v4927_v50 }
 0x412   :  { %5656 = vmatmul.mubr.bf16.gmra.mrb[68].mxu1 %v4928_v4 }
 0x417   :  { %v5629_v51 = vpop.f32.mrb[72].mxu0 }
 0x418   :  { %v4887_v52 = vadd.f32 %v5629_v51, %v5425_v26  ;;  %v4878_v53 = vpop.f32.mrb[73].mxu0 }
 0x419   :  { %v4879_v55 = vadd.f32 %v5425_v26, %v4878_v53  ;;  %v5630_v54 = vpop.f32.mrb[74].mxu0 }
 0x41a   :  { %v4890_v56 = vadd.f32 %v5630_v54, %v5425_v26  ;;  %v4881_v57 = vpop.f32.mrb[75].mxu0  ;;  %v4919_v60 = vmax.f32 %v4887_v52, 0.0 }
 0x41b   :  { %v4882_v58 = vadd.f32 %v5425_v26, %v4881_v57  ;;  %v4917_v63 = vmax.f32 %v4879_v55, 0.0 }
 0x41c   :  { %v4920_v62 = vmax.f32 %v4890_v56, 0.0 }
 0x41d   :  { %v4918_v0 = vmax.f32 %v4882_v58, 0.0 }
 0x41e   :  { %v4930_v5 = vpack.c.bf16 %v4920_v62, %v4919_v60 }
 0x41f   :  { %v4929_v6 = vpack.c.bf16 %v4918_v0, %v4917_v63 }
 0x421   :  { %5659 = vmatprep.mubr.bf16.mxu1 %v4929_v6 }
 0x422   :  { %5660 = vmatmul.mubr.bf16.gmra.mrb[72].mxu1 %v4930_v5 }
 0x427   :  { %v5633_v59 = vpop.f32.mrb[76].mxu0 }
 0x428   :  { %v4903_v7 = vadd.f32 %v5633_v59, %v5425_v26  ;;  %v4894_v8 = vpop.f32.mrb[77].mxu0 }
 0x429   :  { %v4895_v9 = vadd.f32 %v5425_v26, %v4894_v8  ;;  %v5634_v10 = vpop.f32.mrb[78].mxu0 }
 0x42a   :  { %v4906_v11 = vadd.f32 %v5634_v10, %v5425_v26  ;;  %v4897_v48 = vpop.f32.mrb[79].mxu0  ;;  %v4923_v13 = vmax.f32 %v4903_v7, 0.0 }
 0x42b   :  { %v4898_v12 = vadd.f32 %v5425_v26, %v4897_v48  ;;  %v4921_v15 = vmax.f32 %v4895_v9, 0.0 }
 0x42c   :  { %v4924_v14 = vmax.f32 %v4906_v11, 0.0 }
 0x42d   :  { %v4922_v16 = vmax.f32 %v4898_v12, 0.0 }
 0x42e   :  { %v4932_v17 = vpack.c.bf16 %v4924_v14, %v4923_v13 }
 0x42f   :  { %v4931_v18 = vpack.c.bf16 %v4922_v16, %v4921_v15 }
 0x431   :  { %5663 = vmatprep.mubr.bf16.mxu1 %v4931_v18 }
 0x432   :  { %5664 = vmatmul.mubr.bf16.gmra.mrb[76].mxu1 %v4932_v17 }
 0x4d5   :  { %v5653_v20 = vpop.f32.mrb[64].mxu1 }
 0x4d6   :  { %v5047_v21 = vadd.f32 %v5653_v20, %v5434_v19  ;;  %v5038_v22 = vpop.f32.mrb[65].mxu1 }
 0x4d7   :  { %v5039_v23 = vadd.f32 %v5434_v19, %v5038_v22  ;;  %v5654_v24 = vpop.f32.mrb[66].mxu1 }
 0x4d8   :  { %5103 = vst [vmem:[#allocation11 + $0x10] sm:$0xff] %v5047_v21  ;;  %v5050_v25 = vadd.f32 %v5654_v24, %v5434_v19  ;;  %v5041_v26 = vpop.f32.mrb[67].mxu1 }
 0x4d9   :  { %5101 = vst [vmem:[#allocation11] sm:$0xff] %v5039_v23  ;;  %v5042_v27 = vadd.f32 %v5434_v19, %v5041_v26 }
 0x4da   :  { %5104 = vst [vmem:[#allocation11 + $0x18] sm:$0xff] %v5050_v25 }
 0x4db   :  { %5102 = vst [vmem:[#allocation11 + $0x8] sm:$0xff] %v5042_v27 }
 0x4e5   :  { %v5657_v28 = vpop.f32.mrb[68].mxu1 }
 0x4e6   :  { %v5063_v29 = vadd.f32 %v5657_v28, %v5434_v19  ;;  %v5054_v61 = vpop.f32.mrb[69].mxu1 }
 0x4e7   :  { %v5055_v30 = vadd.f32 %v5434_v19, %v5054_v61  ;;  %v5658_v31 = vpop.f32.mrb[70].mxu1 }
 0x4e8   :  { %5107 = vst [vmem:[#allocation11 + $0x30] sm:$0xff] %v5063_v29  ;;  %v5066_v32 = vadd.f32 %v5658_v31, %v5434_v19  ;;  %v5057_v33 = vpop.f32.mrb[71].mxu1 }
 0x4e9   :  { %5105 = vst [vmem:[#allocation11 + $0x20] sm:$0xff] %v5055_v30  ;;  %v5058_v34 = vadd.f32 %v5434_v19, %v5057_v33 }
 0x4ea   :  { %5108 = vst [vmem:[#allocation11 + $0x38] sm:$0xff] %v5066_v32 }
 0x4eb   :  { %5106 = vst [vmem:[#allocation11 + $0x28] sm:$0xff] %v5058_v34 }
 0x4f5   :  { %v5661_v35 = vpop.f32.mrb[72].mxu1 }
 0x4f6   :  { %v5079_v36 = vadd.f32 %v5661_v35, %v5434_v19  ;;  %v5070_v37 = vpop.f32.mrb[73].mxu1 }
 0x4f7   :  { %v5071_v38 = vadd.f32 %v5434_v19, %v5070_v37  ;;  %v5662_v39 = vpop.f32.mrb[74].mxu1 }
 0x4f8   :  { %5111 = vst [vmem:[#allocation11 + $0x50] sm:$0xff] %v5079_v36  ;;  %v5082_v40 = vadd.f32 %v5662_v39, %v5434_v19  ;;  %v5073_v41 = vpop.f32.mrb[75].mxu1 }
 0x4f9   :  { %5109 = vst [vmem:[#allocation11 + $0x40] sm:$0xff] %v5071_v38  ;;  %v5074_v42 = vadd.f32 %v5434_v19, %v5073_v41 }
 0x4fa   :  { %5112 = vst [vmem:[#allocation11 + $0x58] sm:$0xff] %v5082_v40 }
 0x4fb   :  { %5110 = vst [vmem:[#allocation11 + $0x48] sm:$0xff] %v5074_v42 }
 0x505   :  { %v5665_v43 = vpop.f32.mrb[76].mxu1 }
 0x506   :  { %v5095_v44 = vadd.f32 %v5665_v43, %v5434_v19  ;;  %v5086_v45 = vpop.f32.mrb[77].mxu1 }
 0x507   :  { %v5087_v46 = vadd.f32 %v5434_v19, %v5086_v45  ;;  %v5666_v1 = vpop.f32.mrb[78].mxu1 }
 0x508   :  { %5115 = vst [vmem:[#allocation11 + $0x70] sm:$0xff] %v5095_v44  ;;  %v5098_v47 = vadd.f32 %v5666_v1, %v5434_v19  ;;  %v5089_v2 = vpop.f32.mrb[79].mxu1 }
 0x509   :  { %5113 = vst [vmem:[#allocation11 + $0x60] sm:$0xff] %v5087_v46  ;;  %v5090_v49 = vadd.f32 %v5434_v19, %v5089_v2 }
 0x50a   :  { %5116 = vst [vmem:[#allocation11 + $0x78] sm:$0xff] %v5098_v47 }
 0x50b   :  { %5114 = vst [vmem:[#allocation11 + $0x68] sm:$0xff] %v5090_v49 }
 0x50c   :  { %5121 = vsyncadd [#allocation4], 2016  ;;  %s6710_s8 = smov [#allocation11]  }
 0x50d   :  { %s5122_s13 = sshll.u32 %s6710_s8, 4  ;;  %s5123_s13 = int_to_ptr.vmem [resolvable:$true] %s5122_s13 }
 0x50e   :  { %s6670_s1 = scalar_lea.vmem %s5123_s13, 32  ;;  %s6674_s15 = scalar_lea.vmem %s5123_s13, 2048 }
 0x50f   :  { %p6671_p12 = scmp.ne.s32.totalorder %s5123_s13, %s6670_s1  ;;  %p6675_p13 = scmp.lt.s32.totalorder %s5123_s13, %s5123_s13 }
 0x510   :  { %p6676_p0 = scmp.lt.s32.totalorder %s6674_s15, %s6670_s1 }
 0x512   :  { %p6677_p1 = por %p6676_p0, %p6675_p13 }
 0x514   :  { %p6678_p2 = pnand %p6677_p1, %p6671_p12 }
 0x516   :  { %6681 = shalt.err (!%p6678_p2)
}
 0x517   :  { %s6682_s18 = scalar_lea.hbm %s7114_s9, 32 }
 0x518   :  { %p6683_p3 = scmp.ne.s32.totalorder %s7114_s9, %s6682_s18  ;;  %p6686_p4 = scmp.lt.u32.totalorder %s6682_s18, %s7114_s9 }
 0x51a   :  { %p6688_p5 = pnand %p6686_p4, %p6683_p3 }
 0x51c   :  { %6691 = shalt.err (!%p6688_p5)
}
 0x51d   :  { %s6711_s20 = smov 32   ;;  %s6712_s26 = smov 2  }
 0x51e   :  { %5128 = dma.vmem_to_hbm [thread:$0]  %s5123_s13, 32, %s7114_s9, [#allocation4], %s6711_s20, %s6711_s20, %s6712_s26  }
 0x51f   :  { %6698 = dma.done.wait [#allocation4], 2048  }
 0x520   :  { %6699 = vsyncadd [#allocation4], 4294965248 }
 0x521   :  { %5132 = vsyncpa [#allocation3], 1 }
 0x522   :  { %5133 = vsyncpa [#allocation6], 1 }
 0x523   :  { %5134 = vsyncpa [#allocation9], 1 }
 0x524   :  { %5135 = vsyncpa [#allocation4], 1 }

// kernel: tpu_custom_call.1
= control target key start
LH: loop header
LB: loop body
LE: loop exit
PB: predicated region body
PF: predicated region fallthrough
CT: control target
= control target key end

     0   :  { %14 = vsyncpa [#allocation3], 0  ;;  %s7105_s0 = inlined_call_operand.hbm [shape: f32[2,1024], index: 0, kind: input, shape index: {}]   ;;  %s7106_s1 = inlined_call_operand.hbm [shape: bf16[1024,512], index: 1, kind: input, shape index: {}]   ;;  %s7107_s2 = inlined_call_operand.vmem [shape: f32[1,512], index: 2, kind: input, shape index: {}]   ;;  %s7108_s3 = inlined_call_operand.hbm [shape: bf16[512,128], index: 3, kind: input, shape index: {}]   ;;  %s7109_s4 = inlined_call_operand.vmem [shape: f32[1,128], index: 4, kind: input, shape index: {}]   ;;  %s7110_s5 = inlined_call_operand.hbm [shape: bf16[128,128], index: 5, kind: input, shape index: {}]   ;;  %s7111_s6 = inlined_call_operand.vmem [shape: f32[1,128], index: 6, kind: input, shape index: {}]   ;;  %s7112_s7 = inlined_call_operand.hbm [shape: bf16[128,128], index: 7, kind: input, shape index: {}]   ;;  %s7113_s8 = inlined_call_operand.vmem [shape: f32[1,128], index: 8, kind: input, shape index: {}]   ;;  %s7114_s9 = inlined_call_operand.hbm [shape: f32[2,128], index: 9, kind: output, shape index: {}]  }
   0x1   :  { %15 = vsyncpa [#allocation6], 0 }
   0x2   :  { %16 = vsyncpa [#allocation9], 0 }
   0x3   :  { %17 = vsyncpa [#allocation4], 0 }
   0x4   :  { %22 = vsyncadd [#allocation3], 16128  ;;  %s6700_s30 = smov [#allocation5]   ;;  %s6560_s13 = scalar_lea.hbm %s7106_s1, 32768 }
   0x5   :  { %s35_s10 = sshll.u32 %s6700_s30, 4  ;;  %p6561_p0 = scmp.ne.s32.totalorder %s7106_s1, %s6560_s13  ;;  %s36_s10 = int_to_ptr.vmem [resolvable:$true] %s35_s10 }
   0x6   :  { %p6564_p1 = scmp.lt.u32.totalorder %s6560_s13, %s7106_s1 }
   0x8   :  { %p6566_p2 = pnand %p6564_p1, %p6561_p0 }
   0xa   :  { %6569 = shalt.err (!%p6566_p2)
}
   0xb   :  { %s6570_s18 = scalar_lea.vmem %s36_s10, 32768  ;;  %p6575_p4 = scmp.lt.s32.totalorder %s36_s10, %s36_s10 }
   0xc   :  { %p6571_p3 = scmp.ne.s32.totalorder %s36_s10, %s6570_s18  ;;  %p6576_p5 = scmp.lt.s32.totalorder %s6570_s18, %s6570_s18 }
   0xe   :  { %p6577_p6 = por %p6576_p5, %p6575_p4 }
  0x10   :  { %p6578_p7 = pnand %p6577_p6, %p6571_p3 }
  0x12   :  { %6581 = shalt.err (!%p6578_p7)
}
  0x13   :  { %s6701_s19 = smov 256   ;;  %s6702_s20 = smov 16  }
  0x14   :  { %41 = dma.hbm_to_vmem [thread:$0]  %s7106_s1, 32768, %s36_s10, [#allocation6], %s6701_s19, %s6701_s19, %s6702_s20  }
  0x15   :  { %s6703_s23 = smov [#allocation8]   ;;  %s6704_s25 = smov [#allocation2]  }
  0x16   :  { %s63_s24 = sshll.u32 %s6703_s23, 4  ;;  %s23_s26 = sshll.u32 %s6704_s25, 4  ;;  %s64_s24 = int_to_ptr.vmem [resolvable:$true] %s63_s24  ;;  %s24_s26 = int_to_ptr.vmem [resolvable:$true] %s23_s26 }
  0x17   :  { %s6582_s29 = scalar_lea.hbm %s7110_s5, 1024 }
  0x18   :  { %p6583_p8 = scmp.ne.s32.totalorder %s7110_s5, %s6582_s29  ;;  %p6586_p9 = scmp.lt.u32.totalorder %s6582_s29, %s7110_s5 }
  0x1a   :  { %p6588_p10 = pnand %p6586_p9, %p6583_p8 }
  0x1c   :  { %6591 = shalt.err (!%p6588_p10)
}
  0x1d   :  { %s6592_s1 = scalar_lea.vmem %s64_s24, 1024  ;;  %p6597_p12 = scmp.lt.s32.totalorder %s64_s24, %s64_s24 }
  0x1e   :  { %p6593_p11 = scmp.ne.s32.totalorder %s64_s24, %s6592_s1  ;;  %p6598_p13 = scmp.lt.s32.totalorder %s6592_s1, %s6592_s1 }
  0x20   :  { %p6599_p0 = por %p6598_p13, %p6597_p12 }
  0x22   :  { %p6600_p1 = pnand %p6599_p0, %p6593_p11 }
  0x24   :  { %6603 = shalt.err (!%p6600_p1)
}
  0x25   :  { %s6705_s10 = smov 64   ;;  %s6706_s14 = smov 4  }
  0x26   :  { %69 = dma.hbm_to_vmem [thread:$0]  %s7110_s5, 1024, %s64_s24, [#allocation9], %s6705_s10, %s6705_s10, %s6706_s14  }
  0x27   :  { %s6604_s21 = scalar_lea.hbm %s7105_s0, 256 }
  0x28   :  { %p6605_p2 = scmp.ne.s32.totalorder %s7105_s0, %s6604_s21  ;;  %p6608_p3 = scmp.lt.u32.totalorder %s6604_s21, %s7105_s0 }
  0x2a   :  { %p6610_p4 = pnand %p6608_p3, %p6605_p2 }
  0x2c   :  { %6613 = shalt.err (!%p6610_p4)
}
  0x2d   :  { %s6614_s28 = scalar_lea.vmem %s24_s26, 256  ;;  %s6618_s29 = scalar_lea.vmem %s24_s26, 16384 }
  0x2e   :  { %p6615_p5 = scmp.ne.s32.totalorder %s24_s26, %s6614_s28  ;;  %p6619_p6 = scmp.lt.s32.totalorder %s24_s26, %s24_s26 }
  0x2f   :  { %p6620_p7 = scmp.lt.s32.totalorder %s6618_s29, %s6614_s28 }
  0x31   :  { %p6621_p8 = por %p6620_p7, %p6619_p6 }
  0x33   :  { %p6622_p9 = pnand %p6621_p8, %p6615_p5 }
  0x35   :  { %6625 = shalt.err (!%p6622_p9)
}
  0x36   :  { %29 = dma.hbm_to_vmem [thread:$0]  %s7105_s0, 256, %s24_s26, [#allocation3], %s6701_s19, %s6701_s19, %s6702_s20  }
  0x37   :  { %s6707_s30 = smov [#allocation7]   ;;  %s6708_s12 = smov [#allocation10]  }
  0x38   :  { %s49_s11 = sshll.u32 %s6707_s30, 4  ;;  %s77_s13 = sshll.u32 %s6708_s12, 4  ;;  %s50_s11 = int_to_ptr.vmem [resolvable:$true] %s49_s11  ;;  %s78_s13 = int_to_ptr.vmem [resolvable:$true] %s77_s13 }
  0x39   :  { %s6626_s16 = scalar_lea.hbm %s7108_s3, 4096 }
  0x3a   :  { %p6627_p10 = scmp.ne.s32.totalorder %s7108_s3, %s6626_s16  ;;  %p6630_p11 = scmp.lt.u32.totalorder %s6626_s16, %s7108_s3 }
  0x3c   :  { %p6632_p12 = pnand %p6630_p11, %p6627_p10 }
  0x3e   :  { %6635 = shalt.err (!%p6632_p12)
}
  0x3f   :  { %s6636_s0 = scalar_lea.vmem %s50_s11, 4096  ;;  %p6641_p0 = scmp.lt.s32.totalorder %s50_s11, %s50_s11 }
  0x40   :  { %p6637_p13 = scmp.ne.s32.totalorder %s50_s11, %s6636_s0  ;;  %p6642_p1 = scmp.lt.s32.totalorder %s6636_s0, %s6636_s0 }
  0x42   :  { %p6643_p2 = por %p6642_p1, %p6641_p0 }
  0x44   :  { %p6644_p3 = pnand %p6643_p2, %p6637_p13 }
  0x46   :  { %6647 = shalt.err (!%p6644_p3)
}
  0x47   :  { %55 = dma.hbm_to_vmem [thread:$0]  %s7108_s3, 4096, %s50_s11, [#allocation6], %s6705_s10, %s6705_s10, %s6706_s14  }
  0x48   :  { %s6648_s25 = scalar_lea.hbm %s7112_s7, 1024 }
  0x49   :  { %p6649_p4 = scmp.ne.s32.totalorder %s7112_s7, %s6648_s25  ;;  %p6652_p5 = scmp.lt.u32.totalorder %s6648_s25, %s7112_s7 }
  0x4b   :  { %p6654_p6 = pnand %p6652_p5, %p6649_p4 }
  0x4d   :  { %6657 = shalt.err (!%p6654_p6)
}
  0x4e   :  { %s6658_s24 = scalar_lea.vmem %s78_s13, 1024  ;;  %p6663_p8 = scmp.lt.s32.totalorder %s78_s13, %s78_s13 }
  0x4f   :  { %p6659_p7 = scmp.ne.s32.totalorder %s78_s13, %s6658_s24  ;;  %p6664_p9 = scmp.lt.s32.totalorder %s6658_s24, %s6658_s24 }
  0x51   :  { %p6665_p10 = por %p6664_p9, %p6663_p8 }
  0x53   :  { %p6666_p11 = pnand %p6665_p10, %p6659_p7 }
  0x55   :  { %6669 = shalt.err (!%p6666_p11)
}
  0x56   :  { %83 = dma.hbm_to_vmem [thread:$0]  %s7112_s7, 1024, %s78_s13, [#allocation9], %s6705_s10, %s6705_s10, %s6706_s14  }
  0x57   :  { %6692 = dma.done.wait [#allocation3], 16384  }
  0x58   :  { %6693 = vsyncadd [#allocation3], 4294950912 }
  0x59   :  { %6694 = dma.done.wait [#allocation6], 36864  }
  0x5a   :  { %6695 = vsyncadd [#allocation6], 4294930432 }
  0x5b   :  { %6696 = dma.done.wait [#allocation9], 2048  }
  0x5c   :  { %6697 = vsyncadd [#allocation9], 4294965248  ;;  %v5936_v0 = vld [vmem:[#allocation5 + $0x4] ss:$16 sps:$4 sm:$0xff]   ;;  %v5938_v1 = vld [vmem:[#allocation5 + $0xc] ss:$16 sps:$4 sm:$0xff]   ;;  %v365_v41 = vlaneseq }
  0x5d   :  { %3260 = vmatprep.subr.bf16.mxu0 %v5936_v0  ;;  %v5940_v2 = vld [vmem:[#allocation5] ss:$16 sps:$4 sm:$0xff]   ;;  %v5941_v3 = vld [vmem:[#allocation5 + $0x8] ss:$16 sps:$4 sm:$0xff]   ;;  %3712 = vmatprep.subr.bf16.mxu1 %v5938_v1  ;;  %v5942_v4 = vld [vmem:[#allocation5 + $0x24] ss:$16 sps:$4 sm:$0xff]  }
  0x5e   :  { %3261 = vmatpush1.bf16.msra.mxu0 %v5940_v2  ;;  %3713 = vmatpush1.bf16.msra.mxu1 %v5941_v3  ;;  %v5944_v5 = vld [vmem:[#allocation5 + $0x2c] ss:$16 sps:$4 sm:$0xff]   ;;  %v5946_v6 = vld [vmem:[#allocation5 + $0x20] ss:$16 sps:$4 sm:$0xff]   ;;  %v5947_v7 = vld [vmem:[#allocation5 + $0x28] ss:$16 sps:$4 sm:$0xff]  }
  0x5f   :  { %3262 = vmatprep.subr.bf16.mxu0 %v5942_v4  ;;  %3714 = vmatprep.subr.bf16.mxu1 %v5944_v5  ;;  %v5948_v8 = vld [vmem:[#allocation5 + $0x44] ss:$16 sps:$4 sm:$0xff]   ;;  %v5950_v9 = vld [vmem:[#allocation5 + $0x4c] ss:$16 sps:$4 sm:$0xff]   ;;  %v5952_v10 = vld [vmem:[#allocation5 + $0x40] ss:$16 sps:$4 sm:$0xff]  }
  0x60   :  { %v5953_v11 = vld [vmem:[#allocation5 + $0x48] ss:$16 sps:$4 sm:$0xff]   ;;  %v5954_v12 = vld [vmem:[#allocation5 + $0x64] ss:$16 sps:$4 sm:$0xff]   ;;  %v5956_v13 = vld [vmem:[#allocation5 + $0x6c] ss:$16 sps:$4 sm:$0xff]  }
  0x61   :  { %v5958_v14 = vld [vmem:[#allocation5 + $0x60] ss:$16 sps:$4 sm:$0xff]   ;;  %v5959_v15 = vld [vmem:[#allocation5 + $0x68] ss:$16 sps:$4 sm:$0xff]   ;;  %v5960_v16 = vld [vmem:[#allocation5 + $0x84] ss:$16 sps:$4 sm:$0xff]  }
  0x62   :  { %3263 = vmatpush1.bf16.msra.mxu0 %v5946_v6  ;;  %3715 = vmatpush1.bf16.msra.mxu1 %v5947_v7  ;;  %v5962_v17 = vld [vmem:[#allocation5 + $0x8c] ss:$16 sps:$4 sm:$0xff]   ;;  %v5964_v18 = vld [vmem:[#allocation5 + $0x80] ss:$16 sps:$4 sm:$0xff]   ;;  %v5965_v19 = vld [vmem:[#allocation5 + $0x88] ss:$16 sps:$4 sm:$0xff]  }
  0x63   :  { %3264 = vmatprep.subr.bf16.mxu0 %v5948_v8  ;;  %3716 = vmatprep.subr.bf16.mxu1 %v5950_v9  ;;  %v5966_v20 = vld [vmem:[#allocation5 + $0xa4] ss:$16 sps:$4 sm:$0xff]   ;;  %v5968_v21 = vld [vmem:[#allocation5 + $0xac] ss:$16 sps:$4 sm:$0xff]   ;;  %v5970_v22 = vld [vmem:[#allocation5 + $0xa0] ss:$16 sps:$4 sm:$0xff]  }
  0x64   :  { %v5971_v23 = vld [vmem:[#allocation5 + $0xa8] ss:$16 sps:$4 sm:$0xff]   ;;  %v5972_v24 = vld [vmem:[#allocation5 + $0xc4] ss:$16 sps:$4 sm:$0xff]   ;;  %v5974_v25 = vld [vmem:[#allocation5 + $0xcc] ss:$16 sps:$4 sm:$0xff]  }
  0x65   :  { %v5976_v26 = vld [vmem:[#allocation5 + $0xc0] ss:$16 sps:$4 sm:$0xff]   ;;  %v5977_v27 = vld [vmem:[#allocation5 + $0xc8] ss:$16 sps:$4 sm:$0xff]   ;;  %v5978_v28 = vld [vmem:[#allocation5 + $0xe4] ss:$16 sps:$4 sm:$0xff]  }
  0x66   :  { %3265 = vmatpush1.bf16.msra.mxu0 %v5952_v10  ;;  %3717 = vmatpush1.bf16.msra.mxu1 %v5953_v11  ;;  %v5980_v29 = vld [vmem:[#allocation5 + $0xec] ss:$16 sps:$4 sm:$0xff]   ;;  %v5982_v30 = vld [vmem:[#allocation5 + $0xe0] ss:$16 sps:$4 sm:$0xff]   ;;  %v5983_v31 = vld [vmem:[#allocation5 + $0xe8] ss:$16 sps:$4 sm:$0xff]  }
  0x67   :  { %3266 = vmatprep.subr.bf16.mxu0 %v5954_v12  ;;  %3718 = vmatprep.subr.bf16.mxu1 %v5956_v13  ;;  %v5984_v32 = vld [vmem:[#allocation5 + $0x104] ss:$16 sps:$4 sm:$0xff]   ;;  %v5986_v33 = vld [vmem:[#allocation5 + $0x10c] ss:$16 sps:$4 sm:$0xff]   ;;  %v5988_v34 = vld [vmem:[#allocation5 + $0x100] ss:$16 sps:$4 sm:$0xff]  }
  0x68   :  { %v5989_v35 = vld [vmem:[#allocation5 + $0x108] ss:$16 sps:$4 sm:$0xff]   ;;  %v5990_v36 = vld [vmem:[#allocation5 + $0x124] ss:$16 sps:$4 sm:$0xff]   ;;  %v5992_v37 = vld [vmem:[#allocation5 + $0x12c] ss:$16 sps:$4 sm:$0xff]  }
  0x69   :  { %v5994_v38 = vld [vmem:[#allocation5 + $0x120] ss:$16 sps:$4 sm:$0xff]   ;;  %v6709_v39 = vmov 1983009808   ;;  %v5995_v42 = vld [vmem:[#allocation5 + $0x128] ss:$16 sps:$4 sm:$0xff]  }
  0x6a   :  { %3267 = vmatpush1.bf16.msra.mxu0 %v5958_v14  ;;  %3719 = vmatpush1.bf16.msra.mxu1 %v5959_v15  ;;  %v363_v40 = vunpack.c.l.s4 %v6709_v39  ;;  %v5996_v43 = vld [vmem:[#allocation5 + $0x144] ss:$16 sps:$4 sm:$0xff]   ;;  %v5998_v44 = vld [vmem:[#allocation5 + $0x14c] ss:$16 sps:$4 sm:$0xff]   ;;  %v6000_v45 = vld [vmem:[#allocation5 + $0x140] ss:$16 sps:$4 sm:$0xff]  }
  0x6b   :  { %3268 = vmatprep.subr.bf16.mxu0 %v5960_v16  ;;  %3720 = vmatprep.subr.bf16.mxu1 %v5962_v17  ;;  %v6001_v46 = vld [vmem:[#allocation5 + $0x148] ss:$16 sps:$4 sm:$0xff]   ;;  %v6838_v48 = vshrl.u32 %v365_v41, 7  ;;  %v6002_v49 = vld [vmem:[#allocation5 + $0x164] ss:$16 sps:$4 sm:$0xff]  }
  0x6c   :  { %v364_v47 = vunpack.c.0.s8 %v363_v40  ;;  %v6004_v50 = vld [vmem:[#allocation5 + $0x16c] ss:$16 sps:$4 sm:$0xff]   ;;  %v6006_v51 = vld [vmem:[#allocation5 + $0x160] ss:$16 sps:$4 sm:$0xff]   ;;  %v6007_v52 = vld [vmem:[#allocation5 + $0x168] ss:$16 sps:$4 sm:$0xff]  }
  0x6d   :  { %v6008_v53 = vld [vmem:[#allocation5 + $0x184] ss:$16 sps:$4 sm:$0xff]   ;;  %v6010_v55 = vld [vmem:[#allocation5 + $0x18c] ss:$16 sps:$4 sm:$0xff]   ;;  %v6032_v56 = vld [vmem:[#allocation2] ss:$16 sps:$4 sm:$0xff]  }
  0x6e   :  { %3269 = vmatpush1.bf16.msra.mxu0 %v5964_v18  ;;  %3721 = vmatpush1.bf16.msra.mxu1 %v5965_v19  ;;  %v6841_v54 = vsub.s32 %v364_v47, %v6838_v48  ;;  %v6035_v57 = vld [vmem:[#allocation2 + $0x20] ss:$16 sps:$4 sm:$0xff]   ;;  %v6013_v60 = vld [vmem:[#allocation5 + $0x188] ss:$16 sps:$4 sm:$0xff]   ;;  %v6014_v63 = vld [vmem:[#allocation5 + $0x1a4] ss:$16 sps:$4 sm:$0xff]  }
  0x6f   :  { %3270 = vmatprep.subr.bf16.mxu0 %v5966_v20  ;;  %3722 = vmatprep.subr.bf16.mxu1 %v5968_v21  ;;  %v6038_v58 = vld [vmem:[#allocation2 + $0x40] ss:$16 sps:$4 sm:$0xff]   ;;  %v6016_v2 = vld [vmem:[#allocation5 + $0x1ac] ss:$16 sps:$4 sm:$0xff]   ;;  %v6019_v6 = vld [vmem:[#allocation5 + $0x1a8] ss:$16 sps:$4 sm:$0xff]  }
  0x70   :  { %v6012_v59 = vld [vmem:[#allocation5 + $0x180] ss:$16 sps:$4 sm:$0xff]   ;;  %v368_v61 = vrot.slane %v6032_v56, %v6841_v54  ;;  %v382_v0 = vrot.slane %v6035_v57, %v6841_v54  ;;  %v440_v1 = vrot.slane %v6038_v58, %v6841_v54  ;;  %v6020_v8 = vld [vmem:[#allocation5 + $0x1c4] ss:$16 sps:$4 sm:$0xff]   ;;  %v6022_v9 = vld [vmem:[#allocation5 + $0x1cc] ss:$16 sps:$4 sm:$0xff]  }
  0x71   :  { %v6041_v62 = vld [vmem:[#allocation2 + $0x60] ss:$16 sps:$4 sm:$0xff]   ;;  %v6025_v12 = vld [vmem:[#allocation5 + $0x1c8] ss:$16 sps:$4 sm:$0xff]   ;;  %v6026_v13 = vld [vmem:[#allocation5 + $0x1e4] ss:$16 sps:$4 sm:$0xff]  }
  0x72   :  { %3271 = vmatpush1.bf16.msra.mxu0 %v5970_v22  ;;  %3723 = vmatpush1.bf16.msra.mxu1 %v5971_v23  ;;  %v454_v3 = vrot.slane %v6041_v62, %v6841_v54  ;;  %v391_v4 = vcombine.high %v368_v61, %v382_v0  ;;  %v6018_v5 = vld [vmem:[#allocation5 + $0x1a0] ss:$16 sps:$4 sm:$0xff]   ;;  %v6028_v14 = vld [vmem:[#allocation5 + $0x1ec] ss:$16 sps:$4 sm:$0xff]   ;;  %v6031_v23 = vld [vmem:[#allocation5 + $0x1e8] ss:$16 sps:$4 sm:$0xff]  }
  0x73   :  { %3272 = vmatprep.subr.bf16.mxu0 %v5972_v24  ;;  %3724 = vmatprep.subr.bf16.mxu1 %v5974_v25  ;;  %v6024_v11 = vld [vmem:[#allocation5 + $0x1c0] ss:$16 sps:$4 sm:$0xff]   ;;  %v390_v24 = vcombine.low %v368_v61, %v382_v0  ;;  %v6066_v47 = vld [vmem:[#allocation5 + $0x244] ss:$16 sps:$4 sm:$0xff]   ;;  %v6073_v61 = vld [vmem:[#allocation5 + $0x268] ss:$16 sps:$4 sm:$0xff]  }
  0x74   :  { %v463_v7 = vcombine.high %v440_v1, %v454_v3  ;;  %v6056_v15 = vld [vmem:[#allocation2 + $0x80] ss:$16 sps:$4 sm:$0xff]   ;;  %v462_v25 = vcombine.low %v440_v1, %v454_v3  ;;  %v6072_v58 = vld [vmem:[#allocation5 + $0x264] ss:$16 sps:$4 sm:$0xff]  }
  0x75   :  { %v6058_v16 = vld [vmem:[#allocation2 + $0xa0] ss:$16 sps:$4 sm:$0xff]   ;;  %v512_v19 = vrot.slane %v6056_v15, %v6841_v54 }
  0x76   :  { %3273 = vmatpush1.bf16.msra.mxu0 %v5976_v26  ;;  %3725 = vmatpush1.bf16.msra.mxu1 %v5977_v27  ;;  %v1639_v10 = vpack.c.bf16 %v463_v7, %v391_v4  ;;  %v6060_v17 = vld [vmem:[#allocation2 + $0xc0] ss:$16 sps:$4 sm:$0xff]   ;;  %v526_v20 = vrot.slane %v6058_v16, %v6841_v54  ;;  %v6046_v27 = vld [vmem:[#allocation5 + $0x204] ss:$16 sps:$4 sm:$0xff]   ;;  %v6089_v7 = vld [vmem:[#allocation5 + $0x28c] ss:$16 sps:$4 sm:$0xff]  }
  0x77   :  { %3274 = vmatprep.subr.bf16.mxu0 %v5978_v28  ;;  %3726 = vmatprep.subr.bf16.mxu1 %v5980_v29  ;;  %v6062_v18 = vld [vmem:[#allocation2 + $0xe0] ss:$16 sps:$4 sm:$0xff]   ;;  %v584_v21 = vrot.slane %v6060_v17, %v6841_v54  ;;  %v6049_v28 = vld [vmem:[#allocation5 + $0x20c] ss:$16 sps:$4 sm:$0xff]   ;;  %v6092_v16 = vld [vmem:[#allocation5 + $0x2a4] ss:$16 sps:$4 sm:$0xff]  }
  0x78   :  { %3292 = vmatprep.mubr.bf16.mxu0 %v1639_v10  ;;  %3744 = vmatprep.mubr.bf16.mxu1 %v1639_v10  ;;  %v6030_v22 = vld [vmem:[#allocation5 + $0x1e0] ss:$16 sps:$4 sm:$0xff]   ;;  %v598_v26 = vrot.slane %v6062_v18, %v6841_v54  ;;  %v534_v39 = vcombine.low %v512_v19, %v526_v20  ;;  %v6095_v17 = vld [vmem:[#allocation5 + $0x2ac] ss:$16 sps:$4 sm:$0xff]  }
  0x79   :  { %v6044_v29 = vld [vmem:[#allocation5 + $0x200] ss:$16 sps:$4 sm:$0xff]  }
  0x7a   :  { %3275 = vmatpush1.bf16.msra.mxu0 %v5982_v30  ;;  %3727 = vmatpush1.bf16.msra.mxu1 %v5983_v31  ;;  %v6047_v30 = vld [vmem:[#allocation5 + $0x208] ss:$16 sps:$4 sm:$0xff]   ;;  %v535_v31 = vcombine.high %v512_v19, %v526_v20  ;;  %v6080_v40 = vld [vmem:[#allocation2 + $0x140] ss:$16 sps:$4 sm:$0xff]  }
  0x7b   :  { %3276 = vmatprep.subr.bf16.mxu0 %v5984_v32  ;;  %3728 = vmatprep.subr.bf16.mxu1 %v5986_v33  ;;  %v607_v32 = vcombine.high %v584_v21, %v598_v26  ;;  %v1638_v33 = vpack.c.bf16 %v462_v25, %v390_v24  ;;  %v6082_v41 = vld [vmem:[#allocation2 + $0x160] ss:$16 sps:$4 sm:$0xff]   ;;  %v6093_v19 = vld [vmem:[#allocation5 + $0x2a8] ss:$16 sps:$4 sm:$0xff]   ;;  %v6109_v24 = vld [vmem:[#allocation5 + $0x2cc] ss:$16 sps:$4 sm:$0xff]  }
  0x7c   :  { %v6100_v3 = vld [vmem:[#allocation2 + $0x1c0] ss:$16 sps:$4 sm:$0xff]  }
  0x7d   :  { %v6102_v4 = vld [vmem:[#allocation2 + $0x1e0] ss:$16 sps:$4 sm:$0xff]  }
  0x7e   :  { %3277 = vmatpush1.bf16.msra.mxu0 %v5988_v34  ;;  %3729 = vmatpush1.bf16.msra.mxu1 %v5989_v35  ;;  %v6052_v34 = vld [vmem:[#allocation5 + $0x224] ss:$16 sps:$4 sm:$0xff]   ;;  %v6055_v35 = vld [vmem:[#allocation5 + $0x22c] ss:$16 sps:$4 sm:$0xff]   ;;  %v886_v10 = vrot.slane %v6102_v4, %v6841_v54  ;;  %v6090_v18 = vld [vmem:[#allocation5 + $0x2a0] ss:$16 sps:$4 sm:$0xff]  }
  0x7f   :  { %3278 = vmatprep.subr.bf16.mxu0 %v5990_v36  ;;  %3730 = vmatprep.subr.bf16.mxu1 %v5992_v37  ;;  %v6076_v36 = vld [vmem:[#allocation2 + $0x100] ss:$16 sps:$4 sm:$0xff]   ;;  %v6146_v4 = vld [vmem:[#allocation5 + $0x344] ss:$16 sps:$4 sm:$0xff]  }
  0x80   :  { %v6078_v37 = vld [vmem:[#allocation2 + $0x120] ss:$16 sps:$4 sm:$0xff]  }
  0x81   :  { %v6116_v25 = vld [vmem:[#allocation2 + $0x200] ss:$16 sps:$4 sm:$0xff]  }
  0x82   :  { %3279 = vmatpush1.bf16.msra.mxu0 %v5994_v38  ;;  %3731 = vmatpush1.bf16.msra.mxu1 %v5995_v42  ;;  %v1647_v38 = vpack.c.bf16 %v607_v32, %v535_v31  ;;  %v6050_v42 = vld [vmem:[#allocation5 + $0x220] ss:$16 sps:$4 sm:$0xff]  }
  0x83   :  { %3280 = vmatprep.subr.bf16.mxu0 %v5996_v43  ;;  %3732 = vmatprep.subr.bf16.mxu1 %v5998_v44  ;;  %v6053_v43 = vld [vmem:[#allocation5 + $0x228] ss:$16 sps:$4 sm:$0xff]   ;;  %v606_v44 = vcombine.low %v584_v21, %v598_v26  ;;  %v6118_v26 = vld [vmem:[#allocation2 + $0x220] ss:$16 sps:$4 sm:$0xff]  }
  0x85   :  { %v1646_v57 = vpack.c.bf16 %v606_v44, %v534_v39 }
  0x86   :  { %3281 = vmatpush1.bf16.msra.mxu0 %v6000_v45  ;;  %3733 = vmatpush1.bf16.msra.mxu1 %v6001_v46  ;;  %v656_v45 = vrot.slane %v6076_v36, %v6841_v54  ;;  %v670_v46 = vrot.slane %v6078_v37, %v6841_v54  ;;  %v6112_v36 = vld [vmem:[#allocation5 + $0x2e4] ss:$16 sps:$4 sm:$0xff]  }
  0x87   :  { %3282 = vmatprep.subr.bf16.mxu0 %v6002_v49  ;;  %3734 = vmatprep.subr.bf16.mxu1 %v6004_v50  ;;  %v728_v49 = vrot.slane %v6080_v40, %v6841_v54  ;;  %v742_v50 = vrot.slane %v6082_v41, %v6841_v54  ;;  %v6110_v40 = vld [vmem:[#allocation5 + $0x2e0] ss:$16 sps:$4 sm:$0xff]   ;;  %v6113_v41 = vld [vmem:[#allocation5 + $0x2e8] ss:$16 sps:$4 sm:$0xff]  }
  0x88   :  { %v678_v0 = vcombine.low %v656_v45, %v670_v46 }
  0x89   :  { %v751_v56 = vcombine.high %v728_v49, %v742_v50  ;;  %v750_v1 = vcombine.low %v728_v49, %v742_v50  ;;  %v6138_v49 = vld [vmem:[#allocation2 + $0x2a0] ss:$16 sps:$4 sm:$0xff]  }
  0x8a   :  { %3283 = vmatpush1.bf16.msra.mxu0 %v6006_v51  ;;  %3735 = vmatpush1.bf16.msra.mxu1 %v6007_v52  ;;  %v6069_v51 = vld [vmem:[#allocation5 + $0x24c] ss:$16 sps:$4 sm:$0xff]   ;;  %v6064_v52 = vld [vmem:[#allocation5 + $0x240] ss:$16 sps:$4 sm:$0xff]  }
  0x8b   :  { %3284 = vmatprep.subr.bf16.mxu0 %v6008_v53  ;;  %3736 = vmatprep.subr.bf16.mxu1 %v6010_v55  ;;  %v6067_v53 = vld [vmem:[#allocation5 + $0x248] ss:$16 sps:$4 sm:$0xff]   ;;  %v679_v55 = vcombine.high %v656_v45, %v670_v46  ;;  %v6126_v45 = vld [vmem:[#allocation5 + $0x304] ss:$16 sps:$4 sm:$0xff]   ;;  %v6129_v46 = vld [vmem:[#allocation5 + $0x30c] ss:$16 sps:$4 sm:$0xff]  }
  0x8c   :  { %v6140_v50 = vld [vmem:[#allocation2 + $0x2c0] ss:$16 sps:$4 sm:$0xff]  }
  0x8d   :  { %v1655_v62 = vpack.c.bf16 %v751_v56, %v679_v55  ;;  %v6127_v55 = vld [vmem:[#allocation5 + $0x308] ss:$16 sps:$4 sm:$0xff]  }
  0x8e   :  { %3285 = vmatpush1.bf16.msra.mxu0 %v6012_v59  ;;  %3737 = vmatpush1.bf16.msra.mxu1 %v6013_v60  ;;  %v6075_v59 = vld [vmem:[#allocation5 + $0x26c] ss:$16 sps:$4 sm:$0xff]   ;;  %v6070_v60 = vld [vmem:[#allocation5 + $0x260] ss:$16 sps:$4 sm:$0xff]  }
  0x8f   :  { %3286 = vmatprep.subr.bf16.mxu0 %v6014_v63  ;;  %3738 = vmatprep.subr.bf16.mxu1 %v6016_v2  ;;  %v6096_v63 = vld [vmem:[#allocation2 + $0x180] ss:$16 sps:$4 sm:$0xff]  }
  0x90   :  { %v6098_v2 = vld [vmem:[#allocation2 + $0x1a0] ss:$16 sps:$4 sm:$0xff]  }
  0x92   :  { %3287 = vmatpush1.bf16.msra.mxu0 %v6018_v5  ;;  %3739 = vmatpush1.bf16.msra.mxu1 %v6019_v6  ;;  %v6086_v5 = vld [vmem:[#allocation5 + $0x284] ss:$16 sps:$4 sm:$0xff]   ;;  %v800_v6 = vrot.slane %v6096_v63, %v6841_v54  ;;  %v6130_v63 = vld [vmem:[#allocation5 + $0x320] ss:$16 sps:$4 sm:$0xff]  }
  0x93   :  { %3288 = vmatprep.subr.bf16.mxu0 %v6020_v8  ;;  %3740 = vmatprep.subr.bf16.mxu1 %v6022_v9  ;;  %v814_v8 = vrot.slane %v6098_v2, %v6841_v54  ;;  %v872_v9 = vrot.slane %v6100_v3, %v6841_v54 }
  0x95   :  { %v895_v15 = vcombine.high %v872_v9, %v886_v10  ;;  %v822_v21 = vcombine.low %v800_v6, %v814_v8 }
  0x96   :  { %3289 = vmatpush1.bf16.msra.mxu0 %v6024_v11  ;;  %3741 = vmatpush1.bf16.msra.mxu1 %v6025_v12  ;;  %v1654_v11 = vpack.c.bf16 %v750_v1, %v678_v0  ;;  %v6084_v12 = vld [vmem:[#allocation5 + $0x280] ss:$16 sps:$4 sm:$0xff]   ;;  %v6133_v0 = vld [vmem:[#allocation5 + $0x328] ss:$16 sps:$4 sm:$0xff]  }
  0x97   :  { %3290 = vmatprep.subr.bf16.mxu0 %v6026_v13  ;;  %3742 = vmatprep.subr.bf16.mxu1 %v6028_v14  ;;  %v6087_v13 = vld [vmem:[#allocation5 + $0x288] ss:$16 sps:$4 sm:$0xff]   ;;  %v823_v14 = vcombine.high %v800_v6, %v814_v8 }
  0x98   :  { %v6147_v8 = vld [vmem:[#allocation5 + $0x348] ss:$16 sps:$4 sm:$0xff]  }
  0x99   :  { %v1663_v20 = vpack.c.bf16 %v895_v15, %v823_v14  ;;  %v6152_v14 = vld [vmem:[#allocation5 + $0x364] ss:$16 sps:$4 sm:$0xff]  }
  0x9a   :  { %3291 = vmatpush1.bf16.msra.mxu0 %v6030_v22  ;;  %3743 = vmatpush1.bf16.msra.mxu1 %v6031_v23  ;;  %v894_v22 = vcombine.low %v872_v9, %v886_v10  ;;  %v6106_v23 = vld [vmem:[#allocation5 + $0x2c4] ss:$16 sps:$4 sm:$0xff]   ;;  %v6156_v9 = vld [vmem:[#allocation2 + $0x300] ss:$16 sps:$4 sm:$0xff]  }
  0x9b   :  { %3373 = vmatprep.subr.bf16.mxu0 %v6046_v27  ;;  %3825 = vmatprep.subr.bf16.mxu1 %v6049_v28  ;;  %v6120_v27 = vld [vmem:[#allocation2 + $0x240] ss:$16 sps:$4 sm:$0xff]   ;;  %v1232_v15 = vrot.slane %v6156_v9, %v6841_v54  ;;  %v6198_v9 = vld [vmem:[#allocation5 + $0x404] ss:$16 sps:$4 sm:$0xff]  }
  0x9c   :  { %v6122_v28 = vld [vmem:[#allocation2 + $0x260] ss:$16 sps:$4 sm:$0xff]   ;;  %v1016_v31 = vrot.slane %v6120_v27, %v6841_v54  ;;  %v1662_v32 = vpack.c.bf16 %v894_v22, %v822_v21  ;;  %v6037_v21 = vld [vmem:[#allocation2 + $0x24] ss:$16 sps:$4 sm:$0xff]  }
  0x9d   :  { %3293 = vmatmul.mubr.bf16.vlgmr.msra.gmra.mrb[0].mxu0 %v1638_v33  ;;  %3745 = vmatmul.mubr.bf16.vlgmr.msra.gmra.mrb[0].mxu1 %v1638_v33  ;;  %v6104_v33 = vld [vmem:[#allocation5 + $0x2c0] ss:$16 sps:$4 sm:$0xff]   ;;  %v6040_v22 = vld [vmem:[#allocation2 + $0x44] ss:$16 sps:$4 sm:$0xff]  }
  0x9e   :  { %3374 = vmatpush1.bf16.msra.mxu0 %v6044_v29  ;;  %3826 = vmatpush1.bf16.msra.mxu1 %v6047_v30  ;;  %v944_v29 = vrot.slane %v6116_v25, %v6841_v54  ;;  %v958_v30 = vrot.slane %v6118_v26, %v6841_v54 }
  0x9f   :  { %3375 = vmatprep.subr.bf16.mxu0 %v6052_v34  ;;  %3827 = vmatprep.subr.bf16.mxu1 %v6055_v35  ;;  %v6107_v34 = vld [vmem:[#allocation5 + $0x2c8] ss:$16 sps:$4 sm:$0xff]   ;;  %v1030_v35 = vrot.slane %v6122_v28, %v6841_v54  ;;  %v6043_v28 = vld [vmem:[#allocation2 + $0x64] ss:$16 sps:$4 sm:$0xff]  }
  0xa0   :  { %3302 = vmatprep.mubr.bf16.mxu0 %v1647_v38  ;;  %3754 = vmatprep.mubr.bf16.mxu1 %v1647_v38  ;;  %v967_v37 = vcombine.high %v944_v29, %v958_v30  ;;  %v6115_v38 = vld [vmem:[#allocation5 + $0x2ec] ss:$16 sps:$4 sm:$0xff]  }
  0xa1   :  { %v1039_v39 = vcombine.high %v1016_v31, %v1030_v35  ;;  %v1038_v44 = vcombine.low %v1016_v31, %v1030_v35 }
  0xa2   :  { %3376 = vmatpush1.bf16.msra.mxu0 %v6050_v42  ;;  %3828 = vmatpush1.bf16.msra.mxu1 %v6053_v43  ;;  %v966_v43 = vcombine.low %v944_v29, %v958_v30  ;;  %v6166_v30 = vld [vmem:[#allocation5 + $0x384] ss:$16 sps:$4 sm:$0xff]  }
  0xa3   :  { %3377 = vmatprep.subr.bf16.mxu0 %v6066_v47  ;;  %3829 = vmatprep.subr.bf16.mxu1 %v6069_v51  ;;  %v1671_v42 = vpack.c.bf16 %v1039_v39, %v967_v37  ;;  %v6136_v47 = vld [vmem:[#allocation2 + $0x280] ss:$16 sps:$4 sm:$0xff]   ;;  %v6175_v37 = vld [vmem:[#allocation5 + $0x3ac] ss:$16 sps:$4 sm:$0xff]  }
  0xa4   :  { %v6142_v51 = vld [vmem:[#allocation2 + $0x2e0] ss:$16 sps:$4 sm:$0xff]   ;;  %v1088_v56 = vrot.slane %v6136_v47, %v6841_v54 }
  0xa5   :  { %3303 = vmatmul.mubr.bf16.gmra.mrb[4].mxu0 %v1646_v57  ;;  %3755 = vmatmul.mubr.bf16.gmra.mrb[4].mxu1 %v1646_v57  ;;  %v1102_v57 = vrot.slane %v6138_v49, %v6841_v54  ;;  %v6178_v39 = vld [vmem:[#allocation2 + $0x3a0] ss:$16 sps:$4 sm:$0xff]   ;;  %v461_v49 = vrot.slane %v6043_v28, %v6841_v54  ;;  %v6224_v28 = vld [vmem:[#allocation2 + $0x104] ss:$16 sps:$4 sm:$0xff]  }
  0xa6   :  { %3378 = vmatpush1.bf16.msra.mxu0 %v6064_v52  ;;  %3830 = vmatpush1.bf16.msra.mxu1 %v6067_v53  ;;  %v1670_v52 = vpack.c.bf16 %v1038_v44, %v966_v43  ;;  %v6124_v53 = vld [vmem:[#allocation5 + $0x300] ss:$16 sps:$4 sm:$0xff]   ;;  %v389_v43 = vrot.slane %v6037_v21, %v6841_v54  ;;  %v447_v44 = vrot.slane %v6040_v22, %v6841_v54  ;;  %v6204_v22 = vld [vmem:[#allocation5 + $0x424] ss:$16 sps:$4 sm:$0xff]  }
  0xa7   :  { %3379 = vmatprep.subr.bf16.mxu0 %v6072_v58  ;;  %3831 = vmatprep.subr.bf16.mxu1 %v6075_v59  ;;  %v6132_v58 = vld [vmem:[#allocation5 + $0x324] ss:$16 sps:$4 sm:$0xff]   ;;  %v1160_v59 = vrot.slane %v6140_v50, %v6841_v54  ;;  %v1110_v2 = vcombine.low %v1088_v56, %v1102_v57  ;;  %v6170_v50 = vld [vmem:[#allocation5 + $0x3a0] ss:$16 sps:$4 sm:$0xff]  }
  0xa8   :  { %3312 = vmatprep.mubr.bf16.mxu0 %v1655_v62  ;;  %3764 = vmatprep.mubr.bf16.mxu1 %v1655_v62  ;;  %v1111_v62 = vcombine.high %v1088_v56, %v1102_v57 }
  0xaa   :  { %3380 = vmatpush1.bf16.msra.mxu0 %v6070_v60  ;;  %3832 = vmatpush1.bf16.msra.mxu1 %v6073_v61  ;;  %v1174_v60 = vrot.slane %v6142_v51, %v6841_v54  ;;  %v6135_v61 = vld [vmem:[#allocation5 + $0x32c] ss:$16 sps:$4 sm:$0xff]  }
  0xab   :  { %3381 = vmatprep.subr.bf16.mxu0 %v6086_v5  ;;  %3833 = vmatprep.subr.bf16.mxu1 %v6089_v7  ;;  %v6149_v5 = vld [vmem:[#allocation5 + $0x34c] ss:$16 sps:$4 sm:$0xff]   ;;  %v6144_v7 = vld [vmem:[#allocation5 + $0x340] ss:$16 sps:$4 sm:$0xff]  }
  0xac   :  { %v1183_v1 = vcombine.high %v1160_v59, %v1174_v60  ;;  %v1182_v3 = vcombine.low %v1160_v59, %v1174_v60  ;;  %v6189_v59 = vld [vmem:[#allocation5 + $0x3cc] ss:$16 sps:$4 sm:$0xff]  }
  0xad   :  { %3313 = vmatmul.mubr.bf16.gmra.mrb[8].mxu0 %v1654_v11  ;;  %3765 = vmatmul.mubr.bf16.gmra.mrb[8].mxu1 %v1654_v11  ;;  %v6158_v11 = vld [vmem:[#allocation2 + $0x320] ss:$16 sps:$4 sm:$0xff]  }
  0xae   :  { %3382 = vmatpush1.bf16.msra.mxu0 %v6084_v12  ;;  %3834 = vmatpush1.bf16.msra.mxu1 %v6087_v13  ;;  %v1679_v6 = vpack.c.bf16 %v1183_v1, %v1111_v62  ;;  %v1678_v10 = vpack.c.bf16 %v1182_v3, %v1110_v2  ;;  %v6160_v12 = vld [vmem:[#allocation2 + $0x340] ss:$16 sps:$4 sm:$0xff]   ;;  %v6187_v1 = vld [vmem:[#allocation5 + $0x3c8] ss:$16 sps:$4 sm:$0xff]   ;;  %v6192_v2 = vld [vmem:[#allocation5 + $0x3e4] ss:$16 sps:$4 sm:$0xff]  }
  0xaf   :  { %3383 = vmatprep.subr.bf16.mxu0 %v6092_v16  ;;  %3835 = vmatprep.subr.bf16.mxu1 %v6095_v17  ;;  %v6162_v13 = vld [vmem:[#allocation2 + $0x360] ss:$16 sps:$4 sm:$0xff]   ;;  %v6155_v16 = vld [vmem:[#allocation5 + $0x36c] ss:$16 sps:$4 sm:$0xff]   ;;  %v1246_v17 = vrot.slane %v6158_v11, %v6841_v54  ;;  %v6208_v11 = vld [vmem:[#allocation2 + $0x84] ss:$16 sps:$4 sm:$0xff]  }
  0xb0   :  { %3322 = vmatprep.mubr.bf16.mxu0 %v1663_v20  ;;  %3774 = vmatprep.mubr.bf16.mxu1 %v1663_v20  ;;  %v6034_v20 = vld [vmem:[#allocation2 + $0x4] ss:$16 sps:$4 sm:$0xff]   ;;  %v6195_v3 = vld [vmem:[#allocation5 + $0x3ec] ss:$16 sps:$4 sm:$0xff]  }
  0xb1   :  { %v1255_v25 = vcombine.high %v1232_v15, %v1246_v17  ;;  %v1254_v27 = vcombine.low %v1232_v15, %v1246_v17  ;;  %v519_v15 = vrot.slane %v6208_v11, %v6841_v54  ;;  %v6259_v11 = vld [vmem:[#allocation2 + $0x264] ss:$16 sps:$4 sm:$0xff]  }
  0xb2   :  { %3384 = vmatpush1.bf16.msra.mxu0 %v6090_v18  ;;  %3836 = vmatpush1.bf16.msra.mxu1 %v6093_v19  ;;  %v1304_v18 = vrot.slane %v6160_v12, %v6841_v54  ;;  %v1318_v19 = vrot.slane %v6162_v13, %v6841_v54  ;;  %v6209_v12 = vld [vmem:[#allocation2 + $0xa4] ss:$16 sps:$4 sm:$0xff]  }
  0xb3   :  { %3385 = vmatprep.subr.bf16.mxu0 %v6106_v23  ;;  %3837 = vmatprep.subr.bf16.mxu1 %v6109_v24  ;;  %v6150_v23 = vld [vmem:[#allocation5 + $0x360] ss:$16 sps:$4 sm:$0xff]   ;;  %v6153_v24 = vld [vmem:[#allocation5 + $0x368] ss:$16 sps:$4 sm:$0xff]   ;;  %v6210_v13 = vld [vmem:[#allocation2 + $0xc4] ss:$16 sps:$4 sm:$0xff]  }
  0xb4   :  { %v1327_v26 = vcombine.high %v1304_v18, %v1318_v19  ;;  %v1326_v29 = vcombine.low %v1304_v18, %v1318_v19  ;;  %v591_v17 = vrot.slane %v6210_v13, %v6841_v54  ;;  %v6196_v19 = vld [vmem:[#allocation5 + $0x400] ss:$16 sps:$4 sm:$0xff]  }
  0xb5   :  { %3323 = vmatmul.mubr.bf16.gmra.mrb[12].mxu0 %v1662_v32  ;;  %3775 = vmatmul.mubr.bf16.gmra.mrb[12].mxu1 %v1662_v32  ;;  %v6169_v32 = vld [vmem:[#allocation5 + $0x38c] ss:$16 sps:$4 sm:$0xff]  }
  0xb6   :  { %3386 = vmatpush1.bf16.msra.mxu0 %v6104_v33  ;;  %3838 = vmatpush1.bf16.msra.mxu1 %v6107_v34  ;;  %v1687_v31 = vpack.c.bf16 %v1327_v26, %v1255_v25  ;;  %v6164_v33 = vld [vmem:[#allocation5 + $0x380] ss:$16 sps:$4 sm:$0xff]   ;;  %v6167_v34 = vld [vmem:[#allocation5 + $0x388] ss:$16 sps:$4 sm:$0xff]   ;;  %v1686_v35 = vpack.c.bf16 %v1326_v29, %v1254_v27 }
  0xb7   :  { %3387 = vmatprep.subr.bf16.mxu0 %v6112_v36  ;;  %3839 = vmatprep.subr.bf16.mxu1 %v6115_v38  ;;  %v6172_v36 = vld [vmem:[#allocation5 + $0x3a4] ss:$16 sps:$4 sm:$0xff]   ;;  %v6176_v38 = vld [vmem:[#allocation2 + $0x380] ss:$16 sps:$4 sm:$0xff]   ;;  %v6205_v27 = vld [vmem:[#allocation5 + $0x428] ss:$16 sps:$4 sm:$0xff]  }
  0xb8   :  { %3332 = vmatprep.mubr.bf16.mxu0 %v1671_v42  ;;  %3784 = vmatprep.mubr.bf16.mxu1 %v1671_v42  ;;  %v375_v42 = vrot.slane %v6034_v20, %v6841_v54  ;;  %v6199_v20 = vld [vmem:[#allocation5 + $0x408] ss:$16 sps:$4 sm:$0xff]   ;;  %v6202_v26 = vld [vmem:[#allocation5 + $0x420] ss:$16 sps:$4 sm:$0xff]  }
  0xba   :  { %3388 = vmatpush1.bf16.msra.mxu0 %v6110_v40  ;;  %3840 = vmatpush1.bf16.msra.mxu1 %v6113_v41  ;;  %v6180_v40 = vld [vmem:[#allocation2 + $0x3c0] ss:$16 sps:$4 sm:$0xff]   ;;  %v393_v60 = vcombine.high %v375_v42, %v389_v43 }
  0xbb   :  { %3389 = vmatprep.subr.bf16.mxu0 %v6126_v45  ;;  %3841 = vmatprep.subr.bf16.mxu1 %v6129_v46  ;;  %v6182_v41 = vld [vmem:[#allocation2 + $0x3e0] ss:$16 sps:$4 sm:$0xff]   ;;  %v1376_v45 = vrot.slane %v6176_v38, %v6841_v54  ;;  %v1390_v46 = vrot.slane %v6178_v39, %v6841_v54  ;;  %v1448_v47 = vrot.slane %v6180_v40, %v6841_v54 }
  0xbc   :  { %v1462_v51 = vrot.slane %v6182_v41, %v6841_v54 }
  0xbd   :  { %3333 = vmatmul.mubr.bf16.gmra.mrb[16].mxu0 %v1670_v52  ;;  %3785 = vmatmul.mubr.bf16.gmra.mrb[16].mxu1 %v1670_v52  ;;  %v6173_v52 = vld [vmem:[#allocation5 + $0x3a8] ss:$16 sps:$4 sm:$0xff]  }
  0xbe   :  { %3390 = vmatpush1.bf16.msra.mxu0 %v6124_v53  ;;  %3842 = vmatpush1.bf16.msra.mxu1 %v6127_v55  ;;  %v1399_v53 = vcombine.high %v1376_v45, %v1390_v46  ;;  %v1398_v55 = vcombine.low %v1376_v45, %v1390_v46  ;;  %v1471_v56 = vcombine.high %v1448_v47, %v1462_v51  ;;  %v6220_v46 = vld [vmem:[#allocation5 + $0x464] ss:$16 sps:$4 sm:$0xff]  }
  0xbf   :  { %3391 = vmatprep.subr.bf16.mxu0 %v6132_v58  ;;  %3843 = vmatprep.subr.bf16.mxu1 %v6135_v61  ;;  %v1470_v57 = vcombine.low %v1448_v47, %v1462_v51  ;;  %v6186_v58 = vld [vmem:[#allocation5 + $0x3c4] ss:$16 sps:$4 sm:$0xff]   ;;  %v465_v61 = vcombine.high %v447_v44, %v461_v49  ;;  %v6223_v47 = vld [vmem:[#allocation5 + $0x46c] ss:$16 sps:$4 sm:$0xff]  }
  0xc0   :  { %3342 = vmatprep.mubr.bf16.mxu0 %v1679_v6  ;;  %3794 = vmatprep.mubr.bf16.mxu1 %v1679_v6  ;;  %v1695_v62 = vpack.c.bf16 %v1471_v56, %v1399_v53  ;;  %v6242_v53 = vld [vmem:[#allocation2 + $0x1c4] ss:$16 sps:$4 sm:$0xff]   ;;  %v6218_v56 = vld [vmem:[#allocation5 + $0x460] ss:$16 sps:$4 sm:$0xff]  }
  0xc1   :  { %v1641_v6 = vpack.c.bf16 %v465_v61, %v393_v60  ;;  %v6230_v61 = vld [vmem:[#allocation5 + $0x484] ss:$16 sps:$4 sm:$0xff]  }
  0xc2   :  { %3392 = vmatpush1.bf16.msra.mxu0 %v6130_v63  ;;  %3844 = vmatpush1.bf16.msra.mxu1 %v6133_v0  ;;  %v1694_v63 = vpack.c.bf16 %v1470_v57, %v1398_v55  ;;  %v6184_v0 = vld [vmem:[#allocation5 + $0x3c0] ss:$16 sps:$4 sm:$0xff]   ;;  %v6243_v55 = vld [vmem:[#allocation2 + $0x1e4] ss:$16 sps:$4 sm:$0xff]   ;;  %v6221_v57 = vld [vmem:[#allocation5 + $0x468] ss:$16 sps:$4 sm:$0xff]  }
  0xc3   :  { %3393 = vmatprep.subr.bf16.mxu0 %v6146_v4  ;;  %3845 = vmatprep.subr.bf16.mxu1 %v6149_v5  ;;  %v6190_v4 = vld [vmem:[#allocation5 + $0x3e0] ss:$16 sps:$4 sm:$0xff]   ;;  %v6193_v5 = vld [vmem:[#allocation5 + $0x3e8] ss:$16 sps:$4 sm:$0xff]  }
  0xc5   :  { %3343 = vmatmul.mubr.bf16.gmra.mrb[20].mxu0 %v1678_v10  ;;  %3795 = vmatmul.mubr.bf16.gmra.mrb[20].mxu1 %v1678_v10  ;;  %v6201_v10 = vld [vmem:[#allocation5 + $0x40c] ss:$16 sps:$4 sm:$0xff]  }
  0xc6   :  { %3394 = vmatpush1.bf16.msra.mxu0 %v6144_v7  ;;  %3846 = vmatpush1.bf16.msra.mxu1 %v6147_v8  ;;  %v392_v7 = vcombine.low %v375_v42, %v389_v43  ;;  %v464_v8 = vcombine.low %v447_v44, %v461_v49  ;;  %v6212_v42 = vld [vmem:[#allocation5 + $0x440] ss:$16 sps:$4 sm:$0xff]   ;;  %v6215_v43 = vld [vmem:[#allocation5 + $0x448] ss:$16 sps:$4 sm:$0xff]   ;;  %v6240_v49 = vld [vmem:[#allocation2 + $0x184] ss:$16 sps:$4 sm:$0xff]  }
  0xc7   :  { %3395 = vmatprep.subr.bf16.mxu0 %v6152_v14  ;;  %3847 = vmatprep.subr.bf16.mxu1 %v6155_v16  ;;  %v6211_v14 = vld [vmem:[#allocation2 + $0xe4] ss:$16 sps:$4 sm:$0xff]   ;;  %v533_v16 = vrot.slane %v6209_v12, %v6841_v54 }
  0xc8   :  { %3352 = vmatprep.mubr.bf16.mxu0 %v1687_v31  ;;  %3804 = vmatprep.mubr.bf16.mxu1 %v1687_v31  ;;  %v1640_v18 = vpack.c.bf16 %v464_v8, %v392_v7  ;;  %v605_v21 = vrot.slane %v6211_v14, %v6841_v54  ;;  %v6239_v7 = vld [vmem:[#allocation5 + $0x4ac] ss:$16 sps:$4 sm:$0xff]   ;;  %v6256_v8 = vld [vmem:[#allocation2 + $0x204] ss:$16 sps:$4 sm:$0xff]  }
  0xc9   :  { %v951_v13 = vrot.slane %v6256_v8, %v6841_v54  ;;  %v6305_v8 = vld [vmem:[#allocation2 + $0x3a4] ss:$16 sps:$4 sm:$0xff]  }
  0xca   :  { %3396 = vmatpush1.bf16.msra.mxu0 %v6150_v23  ;;  %3848 = vmatpush1.bf16.msra.mxu1 %v6153_v24  ;;  %v537_v23 = vcombine.high %v519_v15, %v533_v16  ;;  %v6207_v24 = vld [vmem:[#allocation5 + $0x42c] ss:$16 sps:$4 sm:$0xff]   ;;  %v609_v25 = vcombine.high %v591_v17, %v605_v21  ;;  %v608_v31 = vcombine.low %v591_v17, %v605_v21  ;;  %v6237_v17 = vld [vmem:[#allocation5 + $0x4a8] ss:$16 sps:$4 sm:$0xff]   ;;  %v6246_v21 = vld [vmem:[#allocation5 + $0x4c4] ss:$16 sps:$4 sm:$0xff]  }
  0xcb   :  { %3397 = vmatprep.subr.bf16.mxu0 %v6166_v30  ;;  %3849 = vmatprep.subr.bf16.mxu1 %v6169_v32  ;;  %v536_v30 = vcombine.low %v519_v15, %v533_v16  ;;  %v6225_v32 = vld [vmem:[#allocation2 + $0x124] ss:$16 sps:$4 sm:$0xff]   ;;  %v6234_v16 = vld [vmem:[#allocation5 + $0x4a0] ss:$16 sps:$4 sm:$0xff]  }
  0xcc   :  { %v1649_v29 = vpack.c.bf16 %v609_v25, %v537_v23  ;;  %v677_v38 = vrot.slane %v6225_v32, %v6841_v54  ;;  %v6244_v25 = vld [vmem:[#allocation5 + $0x4c0] ss:$16 sps:$4 sm:$0xff]   ;;  %v6252_v32 = vld [vmem:[#allocation5 + $0x4e4] ss:$16 sps:$4 sm:$0xff]  }
  0xcd   :  { %3353 = vmatmul.mubr.bf16.gmra.mrb[24].mxu0 %v1686_v35  ;;  %3805 = vmatmul.mubr.bf16.gmra.mrb[24].mxu1 %v1686_v35  ;;  %v6214_v35 = vld [vmem:[#allocation5 + $0x444] ss:$16 sps:$4 sm:$0xff]   ;;  %v1648_v41 = vpack.c.bf16 %v608_v31, %v536_v30 }
  0xce   :  { %3398 = vmatpush1.bf16.msra.mxu0 %v6164_v33  ;;  %3850 = vmatpush1.bf16.msra.mxu1 %v6167_v34  ;;  %v6226_v33 = vld [vmem:[#allocation2 + $0x144] ss:$16 sps:$4 sm:$0xff]  }
  0xcf   :  { %3399 = vmatprep.subr.bf16.mxu0 %v6172_v36  ;;  %3851 = vmatprep.subr.bf16.mxu1 %v6175_v37  ;;  %v6227_v34 = vld [vmem:[#allocation2 + $0x164] ss:$16 sps:$4 sm:$0xff]   ;;  %v663_v36 = vrot.slane %v6224_v28, %v6841_v54  ;;  %v6217_v37 = vld [vmem:[#allocation5 + $0x44c] ss:$16 sps:$4 sm:$0xff]   ;;  %v735_v39 = vrot.slane %v6226_v33, %v6841_v54 }
  0xd0   :  { %3362 = vmatprep.mubr.bf16.mxu0 %v1695_v62  ;;  %3814 = vmatprep.mubr.bf16.mxu1 %v1695_v62  ;;  %v749_v40 = vrot.slane %v6227_v34, %v6841_v54  ;;  %v879_v62 = vrot.slane %v6242_v53, %v6841_v54  ;;  %v6274_v30 = vld [vmem:[#allocation2 + $0x2c4] ss:$16 sps:$4 sm:$0xff]   ;;  %v6255_v33 = vld [vmem:[#allocation5 + $0x4ec] ss:$16 sps:$4 sm:$0xff]   ;;  %v6260_v53 = vld [vmem:[#allocation5 + $0x500] ss:$16 sps:$4 sm:$0xff]  }
  0xd1   :  { %v681_v44 = vcombine.high %v663_v36, %v677_v38  ;;  %v6275_v31 = vld [vmem:[#allocation2 + $0x2e4] ss:$16 sps:$4 sm:$0xff]  }
  0xd2   :  { %3400 = vmatpush1.bf16.msra.mxu0 %v6170_v50  ;;  %3852 = vmatpush1.bf16.msra.mxu1 %v6173_v52  ;;  %v753_v45 = vcombine.high %v735_v39, %v749_v40  ;;  %v6241_v50 = vld [vmem:[#allocation2 + $0x1a4] ss:$16 sps:$4 sm:$0xff]   ;;  %v680_v52 = vcombine.low %v663_v36, %v677_v38  ;;  %v1181_v38 = vrot.slane %v6275_v31, %v6841_v54  ;;  %v6324_v31 = vld [vmem:[#allocation2 + $0x48] ss:$16 sps:$4 sm:$0xff]  }
  0xd3   :  { %3401 = vmatprep.subr.bf16.mxu0 %v6186_v58  ;;  %3853 = vmatprep.subr.bf16.mxu1 %v6189_v59  ;;  %v752_v58 = vcombine.low %v735_v39, %v749_v40  ;;  %v807_v59 = vrot.slane %v6240_v49, %v6841_v54  ;;  %v821_v60 = vrot.slane %v6241_v50, %v6841_v54  ;;  %v6250_v39 = vld [vmem:[#allocation5 + $0x4e0] ss:$16 sps:$4 sm:$0xff]   ;;  %v6253_v40 = vld [vmem:[#allocation5 + $0x4e8] ss:$16 sps:$4 sm:$0xff]   ;;  %v6290_v50 = vld [vmem:[#allocation2 + $0x344] ss:$16 sps:$4 sm:$0xff]  }
  0xd4   :  { %v1657_v51 = vpack.c.bf16 %v753_v45, %v681_v44  ;;  %v6265_v44 = vld [vmem:[#allocation5 + $0x50c] ss:$16 sps:$4 sm:$0xff]   ;;  %v6288_v45 = vld [vmem:[#allocation2 + $0x304] ss:$16 sps:$4 sm:$0xff]  }
  0xd5   :  { %3363 = vmatmul.mubr.bf16.gmra.mrb[28].mxu0 %v1694_v63  ;;  %3815 = vmatmul.mubr.bf16.gmra.mrb[28].mxu1 %v1694_v63  ;;  %v893_v63 = vrot.slane %v6243_v55, %v6841_v54  ;;  %v6263_v55 = vld [vmem:[#allocation5 + $0x508] ss:$16 sps:$4 sm:$0xff]  }
  0xd6   :  { %3402 = vmatpush1.bf16.msra.mxu0 %v6184_v0  ;;  %3854 = vmatpush1.bf16.msra.mxu1 %v6187_v1  ;;  %v6233_v0 = vld [vmem:[#allocation5 + $0x48c] ss:$16 sps:$4 sm:$0xff]   ;;  %v6228_v1 = vld [vmem:[#allocation5 + $0x480] ss:$16 sps:$4 sm:$0xff]  }
  0xd7   :  { %3403 = vmatprep.subr.bf16.mxu0 %v6192_v2  ;;  %3855 = vmatprep.subr.bf16.mxu1 %v6195_v3  ;;  %v6231_v2 = vld [vmem:[#allocation5 + $0x488] ss:$16 sps:$4 sm:$0xff]   ;;  %v825_v3 = vcombine.high %v807_v59, %v821_v60 }
  0xd8   :  { %3405 = vmatprep.mubr.bf16.mxu0 %v1641_v6  ;;  %3857 = vmatprep.mubr.bf16.mxu1 %v1641_v6  ;;  %v6236_v6 = vld [vmem:[#allocation5 + $0x4a4] ss:$16 sps:$4 sm:$0xff]  }
  0xda   :  { %3404 = vmatpush1.bf16.msra.mxu0 %v6190_v4  ;;  %3856 = vmatpush1.bf16.msra.mxu1 %v6193_v5  ;;  %v897_v4 = vcombine.high %v879_v62, %v893_v63  ;;  %v1656_v5 = vpack.c.bf16 %v752_v58, %v680_v52  ;;  %v6271_v58 = vld [vmem:[#allocation5 + $0x52c] ss:$16 sps:$4 sm:$0xff]  }
  0xdb   :  { %3486 = vmatprep.subr.bf16.mxu0 %v6198_v9  ;;  %3938 = vmatprep.subr.bf16.mxu1 %v6201_v10  ;;  %v6257_v9 = vld [vmem:[#allocation2 + $0x224] ss:$16 sps:$4 sm:$0xff]  }
  0xdc   :  { %v6258_v10 = vld [vmem:[#allocation2 + $0x244] ss:$16 sps:$4 sm:$0xff]   ;;  %v1665_v12 = vpack.c.bf16 %v897_v4, %v825_v3  ;;  %v965_v14 = vrot.slane %v6257_v9, %v6841_v54  ;;  %v6281_v4 = vld [vmem:[#allocation5 + $0x54c] ss:$16 sps:$4 sm:$0xff]  }
  0xdd   :  { %3406 = vmatmul.mubr.bf16.vlgmr.msra.gmra.mrb[0].mxu0 %v1640_v18  ;;  %3858 = vmatmul.mubr.bf16.vlgmr.msra.gmra.mrb[0].mxu1 %v1640_v18  ;;  %v1023_v15 = vrot.slane %v6258_v10, %v6841_v54  ;;  %v824_v18 = vcombine.low %v807_v59, %v821_v60  ;;  %v1311_v60 = vrot.slane %v6290_v50, %v6841_v54  ;;  %v6278_v3 = vld [vmem:[#allocation5 + $0x544] ss:$16 sps:$4 sm:$0xff]  }
  0xde   :  { %3487 = vmatpush1.bf16.msra.mxu0 %v6196_v19  ;;  %3939 = vmatpush1.bf16.msra.mxu1 %v6199_v20  ;;  %v896_v19 = vcombine.low %v879_v62, %v893_v63  ;;  %v1037_v20 = vrot.slane %v6259_v11, %v6841_v54  ;;  %v969_v23 = vcombine.high %v951_v13, %v965_v14  ;;  %v6266_v63 = vld [vmem:[#allocation5 + $0x520] ss:$16 sps:$4 sm:$0xff]   ;;  %v6306_v9 = vld [vmem:[#allocation2 + $0x3c4] ss:$16 sps:$4 sm:$0xff]  }
  0xdf   :  { %3488 = vmatprep.subr.bf16.mxu0 %v6204_v22  ;;  %3940 = vmatprep.subr.bf16.mxu1 %v6207_v24  ;;  %v6249_v22 = vld [vmem:[#allocation5 + $0x4cc] ss:$16 sps:$4 sm:$0xff]   ;;  %v6307_v10 = vld [vmem:[#allocation2 + $0x3e4] ss:$16 sps:$4 sm:$0xff]  }
  0xe0   :  { %3415 = vmatprep.mubr.bf16.mxu0 %v1649_v29  ;;  %3867 = vmatprep.mubr.bf16.mxu1 %v1649_v29  ;;  %v1041_v24 = vcombine.high %v1023_v15, %v1037_v20  ;;  %v1664_v28 = vpack.c.bf16 %v896_v19, %v824_v18  ;;  %v6273_v29 = vld [vmem:[#allocation2 + $0x2a4] ss:$16 sps:$4 sm:$0xff]   ;;  %v6285_v18 = vld [vmem:[#allocation5 + $0x568] ss:$16 sps:$4 sm:$0xff]  }
  0xe1   :  { %v1109_v36 = vrot.slane %v6273_v29, %v6841_v54 }
  0xe2   :  { %3489 = vmatpush1.bf16.msra.mxu0 %v6202_v26  ;;  %3941 = vmatpush1.bf16.msra.mxu1 %v6205_v27  ;;  %v6247_v26 = vld [vmem:[#allocation5 + $0x4c8] ss:$16 sps:$4 sm:$0xff]   ;;  %v6272_v27 = vld [vmem:[#allocation2 + $0x284] ss:$16 sps:$4 sm:$0xff]   ;;  %v1673_v34 = vpack.c.bf16 %v1041_v24, %v969_v23 }
  0xe3   :  { %3490 = vmatprep.subr.bf16.mxu0 %v6214_v35  ;;  %3942 = vmatprep.subr.bf16.mxu1 %v6217_v37  ;;  %v1095_v35 = vrot.slane %v6272_v27, %v6841_v54  ;;  %v1167_v37 = vrot.slane %v6274_v30, %v6841_v54  ;;  %v6320_v27 = vld [vmem:[#allocation2 + $0x8] ss:$16 sps:$4 sm:$0xff]  }
  0xe5   :  { %3416 = vmatmul.mubr.bf16.gmra.mrb[4].mxu0 %v1648_v41  ;;  %3868 = vmatmul.mubr.bf16.gmra.mrb[4].mxu1 %v1648_v41  ;;  %v968_v41 = vcombine.low %v951_v13, %v965_v14  ;;  %v1185_v49 = vcombine.high %v1167_v37, %v1181_v38  ;;  %v6279_v13 = vld [vmem:[#allocation5 + $0x548] ss:$16 sps:$4 sm:$0xff]   ;;  %v6284_v14 = vld [vmem:[#allocation5 + $0x564] ss:$16 sps:$4 sm:$0xff]  }
  0xe6   :  { %3491 = vmatpush1.bf16.msra.mxu0 %v6212_v42  ;;  %3943 = vmatpush1.bf16.msra.mxu1 %v6215_v43  ;;  %v1040_v42 = vcombine.low %v1023_v15, %v1037_v20  ;;  %v6262_v43 = vld [vmem:[#allocation5 + $0x504] ss:$16 sps:$4 sm:$0xff]   ;;  %v6287_v15 = vld [vmem:[#allocation5 + $0x56c] ss:$16 sps:$4 sm:$0xff]   ;;  %v1397_v20 = vrot.slane %v6305_v8, %v6841_v54 }
  0xe7   :  { %3492 = vmatprep.subr.bf16.mxu0 %v6220_v46  ;;  %3944 = vmatprep.subr.bf16.mxu1 %v6223_v47  ;;  %v6289_v46 = vld [vmem:[#allocation2 + $0x324] ss:$16 sps:$4 sm:$0xff]   ;;  %v1113_v47 = vcombine.high %v1095_v35, %v1109_v36  ;;  %v6333_v8 = vld [vmem:[#allocation5 + $0x60c] ss:$16 sps:$4 sm:$0xff]  }
  0xe8   :  { %3425 = vmatprep.mubr.bf16.mxu0 %v1657_v51  ;;  %3877 = vmatprep.mubr.bf16.mxu1 %v1657_v51  ;;  %v6291_v51 = vld [vmem:[#allocation2 + $0x364] ss:$16 sps:$4 sm:$0xff]   ;;  %v1672_v52 = vpack.c.bf16 %v1040_v42, %v968_v41  ;;  %v1253_v59 = vrot.slane %v6289_v46, %v6841_v54  ;;  %v6298_v42 = vld [vmem:[#allocation5 + $0x5a0] ss:$16 sps:$4 sm:$0xff]  }
  0xe9   :  { %v1681_v62 = vpack.c.bf16 %v1185_v49, %v1113_v47  ;;  %v6310_v47 = vld [vmem:[#allocation5 + $0x5c4] ss:$16 sps:$4 sm:$0xff]   ;;  %v6313_v49 = vld [vmem:[#allocation5 + $0x5cc] ss:$16 sps:$4 sm:$0xff]  }
  0xea   :  { %3493 = vmatpush1.bf16.msra.mxu0 %v6218_v56  ;;  %3945 = vmatpush1.bf16.msra.mxu1 %v6221_v57  ;;  %v6268_v56 = vld [vmem:[#allocation5 + $0x524] ss:$16 sps:$4 sm:$0xff]   ;;  %v6900_v57 = vrot.slane %v6288_v45, %v6841_v54 }
  0xeb   :  { %3494 = vmatprep.subr.bf16.mxu0 %v6230_v61  ;;  %3946 = vmatprep.subr.bf16.mxu1 %v6233_v0  ;;  %v1325_v61 = vrot.slane %v6291_v51, %v6841_v54  ;;  %v6269_v0 = vld [vmem:[#allocation5 + $0x528] ss:$16 sps:$4 sm:$0xff]  }
  0xec   :  { %v1256_v23 = vcombine.low %v6900_v57, %v1253_v59 }
  0xed   :  { %3426 = vmatmul.mubr.bf16.gmra.mrb[8].mxu0 %v1656_v5  ;;  %3878 = vmatmul.mubr.bf16.gmra.mrb[8].mxu1 %v1656_v5  ;;  %v6304_v5 = vld [vmem:[#allocation2 + $0x384] ss:$16 sps:$4 sm:$0xff]   ;;  %v1328_v24 = vcombine.low %v1311_v60, %v1325_v61 }
  0xee   :  { %3495 = vmatpush1.bf16.msra.mxu0 %v6228_v1  ;;  %3947 = vmatpush1.bf16.msra.mxu1 %v6231_v2  ;;  %v1112_v1 = vcombine.low %v1095_v35, %v1109_v36  ;;  %v1184_v2 = vcombine.low %v1167_v37, %v1181_v38  ;;  %v1383_v19 = vrot.slane %v6304_v5, %v6841_v54  ;;  %v6295_v35 = vld [vmem:[#allocation5 + $0x588] ss:$16 sps:$4 sm:$0xff]   ;;  %v6300_v36 = vld [vmem:[#allocation5 + $0x5a4] ss:$16 sps:$4 sm:$0xff]   ;;  %v6303_v38 = vld [vmem:[#allocation5 + $0x5ac] ss:$16 sps:$4 sm:$0xff]  }
  0xef   :  { %3496 = vmatprep.subr.bf16.mxu0 %v6236_v6  ;;  %3948 = vmatprep.subr.bf16.mxu1 %v6239_v7  ;;  %v1257_v6 = vcombine.high %v6900_v57, %v1253_v59  ;;  %v1329_v7 = vcombine.high %v1311_v60, %v1325_v61  ;;  %v404_v37 = vrot.slane %v6320_v27, %v6841_v54  ;;  %v6342_v57 = vld [vmem:[#allocation2 + $0xa8] ss:$16 sps:$4 sm:$0xff]   ;;  %v6316_v60 = vld [vmem:[#allocation5 + $0x5e4] ss:$16 sps:$4 sm:$0xff]   ;;  %v6319_v61 = vld [vmem:[#allocation5 + $0x5ec] ss:$16 sps:$4 sm:$0xff]  }
  0xf0   :  { %3435 = vmatprep.mubr.bf16.mxu0 %v1665_v12  ;;  %3887 = vmatprep.mubr.bf16.mxu1 %v1665_v12  ;;  %v1680_v11 = vpack.c.bf16 %v1184_v2, %v1112_v1  ;;  %v6276_v12 = vld [vmem:[#allocation5 + $0x540] ss:$16 sps:$4 sm:$0xff]   ;;  %v1401_v29 = vcombine.high %v1383_v19, %v1397_v20  ;;  %v1400_v45 = vcombine.low %v1383_v19, %v1397_v20  ;;  %v6346_v59 = vld [vmem:[#allocation2 + $0xe8] ss:$16 sps:$4 sm:$0xff]  }
  0xf1   :  { %v634_v2 = vrot.slane %v6346_v59, %v6841_v54  ;;  %v6366_v19 = vld [vmem:[#allocation2 + $0x168] ss:$16 sps:$4 sm:$0xff]  }
  0xf2   :  { %3497 = vmatpush1.bf16.msra.mxu0 %v6234_v16  ;;  %3949 = vmatpush1.bf16.msra.mxu1 %v6237_v17  ;;  %v1689_v16 = vpack.c.bf16 %v1329_v7, %v1257_v6  ;;  %v6282_v17 = vld [vmem:[#allocation5 + $0x560] ss:$16 sps:$4 sm:$0xff]   ;;  %v6330_v7 = vld [vmem:[#allocation5 + $0x604] ss:$16 sps:$4 sm:$0xff]  }
  0xf3   :  { %3498 = vmatprep.subr.bf16.mxu0 %v6246_v21  ;;  %3950 = vmatprep.subr.bf16.mxu1 %v6249_v22  ;;  %v1455_v21 = vrot.slane %v6306_v9, %v6841_v54  ;;  %v1469_v22 = vrot.slane %v6307_v10, %v6841_v54  ;;  %v6328_v9 = vld [vmem:[#allocation5 + $0x600] ss:$16 sps:$4 sm:$0xff]   ;;  %v6331_v10 = vld [vmem:[#allocation5 + $0x608] ss:$16 sps:$4 sm:$0xff]  }
  0xf5   :  { %3436 = vmatmul.mubr.bf16.gmra.mrb[12].mxu0 %v1664_v28  ;;  %3888 = vmatmul.mubr.bf16.gmra.mrb[12].mxu1 %v1664_v28  ;;  %v6322_v28 = vld [vmem:[#allocation2 + $0x28] ss:$16 sps:$4 sm:$0xff]   ;;  %v1473_v30 = vcombine.high %v1455_v21, %v1469_v22  ;;  %v1472_v46 = vcombine.low %v1455_v21, %v1469_v22 }
  0xf6   :  { %3499 = vmatpush1.bf16.msra.mxu0 %v6244_v25  ;;  %3951 = vmatpush1.bf16.msra.mxu1 %v6247_v26  ;;  %v6294_v25 = vld [vmem:[#allocation5 + $0x584] ss:$16 sps:$4 sm:$0xff]   ;;  %v6297_v26 = vld [vmem:[#allocation5 + $0x58c] ss:$16 sps:$4 sm:$0xff]  }
  0xf7   :  { %3500 = vmatprep.subr.bf16.mxu0 %v6252_v32  ;;  %3952 = vmatprep.subr.bf16.mxu1 %v6255_v33  ;;  %v6326_v32 = vld [vmem:[#allocation2 + $0x68] ss:$16 sps:$4 sm:$0xff]   ;;  %v1688_v33 = vpack.c.bf16 %v1328_v24, %v1256_v23  ;;  %v6334_v24 = vld [vmem:[#allocation5 + $0x620] ss:$16 sps:$4 sm:$0xff]  }
  0xf8   :  { %3445 = vmatprep.mubr.bf16.mxu0 %v1673_v34  ;;  %3897 = vmatprep.mubr.bf16.mxu1 %v1673_v34  ;;  %v6292_v34 = vld [vmem:[#allocation5 + $0x580] ss:$16 sps:$4 sm:$0xff]   ;;  %v490_v41 = vrot.slane %v6326_v32, %v6841_v54  ;;  %v6351_v32 = vld [vmem:[#allocation5 + $0x648] ss:$16 sps:$4 sm:$0xff]  }
  0xfa   :  { %3501 = vmatpush1.bf16.msra.mxu0 %v6250_v39  ;;  %3953 = vmatpush1.bf16.msra.mxu1 %v6253_v40  ;;  %v418_v39 = vrot.slane %v6322_v28, %v6841_v54  ;;  %v476_v40 = vrot.slane %v6324_v31, %v6841_v54  ;;  %v778_v28 = vrot.slane %v6366_v19, %v6841_v54  ;;  %v6348_v31 = vld [vmem:[#allocation5 + $0x640] ss:$16 sps:$4 sm:$0xff]   ;;  %v6399_v19 = vld [vmem:[#allocation5 + $0x6ec] ss:$16 sps:$4 sm:$0xff]  }
  0xfb   :  { %3502 = vmatprep.subr.bf16.mxu0 %v6262_v43  ;;  %3954 = vmatprep.subr.bf16.mxu1 %v6265_v44  ;;  %v6301_v43 = vld [vmem:[#allocation5 + $0x5a8] ss:$16 sps:$4 sm:$0xff]   ;;  %v1697_v44 = vpack.c.bf16 %v1473_v30, %v1401_v29  ;;  %v6350_v29 = vld [vmem:[#allocation5 + $0x644] ss:$16 sps:$4 sm:$0xff]   ;;  %v6353_v30 = vld [vmem:[#allocation5 + $0x64c] ss:$16 sps:$4 sm:$0xff]  }
  0xfc   :  { %v427_v50 = vcombine.high %v404_v37, %v418_v39  ;;  %v499_v51 = vcombine.high %v476_v40, %v490_v41  ;;  %v426_v5 = vcombine.low %v404_v37, %v418_v39  ;;  %v498_v6 = vcombine.low %v476_v40, %v490_v41  ;;  %v6359_v37 = vld [vmem:[#allocation5 + $0x66c] ss:$16 sps:$4 sm:$0xff]   ;;  %v6382_v39 = vld [vmem:[#allocation2 + $0x1a8] ss:$16 sps:$4 sm:$0xff]  }
  0xfd   :  { %3446 = vmatmul.mubr.bf16.gmra.mrb[16].mxu0 %v1672_v52  ;;  %3898 = vmatmul.mubr.bf16.gmra.mrb[16].mxu1 %v1672_v52  ;;  %v6308_v52 = vld [vmem:[#allocation5 + $0x5c0] ss:$16 sps:$4 sm:$0xff]  }
  0xfe   :  { %3503 = vmatpush1.bf16.msra.mxu0 %v6260_v53  ;;  %3955 = vmatpush1.bf16.msra.mxu1 %v6263_v55  ;;  %v6311_v53 = vld [vmem:[#allocation5 + $0x5c8] ss:$16 sps:$4 sm:$0xff]  }
  0xff   :  { %3504 = vmatprep.subr.bf16.mxu0 %v6268_v56  ;;  %3956 = vmatprep.subr.bf16.mxu1 %v6271_v58  ;;  %v6340_v55 = vld [vmem:[#allocation2 + $0x88] ss:$16 sps:$4 sm:$0xff]   ;;  %v1696_v56 = vpack.c.bf16 %v1472_v46, %v1400_v45 }
 0x100   :  { %3455 = vmatprep.mubr.bf16.mxu0 %v1681_v62  ;;  %3907 = vmatprep.mubr.bf16.mxu1 %v1681_v62  ;;  %v6344_v58 = vld [vmem:[#allocation2 + $0xc8] ss:$16 sps:$4 sm:$0xff]   ;;  %v1643_v62 = vpack.c.bf16 %v499_v51, %v427_v50  ;;  %v6370_v50 = vld [vmem:[#allocation5 + $0x684] ss:$16 sps:$4 sm:$0xff]  }
 0x101   :  { %v620_v1 = vrot.slane %v6344_v58, %v6841_v54  ;;  %v6357_v45 = vld [vmem:[#allocation5 + $0x668] ss:$16 sps:$4 sm:$0xff]  }
 0x102   :  { %3505 = vmatpush1.bf16.msra.mxu0 %v6266_v63  ;;  %3957 = vmatpush1.bf16.msra.mxu1 %v6269_v0  ;;  %v548_v63 = vrot.slane %v6340_v55, %v6841_v54  ;;  %v562_v0 = vrot.slane %v6342_v57, %v6841_v54  ;;  %v6368_v55 = vld [vmem:[#allocation5 + $0x680] ss:$16 sps:$4 sm:$0xff]  }
 0x103   :  { %3506 = vmatprep.subr.bf16.mxu0 %v6278_v3  ;;  %3958 = vmatprep.subr.bf16.mxu1 %v6281_v4  ;;  %v6314_v3 = vld [vmem:[#allocation5 + $0x5e0] ss:$16 sps:$4 sm:$0xff]   ;;  %v6317_v4 = vld [vmem:[#allocation5 + $0x5e8] ss:$16 sps:$4 sm:$0xff]   ;;  %v642_v27 = vcombine.low %v620_v1, %v634_v2 }
 0x105   :  { %3456 = vmatmul.mubr.bf16.gmra.mrb[20].mxu0 %v1680_v11  ;;  %3908 = vmatmul.mubr.bf16.gmra.mrb[20].mxu1 %v1680_v11  ;;  %v571_v11 = vcombine.high %v548_v63, %v562_v0 }
 0x106   :  { %3507 = vmatpush1.bf16.msra.mxu0 %v6276_v12  ;;  %3959 = vmatpush1.bf16.msra.mxu1 %v6279_v13  ;;  %v643_v12 = vcombine.high %v620_v1, %v634_v2  ;;  %v1642_v13 = vpack.c.bf16 %v498_v6, %v426_v5  ;;  %v6400_v1 = vld [vmem:[#allocation2 + $0x208] ss:$16 sps:$4 sm:$0xff]  }
 0x107   :  { %3508 = vmatprep.subr.bf16.mxu0 %v6284_v14  ;;  %3960 = vmatprep.subr.bf16.mxu1 %v6287_v15  ;;  %v6336_v14 = vld [vmem:[#allocation5 + $0x624] ss:$16 sps:$4 sm:$0xff]   ;;  %v6339_v15 = vld [vmem:[#allocation5 + $0x62c] ss:$16 sps:$4 sm:$0xff]   ;;  %v6404_v5 = vld [vmem:[#allocation2 + $0x248] ss:$16 sps:$4 sm:$0xff]  }
 0x108   :  { %3465 = vmatprep.mubr.bf16.mxu0 %v1689_v16  ;;  %3917 = vmatprep.mubr.bf16.mxu1 %v1689_v16  ;;  %v6360_v16 = vld [vmem:[#allocation2 + $0x108] ss:$16 sps:$4 sm:$0xff]   ;;  %v1651_v20 = vpack.c.bf16 %v643_v12, %v571_v11  ;;  %v1052_v11 = vrot.slane %v6404_v5, %v6841_v54 }
 0x109   :  { %v692_v21 = vrot.slane %v6360_v16, %v6841_v54  ;;  %v6406_v6 = vld [vmem:[#allocation2 + $0x268] ss:$16 sps:$4 sm:$0xff]  }
 0x10a   :  { %3509 = vmatpush1.bf16.msra.mxu0 %v6282_v17  ;;  %3961 = vmatpush1.bf16.msra.mxu1 %v6285_v18  ;;  %v6362_v17 = vld [vmem:[#allocation2 + $0x128] ss:$16 sps:$4 sm:$0xff]   ;;  %v1066_v12 = vrot.slane %v6406_v6, %v6841_v54  ;;  %v6450_v6 = vld [vmem:[#allocation5 + $0x784] ss:$16 sps:$4 sm:$0xff]  }
 0x10b   :  { %3510 = vmatprep.subr.bf16.mxu0 %v6294_v25  ;;  %3962 = vmatprep.subr.bf16.mxu1 %v6297_v26  ;;  %v6364_v18 = vld [vmem:[#allocation2 + $0x148] ss:$16 sps:$4 sm:$0xff]   ;;  %v706_v22 = vrot.slane %v6362_v17, %v6841_v54  ;;  %v570_v26 = vcombine.low %v548_v63, %v562_v0 }
 0x10c   :  { %v764_v23 = vrot.slane %v6364_v18, %v6841_v54  ;;  %v6337_v25 = vld [vmem:[#allocation5 + $0x628] ss:$16 sps:$4 sm:$0xff]   ;;  %v1075_v17 = vcombine.high %v1052_v11, %v1066_v12  ;;  %v6396_v18 = vld [vmem:[#allocation5 + $0x6e4] ss:$16 sps:$4 sm:$0xff]  }
 0x10d   :  { %3466 = vmatmul.mubr.bf16.gmra.mrb[24].mxu0 %v1688_v33  ;;  %3918 = vmatmul.mubr.bf16.gmra.mrb[24].mxu1 %v1688_v33  ;;  %v715_v33 = vcombine.high %v692_v21, %v706_v22  ;;  %v714_v41 = vcombine.low %v692_v21, %v706_v22  ;;  %v6377_v63 = vld [vmem:[#allocation5 + $0x6a8] ss:$16 sps:$4 sm:$0xff]  }
 0x10e   :  { %3511 = vmatpush1.bf16.msra.mxu0 %v6292_v34  ;;  %3963 = vmatpush1.bf16.msra.mxu1 %v6295_v35  ;;  %v787_v34 = vcombine.high %v764_v23, %v778_v28  ;;  %v1650_v35 = vpack.c.bf16 %v642_v27, %v570_v26  ;;  %v786_v46 = vcombine.low %v764_v23, %v778_v28  ;;  %v6397_v21 = vld [vmem:[#allocation5 + $0x6e8] ss:$16 sps:$4 sm:$0xff]   ;;  %v6413_v26 = vld [vmem:[#allocation5 + $0x70c] ss:$16 sps:$4 sm:$0xff]  }
 0x10f   :  { %3512 = vmatprep.subr.bf16.mxu0 %v6300_v36  ;;  %3964 = vmatprep.subr.bf16.mxu1 %v6303_v38  ;;  %v6356_v36 = vld [vmem:[#allocation5 + $0x664] ss:$16 sps:$4 sm:$0xff]   ;;  %v6380_v38 = vld [vmem:[#allocation2 + $0x188] ss:$16 sps:$4 sm:$0xff]  }
 0x110   :  { %3475 = vmatprep.mubr.bf16.mxu0 %v1697_v44  ;;  %3927 = vmatprep.mubr.bf16.mxu1 %v1697_v44  ;;  %v1659_v40 = vpack.c.bf16 %v787_v34, %v715_v33  ;;  %v6354_v44 = vld [vmem:[#allocation5 + $0x660] ss:$16 sps:$4 sm:$0xff]   ;;  %v1658_v59 = vpack.c.bf16 %v786_v46, %v714_v41  ;;  %v6420_v27 = vld [vmem:[#allocation2 + $0x288] ss:$16 sps:$4 sm:$0xff]  }
 0x111   :  { %v6422_v28 = vld [vmem:[#allocation2 + $0x2a8] ss:$16 sps:$4 sm:$0xff]  }
 0x112   :  { %3513 = vmatpush1.bf16.msra.mxu0 %v6298_v42  ;;  %3965 = vmatpush1.bf16.msra.mxu1 %v6301_v43  ;;  %v6384_v42 = vld [vmem:[#allocation2 + $0x1c8] ss:$16 sps:$4 sm:$0xff]  }
 0x113   :  { %3514 = vmatprep.subr.bf16.mxu0 %v6310_v47  ;;  %3966 = vmatprep.subr.bf16.mxu1 %v6313_v49  ;;  %v6386_v43 = vld [vmem:[#allocation2 + $0x1e8] ss:$16 sps:$4 sm:$0xff]   ;;  %v836_v47 = vrot.slane %v6380_v38, %v6841_v54  ;;  %v850_v49 = vrot.slane %v6382_v39, %v6841_v54  ;;  %v908_v51 = vrot.slane %v6384_v42, %v6841_v54  ;;  %v6416_v38 = vld [vmem:[#allocation5 + $0x724] ss:$16 sps:$4 sm:$0xff]   ;;  %v6414_v42 = vld [vmem:[#allocation5 + $0x720] ss:$16 sps:$4 sm:$0xff]  }
 0x115   :  { %3476 = vmatmul.mubr.bf16.gmra.mrb[28].mxu0 %v1696_v56  ;;  %3928 = vmatmul.mubr.bf16.gmra.mrb[28].mxu1 %v1696_v56  ;;  %v6371_v56 = vld [vmem:[#allocation5 + $0x688] ss:$16 sps:$4 sm:$0xff]   ;;  %v859_v57 = vcombine.high %v836_v47, %v850_v49  ;;  %v858_v2 = vcombine.low %v836_v47, %v850_v49  ;;  %v6430_v47 = vld [vmem:[#allocation5 + $0x744] ss:$16 sps:$4 sm:$0xff]   ;;  %v6433_v49 = vld [vmem:[#allocation5 + $0x74c] ss:$16 sps:$4 sm:$0xff]  }
 0x116   :  { %3515 = vmatpush1.bf16.msra.mxu0 %v6308_v52  ;;  %3967 = vmatpush1.bf16.msra.mxu1 %v6311_v53  ;;  %v922_v52 = vrot.slane %v6386_v43, %v6841_v54  ;;  %v6373_v53 = vld [vmem:[#allocation5 + $0x68c] ss:$16 sps:$4 sm:$0xff]   ;;  %v6417_v43 = vld [vmem:[#allocation5 + $0x728] ss:$16 sps:$4 sm:$0xff]  }
 0x117   :  { %3516 = vmatprep.subr.bf16.mxu0 %v6316_v60  ;;  %3968 = vmatprep.subr.bf16.mxu1 %v6319_v61  ;;  %v6376_v60 = vld [vmem:[#allocation5 + $0x6a4] ss:$16 sps:$4 sm:$0xff]   ;;  %v6379_v61 = vld [vmem:[#allocation5 + $0x6ac] ss:$16 sps:$4 sm:$0xff]  }
 0x118   :  { %3518 = vmatprep.mubr.bf16.mxu0 %v1643_v62  ;;  %3970 = vmatprep.mubr.bf16.mxu1 %v1643_v62  ;;  %v931_v58 = vcombine.high %v908_v51, %v922_v52  ;;  %v6374_v62 = vld [vmem:[#allocation5 + $0x6a0] ss:$16 sps:$4 sm:$0xff]  }
 0x11a   :  { %3517 = vmatpush1.bf16.msra.mxu0 %v6314_v3  ;;  %3969 = vmatpush1.bf16.msra.mxu1 %v6317_v4  ;;  %v1667_v0 = vpack.c.bf16 %v931_v58, %v859_v57  ;;  %v930_v3 = vcombine.low %v908_v51, %v922_v52  ;;  %v6402_v4 = vld [vmem:[#allocation2 + $0x228] ss:$16 sps:$4 sm:$0xff]  }
 0x11b   :  { %3599 = vmatprep.subr.bf16.mxu0 %v6330_v7  ;;  %4051 = vmatprep.subr.bf16.mxu1 %v6333_v8  ;;  %v6390_v7 = vld [vmem:[#allocation5 + $0x6c4] ss:$16 sps:$4 sm:$0xff]   ;;  %v980_v8 = vrot.slane %v6400_v1, %v6841_v54  ;;  %v6442_v51 = vld [vmem:[#allocation2 + $0x328] ss:$16 sps:$4 sm:$0xff]   ;;  %v6434_v1 = vld [vmem:[#allocation5 + $0x760] ss:$16 sps:$4 sm:$0xff]  }
 0x11c   :  { %v6444_v52 = vld [vmem:[#allocation2 + $0x348] ss:$16 sps:$4 sm:$0xff]  }
 0x11d   :  { %3519 = vmatmul.mubr.bf16.vlgmr.msra.gmra.mrb[0].mxu0 %v1642_v13  ;;  %3971 = vmatmul.mubr.bf16.vlgmr.msra.gmra.mrb[0].mxu1 %v1642_v13  ;;  %v1666_v13 = vpack.c.bf16 %v930_v3, %v858_v2  ;;  %v6431_v57 = vld [vmem:[#allocation5 + $0x748] ss:$16 sps:$4 sm:$0xff]  }
 0x11e   :  { %3600 = vmatpush1.bf16.msra.mxu0 %v6328_v9  ;;  %4052 = vmatpush1.bf16.msra.mxu1 %v6331_v10  ;;  %v6393_v9 = vld [vmem:[#allocation5 + $0x6cc] ss:$16 sps:$4 sm:$0xff]   ;;  %v994_v10 = vrot.slane %v6402_v4, %v6841_v54  ;;  %v6437_v2 = vld [vmem:[#allocation5 + $0x768] ss:$16 sps:$4 sm:$0xff]  }
 0x11f   :  { %3601 = vmatprep.subr.bf16.mxu0 %v6336_v14  ;;  %4053 = vmatprep.subr.bf16.mxu1 %v6339_v15  ;;  %v6388_v14 = vld [vmem:[#allocation5 + $0x6c0] ss:$16 sps:$4 sm:$0xff]   ;;  %v6391_v15 = vld [vmem:[#allocation5 + $0x6c8] ss:$16 sps:$4 sm:$0xff]  }
 0x120   :  { %3528 = vmatprep.mubr.bf16.mxu0 %v1651_v20  ;;  %3980 = vmatprep.mubr.bf16.mxu1 %v1651_v20  ;;  %v1003_v16 = vcombine.high %v980_v8, %v994_v10  ;;  %v6394_v20 = vld [vmem:[#allocation5 + $0x6e0] ss:$16 sps:$4 sm:$0xff]   ;;  %v1002_v23 = vcombine.low %v980_v8, %v994_v10  ;;  %v6451_v10 = vld [vmem:[#allocation5 + $0x788] ss:$16 sps:$4 sm:$0xff]  }
 0x122   :  { %3602 = vmatpush1.bf16.msra.mxu0 %v6334_v24  ;;  %4054 = vmatpush1.bf16.msra.mxu1 %v6337_v25  ;;  %v1675_v22 = vpack.c.bf16 %v1075_v17, %v1003_v16  ;;  %v1074_v24 = vcombine.low %v1052_v11, %v1066_v12  ;;  %v6410_v25 = vld [vmem:[#allocation5 + $0x704] ss:$16 sps:$4 sm:$0xff]   ;;  %v6460_v11 = vld [vmem:[#allocation2 + $0x388] ss:$16 sps:$4 sm:$0xff]  }
 0x123   :  { %3603 = vmatprep.subr.bf16.mxu0 %v6350_v29  ;;  %4055 = vmatprep.subr.bf16.mxu1 %v6353_v30  ;;  %v6424_v29 = vld [vmem:[#allocation2 + $0x2c8] ss:$16 sps:$4 sm:$0xff]   ;;  %v6456_v16 = vld [vmem:[#allocation5 + $0x7a4] ss:$16 sps:$4 sm:$0xff]   ;;  %v1412_v17 = vrot.slane %v6460_v11, %v6841_v54 }
 0x124   :  { %v6426_v30 = vld [vmem:[#allocation2 + $0x2e8] ss:$16 sps:$4 sm:$0xff]   ;;  %v1196_v33 = vrot.slane %v6424_v29, %v6841_v54  ;;  %v1674_v34 = vpack.c.bf16 %v1074_v24, %v1002_v23  ;;  %v6513_v11 = vld [vmem:[#allocation7] sm:$0xff]  }
 0x125   :  { %3529 = vmatmul.mubr.bf16.gmra.mrb[4].mxu0 %v1650_v35  ;;  %3981 = vmatmul.mubr.bf16.gmra.mrb[4].mxu1 %v1650_v35  ;;  %v6408_v35 = vld [vmem:[#allocation5 + $0x700] ss:$16 sps:$4 sm:$0xff]   ;;  %v6457_v23 = vld [vmem:[#allocation5 + $0x7a8] ss:$16 sps:$4 sm:$0xff]  }
 0x126   :  { %3604 = vmatpush1.bf16.msra.mxu0 %v6348_v31  ;;  %4056 = vmatpush1.bf16.msra.mxu1 %v6351_v32  ;;  %v1124_v31 = vrot.slane %v6420_v27, %v6841_v54  ;;  %v1138_v32 = vrot.slane %v6422_v28, %v6841_v54  ;;  %v6470_v28 = vld [vmem:[#allocation5 + $0x7c4] ss:$16 sps:$4 sm:$0xff]  }
 0x127   :  { %3605 = vmatprep.subr.bf16.mxu0 %v6356_v36  ;;  %4057 = vmatprep.subr.bf16.mxu1 %v6359_v37  ;;  %v6411_v36 = vld [vmem:[#allocation5 + $0x708] ss:$16 sps:$4 sm:$0xff]   ;;  %v1210_v37 = vrot.slane %v6426_v30, %v6841_v54  ;;  %v6473_v30 = vld [vmem:[#allocation5 + $0x7cc] ss:$16 sps:$4 sm:$0xff]  }
 0x128   :  { %3538 = vmatprep.mubr.bf16.mxu0 %v1659_v40  ;;  %3990 = vmatprep.mubr.bf16.mxu1 %v1659_v40  ;;  %v1147_v39 = vcombine.high %v1124_v31, %v1138_v32  ;;  %v6419_v40 = vld [vmem:[#allocation5 + $0x72c] ss:$16 sps:$4 sm:$0xff]  }
 0x129   :  { %v1219_v41 = vcombine.high %v1196_v33, %v1210_v37  ;;  %v1218_v46 = vcombine.low %v1196_v33, %v1210_v37  ;;  %v6482_v33 = vld [vmem:[#allocation2 + $0x4c] ss:$16 sps:$4 sm:$0xff]  }
 0x12a   :  { %3606 = vmatpush1.bf16.msra.mxu0 %v6354_v44  ;;  %4058 = vmatpush1.bf16.msra.mxu1 %v6357_v45  ;;  %v1146_v45 = vcombine.low %v1124_v31, %v1138_v32  ;;  %v6480_v31 = vld [vmem:[#allocation2 + $0xc] ss:$16 sps:$4 sm:$0xff]  }
 0x12b   :  { %3607 = vmatprep.subr.bf16.mxu0 %v6370_v50  ;;  %4059 = vmatprep.subr.bf16.mxu1 %v6373_v53  ;;  %v1683_v44 = vpack.c.bf16 %v1219_v41, %v1147_v39  ;;  %v6440_v50 = vld [vmem:[#allocation2 + $0x308] ss:$16 sps:$4 sm:$0xff]   ;;  %v6481_v32 = vld [vmem:[#allocation2 + $0x2c] ss:$16 sps:$4 sm:$0xff]   ;;  %v411_v37 = vrot.slane %v6480_v31, %v6841_v54 }
 0x12c   :  { %v6446_v53 = vld [vmem:[#allocation2 + $0x368] ss:$16 sps:$4 sm:$0xff]   ;;  %v1268_v58 = vrot.slane %v6440_v50, %v6841_v54  ;;  %v6485_v39 = vld [vmem:[#allocation2 + $0xac] ss:$16 sps:$4 sm:$0xff]  }
 0x12d   :  { %3539 = vmatmul.mubr.bf16.gmra.mrb[8].mxu0 %v1658_v59  ;;  %3991 = vmatmul.mubr.bf16.gmra.mrb[8].mxu1 %v1658_v59  ;;  %v1282_v59 = vrot.slane %v6442_v51, %v6841_v54  ;;  %v6487_v41 = vld [vmem:[#allocation2 + $0xec] ss:$16 sps:$4 sm:$0xff]   ;;  %v569_v51 = vrot.slane %v6485_v39, %v6841_v54  ;;  %v6521_v39 = vld [vmem:[#allocation7 + $0x10] sm:$0xff]  }
 0x12e   :  { %3608 = vmatpush1.bf16.msra.mxu0 %v6368_v55  ;;  %4060 = vmatpush1.bf16.msra.mxu1 %v6371_v56  ;;  %v1682_v55 = vpack.c.bf16 %v1218_v46, %v1146_v45  ;;  %v6428_v56 = vld [vmem:[#allocation5 + $0x740] ss:$16 sps:$4 sm:$0xff]   ;;  %v6496_v31 = vld [vmem:[#allocation2 + $0x20c] ss:$16 sps:$4 sm:$0xff]  }
 0x12f   :  { %3609 = vmatprep.subr.bf16.mxu0 %v6376_v60  ;;  %4061 = vmatprep.subr.bf16.mxu1 %v6379_v61  ;;  %v6436_v60 = vld [vmem:[#allocation5 + $0x764] ss:$16 sps:$4 sm:$0xff]   ;;  %v1340_v61 = vrot.slane %v6444_v52, %v6841_v54  ;;  %v1290_v4 = vcombine.low %v1268_v58, %v1282_v59 }
 0x130   :  { %3548 = vmatprep.mubr.bf16.mxu0 %v1667_v0  ;;  %4000 = vmatprep.mubr.bf16.mxu1 %v1667_v0  ;;  %v1291_v0 = vcombine.high %v1268_v58, %v1282_v59  ;;  %v6488_v59 = vld [vmem:[#allocation2 + $0x10c] ss:$16 sps:$4 sm:$0xff]  }
 0x132   :  { %3610 = vmatpush1.bf16.msra.mxu0 %v6374_v62  ;;  %4062 = vmatpush1.bf16.msra.mxu1 %v6377_v63  ;;  %v1354_v62 = vrot.slane %v6446_v53, %v6841_v54  ;;  %v6439_v63 = vld [vmem:[#allocation5 + $0x76c] ss:$16 sps:$4 sm:$0xff]  }
 0x133   :  { %3611 = vmatprep.subr.bf16.mxu0 %v6390_v7  ;;  %4063 = vmatprep.subr.bf16.mxu1 %v6393_v9  ;;  %v6453_v7 = vld [vmem:[#allocation5 + $0x78c] ss:$16 sps:$4 sm:$0xff]   ;;  %v6448_v9 = vld [vmem:[#allocation5 + $0x780] ss:$16 sps:$4 sm:$0xff]  }
 0x134   :  { %v1363_v3 = vcombine.high %v1340_v61, %v1354_v62  ;;  %v1362_v5 = vcombine.low %v1340_v61, %v1354_v62  ;;  %v6477_v61 = vld [vmem:[#allocation5 + $0x7e8] ss:$16 sps:$4 sm:$0xff]  }
 0x135   :  { %3549 = vmatmul.mubr.bf16.gmra.mrb[12].mxu0 %v1666_v13  ;;  %4001 = vmatmul.mubr.bf16.gmra.mrb[12].mxu1 %v1666_v13  ;;  %v6462_v13 = vld [vmem:[#allocation2 + $0x3a8] ss:$16 sps:$4 sm:$0xff]  }
 0x136   :  { %3612 = vmatpush1.bf16.msra.mxu0 %v6388_v14  ;;  %4064 = vmatpush1.bf16.msra.mxu1 %v6391_v15  ;;  %v1691_v8 = vpack.c.bf16 %v1363_v3, %v1291_v0  ;;  %v1690_v12 = vpack.c.bf16 %v1362_v5, %v1290_v4  ;;  %v6464_v14 = vld [vmem:[#allocation2 + $0x3c8] ss:$16 sps:$4 sm:$0xff]   ;;  %v699_v4 = vrot.slane %v6488_v59, %v6841_v54  ;;  %v6503_v59 = vld [vmem:[#allocation2 + $0x2ec] ss:$16 sps:$4 sm:$0xff]  }
 0x137   :  { %3613 = vmatprep.subr.bf16.mxu0 %v6396_v18  ;;  %4065 = vmatprep.subr.bf16.mxu1 %v6399_v19  ;;  %v6466_v15 = vld [vmem:[#allocation2 + $0x3e8] ss:$16 sps:$4 sm:$0xff]   ;;  %v6459_v18 = vld [vmem:[#allocation5 + $0x7ac] ss:$16 sps:$4 sm:$0xff]   ;;  %v1426_v19 = vrot.slane %v6462_v13, %v6841_v54 }
 0x138   :  { %3558 = vmatprep.mubr.bf16.mxu0 %v1675_v22  ;;  %4010 = vmatprep.mubr.bf16.mxu1 %v1675_v22  ;;  %v6454_v22 = vld [vmem:[#allocation5 + $0x7a0] ss:$16 sps:$4 sm:$0xff]   ;;  %v6494_v13 = vld [vmem:[#allocation2 + $0x1cc] ss:$16 sps:$4 sm:$0xff]  }
 0x139   :  { %v1435_v24 = vcombine.high %v1412_v17, %v1426_v19 }
 0x13a   :  { %3614 = vmatpush1.bf16.msra.mxu0 %v6394_v20  ;;  %4066 = vmatpush1.bf16.msra.mxu1 %v6397_v21  ;;  %v1484_v20 = vrot.slane %v6464_v14, %v6841_v54  ;;  %v1498_v21 = vrot.slane %v6466_v15, %v6841_v54  ;;  %v6495_v14 = vld [vmem:[#allocation2 + $0x1ec] ss:$16 sps:$4 sm:$0xff]   ;;  %v6514_v15 = vld [vmem:[#allocation7 + $0xc0] sm:$0xff]  }
 0x13b   :  { %3615 = vmatprep.subr.bf16.mxu0 %v6410_v25  ;;  %4067 = vmatprep.subr.bf16.mxu1 %v6413_v26  ;;  %v1434_v26 = vcombine.low %v1412_v17, %v1426_v19 }
 0x13c   :  { %v1507_v25 = vcombine.high %v1484_v20, %v1498_v21  ;;  %v1506_v27 = vcombine.low %v1484_v20, %v1498_v21  ;;  %v6516_v21 = vld [vmem:[#allocation7 + $0x48] sm:$0xff]  }
 0x13d   :  { %3559 = vmatmul.mubr.bf16.gmra.mrb[16].mxu0 %v1674_v34  ;;  %4011 = vmatmul.mubr.bf16.gmra.mrb[16].mxu1 %v1674_v34  ;;  %v6483_v34 = vld [vmem:[#allocation2 + $0x6c] ss:$16 sps:$4 sm:$0xff]  }
 0x13e   :  { %3616 = vmatpush1.bf16.msra.mxu0 %v6408_v35  ;;  %4068 = vmatpush1.bf16.msra.mxu1 %v6411_v36  ;;  %v1699_v29 = vpack.c.bf16 %v1507_v25, %v1435_v24  ;;  %v6484_v35 = vld [vmem:[#allocation2 + $0x8c] ss:$16 sps:$4 sm:$0xff]   ;;  %v1698_v36 = vpack.c.bf16 %v1506_v27, %v1434_v26  ;;  %v497_v45 = vrot.slane %v6483_v34, %v6841_v54 }
 0x13f   :  { %3617 = vmatprep.subr.bf16.mxu0 %v6416_v38  ;;  %4069 = vmatprep.subr.bf16.mxu1 %v6419_v40  ;;  %v425_v38 = vrot.slane %v6481_v32, %v6841_v54  ;;  %v6486_v40 = vld [vmem:[#allocation2 + $0xcc] ss:$16 sps:$4 sm:$0xff]   ;;  %v555_v46 = vrot.slane %v6484_v35, %v6841_v54  ;;  %v6520_v32 = vld [vmem:[#allocation7 + $0x50] sm:$0xff]  }
 0x140   :  { %3568 = vmatprep.mubr.bf16.mxu0 %v1683_v44  ;;  %4020 = vmatprep.mubr.bf16.mxu1 %v1683_v44  ;;  %v483_v44 = vrot.slane %v6482_v33, %v6841_v54  ;;  %v627_v53 = vrot.slane %v6486_v40, %v6841_v54  ;;  %v6497_v33 = vld [vmem:[#allocation2 + $0x22c] ss:$16 sps:$4 sm:$0xff]  }
 0x141   :  { %v429_v50 = vcombine.high %v411_v37, %v425_v38  ;;  %v6498_v34 = vld [vmem:[#allocation2 + $0x24c] ss:$16 sps:$4 sm:$0xff]  }
 0x142   :  { %3618 = vmatpush1.bf16.msra.mxu0 %v6414_v42  ;;  %4070 = vmatpush1.bf16.msra.mxu1 %v6417_v43  ;;  %v6468_v42 = vld [vmem:[#allocation5 + $0x7c0] ss:$16 sps:$4 sm:$0xff]   ;;  %v6471_v43 = vld [vmem:[#allocation5 + $0x7c8] ss:$16 sps:$4 sm:$0xff]   ;;  %v501_v52 = vcombine.high %v483_v44, %v497_v45  ;;  %v500_v58 = vcombine.low %v483_v44, %v497_v45  ;;  %v6499_v35 = vld [vmem:[#allocation2 + $0x26c] ss:$16 sps:$4 sm:$0xff]  }
 0x143   :  { %3619 = vmatprep.subr.bf16.mxu0 %v6430_v47  ;;  %4071 = vmatprep.subr.bf16.mxu1 %v6433_v49  ;;  %v6476_v47 = vld [vmem:[#allocation5 + $0x7e4] ss:$16 sps:$4 sm:$0xff]   ;;  %v6479_v49 = vld [vmem:[#allocation5 + $0x7ec] ss:$16 sps:$4 sm:$0xff]  }
 0x144   :  { %v1645_v62 = vpack.c.bf16 %v501_v52, %v429_v50  ;;  %v6526_v44 = vld [vmem:[#allocation7 + $0xd8] sm:$0xff]   ;;  %v1001_v50 = vrot.slane %v6497_v33, %v6841_v54  ;;  %v1073_v52 = vrot.slane %v6499_v35, %v6841_v54 }
 0x145   :  { %3569 = vmatmul.mubr.bf16.gmra.mrb[20].mxu0 %v1682_v55  ;;  %4021 = vmatmul.mubr.bf16.gmra.mrb[20].mxu1 %v1682_v55  ;;  %v641_v55 = vrot.slane %v6487_v41, %v6841_v54  ;;  %v6510_v33 = vld [vmem:[#allocation2 + $0x3cc] ss:$16 sps:$4 sm:$0xff]  }
 0x146   :  { %3620 = vmatpush1.bf16.msra.mxu0 %v6428_v56  ;;  %4072 = vmatpush1.bf16.msra.mxu1 %v6431_v57  ;;  %v6474_v56 = vld [vmem:[#allocation5 + $0x7e0] ss:$16 sps:$4 sm:$0xff]   ;;  %v428_v57 = vcombine.low %v411_v37, %v425_v38 }
 0x147   :  { %3621 = vmatprep.subr.bf16.mxu0 %v6436_v60  ;;  %4073 = vmatprep.subr.bf16.mxu1 %v6439_v63  ;;  %v6489_v60 = vld [vmem:[#allocation2 + $0x12c] ss:$16 sps:$4 sm:$0xff]   ;;  %v573_v63 = vcombine.high %v555_v46, %v569_v51  ;;  %v645_v0 = vcombine.high %v627_v53, %v641_v55  ;;  %v644_v17 = vcombine.low %v627_v53, %v641_v55 }
 0x148   :  { %3578 = vmatprep.mubr.bf16.mxu0 %v1691_v8  ;;  %4030 = vmatprep.mubr.bf16.mxu1 %v1691_v8  ;;  %v1644_v3 = vpack.c.bf16 %v500_v58, %v428_v57  ;;  %v713_v5 = vrot.slane %v6489_v60, %v6841_v54  ;;  %v6527_v53 = vld [vmem:[#allocation7 + $0x98] sm:$0xff]   ;;  %v6530_v60 = vld [vmem:[#allocation7 + $0xe0] sm:$0xff]  }
 0x149   :  { %v6500_v55 = vld [vmem:[#allocation2 + $0x28c] ss:$16 sps:$4 sm:$0xff]  }
 0x14a   :  { %3622 = vmatpush1.bf16.msra.mxu0 %v6434_v1  ;;  %4074 = vmatpush1.bf16.msra.mxu1 %v6437_v2  ;;  %v6490_v1 = vld [vmem:[#allocation2 + $0x14c] ss:$16 sps:$4 sm:$0xff]   ;;  %v717_v19 = vcombine.high %v699_v4, %v713_v5  ;;  %v716_v37 = vcombine.low %v699_v4, %v713_v5 }
 0x14b   :  { %3623 = vmatprep.subr.bf16.mxu0 %v6450_v6  ;;  %4075 = vmatprep.subr.bf16.mxu1 %v6453_v7  ;;  %v6491_v2 = vld [vmem:[#allocation2 + $0x16c] ss:$16 sps:$4 sm:$0xff]   ;;  %v1653_v6 = vpack.c.bf16 %v645_v0, %v573_v63  ;;  %v771_v7 = vrot.slane %v6490_v1, %v6841_v54  ;;  %v6529_v63 = vld [vmem:[#allocation7 + $0x20] sm:$0xff]  }
 0x14c   :  { %v785_v8 = vrot.slane %v6491_v2, %v6841_v54  ;;  %v6501_v57 = vld [vmem:[#allocation2 + $0x2ac] ss:$16 sps:$4 sm:$0xff]   ;;  %v6531_v2 = vld [vmem:[#allocation7 + $0xa0] sm:$0xff]  }
 0x14d   :  { %3579 = vmatmul.mubr.bf16.gmra.mrb[24].mxu0 %v1690_v12  ;;  %4031 = vmatmul.mubr.bf16.gmra.mrb[24].mxu1 %v1690_v12  ;;  %v6493_v12 = vld [vmem:[#allocation2 + $0x1ac] ss:$16 sps:$4 sm:$0xff]  }
 0x14e   :  { %3624 = vmatpush1.bf16.msra.mxu0 %v6448_v9  ;;  %4076 = vmatpush1.bf16.msra.mxu1 %v6451_v10  ;;  %v6512_v9 = vld [vmem:[#allocation7 + $0x40] sm:$0xff]   ;;  %v6492_v10 = vld [vmem:[#allocation2 + $0x18c] ss:$16 sps:$4 sm:$0xff]   ;;  %v789_v20 = vcombine.high %v771_v7, %v785_v8  ;;  %v6959_v27 = vrot.slane %v6493_v12, %v6841_v54  ;;  %v788_v38 = vcombine.low %v771_v7, %v785_v8 }
 0x14f   :  { %3625 = vmatprep.subr.bf16.mxu0 %v6456_v16  ;;  %4077 = vmatprep.subr.bf16.mxu1 %v6459_v18  ;;  %v572_v16 = vcombine.low %v555_v46, %v569_v51  ;;  %v6515_v18 = vld [vmem:[#allocation7 + $0x80] sm:$0xff]   ;;  %v6956_v25 = vrot.slane %v6492_v10, %v6841_v54  ;;  %v6966_v46 = vrot.slane %v6496_v31, %v6841_v54  ;;  %v6502_v58 = vld [vmem:[#allocation2 + $0x2cc] ss:$16 sps:$4 sm:$0xff]  }
 0x150   :  { %3588 = vmatprep.mubr.bf16.mxu0 %v1699_v29  ;;  %4040 = vmatprep.mubr.bf16.mxu1 %v1699_v29  ;;  %v1661_v26 = vpack.c.bf16 %v789_v20, %v717_v19  ;;  %v929_v29 = vrot.slane %v6495_v14, %v6841_v54  ;;  %v1660_v45 = vpack.c.bf16 %v788_v38, %v716_v37  ;;  %v6534_v4 = vld [vmem:[#allocation7 + $0xe8] sm:$0xff]   ;;  %v6536_v14 = vld [vmem:[#allocation7 + $0x70] sm:$0xff]  }
 0x151   :  { %v1652_v24 = vpack.c.bf16 %v644_v17, %v572_v16  ;;  %v861_v40 = vcombine.high %v6956_v25, %v6959_v27  ;;  %v1059_v51 = vrot.slane %v6498_v34, %v6841_v54  ;;  %v1005_v0 = vcombine.high %v6966_v46, %v1001_v50  ;;  %v6533_v7 = vld [vmem:[#allocation7 + $0x28] sm:$0xff]  }
 0x152   :  { %3626 = vmatpush1.bf16.msra.mxu0 %v6454_v22  ;;  %4078 = vmatpush1.bf16.msra.mxu1 %v6457_v23  ;;  %v6517_v22 = vld [vmem:[#allocation7 + $0x8] sm:$0xff]   ;;  %v1203_v10 = vrot.slane %v6502_v58, %v6841_v54  ;;  %v1004_v19 = vcombine.low %v6966_v46, %v1001_v50  ;;  %v6543_v58 = vld [vmem:[#allocation7 + $0xb8] sm:$0xff]  }
 0x153   :  { %3627 = vmatprep.subr.bf16.mxu0 %v6470_v28  ;;  %4079 = vmatprep.subr.bf16.mxu1 %v6473_v30  ;;  %v6518_v23 = vld [vmem:[#allocation7 + $0xc8] sm:$0xff]   ;;  %v915_v28 = vrot.slane %v6494_v13, %v6841_v54  ;;  %v1077_v1 = vcombine.high %v1059_v51, %v1073_v52  ;;  %v1076_v20 = vcombine.low %v1059_v51, %v1073_v52 }
 0x154   :  { %v6519_v30 = vld [vmem:[#allocation7 + $0x88] sm:$0xff]  }
 0x155   :  { %3589 = vmatmul.mubr.bf16.gmra.mrb[28].mxu0 %v1698_v36  ;;  %4041 = vmatmul.mubr.bf16.gmra.mrb[28].mxu1 %v1698_v36  ;;  %v6522_v36 = vld [vmem:[#allocation7 + $0xd0] sm:$0xff]   ;;  %v933_v41 = vcombine.high %v915_v28, %v929_v29  ;;  %v1677_v8 = vpack.c.bf16 %v1077_v1, %v1005_v0  ;;  %v6535_v12 = vld [vmem:[#allocation7 + $0xa8] sm:$0xff]   ;;  %v1974_v0 = vsub.s32 3, %v6838_v48 }
 0x156   :  { %3628 = vmatpush1.bf16.msra.mxu0 %v6468_v42  ;;  %4080 = vmatpush1.bf16.msra.mxu1 %v6471_v43  ;;  %v6524_v42 = vld [vmem:[#allocation7 + $0x58] sm:$0xff]   ;;  %v6523_v43 = vld [vmem:[#allocation7 + $0x90] sm:$0xff]  }
 0x157   :  { %3629 = vmatprep.subr.bf16.mxu0 %v6476_v47  ;;  %4081 = vmatprep.subr.bf16.mxu1 %v6479_v49  ;;  %v6525_v47 = vld [vmem:[#allocation7 + $0x18] sm:$0xff]   ;;  %v1669_v49 = vpack.c.bf16 %v933_v41, %v861_v40 }
 0x158   :  { %3631 = vmatprep.mubr.bf16.mxu0 %v1645_v62  ;;  %4083 = vmatprep.mubr.bf16.mxu1 %v1645_v62  ;;  %v932_v62 = vcombine.low %v915_v28, %v929_v29  ;;  %v6504_v13 = vld [vmem:[#allocation2 + $0x30c] ss:$16 sps:$4 sm:$0xff]  }
 0x159   :  { %v6506_v16 = vld [vmem:[#allocation2 + $0x34c] ss:$16 sps:$4 sm:$0xff]  }
 0x15a   :  { %3630 = vmatpush1.bf16.msra.mxu0 %v6474_v56  ;;  %4082 = vmatpush1.bf16.msra.mxu1 %v6477_v61  ;;  %v6528_v56 = vld [vmem:[#allocation7 + $0x60] sm:$0xff]   ;;  %v860_v61 = vcombine.low %v6956_v25, %v6959_v27  ;;  %v6507_v17 = vld [vmem:[#allocation2 + $0x36c] ss:$16 sps:$4 sm:$0xff]   ;;  %v1676_v25 = vpack.c.bf16 %v1076_v20, %v1004_v19  ;;  %v1347_v29 = vrot.slane %v6506_v16, %v6841_v54 }
 0x15b   :  { %5443 = vmatprep.subr.bf16.mxu0 %v6512_v9  ;;  %5507 = vmatprep.subr.bf16.mxu1 %v6514_v15  ;;  %v1145_v9 = vrot.slane %v6501_v57, %v6841_v54  ;;  %v6505_v15 = vld [vmem:[#allocation2 + $0x32c] ss:$16 sps:$4 sm:$0xff]  }
 0x15c   :  { %v1668_v5 = vpack.c.bf16 %v932_v62, %v860_v61  ;;  %v1289_v28 = vrot.slane %v6505_v15, %v6841_v54  ;;  %v6508_v31 = vld [vmem:[#allocation2 + $0x38c] ss:$16 sps:$4 sm:$0xff]   ;;  %v1970_v61 = vsub.s32 2, %v6838_v48  ;;  %v1958_v62 = vld [vmem:[%s7107_s2] sm:$0xf] }
 0x15d   :  { %3632 = vmatmul.mubr.bf16.vlgmr.msra.gmra.mrb[0].mxu0 %v1644_v3  ;;  %4084 = vmatmul.mubr.bf16.vlgmr.msra.gmra.mrb[0].mxu1 %v1644_v3  ;;  %v6532_v3 = vld [vmem:[#allocation7 + $0x68] sm:$0xff]   ;;  %v1419_v40 = vrot.slane %v6508_v31, %v6841_v54  ;;  %v6541_v57 = vld [vmem:[#allocation7 + $0x38] sm:$0xff]  }
 0x15e   :  { %3641 = vmatprep.mubr.bf16.mxu0 %v1653_v6  ;;  %4093 = vmatprep.mubr.bf16.mxu1 %v1653_v6  ;;  %v1131_v6 = vrot.slane %v6500_v55, %v6841_v54  ;;  %v6511_v34 = vld [vmem:[#allocation2 + $0x3ec] ss:$16 sps:$4 sm:$0xff]  }
 0x15f   :  { %5444 = vmatpush3.bf16.msra.mxu0 %v6513_v11  ;;  %5508 = vmatpush3.bf16.msra.mxu1 %v6515_v18  ;;  %v1217_v11 = vrot.slane %v6503_v59, %v6841_v54  ;;  %v6538_v18 = vld [vmem:[#allocation7 + $0xf0] sm:$0xff]   ;;  %v6544_v59 = vld [vmem:[#allocation8] sm:$0xff]  }
 0x160   :  { %5445 = vmatprep.subr.bf16.mxu0 %v6516_v21  ;;  %5509 = vmatprep.subr.bf16.mxu1 %v6518_v23  ;;  %v6537_v21 = vld [vmem:[#allocation7 + $0x30] sm:$0xff]   ;;  %v1148_v35 = vcombine.low %v1131_v6, %v1145_v9 }
 0x161   :  { %v1221_v23 = vcombine.high %v1203_v10, %v1217_v11 }
 0x163   :  { %5446 = vmatpush3.bf16.msra.mxu0 %v6517_v22  ;;  %5510 = vmatpush3.bf16.msra.mxu1 %v6519_v30  ;;  %v1149_v22 = vcombine.high %v1131_v6, %v1145_v9  ;;  %v1361_v30 = vrot.slane %v6507_v17, %v6841_v54 }
 0x164   :  { %5447 = vmatprep.subr.bf16.mxu0 %v6520_v32  ;;  %5511 = vmatprep.subr.bf16.mxu1 %v6522_v36  ;;  %v6509_v32 = vld [vmem:[#allocation2 + $0x3ac] ss:$16 sps:$4 sm:$0xff]   ;;  %v1220_v36 = vcombine.low %v1203_v10, %v1217_v11 }
 0x165   :  { %3642 = vmatmul.mubr.bf16.gmra.mrb[4].mxu0 %v1652_v24  ;;  %4094 = vmatmul.mubr.bf16.gmra.mrb[4].mxu1 %v1652_v24  ;;  %v6539_v24 = vld [vmem:[#allocation7 + $0xb0] sm:$0xff]   ;;  %v1685_v27 = vpack.c.bf16 %v1221_v23, %v1149_v22  ;;  %v1365_v38 = vcombine.high %v1347_v29, %v1361_v30  ;;  %v1364_v46 = vcombine.low %v1347_v29, %v1361_v30 }
 0x166   :  { %3651 = vmatprep.mubr.bf16.mxu0 %v1661_v26  ;;  %4103 = vmatprep.mubr.bf16.mxu1 %v1661_v26  ;;  %v1275_v26 = vrot.slane %v6504_v13, %v6841_v54 }
 0x167   :  { %5448 = vmatpush3.bf16.msra.mxu0 %v6521_v39  ;;  %5512 = vmatpush3.bf16.msra.mxu1 %v6523_v43  ;;  %v1684_v39 = vpack.c.bf16 %v1220_v36, %v1148_v35  ;;  %v1491_v43 = vrot.slane %v6510_v33, %v6841_v54 }
 0x168   :  { %5449 = vmatprep.subr.bf16.mxu0 %v6524_v42  ;;  %5513 = vmatprep.subr.bf16.mxu1 %v6526_v44  ;;  %v1293_v37 = vcombine.high %v1275_v26, %v1289_v28  ;;  %v1433_v42 = vrot.slane %v6509_v32, %v6841_v54  ;;  %v1505_v44 = vrot.slane %v6511_v34, %v6841_v54  ;;  %v6540_v54 = vld [vmem:[#allocation7 + $0x78] sm:$0xff]  }
 0x16a   :  { %v1693_v41 = vpack.c.bf16 %v1365_v38, %v1293_v37  ;;  %v1436_v52 = vcombine.low %v1419_v40, %v1433_v42  ;;  %v6545_v38 = vld [vmem:[#allocation8 + $0x8] sm:$0xff]  }
 0x16b   :  { %5450 = vmatpush3.bf16.msra.mxu0 %v6525_v47  ;;  %5514 = vmatpush3.bf16.msra.mxu1 %v6527_v53  ;;  %v1437_v47 = vcombine.high %v1419_v40, %v1433_v42  ;;  %v1508_v53 = vcombine.low %v1491_v43, %v1505_v44 }
 0x16c   :  { %5451 = vmatprep.subr.bf16.mxu0 %v6528_v56  ;;  %5515 = vmatprep.subr.bf16.mxu1 %v6530_v60  ;;  %v6542_v56 = vld [vmem:[#allocation7 + $0xf8] sm:$0xff]   ;;  %v1962_v60 = vsub.s32 0, %v6838_v48 }
 0x16d   :  { %3652 = vmatmul.mubr.bf16.gmra.mrb[8].mxu0 %v1660_v45  ;;  %4104 = vmatmul.mubr.bf16.gmra.mrb[8].mxu1 %v1660_v45  ;;  %v1292_v45 = vcombine.low %v1275_v26, %v1289_v28  ;;  %v1700_v55 = vpack.c.bf16 %v1508_v53, %v1436_v52 }
 0x16e   :  { %3661 = vmatprep.mubr.bf16.mxu0 %v1669_v49  ;;  %4113 = vmatprep.mubr.bf16.mxu1 %v1669_v49  ;;  %v1509_v49 = vcombine.high %v1491_v43, %v1505_v44  ;;  %v6994_v1 = vrot.slane %v1958_v62, %v1962_v60 }
 0x16f   :  { %5452 = vmatpush3.bf16.msra.mxu0 %v6529_v63  ;;  %5516 = vmatpush3.bf16.msra.mxu1 %v6531_v2  ;;  %v1692_v50 = vpack.c.bf16 %v1364_v46, %v1292_v45  ;;  %v1966_v63 = vsub.s32 1, %v6838_v48  ;;  %v6996_v2 = vrot.slane %v1958_v62, %v1970_v61 }
 0x170   :  { %5453 = vmatprep.subr.bf16.mxu0 %v6532_v3  ;;  %5517 = vmatprep.subr.bf16.mxu1 %v6534_v4  ;;  %v1701_v51 = vpack.c.bf16 %v1509_v49, %v1437_v47  ;;  %v7000_v4 = vrot.slane %v1958_v62, %v1974_v0 }
 0x171   :  { %v6998_v3 = vrot.slane %v1958_v62, %v1966_v63 }
 0x173   :  { %5454 = vmatpush3.bf16.msra.mxu0 %v6533_v7  ;;  %5518 = vmatpush3.bf16.msra.mxu1 %v6535_v12 }
 0x174   :  { %5455 = vmatprep.subr.bf16.mxu0 %v6536_v14  ;;  %5519 = vmatprep.subr.bf16.mxu1 %v6538_v18 }
 0x175   :  { %3662 = vmatmul.mubr.bf16.gmra.mrb[12].mxu0 %v1668_v5  ;;  %4114 = vmatmul.mubr.bf16.gmra.mrb[12].mxu1 %v1668_v5 }
 0x176   :  { %3671 = vmatprep.mubr.bf16.mxu0 %v1677_v8  ;;  %4123 = vmatprep.mubr.bf16.mxu1 %v1677_v8 }
 0x177   :  { %5456 = vmatpush3.bf16.msra.mxu0 %v6537_v21  ;;  %5520 = vmatpush3.bf16.msra.mxu1 %v6539_v24 }
 0x178   :  { %5457 = vmatprep.subr.bf16.mxu0 %v6540_v54  ;;  %5521 = vmatprep.subr.bf16.mxu1 %v6542_v56 }
 0x17b   :  { %5458 = vmatpush3.bf16.msra.mxu0 %v6541_v57  ;;  %5522 = vmatpush3.bf16.msra.mxu1 %v6543_v58 }
 0x17c   :  { %5603 = vmatprep.subr.bf16.mxu0 %v6544_v59 }
 0x17d   :  { %3672 = vmatmul.mubr.bf16.gmra.mrb[16].mxu0 %v1676_v25  ;;  %4124 = vmatmul.mubr.bf16.gmra.mrb[16].mxu1 %v1676_v25 }
 0x17e   :  { %3681 = vmatprep.mubr.bf16.mxu0 %v1685_v27  ;;  %4133 = vmatprep.mubr.bf16.mxu1 %v1685_v27 }
 0x185   :  { %3682 = vmatmul.mubr.bf16.gmra.mrb[20].mxu0 %v1684_v39  ;;  %4134 = vmatmul.mubr.bf16.gmra.mrb[20].mxu1 %v1684_v39 }
 0x186   :  { %3691 = vmatprep.mubr.bf16.mxu0 %v1693_v41  ;;  %4143 = vmatprep.mubr.bf16.mxu1 %v1693_v41 }
 0x18d   :  { %3692 = vmatmul.mubr.bf16.gmra.mrb[24].mxu0 %v1692_v50  ;;  %4144 = vmatmul.mubr.bf16.gmra.mrb[24].mxu1 %v1692_v50 }
 0x18e   :  { %3701 = vmatprep.mubr.bf16.mxu0 %v1701_v51  ;;  %4153 = vmatprep.mubr.bf16.mxu1 %v1701_v51 }
 0x195   :  { %3702 = vmatmul.mubr.bf16.gmra.mrb[28].mxu0 %v1700_v55  ;;  %4154 = vmatmul.mubr.bf16.gmra.mrb[28].mxu1 %v1700_v55  ;;  %v6546_v55 = vld [vmem:[#allocation8 + $0x10] sm:$0xff]  }
 0x230   :  { %v3633_v5 = vpop.f32.mrb[0].mxu0  ;;  %v4085_v6 = vpop.f32.mrb[0].mxu1 }
 0x231   :  { %v5667_v7 = vadd.f32 %v3633_v5, %v6994_v1  ;;  %v5699_v8 = vadd.f32 %v4085_v6, %v6996_v2  ;;  %v3635_v9 = vpop.f32.mrb[1].mxu0  ;;  %v4087_v10 = vpop.f32.mrb[1].mxu1 }
 0x232   :  { %v5668_v11 = vadd.f32 %v3635_v9, %v6998_v3  ;;  %v5700_v48 = vadd.f32 %v4087_v10, %v7000_v4  ;;  %v3637_v12 = vpop.f32.mrb[2].mxu0  ;;  %v4089_v13 = vpop.f32.mrb[2].mxu1 }
 0x233   :  { %v5669_v14 = vadd.f32 %v3637_v12, %v6994_v1  ;;  %v5701_v15 = vadd.f32 %v4089_v13, %v6996_v2  ;;  %v3639_v16 = vpop.f32.mrb[3].mxu0  ;;  %v4091_v17 = vpop.f32.mrb[3].mxu1  ;;  %v4164_v20 = vmax.f32 %v5667_v7, 0.0  ;;  %v4166_v21 = vmax.f32 %v5699_v8, 0.0 }
 0x234   :  { %v5670_v18 = vadd.f32 %v3639_v16, %v6998_v3  ;;  %v5702_v19 = vadd.f32 %v4091_v17, %v7000_v4  ;;  %v4165_v24 = vmax.f32 %v5668_v11, 0.0  ;;  %v4167_v25 = vmax.f32 %v5700_v48, 0.0 }
 0x235   :  { %v4168_v22 = vmax.f32 %v5669_v14, 0.0  ;;  %v4170_v23 = vmax.f32 %v5701_v15, 0.0 }
 0x236   :  { %v4169_v26 = vmax.f32 %v5670_v18, 0.0  ;;  %v4171_v27 = vmax.f32 %v5702_v19, 0.0 }
 0x237   :  { %v4228_v28 = vpack.c.bf16 %v4168_v22, %v4164_v20  ;;  %v4230_v29 = vpack.c.bf16 %v4170_v23, %v4166_v21 }
 0x238   :  { %v4229_v30 = vpack.c.bf16 %v4169_v26, %v4165_v24  ;;  %v4231_v31 = vpack.c.bf16 %v4171_v27, %v4167_v25  ;;  %v3643_v32 = vpop.f32.mrb[4].mxu0  ;;  %v4095_v33 = vpop.f32.mrb[4].mxu1 }
 0x239   :  { %v5671_v34 = vadd.f32 %v3643_v32, %v6994_v1  ;;  %v5703_v35 = vadd.f32 %v4095_v33, %v6996_v2  ;;  %v3645_v36 = vpop.f32.mrb[5].mxu0  ;;  %v4097_v37 = vpop.f32.mrb[5].mxu1 }
 0x23a   :  { %v5672_v39 = vadd.f32 %v3645_v36, %v6998_v3  ;;  %v5704_v40 = vadd.f32 %v4097_v37, %v7000_v4  ;;  %v3647_v41 = vpop.f32.mrb[6].mxu0  ;;  %v4099_v42 = vpop.f32.mrb[6].mxu1  ;;  %4555 = vmatprep.mubr.bf16.mxu0 %v4229_v30  ;;  %4652 = vmatprep.mubr.bf16.mxu1 %v4231_v31 }
 0x23b   :  { %v5673_v43 = vadd.f32 %v3647_v41, %v6994_v1  ;;  %v5705_v44 = vadd.f32 %v4099_v42, %v6996_v2  ;;  %v3649_v45 = vpop.f32.mrb[7].mxu0  ;;  %v4101_v46 = vpop.f32.mrb[7].mxu1  ;;  %4556 = vmatmul.mubr.bf16.vlgmr.msra.gmra.mrb[32].mxu0 %v4228_v28  ;;  %4653 = vmatmul.mubr.bf16.vlgmr.msra.gmra.mrb[32].mxu1 %v4230_v29  ;;  %v4172_v50 = vmax.f32 %v5671_v34, 0.0  ;;  %v4174_v51 = vmax.f32 %v5703_v35, 0.0 }
 0x23c   :  { %v5674_v47 = vadd.f32 %v3649_v45, %v6998_v3  ;;  %v5706_v49 = vadd.f32 %v4101_v46, %v7000_v4  ;;  %5604 = vmatpush3.bf16.msra.mxu0 %v6544_v59  ;;  %v4173_v54 = vmax.f32 %v5672_v39, 0.0  ;;  %v4175_v56 = vmax.f32 %v5704_v40, 0.0 }
 0x23d   :  { %v4176_v52 = vmax.f32 %v5673_v43, 0.0  ;;  %v4178_v53 = vmax.f32 %v5705_v44, 0.0  ;;  %5605 = vmatprep.subr.bf16.mxu0 %v6545_v38 }
 0x23e   :  { %v4177_v57 = vmax.f32 %v5674_v47, 0.0  ;;  %v4179_v58 = vmax.f32 %v5706_v49, 0.0 }
 0x23f   :  { %v4232_v60 = vpack.c.bf16 %v4176_v52, %v4172_v50  ;;  %v4234_v61 = vpack.c.bf16 %v4178_v53, %v4174_v51 }
 0x240   :  { %v4233_v62 = vpack.c.bf16 %v4177_v57, %v4173_v54  ;;  %v4235_v63 = vpack.c.bf16 %v4179_v58, %v4175_v56  ;;  %v3653_v0 = vpop.f32.mrb[8].mxu0  ;;  %v4105_v5 = vpop.f32.mrb[8].mxu1  ;;  %5606 = vmatpush3.bf16.msra.mxu0 %v6545_v38 }
 0x241   :  { %v5675_v6 = vadd.f32 %v3653_v0, %v6994_v1  ;;  %v5707_v59 = vadd.f32 %v4105_v5, %v6996_v2  ;;  %v3655_v7 = vpop.f32.mrb[9].mxu0  ;;  %v4107_v8 = vpop.f32.mrb[9].mxu1  ;;  %5607 = vmatprep.subr.bf16.mxu0 %v6546_v55 }
 0x242   :  { %v5676_v9 = vadd.f32 %v3655_v7, %v6998_v3  ;;  %v5708_v10 = vadd.f32 %v4107_v8, %v7000_v4  ;;  %v3657_v11 = vpop.f32.mrb[10].mxu0  ;;  %v4109_v48 = vpop.f32.mrb[10].mxu1  ;;  %4563 = vmatprep.mubr.bf16.mxu0 %v4233_v62  ;;  %4660 = vmatprep.mubr.bf16.mxu1 %v4235_v63 }
 0x243   :  { %v5677_v12 = vadd.f32 %v3657_v11, %v6994_v1  ;;  %v5709_v13 = vadd.f32 %v4109_v48, %v6996_v2  ;;  %v3659_v14 = vpop.f32.mrb[11].mxu0  ;;  %v4111_v15 = vpop.f32.mrb[11].mxu1  ;;  %4564 = vmatmul.mubr.bf16.gmra.mrb[36].mxu0 %v4232_v60  ;;  %4661 = vmatmul.mubr.bf16.gmra.mrb[36].mxu1 %v4234_v61  ;;  %v4180_v18 = vmax.f32 %v5675_v6, 0.0  ;;  %v4182_v19 = vmax.f32 %v5707_v59, 0.0 }
 0x244   :  { %v5678_v16 = vadd.f32 %v3659_v14, %v6998_v3  ;;  %v5710_v17 = vadd.f32 %v4111_v15, %v7000_v4  ;;  %5608 = vmatpush3.bf16.msra.mxu0 %v6546_v55  ;;  %v4181_v22 = vmax.f32 %v5676_v9, 0.0  ;;  %v4183_v23 = vmax.f32 %v5708_v10, 0.0 }
 0x245   :  { %v4184_v20 = vmax.f32 %v5677_v12, 0.0  ;;  %v4186_v21 = vmax.f32 %v5709_v13, 0.0 }
 0x246   :  { %v4185_v24 = vmax.f32 %v5678_v16, 0.0  ;;  %v4187_v25 = vmax.f32 %v5710_v17, 0.0 }
 0x247   :  { %v4236_v26 = vpack.c.bf16 %v4184_v20, %v4180_v18  ;;  %v4238_v27 = vpack.c.bf16 %v4186_v21, %v4182_v19 }
 0x248   :  { %v4237_v28 = vpack.c.bf16 %v4185_v24, %v4181_v22  ;;  %v4239_v29 = vpack.c.bf16 %v4187_v25, %v4183_v23  ;;  %v3663_v30 = vpop.f32.mrb[12].mxu0  ;;  %v4115_v31 = vpop.f32.mrb[12].mxu1 }
 0x249   :  { %v5679_v32 = vadd.f32 %v3663_v30, %v6994_v1  ;;  %v5711_v33 = vadd.f32 %v4115_v31, %v6996_v2  ;;  %v3665_v34 = vpop.f32.mrb[13].mxu0  ;;  %v4117_v35 = vpop.f32.mrb[13].mxu1 }
 0x24a   :  { %v5680_v36 = vadd.f32 %v3665_v34, %v6998_v3  ;;  %v5712_v37 = vadd.f32 %v4117_v35, %v7000_v4  ;;  %v3667_v38 = vpop.f32.mrb[14].mxu0  ;;  %v4119_v39 = vpop.f32.mrb[14].mxu1  ;;  %4571 = vmatprep.mubr.bf16.mxu0 %v4237_v28  ;;  %4668 = vmatprep.mubr.bf16.mxu1 %v4239_v29 }
 0x24b   :  { %v5681_v40 = vadd.f32 %v3667_v38, %v6994_v1  ;;  %v5713_v41 = vadd.f32 %v4119_v39, %v6996_v2  ;;  %v3669_v42 = vpop.f32.mrb[15].mxu0  ;;  %v4121_v43 = vpop.f32.mrb[15].mxu1  ;;  %4572 = vmatmul.mubr.bf16.gmra.mrb[40].mxu0 %v4236_v26  ;;  %4669 = vmatmul.mubr.bf16.gmra.mrb[40].mxu1 %v4238_v27  ;;  %v4188_v46 = vmax.f32 %v5679_v32, 0.0  ;;  %v4190_v47 = vmax.f32 %v5711_v33, 0.0 }
 0x24c   :  { %v5682_v44 = vadd.f32 %v3669_v42, %v6998_v3  ;;  %v5714_v45 = vadd.f32 %v4121_v43, %v7000_v4  ;;  %v4189_v51 = vmax.f32 %v5680_v36, 0.0  ;;  %v4191_v52 = vmax.f32 %v5712_v37, 0.0 }
 0x24d   :  { %v4192_v49 = vmax.f32 %v5681_v40, 0.0  ;;  %v4194_v50 = vmax.f32 %v5713_v41, 0.0 }
 0x24e   :  { %v4193_v53 = vmax.f32 %v5682_v44, 0.0  ;;  %v4195_v55 = vmax.f32 %v5714_v45, 0.0 }
 0x24f   :  { %v4240_v54 = vpack.c.bf16 %v4192_v49, %v4188_v46  ;;  %v4242_v56 = vpack.c.bf16 %v4194_v50, %v4190_v47 }
 0x250   :  { %v4241_v57 = vpack.c.bf16 %v4193_v53, %v4189_v51  ;;  %v4243_v58 = vpack.c.bf16 %v4195_v55, %v4191_v52  ;;  %v3673_v60 = vpop.f32.mrb[16].mxu0  ;;  %v4125_v61 = vpop.f32.mrb[16].mxu1 }
 0x251   :  { %v5683_v62 = vadd.f32 %v3673_v60, %v6994_v1  ;;  %v5715_v63 = vadd.f32 %v4125_v61, %v6996_v2  ;;  %v3675_v0 = vpop.f32.mrb[17].mxu0  ;;  %v4127_v5 = vpop.f32.mrb[17].mxu1 }
 0x252   :  { %v5684_v6 = vadd.f32 %v3675_v0, %v6998_v3  ;;  %v5716_v59 = vadd.f32 %v4127_v5, %v7000_v4  ;;  %v3677_v7 = vpop.f32.mrb[18].mxu0  ;;  %v4129_v8 = vpop.f32.mrb[18].mxu1  ;;  %4579 = vmatprep.mubr.bf16.mxu0 %v4241_v57  ;;  %4676 = vmatprep.mubr.bf16.mxu1 %v4243_v58 }
 0x253   :  { %v5685_v9 = vadd.f32 %v3677_v7, %v6994_v1  ;;  %v5717_v10 = vadd.f32 %v4129_v8, %v6996_v2  ;;  %v3679_v11 = vpop.f32.mrb[19].mxu0  ;;  %v4131_v48 = vpop.f32.mrb[19].mxu1  ;;  %4580 = vmatmul.mubr.bf16.gmra.mrb[44].mxu0 %v4240_v54  ;;  %4677 = vmatmul.mubr.bf16.gmra.mrb[44].mxu1 %v4242_v56  ;;  %v4196_v14 = vmax.f32 %v5683_v62, 0.0  ;;  %v4198_v15 = vmax.f32 %v5715_v63, 0.0 }
 0x254   :  { %v5686_v12 = vadd.f32 %v3679_v11, %v6998_v3  ;;  %v5718_v13 = vadd.f32 %v4131_v48, %v7000_v4  ;;  %v4197_v18 = vmax.f32 %v5684_v6, 0.0  ;;  %v4199_v19 = vmax.f32 %v5716_v59, 0.0 }
 0x255   :  { %v4200_v16 = vmax.f32 %v5685_v9, 0.0  ;;  %v4202_v17 = vmax.f32 %v5717_v10, 0.0 }
 0x256   :  { %v4201_v20 = vmax.f32 %v5686_v12, 0.0  ;;  %v4203_v21 = vmax.f32 %v5718_v13, 0.0 }
 0x257   :  { %v4244_v22 = vpack.c.bf16 %v4200_v16, %v4196_v14  ;;  %v4246_v23 = vpack.c.bf16 %v4202_v17, %v4198_v15 }
 0x258   :  { %v4245_v24 = vpack.c.bf16 %v4201_v20, %v4197_v18  ;;  %v4247_v25 = vpack.c.bf16 %v4203_v21, %v4199_v19  ;;  %v3683_v26 = vpop.f32.mrb[20].mxu0  ;;  %v4135_v27 = vpop.f32.mrb[20].mxu1 }
 0x259   :  { %v5687_v28 = vadd.f32 %v3683_v26, %v6994_v1  ;;  %v5719_v29 = vadd.f32 %v4135_v27, %v6996_v2  ;;  %v3685_v30 = vpop.f32.mrb[21].mxu0  ;;  %v4137_v31 = vpop.f32.mrb[21].mxu1 }
 0x25a   :  { %v5688_v32 = vadd.f32 %v3685_v30, %v6998_v3  ;;  %v5720_v33 = vadd.f32 %v4137_v31, %v7000_v4  ;;  %v3687_v34 = vpop.f32.mrb[22].mxu0  ;;  %v4139_v35 = vpop.f32.mrb[22].mxu1  ;;  %4587 = vmatprep.mubr.bf16.mxu0 %v4245_v24  ;;  %4684 = vmatprep.mubr.bf16.mxu1 %v4247_v25 }
 0x25b   :  { %v5689_v36 = vadd.f32 %v3687_v34, %v6994_v1  ;;  %v5721_v37 = vadd.f32 %v4139_v35, %v6996_v2  ;;  %v3689_v38 = vpop.f32.mrb[23].mxu0  ;;  %v4141_v39 = vpop.f32.mrb[23].mxu1  ;;  %4588 = vmatmul.mubr.bf16.gmra.mrb[48].mxu0 %v4244_v22  ;;  %4685 = vmatmul.mubr.bf16.gmra.mrb[48].mxu1 %v4246_v23  ;;  %v4204_v42 = vmax.f32 %v5687_v28, 0.0  ;;  %v4206_v43 = vmax.f32 %v5719_v29, 0.0 }
 0x25c   :  { %v5690_v40 = vadd.f32 %v3689_v38, %v6998_v3  ;;  %v5722_v41 = vadd.f32 %v4141_v39, %v7000_v4  ;;  %v4205_v46 = vmax.f32 %v5688_v32, 0.0  ;;  %v4207_v47 = vmax.f32 %v5720_v33, 0.0 }
 0x25d   :  { %v4208_v44 = vmax.f32 %v5689_v36, 0.0  ;;  %v4210_v45 = vmax.f32 %v5721_v37, 0.0 }
 0x25e   :  { %v4209_v49 = vmax.f32 %v5690_v40, 0.0  ;;  %v4211_v50 = vmax.f32 %v5722_v41, 0.0 }
 0x25f   :  { %v4248_v51 = vpack.c.bf16 %v4208_v44, %v4204_v42  ;;  %v4250_v52 = vpack.c.bf16 %v4210_v45, %v4206_v43 }
 0x260   :  { %v4249_v53 = vpack.c.bf16 %v4209_v49, %v4205_v46  ;;  %v4251_v55 = vpack.c.bf16 %v4211_v50, %v4207_v47  ;;  %v3693_v54 = vpop.f32.mrb[24].mxu0  ;;  %v4145_v56 = vpop.f32.mrb[24].mxu1  ;;  %v6547_v49 = vld [vmem:[#allocation8 + $0x18] sm:$0xff]   ;;  %v6550_v50 = vld [vmem:[#allocation8 + $0x30] sm:$0xff]  }
 0x261   :  { %v5691_v57 = vadd.f32 %v3693_v54, %v6994_v1  ;;  %v5723_v58 = vadd.f32 %v4145_v56, %v6996_v2  ;;  %v3695_v60 = vpop.f32.mrb[25].mxu0  ;;  %v4147_v61 = vpop.f32.mrb[25].mxu1  ;;  %5609 = vmatprep.subr.bf16.mxu0 %v6547_v49  ;;  %v6555_v54 = vld [vmem:[#allocation10 + $0x18] sm:$0xff]   ;;  %v6556_v56 = vld [vmem:[#allocation10 + $0x20] sm:$0xff]  }
 0x262   :  { %v5692_v62 = vadd.f32 %v3695_v60, %v6998_v3  ;;  %v5724_v63 = vadd.f32 %v4147_v61, %v7000_v4  ;;  %v3697_v0 = vpop.f32.mrb[26].mxu0  ;;  %v4149_v5 = vpop.f32.mrb[26].mxu1  ;;  %4595 = vmatprep.mubr.bf16.mxu0 %v4249_v53  ;;  %4692 = vmatprep.mubr.bf16.mxu1 %v4251_v55  ;;  %v6553_v53 = vld [vmem:[#allocation10 + $0x8] sm:$0xff]   ;;  %v6554_v55 = vld [vmem:[#allocation10 + $0x10] sm:$0xff]   ;;  %v7069_v61 = vld [vmem:[%s7109_s4] ss:$0 sm:$0xff] }
 0x263   :  { %v5693_v6 = vadd.f32 %v3697_v0, %v6994_v1  ;;  %v5725_v59 = vadd.f32 %v4149_v5, %v6996_v2  ;;  %v3699_v7 = vpop.f32.mrb[27].mxu0  ;;  %v4151_v8 = vpop.f32.mrb[27].mxu1  ;;  %4596 = vmatmul.mubr.bf16.gmra.mrb[52].mxu0 %v4248_v51  ;;  %4693 = vmatmul.mubr.bf16.gmra.mrb[52].mxu1 %v4250_v52  ;;  %v4212_v11 = vmax.f32 %v5691_v57, 0.0  ;;  %v4214_v48 = vmax.f32 %v5723_v58, 0.0  ;;  %v6551_v51 = vld [vmem:[#allocation8 + $0x38] sm:$0xff]   ;;  %v6552_v52 = vld [vmem:[#allocation10] sm:$0xff]  }
 0x264   :  { %v5694_v9 = vadd.f32 %v3699_v7, %v6998_v3  ;;  %v5726_v10 = vadd.f32 %v4151_v8, %v7000_v4  ;;  %v4213_v14 = vmax.f32 %v5692_v62, 0.0  ;;  %v4215_v15 = vmax.f32 %v5724_v63, 0.0  ;;  %5610 = vmatpush3.bf16.msra.mxu0 %v6547_v49  ;;  %5635 = vmatprep.subr.bf16.mxu1 %v6552_v52  ;;  %v6557_v57 = vld [vmem:[#allocation10 + $0x28] sm:$0xff]  }
 0x265   :  { %v4216_v12 = vmax.f32 %v5693_v6, 0.0  ;;  %v4218_v13 = vmax.f32 %v5725_v59, 0.0  ;;  %5636 = vmatpush3.bf16.msra.mxu1 %v6552_v52 }
 0x266   :  { %v4217_v16 = vmax.f32 %v5694_v9, 0.0  ;;  %v4219_v17 = vmax.f32 %v5726_v10, 0.0  ;;  %5637 = vmatprep.subr.bf16.mxu1 %v6553_v53 }
 0x267   :  { %v4252_v18 = vpack.c.bf16 %v4216_v12, %v4212_v11  ;;  %v4254_v19 = vpack.c.bf16 %v4218_v13, %v4214_v48 }
 0x268   :  { %v4253_v20 = vpack.c.bf16 %v4217_v16, %v4213_v14  ;;  %v4255_v21 = vpack.c.bf16 %v4219_v17, %v4215_v15  ;;  %v3703_v22 = vpop.f32.mrb[28].mxu0  ;;  %v4155_v23 = vpop.f32.mrb[28].mxu1 }
 0x269   :  { %v5695_v24 = vadd.f32 %v3703_v22, %v6994_v1  ;;  %v5727_v25 = vadd.f32 %v4155_v23, %v6996_v2  ;;  %v3705_v26 = vpop.f32.mrb[29].mxu0  ;;  %v4157_v27 = vpop.f32.mrb[29].mxu1  ;;  %5638 = vmatpush3.bf16.msra.mxu1 %v6553_v53 }
 0x26a   :  { %v5696_v28 = vadd.f32 %v3705_v26, %v6998_v3  ;;  %v5728_v29 = vadd.f32 %v4157_v27, %v7000_v4  ;;  %v3707_v30 = vpop.f32.mrb[30].mxu0  ;;  %v4159_v31 = vpop.f32.mrb[30].mxu1  ;;  %4603 = vmatprep.mubr.bf16.mxu0 %v4253_v20  ;;  %4700 = vmatprep.mubr.bf16.mxu1 %v4255_v21 }
 0x26b   :  { %v5697_v32 = vadd.f32 %v3707_v30, %v6994_v1  ;;  %v5729_v33 = vadd.f32 %v4159_v31, %v6996_v2  ;;  %v3709_v34 = vpop.f32.mrb[31].mxu0  ;;  %v4161_v35 = vpop.f32.mrb[31].mxu1  ;;  %4604 = vmatmul.mubr.bf16.gmra.mrb[56].mxu0 %v4252_v18  ;;  %4701 = vmatmul.mubr.bf16.gmra.mrb[56].mxu1 %v4254_v19  ;;  %v4220_v38 = vmax.f32 %v5695_v24, 0.0  ;;  %v4222_v39 = vmax.f32 %v5727_v25, 0.0 }
 0x26c   :  { %v5698_v36 = vadd.f32 %v3709_v34, %v6998_v3  ;;  %v5730_v37 = vadd.f32 %v4161_v35, %v7000_v4  ;;  %v4221_v42 = vmax.f32 %v5696_v28, 0.0  ;;  %v4223_v43 = vmax.f32 %v5728_v29, 0.0  ;;  %v6548_v3 = vld [vmem:[#allocation8 + $0x20] sm:$0xff]   ;;  %v6549_v4 = vld [vmem:[#allocation8 + $0x28] sm:$0xff]   ;;  %5639 = vmatprep.subr.bf16.mxu1 %v6554_v55 }
 0x26d   :  { %v4224_v40 = vmax.f32 %v5697_v32, 0.0  ;;  %v4226_v41 = vmax.f32 %v5729_v33, 0.0  ;;  %5611 = vmatprep.subr.bf16.mxu0 %v6548_v3  ;;  %5640 = vmatpush3.bf16.msra.mxu1 %v6554_v55 }
 0x26e   :  { %v4225_v44 = vmax.f32 %v5698_v36, 0.0  ;;  %v4227_v45 = vmax.f32 %v5730_v37, 0.0  ;;  %5612 = vmatpush3.bf16.msra.mxu0 %v6548_v3  ;;  %5641 = vmatprep.subr.bf16.mxu1 %v6555_v54 }
 0x26f   :  { %v4256_v46 = vpack.c.bf16 %v4224_v40, %v4220_v38  ;;  %v4258_v1 = vpack.c.bf16 %v4226_v41, %v4222_v39  ;;  %5613 = vmatprep.subr.bf16.mxu0 %v6549_v4 }
 0x270   :  { %v4257_v47 = vpack.c.bf16 %v4225_v44, %v4221_v42  ;;  %v4259_v2 = vpack.c.bf16 %v4227_v45, %v4223_v43 }
 0x271   :  { %5642 = vmatpush3.bf16.msra.mxu1 %v6555_v54 }
 0x272   :  { %4611 = vmatprep.mubr.bf16.mxu0 %v4257_v47  ;;  %4708 = vmatprep.mubr.bf16.mxu1 %v4259_v2 }
 0x273   :  { %4612 = vmatmul.mubr.bf16.gmra.mrb[60].mxu0 %v4256_v46  ;;  %4709 = vmatmul.mubr.bf16.gmra.mrb[60].mxu1 %v4258_v1 }
 0x274   :  { %5614 = vmatpush3.bf16.msra.mxu0 %v6549_v4  ;;  %5643 = vmatprep.subr.bf16.mxu1 %v6556_v56 }
 0x275   :  { %5615 = vmatprep.subr.bf16.mxu0 %v6550_v50  ;;  %5644 = vmatpush3.bf16.msra.mxu1 %v6556_v56 }
 0x276   :  { %5645 = vmatprep.subr.bf16.mxu1 %v6557_v57 }
 0x278   :  { %5616 = vmatpush3.bf16.msra.mxu0 %v6550_v50 }
 0x279   :  { %5617 = vmatprep.subr.bf16.mxu0 %v6551_v51  ;;  %5646 = vmatpush3.bf16.msra.mxu1 %v6557_v57 }
 0x27c   :  { %5618 = vmatpush3.bf16.msra.mxu0 %v6551_v51 }
 0x30e   :  { %v5459_v58 = vpop.f32.mrb[32].mxu0  ;;  %v5523_v60 = vpop.f32.mrb[32].mxu1 }
 0x30f   :  { %v5460_v62 = vpop.f32.mrb[33].mxu0  ;;  %v5524_v63 = vpop.f32.mrb[33].mxu1 }
 0x310   :  { %v5461_v0 = vadd.f32 %v5460_v62, %v5459_v58  ;;  %v5525_v5 = vadd.f32 %v5524_v63, %v5523_v60  ;;  %v5462_v6 = vpop.f32.mrb[34].mxu0  ;;  %v5526_v59 = vpop.f32.mrb[34].mxu1 }
 0x311   :  { %v5463_v7 = vpop.f32.mrb[35].mxu0  ;;  %v5527_v8 = vpop.f32.mrb[35].mxu1 }
 0x312   :  { %v4558_v9 = vadd.f32 %v5461_v0, %v7069_v61  ;;  %v5464_v10 = vadd.f32 %v5463_v7, %v5462_v6  ;;  %v5528_v11 = vadd.f32 %v5527_v8, %v5526_v59 }
 0x314   :  { %v4655_v48 = vadd.f32 %v5525_v5, %v4558_v9  ;;  %v4561_v12 = vadd.f32 %v5464_v10, %v7069_v61 }
 0x316   :  { %v4658_v13 = vadd.f32 %v5528_v11, %v4561_v12  ;;  %v5465_v14 = vpop.f32.mrb[36].mxu0  ;;  %v5529_v15 = vpop.f32.mrb[36].mxu1  ;;  %v4717_v18 = vmax.f32 %v4655_v48, 0.0 }
 0x317   :  { %v5466_v16 = vpop.f32.mrb[37].mxu0  ;;  %v5530_v17 = vpop.f32.mrb[37].mxu1 }
 0x318   :  { %v4718_v19 = vmax.f32 %v4658_v13, 0.0  ;;  %v5467_v20 = vadd.f32 %v5466_v16, %v5465_v14  ;;  %v5531_v21 = vadd.f32 %v5530_v17, %v5529_v15  ;;  %v5468_v22 = vpop.f32.mrb[38].mxu0  ;;  %v5532_v23 = vpop.f32.mrb[38].mxu1 }
 0x319   :  { %v5469_v24 = vpop.f32.mrb[39].mxu0  ;;  %v5533_v25 = vpop.f32.mrb[39].mxu1 }
 0x31a   :  { %v4566_v26 = vadd.f32 %v5467_v20, %v7069_v61  ;;  %v5470_v27 = vadd.f32 %v5469_v24, %v5468_v22  ;;  %v5534_v28 = vadd.f32 %v5533_v25, %v5532_v23  ;;  %v4733_v29 = vpack.c.bf16 %v4718_v19, %v4717_v18 }
 0x31c   :  { %v4663_v30 = vadd.f32 %v5531_v21, %v4566_v26  ;;  %v4569_v31 = vadd.f32 %v5470_v27, %v7069_v61  ;;  %5619 = vmatprep.mubr.bf16.mxu0 %v4733_v29 }
 0x31e   :  { %v4666_v32 = vadd.f32 %v5534_v28, %v4569_v31  ;;  %v5471_v33 = vpop.f32.mrb[40].mxu0  ;;  %v5535_v34 = vpop.f32.mrb[40].mxu1  ;;  %v4719_v37 = vmax.f32 %v4663_v30, 0.0 }
 0x31f   :  { %v5472_v35 = vpop.f32.mrb[41].mxu0  ;;  %v5536_v36 = vpop.f32.mrb[41].mxu1 }
 0x320   :  { %v4720_v38 = vmax.f32 %v4666_v32, 0.0  ;;  %v5473_v39 = vadd.f32 %v5472_v35, %v5471_v33  ;;  %v5537_v40 = vadd.f32 %v5536_v36, %v5535_v34  ;;  %v5474_v41 = vpop.f32.mrb[42].mxu0  ;;  %v5538_v42 = vpop.f32.mrb[42].mxu1 }
 0x321   :  { %v5475_v43 = vpop.f32.mrb[43].mxu0  ;;  %v5539_v44 = vpop.f32.mrb[43].mxu1 }
 0x322   :  { %v4734_v45 = vpack.c.bf16 %v4720_v38, %v4719_v37  ;;  %v4574_v46 = vadd.f32 %v5473_v39, %v7069_v61  ;;  %v5476_v1 = vadd.f32 %v5475_v43, %v5474_v41  ;;  %v5540_v47 = vadd.f32 %v5539_v44, %v5538_v42 }
 0x324   :  { %v4671_v2 = vadd.f32 %v5537_v40, %v4574_v46  ;;  %v4577_v49 = vadd.f32 %v5476_v1, %v7069_v61  ;;  %5620 = vmatmul.mubr.bf16.vlgmr.msra.gmra.mrb[64].mxu0 %v4734_v45 }
 0x326   :  { %v4674_v3 = vadd.f32 %v5540_v47, %v4577_v49  ;;  %v5477_v4 = vpop.f32.mrb[44].mxu0  ;;  %v5541_v50 = vpop.f32.mrb[44].mxu1  ;;  %v4721_v53 = vmax.f32 %v4671_v2, 0.0 }
 0x327   :  { %v5478_v51 = vpop.f32.mrb[45].mxu0  ;;  %v5542_v52 = vpop.f32.mrb[45].mxu1 }
 0x328   :  { %v4722_v55 = vmax.f32 %v4674_v3, 0.0  ;;  %v5479_v54 = vadd.f32 %v5478_v51, %v5477_v4  ;;  %v5543_v56 = vadd.f32 %v5542_v52, %v5541_v50  ;;  %v5480_v57 = vpop.f32.mrb[46].mxu0  ;;  %v5544_v58 = vpop.f32.mrb[46].mxu1 }
 0x329   :  { %v5481_v60 = vpop.f32.mrb[47].mxu0  ;;  %v5545_v62 = vpop.f32.mrb[47].mxu1 }
 0x32a   :  { %v4582_v63 = vadd.f32 %v5479_v54, %v7069_v61  ;;  %v5482_v0 = vadd.f32 %v5481_v60, %v5480_v57  ;;  %v5546_v5 = vadd.f32 %v5545_v62, %v5544_v58  ;;  %v4735_v6 = vpack.c.bf16 %v4722_v55, %v4721_v53 }
 0x32c   :  { %v4679_v59 = vadd.f32 %v5543_v56, %v4582_v63  ;;  %v4585_v7 = vadd.f32 %v5482_v0, %v7069_v61  ;;  %5623 = vmatprep.mubr.bf16.mxu0 %v4735_v6 }
 0x32e   :  { %v4682_v8 = vadd.f32 %v5546_v5, %v4585_v7  ;;  %v5483_v9 = vpop.f32.mrb[48].mxu0  ;;  %v5547_v10 = vpop.f32.mrb[48].mxu1  ;;  %v4723_v12 = vmax.f32 %v4679_v59, 0.0 }
 0x32f   :  { %v5484_v11 = vpop.f32.mrb[49].mxu0  ;;  %v5548_v48 = vpop.f32.mrb[49].mxu1 }
 0x330   :  { %v4724_v13 = vmax.f32 %v4682_v8, 0.0  ;;  %v5485_v14 = vadd.f32 %v5484_v11, %v5483_v9  ;;  %v5549_v15 = vadd.f32 %v5548_v48, %v5547_v10  ;;  %v5486_v16 = vpop.f32.mrb[50].mxu0  ;;  %v5550_v17 = vpop.f32.mrb[50].mxu1 }
 0x331   :  { %v5487_v18 = vpop.f32.mrb[51].mxu0  ;;  %v5551_v19 = vpop.f32.mrb[51].mxu1 }
 0x332   :  { %v4590_v20 = vadd.f32 %v5485_v14, %v7069_v61  ;;  %v5488_v21 = vadd.f32 %v5487_v18, %v5486_v16  ;;  %v5552_v22 = vadd.f32 %v5551_v19, %v5550_v17  ;;  %v4736_v23 = vpack.c.bf16 %v4724_v13, %v4723_v12 }
 0x334   :  { %v4687_v24 = vadd.f32 %v5549_v15, %v4590_v20  ;;  %v4593_v25 = vadd.f32 %v5488_v21, %v7069_v61  ;;  %5624 = vmatmul.mubr.bf16.gmra.mrb[68].mxu0 %v4736_v23 }
 0x336   :  { %v4690_v26 = vadd.f32 %v5552_v22, %v4593_v25  ;;  %v5489_v27 = vpop.f32.mrb[52].mxu0  ;;  %v5553_v28 = vpop.f32.mrb[52].mxu1  ;;  %v4725_v31 = vmax.f32 %v4687_v24, 0.0  ;;  %v6558_v24 = vld [vmem:[#allocation10 + $0x30] sm:$0xff]   ;;  %v6559_v25 = vld [vmem:[#allocation10 + $0x38] sm:$0xff]  }
 0x337   :  { %v5490_v29 = vpop.f32.mrb[53].mxu0  ;;  %v5554_v30 = vpop.f32.mrb[53].mxu1  ;;  %5647 = vmatprep.subr.bf16.mxu1 %v6558_v24 }
 0x338   :  { %v4726_v32 = vmax.f32 %v4690_v26, 0.0  ;;  %v5491_v33 = vadd.f32 %v5490_v29, %v5489_v27  ;;  %v5555_v34 = vadd.f32 %v5554_v30, %v5553_v28  ;;  %v5492_v35 = vpop.f32.mrb[54].mxu0  ;;  %v5556_v36 = vpop.f32.mrb[54].mxu1  ;;  %5648 = vmatpush3.bf16.msra.mxu1 %v6558_v24  ;;  %v5425_v26 = vld [vmem:[%s7111_s6] ss:$0 sm:$0xff] }
 0x339   :  { %v5493_v37 = vpop.f32.mrb[55].mxu0  ;;  %v5557_v38 = vpop.f32.mrb[55].mxu1  ;;  %5649 = vmatprep.subr.bf16.mxu1 %v6559_v25 }
 0x33a   :  { %v4598_v39 = vadd.f32 %v5491_v33, %v7069_v61  ;;  %v5494_v40 = vadd.f32 %v5493_v37, %v5492_v35  ;;  %v5558_v41 = vadd.f32 %v5557_v38, %v5556_v36  ;;  %v4737_v42 = vpack.c.bf16 %v4726_v32, %v4725_v31 }
 0x33c   :  { %v4695_v43 = vadd.f32 %v5555_v34, %v4598_v39  ;;  %v4601_v44 = vadd.f32 %v5494_v40, %v7069_v61  ;;  %5627 = vmatprep.mubr.bf16.mxu0 %v4737_v42  ;;  %5650 = vmatpush3.bf16.msra.mxu1 %v6559_v25 }
 0x33e   :  { %v4698_v45 = vadd.f32 %v5558_v41, %v4601_v44  ;;  %v5495_v46 = vpop.f32.mrb[56].mxu0  ;;  %v5559_v1 = vpop.f32.mrb[56].mxu1  ;;  %v4727_v49 = vmax.f32 %v4695_v43, 0.0 }
 0x33f   :  { %v5496_v47 = vpop.f32.mrb[57].mxu0  ;;  %v5560_v2 = vpop.f32.mrb[57].mxu1 }
 0x340   :  { %v4728_v3 = vmax.f32 %v4698_v45, 0.0  ;;  %v5497_v4 = vadd.f32 %v5496_v47, %v5495_v46  ;;  %v5561_v50 = vadd.f32 %v5560_v2, %v5559_v1  ;;  %v5498_v51 = vpop.f32.mrb[58].mxu0  ;;  %v5562_v52 = vpop.f32.mrb[58].mxu1 }
 0x341   :  { %v5499_v53 = vpop.f32.mrb[59].mxu0  ;;  %v5563_v55 = vpop.f32.mrb[59].mxu1 }
 0x342   :  { %v4606_v54 = vadd.f32 %v5497_v4, %v7069_v61  ;;  %v5500_v56 = vadd.f32 %v5499_v53, %v5498_v51  ;;  %v5564_v57 = vadd.f32 %v5563_v55, %v5562_v52  ;;  %v4738_v58 = vpack.c.bf16 %v4728_v3, %v4727_v49 }
 0x344   :  { %v4703_v60 = vadd.f32 %v5561_v50, %v4606_v54  ;;  %v4609_v62 = vadd.f32 %v5500_v56, %v7069_v61  ;;  %5628 = vmatmul.mubr.bf16.gmra.mrb[72].mxu0 %v4738_v58 }
 0x346   :  { %v4706_v63 = vadd.f32 %v5564_v57, %v4609_v62  ;;  %v5501_v0 = vpop.f32.mrb[60].mxu0  ;;  %v5565_v5 = vpop.f32.mrb[60].mxu1  ;;  %v4729_v7 = vmax.f32 %v4703_v60, 0.0 }
 0x347   :  { %v5502_v6 = vpop.f32.mrb[61].mxu0  ;;  %v5566_v59 = vpop.f32.mrb[61].mxu1 }
 0x348   :  { %v4730_v8 = vmax.f32 %v4706_v63, 0.0  ;;  %v5503_v9 = vadd.f32 %v5502_v6, %v5501_v0  ;;  %v5567_v10 = vadd.f32 %v5566_v59, %v5565_v5  ;;  %v5504_v11 = vpop.f32.mrb[62].mxu0  ;;  %v5568_v48 = vpop.f32.mrb[62].mxu1 }
 0x349   :  { %v5505_v12 = vpop.f32.mrb[63].mxu0  ;;  %v5569_v13 = vpop.f32.mrb[63].mxu1 }
 0x34a   :  { %v4614_v14 = vadd.f32 %v5503_v9, %v7069_v61  ;;  %v5506_v15 = vadd.f32 %v5505_v12, %v5504_v11  ;;  %v5570_v16 = vadd.f32 %v5569_v13, %v5568_v48  ;;  %v4739_v17 = vpack.c.bf16 %v4730_v8, %v4729_v7 }
 0x34c   :  { %v4711_v18 = vadd.f32 %v5567_v10, %v4614_v14  ;;  %v4617_v19 = vadd.f32 %v5506_v15, %v7069_v61  ;;  %5631 = vmatprep.mubr.bf16.mxu0 %v4739_v17 }
 0x34e   :  { %v4714_v20 = vadd.f32 %v5570_v16, %v4617_v19  ;;  %v4731_v21 = vmax.f32 %v4711_v18, 0.0  ;;  %v5434_v19 = vld [vmem:[%s7113_s8] ss:$0 sm:$0xff] }
 0x350   :  { %v4732_v22 = vmax.f32 %v4714_v20, 0.0 }
 0x352   :  { %v4740_v23 = vpack.c.bf16 %v4732_v22, %v4731_v21 }
 0x354   :  { %5632 = vmatmul.mubr.bf16.gmra.mrb[76].mxu0 %v4740_v23 }
 0x3f7   :  { %v5621_v27 = vpop.f32.mrb[64].mxu0 }
 0x3f8   :  { %v4855_v28 = vadd.f32 %v5621_v27, %v5425_v26  ;;  %v4846_v29 = vpop.f32.mrb[65].mxu0 }
 0x3f9   :  { %v4847_v61 = vadd.f32 %v5425_v26, %v4846_v29  ;;  %v5622_v30 = vpop.f32.mrb[66].mxu0 }
 0x3fa   :  { %v4858_v31 = vadd.f32 %v5622_v30, %v5425_v26  ;;  %v4849_v32 = vpop.f32.mrb[67].mxu0  ;;  %v4911_v34 = vmax.f32 %v4855_v28, 0.0 }
 0x3fb   :  { %v4850_v33 = vadd.f32 %v5425_v26, %v4849_v32  ;;  %v4909_v36 = vmax.f32 %v4847_v61, 0.0 }
 0x3fc   :  { %v4912_v35 = vmax.f32 %v4858_v31, 0.0 }
 0x3fd   :  { %v4910_v37 = vmax.f32 %v4850_v33, 0.0 }
 0x3fe   :  { %v4926_v38 = vpack.c.bf16 %v4912_v35, %v4911_v34 }
 0x3ff   :  { %v4925_v39 = vpack.c.bf16 %v4910_v37, %v4909_v36 }
 0x401   :  { %5651 = vmatprep.mubr.bf16.mxu1 %v4925_v39 }
 0x402   :  { %5652 = vmatmul.mubr.bf16.vlgmr.msra.gmra.mrb[64].mxu1 %v4926_v38 }
 0x407   :  { %v5625_v40 = vpop.f32.mrb[68].mxu0 }
 0x408   :  { %v4871_v41 = vadd.f32 %v5625_v40, %v5425_v26  ;;  %v4862_v42 = vpop.f32.mrb[69].mxu0 }
 0x409   :  { %v4863_v43 = vadd.f32 %v5425_v26, %v4862_v42  ;;  %v5626_v44 = vpop.f32.mrb[70].mxu0 }
 0x40a   :  { %v4874_v45 = vadd.f32 %v5626_v44, %v5425_v26  ;;  %v4865_v46 = vpop.f32.mrb[71].mxu0  ;;  %v4915_v47 = vmax.f32 %v4871_v41, 0.0 }
 0x40b   :  { %v4866_v1 = vadd.f32 %v5425_v26, %v4865_v46  ;;  %v4913_v49 = vmax.f32 %v4863_v43, 0.0 }
 0x40c   :  { %v4916_v2 = vmax.f32 %v4874_v45, 0.0 }
 0x40d   :  { %v4914_v3 = vmax.f32 %v4866_v1, 0.0 }
 0x40e   :  { %v4928_v4 = vpack.c.bf16 %v4916_v2, %v4915_v47 }
 0x40f   :  { %v4927_v50 = vpack.c.bf16 %v4914_v3, %v4913_v49 }
 0x411   :  { %5655 = vmatprep.mubr.bf16.mxu1 %v4927_v50 }
 0x412   :  { %5656 = vmatmul.mubr.bf16.gmra.mrb[68].mxu1 %v4928_v4 }
 0x417   :  { %v5629_v51 = vpop.f32.mrb[72].mxu0 }
 0x418   :  { %v4887_v52 = vadd.f32 %v5629_v51, %v5425_v26  ;;  %v4878_v53 = vpop.f32.mrb[73].mxu0 }
 0x419   :  { %v4879_v55 = vadd.f32 %v5425_v26, %v4878_v53  ;;  %v5630_v54 = vpop.f32.mrb[74].mxu0 }
 0x41a   :  { %v4890_v56 = vadd.f32 %v5630_v54, %v5425_v26  ;;  %v4881_v57 = vpop.f32.mrb[75].mxu0  ;;  %v4919_v60 = vmax.f32 %v4887_v52, 0.0 }
 0x41b   :  { %v4882_v58 = vadd.f32 %v5425_v26, %v4881_v57  ;;  %v4917_v63 = vmax.f32 %v4879_v55, 0.0 }
 0x41c   :  { %v4920_v62 = vmax.f32 %v4890_v56, 0.0 }
 0x41d   :  { %v4918_v0 = vmax.f32 %v4882_v58, 0.0 }
 0x41e   :  { %v4930_v5 = vpack.c.bf16 %v4920_v62, %v4919_v60 }
 0x41f   :  { %v4929_v6 = vpack.c.bf16 %v4918_v0, %v4917_v63 }
 0x421   :  { %5659 = vmatprep.mubr.bf16.mxu1 %v4929_v6 }
 0x422   :  { %5660 = vmatmul.mubr.bf16.gmra.mrb[72].mxu1 %v4930_v5 }
 0x427   :  { %v5633_v59 = vpop.f32.mrb[76].mxu0 }
 0x428   :  { %v4903_v7 = vadd.f32 %v5633_v59, %v5425_v26  ;;  %v4894_v8 = vpop.f32.mrb[77].mxu0 }
 0x429   :  { %v4895_v9 = vadd.f32 %v5425_v26, %v4894_v8  ;;  %v5634_v10 = vpop.f32.mrb[78].mxu0 }
 0x42a   :  { %v4906_v11 = vadd.f32 %v5634_v10, %v5425_v26  ;;  %v4897_v48 = vpop.f32.mrb[79].mxu0  ;;  %v4923_v13 = vmax.f32 %v4903_v7, 0.0 }
 0x42b   :  { %v4898_v12 = vadd.f32 %v5425_v26, %v4897_v48  ;;  %v4921_v15 = vmax.f32 %v4895_v9, 0.0 }
 0x42c   :  { %v4924_v14 = vmax.f32 %v4906_v11, 0.0 }
 0x42d   :  { %v4922_v16 = vmax.f32 %v4898_v12, 0.0 }
 0x42e   :  { %v4932_v17 = vpack.c.bf16 %v4924_v14, %v4923_v13 }
 0x42f   :  { %v4931_v18 = vpack.c.bf16 %v4922_v16, %v4921_v15 }
 0x431   :  { %5663 = vmatprep.mubr.bf16.mxu1 %v4931_v18 }
 0x432   :  { %5664 = vmatmul.mubr.bf16.gmra.mrb[76].mxu1 %v4932_v17 }
 0x4d5   :  { %v5653_v20 = vpop.f32.mrb[64].mxu1 }
 0x4d6   :  { %v5047_v21 = vadd.f32 %v5653_v20, %v5434_v19  ;;  %v5038_v22 = vpop.f32.mrb[65].mxu1 }
 0x4d7   :  { %v5039_v23 = vadd.f32 %v5434_v19, %v5038_v22  ;;  %v5654_v24 = vpop.f32.mrb[66].mxu1 }
 0x4d8   :  { %5103 = vst [vmem:[#allocation11 + $0x10] sm:$0xff] %v5047_v21  ;;  %v5050_v25 = vadd.f32 %v5654_v24, %v5434_v19  ;;  %v5041_v26 = vpop.f32.mrb[67].mxu1 }
 0x4d9   :  { %5101 = vst [vmem:[#allocation11] sm:$0xff] %v5039_v23  ;;  %v5042_v27 = vadd.f32 %v5434_v19, %v5041_v26 }
 0x4da   :  { %5104 = vst [vmem:[#allocation11 + $0x18] sm:$0xff] %v5050_v25 }
 0x4db   :  { %5102 = vst [vmem:[#allocation11 + $0x8] sm:$0xff] %v5042_v27 }
 0x4e5   :  { %v5657_v28 = vpop.f32.mrb[68].mxu1 }
 0x4e6   :  { %v5063_v29 = vadd.f32 %v5657_v28, %v5434_v19  ;;  %v5054_v61 = vpop.f32.mrb[69].mxu1 }
 0x4e7   :  { %v5055_v30 = vadd.f32 %v5434_v19, %v5054_v61  ;;  %v5658_v31 = vpop.f32.mrb[70].mxu1 }
 0x4e8   :  { %5107 = vst [vmem:[#allocation11 + $0x30] sm:$0xff] %v5063_v29  ;;  %v5066_v32 = vadd.f32 %v5658_v31, %v5434_v19  ;;  %v5057_v33 = vpop.f32.mrb[71].mxu1 }
 0x4e9   :  { %5105 = vst [vmem:[#allocation11 + $0x20] sm:$0xff] %v5055_v30  ;;  %v5058_v34 = vadd.f32 %v5434_v19, %v5057_v33 }
 0x4ea   :  { %5108 = vst [vmem:[#allocation11 + $0x38] sm:$0xff] %v5066_v32 }
 0x4eb   :  { %5106 = vst [vmem:[#allocation11 + $0x28] sm:$0xff] %v5058_v34 }
 0x4f5   :  { %v5661_v35 = vpop.f32.mrb[72].mxu1 }
 0x4f6   :  { %v5079_v36 = vadd.f32 %v5661_v35, %v5434_v19  ;;  %v5070_v37 = vpop.f32.mrb[73].mxu1 }
 0x4f7   :  { %v5071_v38 = vadd.f32 %v5434_v19, %v5070_v37  ;;  %v5662_v39 = vpop.f32.mrb[74].mxu1 }
 0x4f8   :  { %5111 = vst [vmem:[#allocation11 + $0x50] sm:$0xff] %v5079_v36  ;;  %v5082_v40 = vadd.f32 %v5662_v39, %v5434_v19  ;;  %v5073_v41 = vpop.f32.mrb[75].mxu1 }
 0x4f9   :  { %5109 = vst [vmem:[#allocation11 + $0x40] sm:$0xff] %v5071_v38  ;;  %v5074_v42 = vadd.f32 %v5434_v19, %v5073_v41 }
 0x4fa   :  { %5112 = vst [vmem:[#allocation11 + $0x58] sm:$0xff] %v5082_v40 }
 0x4fb   :  { %5110 = vst [vmem:[#allocation11 + $0x48] sm:$0xff] %v5074_v42 }
 0x505   :  { %v5665_v43 = vpop.f32.mrb[76].mxu1 }
 0x506   :  { %v5095_v44 = vadd.f32 %v5665_v43, %v5434_v19  ;;  %v5086_v45 = vpop.f32.mrb[77].mxu1 }
 0x507   :  { %v5087_v46 = vadd.f32 %v5434_v19, %v5086_v45  ;;  %v5666_v1 = vpop.f32.mrb[78].mxu1 }
 0x508   :  { %5115 = vst [vmem:[#allocation11 + $0x70] sm:$0xff] %v5095_v44  ;;  %v5098_v47 = vadd.f32 %v5666_v1, %v5434_v19  ;;  %v5089_v2 = vpop.f32.mrb[79].mxu1 }
 0x509   :  { %5113 = vst [vmem:[#allocation11 + $0x60] sm:$0xff] %v5087_v46  ;;  %v5090_v49 = vadd.f32 %v5434_v19, %v5089_v2 }
 0x50a   :  { %5116 = vst [vmem:[#allocation11 + $0x78] sm:$0xff] %v5098_v47 }
 0x50b   :  { %5114 = vst [vmem:[#allocation11 + $0x68] sm:$0xff] %v5090_v49 }
 0x50c   :  { %5121 = vsyncadd [#allocation4], 2016  ;;  %s6710_s8 = smov [#allocation11]  }
 0x50d   :  { %s5122_s13 = sshll.u32 %s6710_s8, 4  ;;  %s5123_s13 = int_to_ptr.vmem [resolvable:$true] %s5122_s13 }
 0x50e   :  { %s6670_s1 = scalar_lea.vmem %s5123_s13, 32  ;;  %s6674_s15 = scalar_lea.vmem %s5123_s13, 2048 }
 0x50f   :  { %p6671_p12 = scmp.ne.s32.totalorder %s5123_s13, %s6670_s1  ;;  %p6675_p13 = scmp.lt.s32.totalorder %s5123_s13, %s5123_s13 }
 0x510   :  { %p6676_p0 = scmp.lt.s32.totalorder %s6674_s15, %s6670_s1 }
 0x512   :  { %p6677_p1 = por %p6676_p0, %p6675_p13 }
 0x514   :  { %p6678_p2 = pnand %p6677_p1, %p6671_p12 }
 0x516   :  { %6681 = shalt.err (!%p6678_p2)
}
 0x517   :  { %s6682_s18 = scalar_lea.hbm %s7114_s9, 32 }
 0x518   :  { %p6683_p3 = scmp.ne.s32.totalorder %s7114_s9, %s6682_s18  ;;  %p6686_p4 = scmp.lt.u32.totalorder %s6682_s18, %s7114_s9 }
 0x51a   :  { %p6688_p5 = pnand %p6686_p4, %p6683_p3 }
 0x51c   :  { %6691 = shalt.err (!%p6688_p5)
}
 0x51d   :  { %s6711_s20 = smov 32   ;;  %s6712_s26 = smov 2  }
 0x51e   :  { %5128 = dma.vmem_to_hbm [thread:$0]  %s5123_s13, 32, %s7114_s9, [#allocation4], %s6711_s20, %s6711_s20, %s6712_s26  }
 0x51f   :  { %6698 = dma.done.wait [#allocation4], 2048  }
 0x520   :  { %6699 = vsyncadd [#allocation4], 4294965248 }
 0x521   :  { %5132 = vsyncpa [#allocation3], 1 }
 0x522   :  { %5133 = vsyncpa [#allocation6], 1 }
 0x523   :  { %5134 = vsyncpa [#allocation9], 1 }
 0x524   :  { %5135 = vsyncpa [#allocation4], 1 }

</bundles_post_ra>
